<compile_context>
chip_gen: v5e
topology: v5e:2x2
jax: 0.10.0
libtpu: 0.0.40
codegen_flags: <defaults>
</compile_context>

<pallas_src>
import math
import jax
import jax.numpy as jnp
from jax.experimental import pallas as pl
from jax.experimental.pallas import tpu as pltpu

NEG_SLOPE = 0.01   # nn.LeakyReLU default
LN_EPS = 1e-5      # nn.LayerNorm default


def policy_mlp_kernel(x_ref, *refs):
    """refs = (w1,b1, [gamma,beta,w,b] * 4, o_ref). Params are resident in VMEM."""
    o_ref = refs[-1]
    p = refs[:-1]

    # First Linear: (TB, D_in) @ (D_in, H0) + (1, H0). bf16 operands, f32 accum.
    xb = x_ref[...].astype(jnp.bfloat16)
    h = jnp.dot(xb, p[0][...], preferred_element_type=jnp.float32) + p[1][...]

    # 4 x (LayerNorm -> LeakyReLU -> Linear)
    idx = 2
    for _ in range(4):
        g = p[idx][...]        # (1, H)   f32
        beta = p[idx + 1][...] # (1, H)   f32
        w = p[idx + 2][...]    # (H, H')  bf16
        b = p[idx + 3][...]    # (1, H')  f32
        idx += 4

        # One-pass LayerNorm statistics (f32): var = E[h^2] - mu^2 (biased, as torch)
        inv_n = 1.0 / h.shape[-1]
        mu = jnp.sum(h, axis=-1, keepdims=True) * inv_n
        ms = jnp.sum(h * h, axis=-1, keepdims=True) * inv_n
        var = jnp.maximum(ms - mu * mu, 0.0)
        hn = (h - mu) * jax.lax.rsqrt(var + LN_EPS) * g + beta

        # LeakyReLU (f32, VPU)
        a = jnp.where(hn >= 0, hn, NEG_SLOPE * hn)

        # Linear on the MXU: bf16 operands, f32 accumulation
        h = jnp.dot(a.astype(jnp.bfloat16), w, preferred_element_type=jnp.float32) + b

    o_ref[...] = h.astype(o_ref.dtype)


def init_policy_net_params(key, input_dim, output_dim,
                           hidden_layer_sizes=(512, 256, 256, 128)):
    """Init mirroring PyTorch defaults:
       Linear: W,b ~ U(-1/sqrt(fan_in), 1/sqrt(fan_in)); LayerNorm: gamma=1, beta=0.
       Weights stored bf16 (matmul operands), biases/gamma/beta stored f32.
       Returns a flat list ordered as consumed by the kernel."""
    layer_sizes = list(hidden_layer_sizes) + [output_dim]
    dims = [input_dim] + layer_sizes
    params = []

    def linear(k, fan_in, fan_out):
        kw, kb = jax.random.split(k)
        bound = 1.0 / math.sqrt(fan_in)
        w = jax.random.uniform(kw, (fan_in, fan_out), jnp.float32, -bound, bound)
        b = jax.random.uniform(kb, (1, fan_out), jnp.float32, -bound, bound)
        return w.astype(jnp.bfloat16), b

    keys = jax.random.split(key, 5)
    w, b = linear(keys[0], dims[0], dims[1])
    params += [w, b]
    for i in range(4):
        h_in, h_out = dims[i + 1], dims[i + 2]
        gamma = jnp.ones((1, h_in), jnp.float32)
        beta = jnp.zeros((1, h_in), jnp.float32)
        w, b = linear(keys[i + 1], h_in, h_out)
        params += [gamma, beta, w, b]
    return params


def policy_net_forward(x, params, *, block_b=128):
    B, D_in = x.shape
    D_out = params[-1].shape[-1]           # true (unpadded) output dim

    # Pad batch to a multiple of the batch tile.
    B_pad = ((B + block_b - 1) // block_b) * block_b
    if B_pad != B:
        x = jnp.pad(x, ((0, B_pad - B), (0, 0)))

    # Lane-pad the final Linear so the output block is a multiple of 128 lanes.
    D_out_pad = ((D_out + 127) // 128) * 128
    w_last, b_last = params[-2], params[-1]
    if D_out_pad != D_out:
        w_last = jnp.pad(w_last, ((0, 0), (0, D_out_pad - D_out)))
        b_last = jnp.pad(b_last, ((0, 0), (0, D_out_pad - D_out)))
    kparams = list(params[:-2]) + [w_last, b_last]

    # x is tiled over the batch; parameters are single-buffered VMEM residents.
    in_specs = [pl.BlockSpec((block_b, D_in), lambda i: (i, 0))]
    in_specs += [pl.BlockSpec(memory_space=pltpu.MemorySpace.VMEM) for _ in kparams]

    out = pl.pallas_call(
        policy_mlp_kernel,
        out_shape=jax.ShapeDtypeStruct((B_pad, D_out_pad), jnp.float32),
        grid_spec=pltpu.PrefetchScalarGridSpec(
            num_scalar_prefetch=0,
            grid=(B_pad // block_b,),
            in_specs=in_specs,
            out_specs=pl.BlockSpec((block_b, D_out_pad), lambda i: (i, 0)),
        ),
        compiler_params=pltpu.CompilerParams(
            dimension_semantics=("parallel",),
            vmem_limit_bytes=32 << 20,
        ),
    )(x, *kparams)

    return out[:B, :D_out]


def policy_net_reference(x, params):
    """Pure-JAX reference of the same forward pass (bf16 matmul operands,
       f32 accumulation/elementwise — same numerics as the kernel)."""
    def mm(a, w, b):
        return jnp.dot(a.astype(jnp.bfloat16), w,
                       preferred_element_type=jnp.float32) + b

    h = mm(x, params[0], params[1])
    idx = 2
    for _ in range(4):
        g, beta, w, b = params[idx], params[idx + 1], params[idx + 2], params[idx + 3]
        idx += 4
        inv_n = 1.0 / h.shape[-1]
        mu = jnp.sum(h, axis=-1, keepdims=True) * inv_n
        ms = jnp.sum(h * h, axis=-1, keepdims=True) * inv_n
        var = jnp.maximum(ms - mu * mu, 0.0)
        hn = (h - mu) * jax.lax.rsqrt(var + LN_EPS) * g + beta
        a = jnp.where(hn >= 0, hn, NEG_SLOPE * hn)
        h = mm(a, w, b)
    return h


if __name__ == "__main__":
    # Deterministic example consistent with PolicyNet(input_dim, output_dim).
    # batch=256 so grid=(2,) with block_b=128 (keeps both v7x TensorCores busy).
    batch = 256
    input_dim = 32
    output_dim = 8
    hidden_layer_sizes = (512, 256, 256, 128)  # module default

    key = jax.random.PRNGKey(0)
    kx, kp = jax.random.split(key)
    x = jax.random.normal(kx, (batch, input_dim), jnp.float32)
    params = init_policy_net_params(kp, input_dim, output_dim, hidden_layer_sizes)

    out = policy_net_forward(x, params, block_b=128)
    out = jax.block_until_ready(out)

    ref = policy_net_reference(x, params)
    assert out.shape == (batch, output_dim)
    assert jnp.allclose(out, ref, rtol=2e-3, atol=2e-3), "mismatch vs reference"

    print("KERNEL_OK")
</pallas_src>

<mosaic_0001>
module attributes {stable_mosaic.version = 11 : i64} {
  func.func @policy_mlp_kernel(%arg0: i32, %arg1: memref<128x32xf32, #tpu.memory_space<vmem>>, %arg2: memref<32x512xbf16, #tpu.memory_space<vmem>>, %arg3: memref<1x512xf32, #tpu.memory_space<vmem>>, %arg4: memref<1x512xf32, #tpu.memory_space<vmem>>, %arg5: memref<1x512xf32, #tpu.memory_space<vmem>>, %arg6: memref<512x256xbf16, #tpu.memory_space<vmem>>, %arg7: memref<1x256xf32, #tpu.memory_space<vmem>>, %arg8: memref<1x256xf32, #tpu.memory_space<vmem>>, %arg9: memref<1x256xf32, #tpu.memory_space<vmem>>, %arg10: memref<256x256xbf16, #tpu.memory_space<vmem>>, %arg11: memref<1x256xf32, #tpu.memory_space<vmem>>, %arg12: memref<1x256xf32, #tpu.memory_space<vmem>>, %arg13: memref<1x256xf32, #tpu.memory_space<vmem>>, %arg14: memref<256x128xbf16, #tpu.memory_space<vmem>>, %arg15: memref<1x128xf32, #tpu.memory_space<vmem>>, %arg16: memref<1x128xf32, #tpu.memory_space<vmem>>, %arg17: memref<1x128xf32, #tpu.memory_space<vmem>>, %arg18: memref<128x128xbf16, #tpu.memory_space<vmem>>, %arg19: memref<1x128xf32, #tpu.memory_space<vmem>>, %arg20: memref<128x128xf32, #tpu.memory_space<vmem>>) attributes {dimension_semantics = [#tpu.dimension_semantics<parallel>], iteration_bounds = array<i64: 2>, scalar_prefetch = 0 : i64, scratch_operands = 0 : i64, tpu.core_type = #tpu.core_type<tc>, window_params = [{transform_indices = @transform_0, window_bounds = array<i64: 128, 32>}, {pipeline_mode = #tpu.pipeline_mode<synchronous>, transform_indices = @transform_1, window_bounds = array<i64: 32, 512>}, {pipeline_mode = #tpu.pipeline_mode<synchronous>, transform_indices = @transform_2, window_bounds = array<i64: 1, 512>}, {pipeline_mode = #tpu.pipeline_mode<synchronous>, transform_indices = @transform_3, window_bounds = array<i64: 1, 512>}, {pipeline_mode = #tpu.pipeline_mode<synchronous>, transform_indices = @transform_4, window_bounds = array<i64: 1, 512>}, {pipeline_mode = #tpu.pipeline_mode<synchronous>, transform_indices = @transform_5, window_bounds = array<i64: 512, 256>}, {pipeline_mode = #tpu.pipeline_mode<synchronous>, transform_indices = @transform_6, window_bounds = array<i64: 1, 256>}, {pipeline_mode = #tpu.pipeline_mode<synchronous>, transform_indices = @transform_7, window_bounds = array<i64: 1, 256>}, {pipeline_mode = #tpu.pipeline_mode<synchronous>, transform_indices = @transform_8, window_bounds = array<i64: 1, 256>}, {pipeline_mode = #tpu.pipeline_mode<synchronous>, transform_indices = @transform_9, window_bounds = array<i64: 256, 256>}, {pipeline_mode = #tpu.pipeline_mode<synchronous>, transform_indices = @transform_10, window_bounds = array<i64: 1, 256>}, {pipeline_mode = #tpu.pipeline_mode<synchronous>, transform_indices = @transform_11, window_bounds = array<i64: 1, 256>}, {pipeline_mode = #tpu.pipeline_mode<synchronous>, transform_indices = @transform_12, window_bounds = array<i64: 1, 256>}, {pipeline_mode = #tpu.pipeline_mode<synchronous>, transform_indices = @transform_13, window_bounds = array<i64: 256, 128>}, {pipeline_mode = #tpu.pipeline_mode<synchronous>, transform_indices = @transform_14, window_bounds = array<i64: 1, 128>}, {pipeline_mode = #tpu.pipeline_mode<synchronous>, transform_indices = @transform_15, window_bounds = array<i64: 1, 128>}, {pipeline_mode = #tpu.pipeline_mode<synchronous>, transform_indices = @transform_16, window_bounds = array<i64: 1, 128>}, {pipeline_mode = #tpu.pipeline_mode<synchronous>, transform_indices = @transform_17, window_bounds = array<i64: 128, 128>}, {pipeline_mode = #tpu.pipeline_mode<synchronous>, transform_indices = @transform_18, window_bounds = array<i64: 1, 128>}, {transform_indices = @transform_19, window_bounds = array<i64: 128, 128>}]} {
    %c0 = arith.constant 0 : index
    %c0_0 = arith.constant 0 : index
    %0 = vector.load %arg1[%c0, %c0_0] : memref<128x32xf32, #tpu.memory_space<vmem>>, vector<128x32xf32>
    %1 = arith.truncf %0 : vector<128x32xf32> to vector<128x32xbf16>
    %c0_1 = arith.constant 0 : index
    %c0_2 = arith.constant 0 : index
    %2 = vector.load %arg2[%c0_1, %c0_2] : memref<32x512xbf16, #tpu.memory_space<vmem>>, vector<32x512xbf16>
    %cst = arith.constant dense<0.000000e+00> : vector<128x512xf32>
    %3 = tpu.matmul %1, %2, %cst {dimension_numbers = #tpu.dot_dimension_numbers<[1], [0], [0], [1], [0, 0, 1, 1], [], []>} : vector<128x32xbf16>, vector<32x512xbf16>, vector<128x512xf32> -> vector<128x512xf32>
    %c0_3 = arith.constant 0 : index
    %c0_4 = arith.constant 0 : index
    %4 = vector.load %arg3[%c0_3, %c0_4] : memref<1x512xf32, #tpu.memory_space<vmem>>, vector<1x512xf32>
    %5 = vector.broadcast %4 : vector<1x512xf32> to vector<128x512xf32>
    %6 = arith.addf %3, %5 : vector<128x512xf32>
    %c0_5 = arith.constant 0 : index
    %c0_6 = arith.constant 0 : index
    %7 = vector.load %arg4[%c0_5, %c0_6] : memref<1x512xf32, #tpu.memory_space<vmem>>, vector<1x512xf32>
    %c0_7 = arith.constant 0 : index
    %c0_8 = arith.constant 0 : index
    %8 = vector.load %arg5[%c0_7, %c0_8] : memref<1x512xf32, #tpu.memory_space<vmem>>, vector<1x512xf32>
    %c0_9 = arith.constant 0 : index
    %c0_10 = arith.constant 0 : index
    %9 = vector.load %arg6[%c0_9, %c0_10] : memref<512x256xbf16, #tpu.memory_space<vmem>>, vector<512x256xbf16>
    %c0_11 = arith.constant 0 : index
    %c0_12 = arith.constant 0 : index
    %10 = vector.load %arg7[%c0_11, %c0_12] : memref<1x256xf32, #tpu.memory_space<vmem>>, vector<1x256xf32>
    %cst_13 = arith.constant dense<0.000000e+00> : vector<128xf32>
    %11 = vector.multi_reduction <add>, %6, %cst_13 [1] : vector<128x512xf32> to vector<128xf32>
    %12 = vector.shape_cast %11 : vector<128xf32> to vector<128x1xf32>
    %cst_14 = arith.constant 0.001953125 : f32
    %13 = vector.broadcast %cst_14 : f32 to vector<128x1xf32>
    %14 = arith.mulf %12, %13 : vector<128x1xf32>
    %15 = arith.mulf %6, %6 : vector<128x512xf32>
    %cst_15 = arith.constant dense<0.000000e+00> : vector<128xf32>
    %16 = vector.multi_reduction <add>, %15, %cst_15 [1] : vector<128x512xf32> to vector<128xf32>
    %17 = vector.shape_cast %16 : vector<128xf32> to vector<128x1xf32>
    %cst_16 = arith.constant 0.001953125 : f32
    %18 = vector.broadcast %cst_16 : f32 to vector<128x1xf32>
    %19 = arith.mulf %17, %18 : vector<128x1xf32>
    %20 = arith.mulf %14, %14 : vector<128x1xf32>
    %21 = arith.subf %19, %20 : vector<128x1xf32>
    %cst_17 = arith.constant 0.000000e+00 : f32
    %22 = vector.broadcast %cst_17 : f32 to vector<128x1xf32>
    %23 = arith.maximumf %21, %22 : vector<128x1xf32>
    %24 = vector.broadcast %14 : vector<128x1xf32> to vector<128x512xf32>
    %25 = arith.subf %6, %24 : vector<128x512xf32>
    %cst_18 = arith.constant 9.99999974E-6 : f32
    %26 = vector.broadcast %cst_18 : f32 to vector<128x1xf32>
    %27 = arith.addf %23, %26 : vector<128x1xf32>
    %28 = math.rsqrt %27 : vector<128x1xf32>
    %29 = vector.broadcast %28 : vector<128x1xf32> to vector<128x512xf32>
    %30 = arith.mulf %25, %29 : vector<128x512xf32>
    %31 = vector.broadcast %7 : vector<1x512xf32> to vector<128x512xf32>
    %32 = arith.mulf %30, %31 : vector<128x512xf32>
    %33 = vector.broadcast %8 : vector<1x512xf32> to vector<128x512xf32>
    %34 = arith.addf %32, %33 : vector<128x512xf32>
    %cst_19 = arith.constant 0.000000e+00 : f32
    %35 = vector.broadcast %cst_19 : f32 to vector<128x512xf32>
    %36 = arith.cmpf oge, %34, %35 : vector<128x512xf32>
    %cst_20 = arith.constant 0.00999999977 : f32
    %37 = vector.broadcast %cst_20 : f32 to vector<128x512xf32>
    %38 = arith.mulf %37, %34 : vector<128x512xf32>
    %39 = arith.select %36, %34, %38 : vector<128x512xi1>, vector<128x512xf32>
    %40 = arith.truncf %39 : vector<128x512xf32> to vector<128x512xbf16>
    %cst_21 = arith.constant dense<0.000000e+00> : vector<128x256xf32>
    %41 = tpu.matmul %40, %9, %cst_21 {dimension_numbers = #tpu.dot_dimension_numbers<[1], [0], [0], [1], [0, 0, 1, 1], [], []>} : vector<128x512xbf16>, vector<512x256xbf16>, vector<128x256xf32> -> vector<128x256xf32>
    %42 = vector.broadcast %10 : vector<1x256xf32> to vector<128x256xf32>
    %43 = arith.addf %41, %42 : vector<128x256xf32>
    %c0_22 = arith.constant 0 : index
    %c0_23 = arith.constant 0 : index
    %44 = vector.load %arg8[%c0_22, %c0_23] : memref<1x256xf32, #tpu.memory_space<vmem>>, vector<1x256xf32>
    %c0_24 = arith.constant 0 : index
    %c0_25 = arith.constant 0 : index
    %45 = vector.load %arg9[%c0_24, %c0_25] : memref<1x256xf32, #tpu.memory_space<vmem>>, vector<1x256xf32>
    %c0_26 = arith.constant 0 : index
    %c0_27 = arith.constant 0 : index
    %46 = vector.load %arg10[%c0_26, %c0_27] : memref<256x256xbf16, #tpu.memory_space<vmem>>, vector<256x256xbf16>
    %c0_28 = arith.constant 0 : index
    %c0_29 = arith.constant 0 : index
    %47 = vector.load %arg11[%c0_28, %c0_29] : memref<1x256xf32, #tpu.memory_space<vmem>>, vector<1x256xf32>
    %cst_30 = arith.constant dense<0.000000e+00> : vector<128xf32>
    %48 = vector.multi_reduction <add>, %43, %cst_30 [1] : vector<128x256xf32> to vector<128xf32>
    %49 = vector.shape_cast %48 : vector<128xf32> to vector<128x1xf32>
    %cst_31 = arith.constant 3.906250e-03 : f32
    %50 = vector.broadcast %cst_31 : f32 to vector<128x1xf32>
    %51 = arith.mulf %49, %50 : vector<128x1xf32>
    %52 = arith.mulf %43, %43 : vector<128x256xf32>
    %cst_32 = arith.constant dense<0.000000e+00> : vector<128xf32>
    %53 = vector.multi_reduction <add>, %52, %cst_32 [1] : vector<128x256xf32> to vector<128xf32>
    %54 = vector.shape_cast %53 : vector<128xf32> to vector<128x1xf32>
    %cst_33 = arith.constant 3.906250e-03 : f32
    %55 = vector.broadcast %cst_33 : f32 to vector<128x1xf32>
    %56 = arith.mulf %54, %55 : vector<128x1xf32>
    %57 = arith.mulf %51, %51 : vector<128x1xf32>
    %58 = arith.subf %56, %57 : vector<128x1xf32>
    %cst_34 = arith.constant 0.000000e+00 : f32
    %59 = vector.broadcast %cst_34 : f32 to vector<128x1xf32>
    %60 = arith.maximumf %58, %59 : vector<128x1xf32>
    %61 = vector.broadcast %51 : vector<128x1xf32> to vector<128x256xf32>
    %62 = arith.subf %43, %61 : vector<128x256xf32>
    %cst_35 = arith.constant 9.99999974E-6 : f32
    %63 = vector.broadcast %cst_35 : f32 to vector<128x1xf32>
    %64 = arith.addf %60, %63 : vector<128x1xf32>
    %65 = math.rsqrt %64 : vector<128x1xf32>
    %66 = vector.broadcast %65 : vector<128x1xf32> to vector<128x256xf32>
    %67 = arith.mulf %62, %66 : vector<128x256xf32>
    %68 = vector.broadcast %44 : vector<1x256xf32> to vector<128x256xf32>
    %69 = arith.mulf %67, %68 : vector<128x256xf32>
    %70 = vector.broadcast %45 : vector<1x256xf32> to vector<128x256xf32>
    %71 = arith.addf %69, %70 : vector<128x256xf32>
    %cst_36 = arith.constant 0.000000e+00 : f32
    %72 = vector.broadcast %cst_36 : f32 to vector<128x256xf32>
    %73 = arith.cmpf oge, %71, %72 : vector<128x256xf32>
    %cst_37 = arith.constant 0.00999999977 : f32
    %74 = vector.broadcast %cst_37 : f32 to vector<128x256xf32>
    %75 = arith.mulf %74, %71 : vector<128x256xf32>
    %76 = arith.select %73, %71, %75 : vector<128x256xi1>, vector<128x256xf32>
    %77 = arith.truncf %76 : vector<128x256xf32> to vector<128x256xbf16>
    %cst_38 = arith.constant dense<0.000000e+00> : vector<128x256xf32>
    %78 = tpu.matmul %77, %46, %cst_38 {dimension_numbers = #tpu.dot_dimension_numbers<[1], [0], [0], [1], [0, 0, 1, 1], [], []>} : vector<128x256xbf16>, vector<256x256xbf16>, vector<128x256xf32> -> vector<128x256xf32>
    %79 = vector.broadcast %47 : vector<1x256xf32> to vector<128x256xf32>
    %80 = arith.addf %78, %79 : vector<128x256xf32>
    %c0_39 = arith.constant 0 : index
    %c0_40 = arith.constant 0 : index
    %81 = vector.load %arg12[%c0_39, %c0_40] : memref<1x256xf32, #tpu.memory_space<vmem>>, vector<1x256xf32>
    %c0_41 = arith.constant 0 : index
    %c0_42 = arith.constant 0 : index
    %82 = vector.load %arg13[%c0_41, %c0_42] : memref<1x256xf32, #tpu.memory_space<vmem>>, vector<1x256xf32>
    %c0_43 = arith.constant 0 : index
    %c0_44 = arith.constant 0 : index
    %83 = vector.load %arg14[%c0_43, %c0_44] : memref<256x128xbf16, #tpu.memory_space<vmem>>, vector<256x128xbf16>
    %c0_45 = arith.constant 0 : index
    %c0_46 = arith.constant 0 : index
    %84 = vector.load %arg15[%c0_45, %c0_46] : memref<1x128xf32, #tpu.memory_space<vmem>>, vector<1x128xf32>
    %cst_47 = arith.constant dense<0.000000e+00> : vector<128xf32>
    %85 = vector.multi_reduction <add>, %80, %cst_47 [1] : vector<128x256xf32> to vector<128xf32>
    %86 = vector.shape_cast %85 : vector<128xf32> to vector<128x1xf32>
    %cst_48 = arith.constant 3.906250e-03 : f32
    %87 = vector.broadcast %cst_48 : f32 to vector<128x1xf32>
    %88 = arith.mulf %86, %87 : vector<128x1xf32>
    %89 = arith.mulf %80, %80 : vector<128x256xf32>
    %cst_49 = arith.constant dense<0.000000e+00> : vector<128xf32>
    %90 = vector.multi_reduction <add>, %89, %cst_49 [1] : vector<128x256xf32> to vector<128xf32>
    %91 = vector.shape_cast %90 : vector<128xf32> to vector<128x1xf32>
    %cst_50 = arith.constant 3.906250e-03 : f32
    %92 = vector.broadcast %cst_50 : f32 to vector<128x1xf32>
    %93 = arith.mulf %91, %92 : vector<128x1xf32>
    %94 = arith.mulf %88, %88 : vector<128x1xf32>
    %95 = arith.subf %93, %94 : vector<128x1xf32>
    %cst_51 = arith.constant 0.000000e+00 : f32
    %96 = vector.broadcast %cst_51 : f32 to vector<128x1xf32>
    %97 = arith.maximumf %95, %96 : vector<128x1xf32>
    %98 = vector.broadcast %88 : vector<128x1xf32> to vector<128x256xf32>
    %99 = arith.subf %80, %98 : vector<128x256xf32>
    %cst_52 = arith.constant 9.99999974E-6 : f32
    %100 = vector.broadcast %cst_52 : f32 to vector<128x1xf32>
    %101 = arith.addf %97, %100 : vector<128x1xf32>
    %102 = math.rsqrt %101 : vector<128x1xf32>
    %103 = vector.broadcast %102 : vector<128x1xf32> to vector<128x256xf32>
    %104 = arith.mulf %99, %103 : vector<128x256xf32>
    %105 = vector.broadcast %81 : vector<1x256xf32> to vector<128x256xf32>
    %106 = arith.mulf %104, %105 : vector<128x256xf32>
    %107 = vector.broadcast %82 : vector<1x256xf32> to vector<128x256xf32>
    %108 = arith.addf %106, %107 : vector<128x256xf32>
    %cst_53 = arith.constant 0.000000e+00 : f32
    %109 = vector.broadcast %cst_53 : f32 to vector<128x256xf32>
    %110 = arith.cmpf oge, %108, %109 : vector<128x256xf32>
    %cst_54 = arith.constant 0.00999999977 : f32
    %111 = vector.broadcast %cst_54 : f32 to vector<128x256xf32>
    %112 = arith.mulf %111, %108 : vector<128x256xf32>
    %113 = arith.select %110, %108, %112 : vector<128x256xi1>, vector<128x256xf32>
    %114 = arith.truncf %113 : vector<128x256xf32> to vector<128x256xbf16>
    %cst_55 = arith.constant dense<0.000000e+00> : vector<128x128xf32>
    %115 = tpu.matmul %114, %83, %cst_55 {dimension_numbers = #tpu.dot_dimension_numbers<[1], [0], [0], [1], [0, 0, 1, 1], [], []>} : vector<128x256xbf16>, vector<256x128xbf16>, vector<128x128xf32> -> vector<128x128xf32>
    %116 = vector.broadcast %84 : vector<1x128xf32> to vector<128x128xf32>
    %117 = arith.addf %115, %116 : vector<128x128xf32>
    %c0_56 = arith.constant 0 : index
    %c0_57 = arith.constant 0 : index
    %118 = vector.load %arg16[%c0_56, %c0_57] : memref<1x128xf32, #tpu.memory_space<vmem>>, vector<1x128xf32>
    %c0_58 = arith.constant 0 : index
    %c0_59 = arith.constant 0 : index
    %119 = vector.load %arg17[%c0_58, %c0_59] : memref<1x128xf32, #tpu.memory_space<vmem>>, vector<1x128xf32>
    %c0_60 = arith.constant 0 : index
    %c0_61 = arith.constant 0 : index
    %120 = vector.load %arg18[%c0_60, %c0_61] : memref<128x128xbf16, #tpu.memory_space<vmem>>, vector<128x128xbf16>
    %c0_62 = arith.constant 0 : index
    %c0_63 = arith.constant 0 : index
    %121 = vector.load %arg19[%c0_62, %c0_63] : memref<1x128xf32, #tpu.memory_space<vmem>>, vector<1x128xf32>
    %cst_64 = arith.constant dense<0.000000e+00> : vector<128xf32>
    %122 = vector.multi_reduction <add>, %117, %cst_64 [1] : vector<128x128xf32> to vector<128xf32>
    %123 = vector.shape_cast %122 : vector<128xf32> to vector<128x1xf32>
    %cst_65 = arith.constant 7.812500e-03 : f32
    %124 = vector.broadcast %cst_65 : f32 to vector<128x1xf32>
    %125 = arith.mulf %123, %124 : vector<128x1xf32>
    %126 = arith.mulf %117, %117 : vector<128x128xf32>
    %cst_66 = arith.constant dense<0.000000e+00> : vector<128xf32>
    %127 = vector.multi_reduction <add>, %126, %cst_66 [1] : vector<128x128xf32> to vector<128xf32>
    %128 = vector.shape_cast %127 : vector<128xf32> to vector<128x1xf32>
    %cst_67 = arith.constant 7.812500e-03 : f32
    %129 = vector.broadcast %cst_67 : f32 to vector<128x1xf32>
    %130 = arith.mulf %128, %129 : vector<128x1xf32>
    %131 = arith.mulf %125, %125 : vector<128x1xf32>
    %132 = arith.subf %130, %131 : vector<128x1xf32>
    %cst_68 = arith.constant 0.000000e+00 : f32
    %133 = vector.broadcast %cst_68 : f32 to vector<128x1xf32>
    %134 = arith.maximumf %132, %133 : vector<128x1xf32>
    %135 = vector.broadcast %125 : vector<128x1xf32> to vector<128x128xf32>
    %136 = arith.subf %117, %135 : vector<128x128xf32>
    %cst_69 = arith.constant 9.99999974E-6 : f32
    %137 = vector.broadcast %cst_69 : f32 to vector<128x1xf32>
    %138 = arith.addf %134, %137 : vector<128x1xf32>
    %139 = math.rsqrt %138 : vector<128x1xf32>
    %140 = vector.broadcast %139 : vector<128x1xf32> to vector<128x128xf32>
    %141 = arith.mulf %136, %140 : vector<128x128xf32>
    %142 = vector.broadcast %118 : vector<1x128xf32> to vector<128x128xf32>
    %143 = arith.mulf %141, %142 : vector<128x128xf32>
    %144 = vector.broadcast %119 : vector<1x128xf32> to vector<128x128xf32>
    %145 = arith.addf %143, %144 : vector<128x128xf32>
    %cst_70 = arith.constant 0.000000e+00 : f32
    %146 = vector.broadcast %cst_70 : f32 to vector<128x128xf32>
    %147 = arith.cmpf oge, %145, %146 : vector<128x128xf32>
    %cst_71 = arith.constant 0.00999999977 : f32
    %148 = vector.broadcast %cst_71 : f32 to vector<128x128xf32>
    %149 = arith.mulf %148, %145 : vector<128x128xf32>
    %150 = arith.select %147, %145, %149 : vector<128x128xi1>, vector<128x128xf32>
    %151 = arith.truncf %150 : vector<128x128xf32> to vector<128x128xbf16>
    %cst_72 = arith.constant dense<0.000000e+00> : vector<128x128xf32>
    %152 = tpu.matmul %151, %120, %cst_72 {dimension_numbers = #tpu.dot_dimension_numbers<[1], [0], [0], [1], [0, 0, 1, 1], [], []>} : vector<128x128xbf16>, vector<128x128xbf16>, vector<128x128xf32> -> vector<128x128xf32>
    %153 = vector.broadcast %121 : vector<1x128xf32> to vector<128x128xf32>
    %154 = arith.addf %152, %153 : vector<128x128xf32>
    %c0_73 = arith.constant 0 : index
    %c0_74 = arith.constant 0 : index
    %155 = vector.load %arg20[%c0_73, %c0_74] : memref<128x128xf32, #tpu.memory_space<vmem>>, vector<128x128xf32>
    tpu.vector_store %arg20[%c0_73, %c0_74], %154 {strides = array<i32>} : memref<128x128xf32, #tpu.memory_space<vmem>>, vector<128x128xf32>,
    return
  }
  func.func @transform_0(%arg0: i32) -> (i32, i32) {
    %c0_i32 = arith.constant 0 : i32
    %c0_i32_0 = arith.constant 0 : i32
    return %arg0, %c0_i32 : i32, i32
  }
  func.func @transform_1(%arg0: i32) -> (i32, i32) {
    %c0_i32 = arith.constant 0 : i32
    %c0_i32_0 = arith.constant 0 : i32
    %c0_i32_1 = arith.constant 0 : i32
    return %c0_i32, %c0_i32_0 : i32, i32
  }
  func.func @transform_2(%arg0: i32) -> (i32, i32) {
    %c0_i32 = arith.constant 0 : i32
    %c0_i32_0 = arith.constant 0 : i32
    %c0_i32_1 = arith.constant 0 : i32
    return %c0_i32, %c0_i32_0 : i32, i32
  }
  func.func @transform_3(%arg0: i32) -> (i32, i32) {
    %c0_i32 = arith.constant 0 : i32
    %c0_i32_0 = arith.constant 0 : i32
    %c0_i32_1 = arith.constant 0 : i32
    return %c0_i32, %c0_i32_0 : i32, i32
  }
  func.func @transform_4(%arg0: i32) -> (i32, i32) {
    %c0_i32 = arith.constant 0 : i32
    %c0_i32_0 = arith.constant 0 : i32
    %c0_i32_1 = arith.constant 0 : i32
    return %c0_i32, %c0_i32_0 : i32, i32
  }
  func.func @transform_5(%arg0: i32) -> (i32, i32) {
    %c0_i32 = arith.constant 0 : i32
    %c0_i32_0 = arith.constant 0 : i32
    %c0_i32_1 = arith.constant 0 : i32
    return %c0_i32, %c0_i32_0 : i32, i32
  }
  func.func @transform_6(%arg0: i32) -> (i32, i32) {
    %c0_i32 = arith.constant 0 : i32
    %c0_i32_0 = arith.constant 0 : i32
    %c0_i32_1 = arith.constant 0 : i32
    return %c0_i32, %c0_i32_0 : i32, i32
  }
  func.func @transform_7(%arg0: i32) -> (i32, i32) {
    %c0_i32 = arith.constant 0 : i32
    %c0_i32_0 = arith.constant 0 : i32
    %c0_i32_1 = arith.constant 0 : i32
    return %c0_i32, %c0_i32_0 : i32, i32
  }
  func.func @transform_8(%arg0: i32) -> (i32, i32) {
    %c0_i32 = arith.constant 0 : i32
    %c0_i32_0 = arith.constant 0 : i32
    %c0_i32_1 = arith.constant 0 : i32
    return %c0_i32, %c0_i32_0 : i32, i32
  }
  func.func @transform_9(%arg0: i32) -> (i32, i32) {
    %c0_i32 = arith.constant 0 : i32
    %c0_i32_0 = arith.constant 0 : i32
    %c0_i32_1 = arith.constant 0 : i32
    return %c0_i32, %c0_i32_0 : i32, i32
  }
  func.func @transform_10(%arg0: i32) -> (i32, i32) {
    %c0_i32 = arith.constant 0 : i32
    %c0_i32_0 = arith.constant 0 : i32
    %c0_i32_1 = arith.constant 0 : i32
    return %c0_i32, %c0_i32_0 : i32, i32
  }
  func.func @transform_11(%arg0: i32) -> (i32, i32) {
    %c0_i32 = arith.constant 0 : i32
    %c0_i32_0 = arith.constant 0 : i32
    %c0_i32_1 = arith.constant 0 : i32
    return %c0_i32, %c0_i32_0 : i32, i32
  }
  func.func @transform_12(%arg0: i32) -> (i32, i32) {
    %c0_i32 = arith.constant 0 : i32
    %c0_i32_0 = arith.constant 0 : i32
    %c0_i32_1 = arith.constant 0 : i32
    return %c0_i32, %c0_i32_0 : i32, i32
  }
  func.func @transform_13(%arg0: i32) -> (i32, i32) {
    %c0_i32 = arith.constant 0 : i32
    %c0_i32_0 = arith.constant 0 : i32
    %c0_i32_1 = arith.constant 0 : i32
    return %c0_i32, %c0_i32_0 : i32, i32
  }
  func.func @transform_14(%arg0: i32) -> (i32, i32) {
    %c0_i32 = arith.constant 0 : i32
    %c0_i32_0 = arith.constant 0 : i32
    %c0_i32_1 = arith.constant 0 : i32
    return %c0_i32, %c0_i32_0 : i32, i32
  }
  func.func @transform_15(%arg0: i32) -> (i32, i32) {
    %c0_i32 = arith.constant 0 : i32
    %c0_i32_0 = arith.constant 0 : i32
    %c0_i32_1 = arith.constant 0 : i32
    return %c0_i32, %c0_i32_0 : i32, i32
  }
  func.func @transform_16(%arg0: i32) -> (i32, i32) {
    %c0_i32 = arith.constant 0 : i32
    %c0_i32_0 = arith.constant 0 : i32
    %c0_i32_1 = arith.constant 0 : i32
    return %c0_i32, %c0_i32_0 : i32, i32
  }
  func.func @transform_17(%arg0: i32) -> (i32, i32) {
    %c0_i32 = arith.constant 0 : i32
    %c0_i32_0 = arith.constant 0 : i32
    %c0_i32_1 = arith.constant 0 : i32
    return %c0_i32, %c0_i32_0 : i32, i32
  }
  func.func @transform_18(%arg0: i32) -> (i32, i32) {
    %c0_i32 = arith.constant 0 : i32
    %c0_i32_0 = arith.constant 0 : i32
    %c0_i32_1 = arith.constant 0 : i32
    return %c0_i32, %c0_i32_0 : i32, i32
  }
  func.func @transform_19(%arg0: i32) -> (i32, i32) {
    %c0_i32 = arith.constant 0 : i32
    %c0_i32_0 = arith.constant 0 : i32
    return %arg0, %c0_i32 : i32, i32
  }
}

</mosaic_0001>

<bundles_post_ra>
// kernel: tpu_custom_call.1
= control target key start
LH: loop header
LB: loop body
LE: loop exit
PB: predicated region body
PF: predicated region fallthrough
CT: control target
= control target key end

     0   :  { %s10085_s0 = inlined_call_operand.vmem [shape: f32[256,32], index: 0, kind: input, shape index: {}]   ;;  %s10086_s1 = inlined_call_operand.vmem [shape: bf16[32,512], index: 1, kind: input, shape index: {}]   ;;  %s10087_s2 = inlined_call_operand.vmem [shape: f32[1,512], index: 2, kind: input, shape index: {}]   ;;  %s10088_s3 = inlined_call_operand.vmem [shape: f32[1,512], index: 3, kind: input, shape index: {}]   ;;  %s10089_s4 = inlined_call_operand.hbm [shape: f32[1,512], index: 4, kind: input, shape index: {}]   ;;  %s10090_s5 = inlined_call_operand.hbm [shape: bf16[512,256], index: 5, kind: input, shape index: {}]   ;;  %s10091_s6 = inlined_call_operand.hbm [shape: f32[1,256], index: 6, kind: input, shape index: {}]   ;;  %s10092_s7 = inlined_call_operand.hbm [shape: f32[1,256], index: 7, kind: input, shape index: {}]   ;;  %s10093_s8 = inlined_call_operand.hbm [shape: f32[1,256], index: 8, kind: input, shape index: {}]   ;;  %s10094_s9 = inlined_call_operand.vmem [shape: bf16[256,256], index: 9, kind: input, shape index: {}]   ;;  %s10095_s10 = inlined_call_operand.hbm [shape: f32[1,256], index: 10, kind: input, shape index: {}]   ;;  %s10096_s11 = inlined_call_operand.hbm [shape: f32[1,256], index: 11, kind: input, shape index: {}]   ;;  %s10097_s12 = inlined_call_operand.vmem [shape: f32[1,256], index: 12, kind: input, shape index: {}]   ;;  %s10098_s13 = inlined_call_operand.hbm [shape: bf16[256,128], index: 13, kind: input, shape index: {}]   ;;  %s10099_s14 = inlined_call_operand.vmem [shape: f32[1,128], index: 14, kind: input, shape index: {}]   ;;  %s10100_s15 = inlined_call_operand.hbm [shape: f32[1,128], index: 15, kind: input, shape index: {}]   ;;  %s10101_s16 = inlined_call_operand.vmem [shape: f32[1,128], index: 16, kind: input, shape index: {}]   ;;  %s10102_s17 = inlined_call_operand.hbm [shape: bf16[128,128], index: 17, kind: input, shape index: {}]   ;;  %s10103_s18 = inlined_call_operand.vmem [shape: f32[1,128], index: 18, kind: input, shape index: {}]   ;;  %s10104_s19 = inlined_call_operand.hbm [shape: f32[256,128], index: 19, kind: output, shape index: {}]  }
   0x1   :  { %10188 = sst [smem:[#allocation78_spill]] %s10085_s0 }
   0x2   :  { %10189 = sst [smem:[#allocation79_spill]] %s10086_s1 }
   0x3   :  { %10190 = sst [smem:[#allocation80_spill]] %s10087_s2 }
   0x4   :  { %10191 = sst [smem:[#allocation81_spill]] %s10088_s3 }
   0x5   :  { %10192 = sst [smem:[#allocation82_spill]] %s10090_s5 }
   0x6   :  { %10193 = sst [smem:[#allocation83_spill]] %s10092_s7 }
   0x7   :  { %10194 = sst [smem:[#allocation84_spill]] %s10103_s18 }
   0x8   :  { %10195 = sst [smem:[#allocation85_spill]] %s10104_s19 }
   0x9   :  { %24 = vsyncpa [#allocation3], 0 }
   0xa   :  { %25 = vsyncpa [#allocation6], 0 }
   0xb   :  { %26 = vsyncpa [#allocation9], 0 }
   0xc   :  { %27 = vsyncpa [#allocation12], 0 }
   0xd   :  { %28 = vsyncpa [#allocation15], 0 }
   0xe   :  { %29 = vsyncpa [#allocation18], 0 }
   0xf   :  { %30 = vsyncpa [#allocation4], 0 }
  0x10   :  { %32 = vsyncpa [#allocation4 + $0x1], 0  ;;  %s6984_s0 = smov 0   ;;  %s6986_s30 = smov 0  }
  0x11   :  { %s6988_s20 = smov 0   ;;  %s6990_s21 = smov 0  }
  0x12 LB: > { %10196 = sst [smem:[#allocation27_spill]] %s6854_s0  ;;  %s7005_s1 = sadd.s32 4294967295, %s6866_s21   ;;  %s6866_s21 = sphi %s6990_s21, %s10357_s21   ;;  %s6862_s20 = sphi %s6988_s20, %s10359_s20   ;;  %s6858_s30 = sphi %s6986_s30, %s10361_s30   ;;  %s6854_s0 = sphi %s6984_s0, %s10360_s0  }
  0x13   : > { %10197 = sst [smem:[#allocation28_spill]] %s6862_s20  ;;  %s5491_s22 = sadd.s32 4294967294, %s6866_s21  }
  0x14   : > { %10198 = sst [smem:[#allocation29_spill]] %s6866_s21  ;;  %s7009_s2 = sadd.s32 1, %s6866_s21  }
  0x15   : > { %10199 = sst [smem:[#allocation30_spill]] %s7009_s2  ;;  %s449_s23 = sadd.s32 1, %s6862_s20 }
  0x16   : > { %s446_s24 = ssub.s32 %s6866_s21, %s7009_s2  ;;  %p459_p0 = scmp.ne.s32.totalorder %s6862_s20, %s6858_s30 }
  0x17   : > { %p447_p1 = scmp.eq.s32.totalorder %s446_s24, 0  ;;  %p460_p2 = scmp.eq.s32.totalorder %s7005_s1, 1 }
  0x18   : > { %p465_p3 = scmp.ne.s32.totalorder %s6858_s30, %s6854_s0  ;;  %p466_p4 = scmp.eq.s32.totalorder %s5491_s22, 1 }
  0x19   : > { %s7020_s25 = scalar_select %p447_p1, %s6862_s20, %s449_s23  }
  0x1a   : > { %p7022_p5 = por %p460_p2, %p459_p0  ;;  %p7026_p6 = por %p466_p4, %p465_p3 }
  0x1b   : > { %10200 = sst [smem:[#allocation31_spill]] %s7020_s25  ;;  %p5492_p7 = scmp.ge.s32.totalorder %s6866_s21, 1 }
  0x1c   : > { %s10201_s3 = scalar_select %p7022_p5, 1, 0 }
  0x1d   : > { %s10203_s26 = scalar_select %p7026_p6, 1, 0 }
  0x1e   : > { %10202 = sst [smem:[#allocation32_spill]] %s10201_s3  ;;  %p473_p8 = scmp.lt.s32.totalorder %s6866_s21, 3 }
  0x1f   : > { %10204 = sst [smem:[#allocation33_spill]] %s10203_s26  ;;  %p6279_p9 = scmp.eq.s32.totalorder %s7005_s1, 0 }
  0x20   : > { %p7033_p10 = pnand %p5492_p7, %p473_p8  ;;  %s10206_s5 = sld [smem:[#allocation82_spill]] }
  0x21   : > { %s6868_s23 = smov [#allocation5]   ;;  %s10208_s7 = sld [smem:[#allocation83_spill]] }
  0x22   : > { %p6244_p11 = pneg %p7033_p10  ;;  %s507_s24 = sshll.u32 %s6868_s23, 4  ;;  %s508_s24 = int_to_ptr.vmem [resolvable:$true] %s507_s24 }
  0x23   : > { %s6869_s28 = smov 128   ;;  %s6870_s29 = smov 8  }
  0x24   : > { %p7044_p12 = pnand %p6279_p9, %p6244_p11  ;;  %s559_s19 = sshll.u32 %s10095_s10, 4  ;;  %s560_s19 = int_to_ptr.hbm [resolvable:$true] %s559_s19 }
  0x25   : > { %s6872_s3 = smov [#allocation11]   ;;  %s6874_s0 = smov 64  }
  0x26   : > { %s505_s22 = sshll.u32 %s10206_s5, 4  ;;  %s6871_s5 = smov [#allocation8]   ;;  %s506_s22 = int_to_ptr.hbm [resolvable:$true] %s505_s22 }
  0x27   : > { %s532_s26 = sshll.u32 %s10208_s7, 4  ;;  %s534_s23 = sshll.u32 %s6871_s5, 4  ;;  %s533_s26 = int_to_ptr.hbm [resolvable:$true] %s532_s26  ;;  %s535_s23 = int_to_ptr.vmem [resolvable:$true] %s534_s23 }
  0x28   : > { %6250 = dma.hbm_to_vmem [thread:$0]  (!%p7044_p12), %s506_s22, 8192, %s508_s24, [#allocation6], %s6869_s28, %s6869_s28, %s6870_s29  }
  0x29   : > { %6256 = dma.hbm_to_vmem [thread:$0]  (!%p7044_p12), %s533_s26, 32, %s535_s23, [#allocation9]  }
  0x2a   : > { %s585_s7 = sshll.u32 %s10098_s13, 4  ;;  %s561_s18 = sshll.u32 %s6872_s3, 4  ;;  %s586_s7 = int_to_ptr.hbm [resolvable:$true] %s585_s7  ;;  %s562_s18 = int_to_ptr.vmem [resolvable:$true] %s561_s18 }
  0x2b   : > { %6262 = dma.hbm_to_vmem [thread:$0]  (!%p7044_p12), %s560_s19, 32, %s562_s18, [#allocation12]  }
  0x2c   : > { %s6873_s5 = smov [#allocation14]   ;;  %s6875_s21 = smov 4  }
  0x2d   : > { %s587_s22 = sshll.u32 %s6873_s5, 4  ;;  %s494_s3 = sshll.u32 %s10089_s4, 4  ;;  %s588_s22 = int_to_ptr.vmem [resolvable:$true] %s587_s22  ;;  %s495_s3 = int_to_ptr.hbm [resolvable:$true] %s494_s3 }
  0x2e   : > { %6268 = dma.hbm_to_vmem [thread:$0]  (!%p7044_p12), %s586_s7, 2048, %s588_s22, [#allocation15], %s6874_s0, %s6874_s0, %s6875_s21  }
  0x2f   : > { %s6876_s28 = smov [#allocation2]   ;;  %s520_s23 = sshll.u32 %s10091_s6, 4  ;;  %s521_s23 = int_to_ptr.hbm [resolvable:$true] %s520_s23 }
  0x30   : > { %s496_s29 = sshll.u32 %s6876_s28, 4  ;;  %s6877_s20 = smov [#allocation7]   ;;  %s497_s29 = int_to_ptr.vmem [resolvable:$true] %s496_s29 }
  0x31   : > { %6247 = dma.hbm_to_vmem [thread:$0]  (!%p7044_p12), %s495_s3, 64, %s497_s29, [#allocation3]  }
  0x32   : > { %s522_s2 = sshll.u32 %s6877_s20, 4  ;;  %s544_s22 = sshll.u32 %s10093_s8, 4  ;;  %s523_s2 = int_to_ptr.vmem [resolvable:$true] %s522_s2  ;;  %s545_s22 = int_to_ptr.hbm [resolvable:$true] %s544_s22 }
  0x33   : > { %6253 = dma.hbm_to_vmem [thread:$0]  (!%p7044_p12), %s521_s23, 32, %s523_s2, [#allocation6]  }
  0x34   : > { %s571_s28 = sshll.u32 %s10096_s11, 4  ;;  %s6878_s18 = smov [#allocation10]   ;;  %s572_s28 = int_to_ptr.hbm [resolvable:$true] %s571_s28 }
  0x35   : > { %s546_s19 = sshll.u32 %s6878_s18, 4  ;;  %s6879_s3 = smov [#allocation13]   ;;  %s547_s19 = int_to_ptr.vmem [resolvable:$true] %s546_s19 }
  0x36   : > { %6259 = dma.hbm_to_vmem [thread:$0]  (!%p7044_p12), %s545_s22, 32, %s547_s19, [#allocation9]  }
  0x37   : > { %s573_s29 = sshll.u32 %s6879_s3, 4  ;;  %s603_s7 = sshll.u32 %s10100_s15, 4  ;;  %s574_s29 = int_to_ptr.vmem [resolvable:$true] %s573_s29  ;;  %s604_s7 = int_to_ptr.hbm [resolvable:$true] %s603_s7 }
  0x38   : > { %6265 = dma.hbm_to_vmem [thread:$0]  (!%p7044_p12), %s572_s28, 32, %s574_s29, [#allocation12]  }
  0x39   : > { %s617_s26 = sshll.u32 %s10102_s17, 4  ;;  %s6880_s24 = smov [#allocation16]   ;;  %s618_s26 = int_to_ptr.hbm [resolvable:$true] %s617_s26 }
  0x3a   : > { %s605_s18 = sshll.u32 %s6880_s24, 4  ;;  %s6881_s22 = smov [#allocation17]   ;;  %s606_s18 = int_to_ptr.vmem [resolvable:$true] %s605_s18 }
  0x3b   : > { %6271 = dma.hbm_to_vmem [thread:$0]  (!%p7044_p12), %s604_s7, 16, %s606_s18, [#allocation15]  }
  0x3c   : > { %s619_s19 = sshll.u32 %s6881_s22, 4  ;;  %647 = sbr.rel (%p7033_p10) target bundleno = 1822 (0x71e), region = 96  ;;  %s620_s19 = int_to_ptr.vmem [resolvable:$true] %s619_s19 }
  0x3d   : > { %6274 = dma.hbm_to_vmem [thread:$0]  (!%p7044_p12), %s618_s26, 1024, %s620_s19, [#allocation18], %s6874_s0, %s6874_s0, %s6875_s21  }
  0x41   : > { %6825 = dma.done.wait (%p6279_p9), [#allocation3], 64  }
  0x42   : > { %6827 = vsyncadd (%p6279_p9), [#allocation3], 4294967232 }
  0x43   : > { %6829 = dma.done.wait (%p6279_p9), [#allocation6], 8224  }
  0x44   : > { %6831 = vsyncadd (%p6279_p9), [#allocation6], 4294959072 }
  0x45   : > { %6833 = dma.done.wait (%p6279_p9), [#allocation9], 64  }
  0x46   : > { %6835 = vsyncadd (%p6279_p9), [#allocation9], 4294967232 }
  0x47   : > { %6837 = dma.done.wait (%p6279_p9), [#allocation12], 64  }
  0x48   : > { %6839 = vsyncadd (%p6279_p9), [#allocation12], 4294967232 }
  0x49   : > { %6841 = dma.done.wait (%p6279_p9), [#allocation15], 2064  }
  0x4a   : > { %6843 = vsyncadd (%p6279_p9), [#allocation15], 4294965232 }
  0x4b   : > { %6845 = dma.done.wait (%p6279_p9), [#allocation18], 1024  }
  0x4c   : > { %6847 = vsyncadd (%p6279_p9), [#allocation18], 4294966272  ;;  %s5516_s25 = sshll.u32 %s7005_s1, 4  ;;  %s10209_s28 = sld [smem:[#allocation79_spill]]  ;;  %vm839_vm0 = vcmask 261120  }
  0x4d   : > { %p750_p13 = scmp.lt.s32.totalorder %s5516_s25, 31  ;;  %s10210_s2 = sld [smem:[#allocation78_spill]] }
  0x4e   : > { %s10211_s7 = sld [smem:[#allocation80_spill]]  ;;  %s746_s21 = sand.u32 1, %s6858_s30  }
  0x4f   : > { %s10363_s25 = smov (!%p750_p13, %s5516_s25), 31  ;;  %s10249_s24 = sld [smem:[#allocation81_spill]] }
  0x50   : > { %s5517_s27 = sshll.u32 %s10363_s25, 3  ;;  %s5515_s3 = sshll.u32 %s746_s21, 7 }
  0x51   : > { %s10033_s5 = scalar_lea.vmem [#allocation19], %s5515_s3  ;;  %s10353_s18 = sld [smem:[#allocation85_spill]] }
  0x52   : > { %v5536_v0 = vld [vmem:[%s10209_s28 + $0x20] sm:$0xf]  ;;  %v6073_v1 = vld [vmem:[%s10209_s28 + $0x2c] sm:$0xf0]  ;;  %v5544_v2 = vld [vmem:[%s10209_s28 + $0x28] sm:$0xf] }
  0x53   : > { %s7140_s26 = scalar_lea.vmem %s10210_s2, %s5517_s27  ;;  %v5537_v3 = vor.u32 %v6073_v1, %v5536_v0  ;;  %v6074_v4 = vld [vmem:[%s10209_s28 + $0x34] sm:$0xf0]  ;;  %v5520_v5 = vld [vmem:[%s10209_s28] sm:$0xf]  ;;  %v6069_v6 = vld [vmem:[%s10209_s28 + $0xc] sm:$0xf0] }
  0x54   : > { %v5545_v7 = vor.u32 %v6074_v4, %v5544_v2  ;;  %v6071_v8 = vld [vmem:[%s10209_s28 + $0x24] sm:$0xf]  ;;  %v5538_v9 = vld [vmem:[%s10209_s28 + $0x30] sm:$0xf0]  ;;  %v5528_v10 = vld [vmem:[%s10209_s28 + $0x8] sm:$0xf]  ;;  %v5521_v11 = vor.u32 %v6069_v6, %v5520_v5 }
  0x55   : > { %870 = vmatpush.bf16.msra.mxu0 %v5537_v3  ;;  %6196 = vmatpush.bf16.msra.mxu3 %v5537_v3  ;;  %v5541_v12 = vor.u32 %v6071_v8, %v5538_v9  ;;  %v6070_v13 = vld [vmem:[%s10209_s28 + $0x14] sm:$0xf0]  ;;  %v757_v14 = vld [vmem:[%s7140_s26] sm:$0xff]  ;;  %v758_v15 = vld [vmem:[%s7140_s26 + $0x8] sm:$0xff]  ;;  %s5328_s19 = sshll.u32 %s10033_s5, 4  ;;  %s5316_s0 = scalar_lea.sflag [#allocation4], %s746_s21  ;;  %s5329_s19 = int_to_ptr.vmem [resolvable:$true] %s5328_s19 }
  0x56   : > { %6200 = vmatpush.bf16.msra.mxu2 %v5545_v7  ;;  %v5529_v16 = vor.u32 %v6070_v13, %v5528_v10  ;;  %v761_v17 = vld [vmem:[%s7140_s26 + $0x20] sm:$0xff]  ;;  %v762_v18 = vld [vmem:[%s7140_s26 + $0x28] sm:$0xff]  ;;  %v5546_v20 = vld [vmem:[%s10209_s28 + $0x38] sm:$0xf0]  ;;  %v773_v23 = vpack.c.bf16 %v758_v15, %v757_v14 }
  0x57   : > { %v6072_v19 = vld [vmem:[%s10209_s28 + $0x2c] sm:$0xf]  ;;  %6198 = vmatpush.bf16.msra.mxu1 %v5541_v12  ;;  %v6067_v21 = vld [vmem:[%s10209_s28 + $0x4] sm:$0xf]  ;;  %v5522_v22 = vld [vmem:[%s10209_s28 + $0x10] sm:$0xf0]  ;;  %v775_v24 = vpack.c.bf16 %v762_v18, %v761_v17 }
  0x58   : > { %v5549_v25 = vor.u32 %v6072_v19, %v5546_v20  ;;  %v5525_v26 = vor.u32 %v6067_v21, %v5522_v22  ;;  %v759_v27 = vld [vmem:[%s7140_s26 + $0x10] sm:$0xff]  ;;  %v760_v28 = vld [vmem:[%s7140_s26 + $0x18] sm:$0xff]  ;;  %v6068_v33 = vld [vmem:[%s10209_s28 + $0xc] sm:$0xf]  ;;  %s6800_s20 = scalar_lea.hbm %s10353_s18, 256 }
  0x59   : > { %871 = vmatpush.bf16.msra.mxu0 %v5521_v11  ;;  %6197 = vmatpush.bf16.msra.mxu3 %v5521_v11  ;;  %v763_v29 = vld [vmem:[%s7140_s26 + $0x30] sm:$0xff]  ;;  %v764_v30 = vld [vmem:[%s7140_s26 + $0x38] sm:$0xff]  ;;  %v774_v31 = vpack.c.bf16 %v760_v28, %v759_v27  ;;  %v765_v36 = vld [vmem:[%s7140_s26 + $0x40] sm:$0xff] }
  0x5a   : > { %6201 = vmatpush.bf16.msra.mxu2 %v5529_v16  ;;  %v776_v32 = vpack.c.bf16 %v764_v30, %v763_v29  ;;  %v5530_v34 = vld [vmem:[%s10209_s28 + $0x18] sm:$0xf0]  ;;  %v766_v37 = vld [vmem:[%s7140_s26 + $0x48] sm:$0xff]  ;;  %v767_v39 = vld [vmem:[%s7140_s26 + $0x50] sm:$0xff] }
  0x5b   : > { %6199 = vmatpush.bf16.msra.mxu1 %v5525_v26  ;;  %v5533_v35 = vor.u32 %v6068_v33, %v5530_v34  ;;  %v777_v38 = vpack.c.bf16 %v766_v37, %v765_v36  ;;  %v768_v40 = vld [vmem:[%s7140_s26 + $0x58] sm:$0xff]  ;;  %v769_v42 = vld [vmem:[%s7140_s26 + $0x60] sm:$0xff]  ;;  %v770_v43 = vld [vmem:[%s7140_s26 + $0x68] sm:$0xff] }
  0x5c   : > { %5550 = vmatmul.msk.bf16.vlgmr.msra.gmra.mxu0 %vm839_vm0, %v773_v23  ;;  %5552 = vmatmul.msk.bf16.vlgmr.msra.gmra.mxu3 %vm839_vm0, %v775_v24  ;;  %v778_v41 = vpack.c.bf16 %v768_v40, %v767_v39  ;;  %v779_v44 = vpack.c.bf16 %v770_v43, %v769_v42  ;;  %v771_v45 = vld [vmem:[%s7140_s26 + $0x70] sm:$0xff]  ;;  %v772_v46 = vld [vmem:[%s7140_s26 + $0x78] sm:$0xff]  ;;  %v789_v4 = vld [vmem:[%s10211_s7] sm:$0xf]  ;;  %s10351_s26 = sld [smem:[#allocation84_spill]]  ;;  %s6195_s7 = sshll.u32 %s7005_s1, 7 }
  0x5d   : > { %1017 = vmatpush.bf16.msrb.mxu3 %v5549_v25  ;;  %919 = vmatpush.bf16.msrb.mxu0 %v5541_v12  ;;  %v780_v47 = vpack.c.bf16 %v772_v46, %v771_v45  ;;  %v7258_v5 = vperm.slane %v789_v4, 0  ;;  %v7260_v6 = vperm.slane %v789_v4, 1  ;;  %v7267_v9 = vperm.slane %v789_v4, 2  ;;  %v5832_v43 = vld [vmem:[#allocation5 + $0x1f0] sm:$0xf]  ;;  %s5327_s22 = scalar_lea.hbm %s10353_s18, %s6195_s7 }
  0x5e   : > { %5568 = vmatmul.msk.bf16.vlgmr.msra.gmra.mxu2 %vm839_vm0, %v775_v24  ;;  %5560 = vmatmul.msk.bf16.vlgmr.msra.gmra.mxu1 %vm839_vm0, %v775_v24  ;;  %s5330_s25 = sshll.u32 %s5327_s22, 4  ;;  %s5331_s25 = int_to_ptr.hbm [resolvable:$true] %s5330_s25 }
  0x5f   : > { %s6794_s27 = sshra.s32 %s5331_s25, 4  ;;  %s6795_s27 = int_to_ptr.hbm [resolvable:$true] %s6794_s27 }
  0x60   : > { %s6796_s3 = scalar_lea.hbm %s6795_s27, 128  ;;  %p6801_p3 = scmp.lt.s32.totalorder %s6795_s27, %s10353_s18 }
  0x61   : > { %920 = vmatpush.bf16.msrb.mxu0 %v5525_v26  ;;  %1018 = vmatpush.bf16.msrb.mxu3 %v5533_v35  ;;  %p6797_p0 = scmp.ne.s32.totalorder %s6795_s27, %s6796_s3  ;;  %p6802_p4 = scmp.lt.s32.totalorder %s6800_s20, %s6796_s3 }
  0x63   : > { %p6798_p1 = pnand %p6797_p0, %p7022_p5  ;;  %p6803_p7 = por %p6802_p4, %p6801_p3 }
  0x65   : > { %968 = vmatpush.bf16.msra.mxu0 %v5545_v7  ;;  %p6799_p2 = pneg %p6798_p1 }
  0x67   : > { %p6804_p8 = pnand %p6803_p7, %p6799_p2 }
  0x69   : > { %969 = vmatpush.bf16.msra.mxu0 %v5529_v16  ;;  %v7279_v16 = vperm.slane %v789_v4, 3 }
  0x6c   : > { %5551 = vmatmul.msk.bf16.gmra.mxu0 %vm839_vm0, %v774_v31  ;;  %5553 = vmatmul.msk.bf16.gmra.mxu3 %vm839_vm0, %v776_v32 }
  0x6e   : > { %5569 = vmatmul.msk.bf16.gmra.mxu2 %vm839_vm0, %v776_v32  ;;  %5561 = vmatmul.msk.bf16.gmra.mxu1 %vm839_vm0, %v776_v32 }
  0x7c   : > { %5554 = vmatmul.msk.bf16.gmra.mxu3 %vm839_vm0, %v777_v38  ;;  %5558 = vmatmul.msk.bf16.vlgmr.msrb.gmra.mxu0 %vm839_vm0, %v773_v23 }
  0x7e   : > { %5570 = vmatmul.msk.bf16.gmra.mxu2 %vm839_vm0, %v777_v38  ;;  %5562 = vmatmul.msk.bf16.gmra.mxu1 %vm839_vm0, %v777_v38 }
  0x8c   : > { %5555 = vmatmul.msk.bf16.gmra.mxu3 %vm839_vm0, %v778_v41  ;;  %5559 = vmatmul.msk.bf16.gmra.mxu0 %vm839_vm0, %v774_v31 }
  0x8e   : > { %5571 = vmatmul.msk.bf16.gmra.mxu2 %vm839_vm0, %v778_v41  ;;  %5563 = vmatmul.msk.bf16.gmra.mxu1 %vm839_vm0, %v778_v41 }
  0x9c   : > { %5556 = vmatmul.msk.bf16.gmra.mxu3 %vm839_vm0, %v779_v44  ;;  %5566 = vmatmul.msk.bf16.vlgmr.msra.gmra.mxu0 %vm839_vm0, %v773_v23 }
  0x9e   : > { %5572 = vmatmul.msk.bf16.gmra.mxu2 %vm839_vm0, %v779_v44  ;;  %5564 = vmatmul.msk.bf16.gmra.mxu1 %vm839_vm0, %v779_v44 }
  0xac   : > { %5557 = vmatmul.msk.bf16.gmra.mxu3 %vm839_vm0, %v780_v47  ;;  %5567 = vmatmul.msk.bf16.gmra.mxu0 %vm839_vm0, %v774_v31 }
  0xae   : > { %5573 = vmatmul.msk.bf16.gmra.mxu2 %vm839_vm0, %v780_v47  ;;  %5565 = vmatmul.msk.bf16.gmra.mxu1 %vm839_vm0, %v780_v47 }
  0xbc   : > { %5574 = vmatmul.msk.bf16.vlgmr.msrb.gmra.mxu3 %vm839_vm0, %v773_v23 }
  0xcc   : > { %5575 = vmatmul.msk.bf16.gmra.mxu3 %vm839_vm0, %v774_v31 }
  0xd9   : > { %v873_v49 = vpop.f32.mrf.mxu0 }
  0xda   : > { %v7265_v8 = vadd.f32 %v873_v49, %v7258_v5 }
  0xdb   : > { %v932_v14 = vpop.f32.mrf.mxu1 }
  0xdc   : > { %5576 = vmatmul.msk.bf16.gmra.mxu3 %vm839_vm0, %v775_v24  ;;  %v1223_v13 = vmul.f32 %v7265_v8, %v7265_v8 }
  0xdf   : > { %v7224_v48 = vpop.f32.mrf.mxu3 }
  0xe1   : > { %v875_v51 = vpop.f32.mrf.mxu0  ;;  %v7295_v25 = vpop.f32.mrf.mxu2 }
  0xe2   : > { %v7293_v24 = vadd.f32 %v875_v51, %v7258_v5 }
  0xe3   : > { %v7307_v34 = vpop.f32.mrf.mxu1 }
  0xe4   : > { %v1227_v33 = vmul.f32 %v7293_v24, %v7293_v24 }
  0xe7   : > { %v7226_v50 = vpop.f32.mrf.mxu3 }
  0xe9   : > { %v878_v53 = vpop.f32.mrf.mxu0 }
  0xea   : > { %v7314_v37 = vadd.f32 %v878_v53, %v7258_v5  ;;  %v983_v53 = vpop.f32.mrf.mxu2 }
  0xec   : > { %5577 = vmatmul.msk.bf16.gmra.mxu3 %vm839_vm0, %v776_v32 }
  0xef   : > { %v7229_v52 = vpop.f32.mrf.mxu3 }
  0xf1   : > { %v7234_v55 = vpop.f32.mrf.mxu0 }
  0xf7   : > { %v7231_v54 = vpop.f32.mrf.mxu3 }
  0xf9   : > { %v922_v58 = vpop.f32.mrf.mxu0 }
  0xfa   : > { %v7270_v10 = vadd.f32 %v922_v58, %v7260_v6  ;;  %v1231_v58 = vmul.f32 %v7314_v37, %v7314_v37 }
  0xfc   : > { %5578 = vmatmul.msk.bf16.gmra.mxu3 %vm839_vm0, %v777_v38  ;;  %v1224_v15 = vmul.f32 %v7270_v10, %v7270_v10  ;;  %v1127_v17 = vadd.f32 %v7270_v10, %v7265_v8 }
  0xfe   : > { %v1287_v23 = vadd.f32 %v1224_v15, %v1223_v13  ;;  %v937_v15 = vpop.f32.mrf.mxu1 }
  0xff   : > { %v7236_v56 = vpop.f32.mrf.mxu3 }
 0x101   : > { %v924_v60 = vpop.f32.mrf.mxu0 }
 0x102   : > { %v7286_v20 = vadd.f32 %v924_v60, %v7260_v6 }
 0x104   : > { %v1228_v30 = vmul.f32 %v7286_v20, %v7286_v20  ;;  %v1132_v35 = vadd.f32 %v7286_v20, %v7293_v24 }
 0x106   : > { %v1292_v42 = vadd.f32 %v1228_v30, %v1227_v33  ;;  %v986_v33 = vpop.f32.mrf.mxu2 }
 0x107   : > { %v7238_v57 = vpop.f32.mrf.mxu3 }
 0x109   : > { %v927_v62 = vpop.f32.mrf.mxu0 }
 0x10a   : > { %v7317_v39 = vadd.f32 %v927_v62, %v7260_v6 }
 0x10c   : > { %5579 = vmatmul.msk.bf16.gmra.mxu3 %vm839_vm0, %v778_v41  ;;  %v1232_v60 = vmul.f32 %v7317_v39, %v7317_v39  ;;  %v1137_v4 = vadd.f32 %v7317_v39, %v7314_v37 }
 0x10f   : > { %v7241_v59 = vpop.f32.mrf.mxu3 }
 0x111   : > { %v7248_v0 = vpop.f32.mrf.mxu0 }
 0x117   : > { %v7243_v61 = vpop.f32.mrf.mxu3 }
 0x119   : > { %v971_v3 = vpop.f32.mrf.mxu0 }
 0x11a   : > { %v7273_v11 = vadd.f32 %v971_v3, %v7267_v9 }
 0x11c   : > { %5580 = vmatmul.msk.bf16.gmra.mxu3 %vm839_vm0, %v779_v44  ;;  %v1225_v18 = vmul.f32 %v7273_v11, %v7273_v11  ;;  %v1128_v22 = vadd.f32 %v1127_v17, %v7273_v11  ;;  %v6138_v44 = vld [vmem:[#allocation5 + $0x1f4] sm:$0xf0]  ;;  %v7339_v17 = vadd.f32 %v7248_v0, %v7260_v6 }
 0x11d   : > { %v5833_v45 = vor.u32 %v6138_v44, %v5832_v43  ;;  %v5824_v44 = vld [vmem:[#allocation5 + $0x1e0] sm:$0xf] }
 0x11e   : > { %v1288_v29 = vadd.f32 %v1287_v23, %v1225_v18  ;;  %v7347_v23 = vadd.f32 %v7234_v55, %v7258_v5  ;;  %v1236_v30 = vmul.f32 %v7339_v17, %v7339_v17  ;;  %v7362_v55 = vadd.f32 %v7224_v48, %v7258_v5  ;;  %v6136_v48 = vld [vmem:[#allocation5 + $0x1e4] sm:$0xf0] }
 0x11f   : > { %v7246_v63 = vpop.f32.mrf.mxu3  ;;  %2577 = vmatpush.bf16.msra.mxu3 %v5833_v45 }
 0x121   : > { %v973_v12 = vpop.f32.mrf.mxu0 }
 0x122   : > { %v7298_v26 = vadd.f32 %v973_v12, %v7267_v9 }
 0x124   : > { %v1229_v36 = vmul.f32 %v7298_v26, %v7298_v26  ;;  %v1133_v41 = vadd.f32 %v1132_v35, %v7298_v26  ;;  %v1235_v35 = vmul.f32 %v7347_v23, %v7347_v23 }
 0x126   : > { %v1293_v51 = vadd.f32 %v1292_v42, %v1229_v36  ;;  %v1142_v36 = vadd.f32 %v7339_v17, %v7347_v23  ;;  %v1302_v43 = vadd.f32 %v1236_v30, %v1235_v35 }
 0x127   : > { %v7250_v1 = vpop.f32.mrf.mxu3 }
 0x129   : > { %v976_v32 = vpop.f32.mrf.mxu0 }
 0x12a   : > { %v7324_v46 = vadd.f32 %v976_v32, %v7267_v9  ;;  %v7358_v32 = vadd.f32 %v932_v14, %v7260_v6 }
 0x12c   : > { %5581 = vmatmul.msk.bf16.gmra.mxu3 %vm839_vm0, %v780_v47  ;;  %v1233_v3 = vmul.f32 %v7324_v46, %v7324_v46  ;;  %v1240_v45 = vmul.f32 %v7358_v32, %v7358_v32 }
 0x12f   : > { %v7253_v2 = vpop.f32.mrf.mxu3 }
 0x131   : > { %v978_v12 = vpop.f32.mrf.mxu0 }
 0x137   : > { %v7262_v7 = vpop.f32.mrf.mxu3 }
 0x13f   : > { %v1020_v19 = vpop.f32.mrf.mxu3 }
 0x140   : > { %v7289_v21 = vadd.f32 %v1020_v19, %v7279_v16  ;;  %v1138_v19 = vadd.f32 %v1137_v4, %v7324_v46  ;;  %v1147_v4 = vadd.f32 %v7358_v32, %v7362_v55 }
 0x142   : > { %v1129_v27 = vadd.f32 %v1128_v22, %v7289_v21  ;;  %v1226_v28 = vmul.f32 %v7289_v21, %v7289_v21  ;;  %v1297_v22 = vadd.f32 %v1232_v60, %v1231_v58  ;;  %v939_v58 = vpop.f32.mrf.mxu1 }
 0x144   : > { %1130 = vadd.xlane.f32.xlu0 %v1129_v27  ;;  %v1289_v31 = vadd.f32 %v1288_v29, %v1226_v28  ;;  %v7350_v27 = vadd.f32 %v978_v12, %v7267_v9  ;;  %v1298_v0 = vadd.f32 %v1297_v22, %v1233_v3 }
 0x146   : > { %1290 = vadd.xlane.f32.xlu1 %v1289_v31  ;;  %v1143_v14 = vadd.f32 %v1142_v36, %v7350_v27 }
 0x147   : > { %v1022_v38 = vpop.f32.mrf.mxu3 }
 0x148   : > { %v7320_v40 = vadd.f32 %v1022_v38, %v7279_v16  ;;  %v1237_v38 = vmul.f32 %v7350_v27, %v7350_v27 }
 0x14a   : > { %v1134_v47 = vadd.f32 %v1133_v41, %v7320_v40  ;;  %v1230_v49 = vmul.f32 %v7320_v40, %v7320_v40  ;;  %v1303_v3 = vadd.f32 %v1302_v43, %v1237_v38 }
 0x14c   : > { %1135 = vadd.xlane.f32.xlu0 %v1134_v47  ;;  %v1294_v62 = vadd.f32 %v1293_v51, %v1230_v49  ;;  %v7378_v47 = vadd.f32 %v7295_v25, %v7267_v9  ;;  %v5825_v49 = vor.u32 %v6136_v48, %v5824_v44  ;;  %v1239_v51 = vmul.f32 %v7362_v55, %v7362_v55 }
 0x14d   : > { %v7389_v25 = vadd.f32 %v7226_v50, %v7258_v5  ;;  %v7418_v48 = vadd.f32 %v7229_v52, %v7258_v5 }
 0x14e   : > { %1295 = vadd.xlane.f32.xlu1 %v1294_v62  ;;  %2578 = vmatpush.bf16.msra.mxu3 %v5825_v49  ;;  %v1307_v22 = vadd.f32 %v1240_v45, %v1239_v51  ;;  %v1148_v30 = vadd.f32 %v1147_v4, %v7378_v47  ;;  %v5816_v4 = vld [vmem:[#allocation5 + $0x1d0] sm:$0xf] }
 0x14f   : > { %v1025_v13 = vpop.f32.mrf.mxu3  ;;  %v1243_v50 = vmul.f32 %v7389_v25, %v7389_v25  ;;  %10214 = vst [vmem:[#allocation36_spill] sm:$0xff] %v7418_v48  ;;  %v1247_v52 = vmul.f32 %v7418_v48, %v7418_v48 }
 0x150   : > { %v7342_v18 = vadd.f32 %v1025_v13, %v7279_v16  ;;  %v7393_v13 = vadd.f32 %v7307_v34, %v7260_v6  ;;  %v7406_v34 = vadd.f32 %v983_v53, %v7267_v9 }
 0x152   : > { %v1139_v28 = vadd.f32 %v1138_v19, %v7342_v18  ;;  %v1234_v29 = vmul.f32 %v7342_v18, %v7342_v18  ;;  %v1241_v19 = vmul.f32 %v7378_v47, %v7378_v47  ;;  %10212 = vst [vmem:[#allocation34_spill] sm:$0xff] %v7406_v34  ;;  %v1152_v44 = vadd.f32 %v7393_v13, %v7389_v25 }
 0x153   : > { %v1245_v53 = vmul.f32 %v7406_v34, %v7406_v34 }
 0x154   : > { %1140 = vadd.xlane.f32.xlu2 %v1139_v28  ;;  %v1299_v31 = vadd.f32 %v1298_v0, %v1234_v29  ;;  %v988_v28 = vpop.f32.mrf.mxu2  ;;  %v1308_v38 = vadd.f32 %v1307_v22, %v1241_v19 }
 0x156   : > { %1300 = vadd.xlane.f32.xlu0 %v1299_v31  ;;  %v1244_v31 = vmul.f32 %v7393_v13, %v7393_v13 }
 0x157   : > { %v1027_v41 = vpop.f32.mrf.mxu3 }
 0x158   : > { %v7371_v42 = vadd.f32 %v1027_v41, %v7279_v16  ;;  %v7412_v41 = vadd.f32 %v937_v15, %v7260_v6  ;;  %v1312_v45 = vadd.f32 %v1244_v31, %v1243_v50  ;;  %v5704_v50 = vld [vmem:[#allocation5 + $0xf0] sm:$0xf]  ;;  %v6106_v31 = vld [vmem:[#allocation5 + $0xf4] sm:$0xf0] }
 0x15a   : > { %v1144_v60 = vadd.f32 %v1143_v14, %v7371_v42  ;;  %v1238_v62 = vmul.f32 %v7371_v42, %v7371_v42  ;;  %10213 = vst [vmem:[#allocation35_spill] sm:$0xff] %v7412_v41  ;;  %v942_v14 = vpop.f32.mrf.mxu1  ;;  %v1248_v15 = vmul.f32 %v7412_v41, %v7412_v41  ;;  %v1313_v22 = vadd.f32 %v1312_v45, %v1245_v53 }
 0x15b   : > { %v7441_v45 = vadd.f32 %v939_v58, %v7260_v6 }
 0x15c   : > { %1145 = vadd.xlane.f32.xlu2 %v1144_v60  ;;  %v1304_v12 = vadd.f32 %v1303_v3, %v1238_v62  ;;  %v1153_v60 = vadd.f32 %v1152_v44, %v7406_v34  ;;  %v5768_v62 = vld [vmem:[#allocation5 + $0x170] sm:$0xf]  ;;  %v6122_v3 = vld [vmem:[#allocation5 + $0x174] sm:$0xf0]  ;;  %v991_v19 = vpop.f32.mrf.mxu2  ;;  %v1157_v44 = vadd.f32 %v7412_v41, %v7418_v48  ;;  %v5762_v34 = vld [vmem:[#allocation5 + $0x168] sm:$0xf0] }
 0x15d   : > { %10216 = vst [vmem:[#allocation38_spill] sm:$0xff] %v7441_v45  ;;  %v1252_v58 = vmul.f32 %v7441_v45, %v7441_v45 }
 0x15e   : > { %1305 = vadd.xlane.f32.xlu1 %v1304_v12  ;;  %v7431_v12 = vadd.f32 %v986_v33, %v7267_v9 }
 0x15f   : > { %v1030_v29 = vpop.f32.mrf.mxu3 }
 0x160   : > { %v7398_v0 = vadd.f32 %v1030_v29, %v7279_v16  ;;  %10215 = vst [vmem:[#allocation37_spill] sm:$0xff] %v7431_v12  ;;  %v5769_v29 = vor.u32 %v6122_v3, %v5768_v62  ;;  %v1249_v53 = vmul.f32 %v7431_v12, %v7431_v12 }
 0x162   : > { %v1149_v35 = vadd.f32 %v1148_v30, %v7398_v0  ;;  %v1242_v36 = vmul.f32 %v7398_v0, %v7398_v0  ;;  %v6134_v30 = vld [vmem:[#allocation5 + $0x1d4] sm:$0xf0]  ;;  %2528 = vmatpush.bf16.msrb.mxu2 %v5769_v29  ;;  %v944_v62 = vpop.f32.mrf.mxu1  ;;  %v5760_v29 = vld [vmem:[#allocation5 + $0x160] sm:$0xf] }
 0x164   : > { %1150 = vadd.xlane.f32.xlu2 %v1149_v35  ;;  %v1309_v43 = vadd.f32 %v1308_v38, %v1242_v36  ;;  %v5817_v38 = vor.u32 %v6134_v30, %v5816_v4  ;;  %v6120_v30 = vld [vmem:[#allocation5 + $0x164] sm:$0xf0] }
 0x166   : > { %1310 = vadd.xlane.f32.xlu1 %v1309_v43  ;;  %v5705_v43 = vor.u32 %v6106_v31, %v5704_v50  ;;  %2579 = vmatpush.bf16.msra.mxu3 %v5817_v38 }
 0x167   : > { %v1032_v49 = vpop.f32.mrf.mxu3 }
 0x168   : > { %v7425_v51 = vadd.f32 %v1032_v49, %v7279_v16  ;;  %v1317_v49 = vadd.f32 %v1248_v15, %v1247_v52  ;;  %2479 = vmatpush.bf16.msrb.mxu1 %v5705_v43  ;;  %v5761_v15 = vor.u32 %v6120_v30, %v5760_v29  ;;  %v5696_v30 = vld [vmem:[#allocation5 + $0xe0] sm:$0xf] }
 0x16a   : > { %v1154_v35 = vadd.f32 %v1153_v60, %v7425_v51  ;;  %v1246_v36 = vmul.f32 %v7425_v51, %v7425_v51  ;;  %v7445_v60 = vadd.f32 %v7231_v54, %v7258_v5  ;;  %v1318_v50 = vadd.f32 %v1317_v49, %v1249_v53  ;;  %2529 = vmatpush.bf16.msrb.mxu2 %v5761_v15  ;;  %v5808_v15 = vld [vmem:[#allocation5 + $0x1c0] sm:$0xf] }
 0x16b   : > { %v7456_v54 = vadd.f32 %v988_v28, %v7267_v9 }
 0x16c   : > { %1155 = vadd.xlane.f32.xlu0 %v1154_v35  ;;  %v1314_v33 = vadd.f32 %v1313_v22, %v1246_v36  ;;  %10217 = vst [vmem:[#allocation39_spill] sm:$0xff] %v7445_v60  ;;  %v1158_v22 = vadd.f32 %v1157_v44, %v7431_v12  ;;  %v1251_v52 = vmul.f32 %v7445_v60, %v7445_v60  ;;  %v993_v36 = vpop.f32.mrf.mxu2 }
 0x16d   : > { %10218 = vst [vmem:[#allocation40_spill] sm:$0xff] %v7456_v54  ;;  %v1162_v43 = vadd.f32 %v7441_v45, %v7445_v60  ;;  %v7465_v44 = vadd.f32 %v7236_v56, %v7258_v5  ;;  %v1253_v28 = vmul.f32 %v7456_v54, %v7456_v54  ;;  %v7495_v45 = vadd.f32 %v7238_v57, %v7258_v5  ;;  %v6102_v57 = vld [vmem:[#allocation5 + $0xd4] sm:$0xf0] }
 0x16e   : > { %1315 = vadd.xlane.f32.xlu2 %v1314_v33  ;;  %v7468_v33 = vadd.f32 %v942_v14, %v7260_v6  ;;  %v1322_v53 = vadd.f32 %v1252_v58, %v1251_v52  ;;  %v6132_v52 = vld [vmem:[#allocation5 + $0x1c4] sm:$0xf0] }
 0x16f   : > { %v1035_v3 = vpop.f32.mrf.mxu3  ;;  %10219 = vst [vmem:[#allocation41_spill] sm:$0xff] %v7465_v44  ;;  %v1163_v29 = vadd.f32 %v1162_v43, %v7456_v54  ;;  %v1255_v56 = vmul.f32 %v7465_v44, %v7465_v44 }
 0x170   : > { %v7448_v4 = vadd.f32 %v1035_v3, %v7279_v16  ;;  %10220 = vst [vmem:[#allocation42_spill] sm:$0xff] %v7468_v33  ;;  %v947_v3 = vpop.f32.mrf.mxu1  ;;  %v1256_v14 = vmul.f32 %v7468_v33, %v7468_v33  ;;  %v1323_v43 = vadd.f32 %v1322_v53, %v1253_v28  ;;  %v1167_v54 = vadd.f32 %v7468_v33, %v7465_v44 }
 0x171   : > { %10223 = vst [vmem:[#allocation45_spill] sm:$0xff] %v7495_v45 }
 0x172   : > { %v1159_v31 = vadd.f32 %v1158_v22, %v7448_v4  ;;  %v1250_v35 = vmul.f32 %v7448_v4, %v7448_v4 }
 0x174   : > { %1160 = vadd.xlane.f32.xlu0 %v1159_v31  ;;  %v1319_v38 = vadd.f32 %v1318_v50, %v1250_v35  ;;  %v6104_v50 = vld [vmem:[#allocation5 + $0xe4] sm:$0xf0]  ;;  %v7481_v31 = vadd.f32 %v991_v19, %v7267_v9 }
 0x175   : > { %v5697_v58 = vor.u32 %v6104_v50, %v5696_v30  ;;  %v7491_v30 = vadd.f32 %v944_v62, %v7260_v6  ;;  %v996_v50 = vpop.f32.mrf.mxu2 }
 0x176   : > { %1320 = vadd.xlane.f32.xlu2 %v1319_v38  ;;  %10221 = vst [vmem:[#allocation43_spill] sm:$0xff] %v7481_v31  ;;  %v1257_v19 = vmul.f32 %v7481_v31, %v7481_v31 }
 0x177   : > { %v1037_v49 = vpop.f32.mrf.mxu3  ;;  %2480 = vmatpush.bf16.msrb.mxu1 %v5697_v58  ;;  %10222 = vst [vmem:[#allocation44_spill] sm:$0xff] %v7491_v30  ;;  %v5752_v58 = vld [vmem:[#allocation5 + $0x150] sm:$0xf]  ;;  %v1260_v62 = vmul.f32 %v7491_v30, %v7491_v30 }
 0x178   : > { %v7473_v22 = vadd.f32 %v1037_v49, %v7279_v16  ;;  %v5809_v49 = vor.u32 %v6132_v52, %v5808_v15  ;;  %v1168_v15 = vadd.f32 %v1167_v54, %v7481_v31  ;;  %v6118_v52 = vld [vmem:[#allocation5 + $0x154] sm:$0xf0] }
 0x17a   : > { %v1164_v35 = vadd.f32 %v1163_v29, %v7473_v22  ;;  %v1254_v38 = vmul.f32 %v7473_v22, %v7473_v22  ;;  %2580 = vmatpush.bf16.msra.mxu3 %v5809_v49  ;;  %v1327_v29 = vadd.f32 %v1256_v14, %v1255_v56  ;;  %v5753_v14 = vor.u32 %v6118_v52, %v5752_v58 }
 0x17c   : > { %1165 = vadd.xlane.f32.xlu1 %v1164_v35  ;;  %v1324_v12 = vadd.f32 %v1323_v43, %v1254_v38  ;;  %v5688_v35 = vld [vmem:[#allocation5 + $0xd0] sm:$0xf]  ;;  %v7504_v38 = vadd.f32 %v993_v36, %v7267_v9  ;;  %v1328_v56 = vadd.f32 %v1327_v29, %v1257_v19  ;;  %v949_v43 = vpop.f32.mrf.mxu1  ;;  %2530 = vmatpush.bf16.msrb.mxu2 %v5753_v14 }
 0x17d   : > { %v1172_v36 = vadd.f32 %v7491_v30, %v7495_v45  ;;  %v7515_v19 = vadd.f32 %v7241_v59, %v7258_v5  ;;  %v7518_v29 = vadd.f32 %v947_v3, %v7260_v6  ;;  %v998_v52 = vpop.f32.mrf.mxu2 }
 0x17e   : > { %1325 = vadd.xlane.f32.xlu0 %v1324_v12  ;;  %10224 = vst [vmem:[#allocation46_spill] sm:$0xff] %v7504_v38  ;;  %v1259_v12 = vmul.f32 %v7495_v45, %v7495_v45 }
 0x17f   : > { %v1040_v28 = vpop.f32.mrf.mxu3  ;;  %10225 = vst [vmem:[#allocation47_spill] sm:$0xff] %v7515_v19  ;;  %v1173_v14 = vadd.f32 %v1172_v36, %v7504_v38  ;;  %v1263_v59 = vmul.f32 %v7515_v19, %v7515_v19  ;;  %v1264_v3 = vmul.f32 %v7518_v29, %v7518_v29  ;;  %v1177_v30 = vadd.f32 %v7518_v29, %v7515_v19  ;;  %v6088_v19 = vld [vmem:[#allocation5 + $0x64] sm:$0xf0] }
 0x180   : > { %v7498_v53 = vadd.f32 %v1040_v28, %v7279_v16  ;;  %v5689_v28 = vor.u32 %v6102_v57, %v5688_v35  ;;  %10226 = vst [vmem:[#allocation48_spill] sm:$0xff] %v7518_v29  ;;  %v1332_v58 = vadd.f32 %v1260_v62, %v1259_v12  ;;  %v5800_v57 = vld [vmem:[#allocation5 + $0x1b0] sm:$0xf]  ;;  %v6116_v12 = vld [vmem:[#allocation5 + $0x144] sm:$0xf0] }
 0x182   : > { %v1169_v49 = vadd.f32 %v1168_v15, %v7498_v53  ;;  %v1258_v54 = vmul.f32 %v7498_v53, %v7498_v53  ;;  %2481 = vmatpush.bf16.msrb.mxu1 %v5689_v28  ;;  %v1261_v15 = vmul.f32 %v7504_v38, %v7504_v38 }
 0x184   : > { %1170 = vadd.xlane.f32.xlu1 %v1169_v49  ;;  %v1329_v31 = vadd.f32 %v1328_v56, %v1258_v54  ;;  %v6130_v49 = vld [vmem:[#allocation5 + $0x1b4] sm:$0xf0]  ;;  %v5744_v54 = vld [vmem:[#allocation5 + $0x140] sm:$0xf]  ;;  %v1333_v36 = vadd.f32 %v1332_v58, %v1261_v15  ;;  %v952_v33 = vpop.f32.mrf.mxu1 }
 0x185   : > { %v5801_v62 = vor.u32 %v6130_v49, %v5800_v57  ;;  %v5745_v38 = vor.u32 %v6116_v12, %v5744_v54  ;;  %v7541_v57 = vadd.f32 %v949_v43, %v7260_v6  ;;  %v7545_v49 = vadd.f32 %v7243_v61, %v7258_v5 }
 0x186   : > { %1330 = vadd.xlane.f32.xlu0 %v1329_v31  ;;  %v7531_v31 = vadd.f32 %v996_v50, %v7267_v9  ;;  %v7556_v61 = vadd.f32 %v998_v52, %v7267_v9 }
 0x187   : > { %v1042_v35 = vpop.f32.mrf.mxu3  ;;  %2581 = vmatpush.bf16.msra.mxu3 %v5801_v62  ;;  %2531 = vmatpush.bf16.msrb.mxu2 %v5745_v38  ;;  %10228 = vst [vmem:[#allocation50_spill] sm:$0xff] %v7541_v57  ;;  %v5680_v62 = vld [vmem:[#allocation5 + $0xc0] sm:$0xf]  ;;  %v6100_v38 = vld [vmem:[#allocation5 + $0xc4] sm:$0xf0]  ;;  %v1268_v12 = vmul.f32 %v7541_v57, %v7541_v57 }
 0x188   : > { %v7523_v56 = vadd.f32 %v1042_v35, %v7279_v16  ;;  %10227 = vst [vmem:[#allocation49_spill] sm:$0xff] %v7531_v31  ;;  %v1265_v50 = vmul.f32 %v7531_v31, %v7531_v31  ;;  %v1178_v54 = vadd.f32 %v1177_v30, %v7531_v31  ;;  %v5792_v31 = vld [vmem:[#allocation5 + $0x1a0] sm:$0xf] }
 0x189   : > { %10229 = vst [vmem:[#allocation51_spill] sm:$0xff] %v7545_v49 }
 0x18a   : > { %v1174_v28 = vadd.f32 %v1173_v14, %v7523_v56  ;;  %v1262_v35 = vmul.f32 %v7523_v56, %v7523_v56  ;;  %v1337_v14 = vadd.f32 %v1264_v3, %v1263_v59  ;;  %v1267_v59 = vmul.f32 %v7545_v49, %v7545_v49  ;;  %10231 = vst [vmem:[#allocation53_spill] sm:$0xff] %v7556_v61 }
 0x18c   : > { %1175 = vadd.xlane.f32.xlu2 %v1174_v28  ;;  %v1334_v45 = vadd.f32 %v1333_v36, %v1262_v35  ;;  %v1001_v28 = vpop.f32.mrf.mxu2  ;;  %v1338_v43 = vadd.f32 %v1337_v14, %v1265_v50  ;;  %v5681_v35 = vor.u32 %v6100_v38, %v5680_v62  ;;  %v1182_v36 = vadd.f32 %v7541_v57, %v7545_v49  ;;  %v954_v52 = vpop.f32.mrf.mxu1 }
 0x18d   : > { %v7565_v50 = vadd.f32 %v7246_v63, %v7258_v5  ;;  %v7568_v14 = vadd.f32 %v952_v33, %v7260_v6 }
 0x18e   : > { %1335 = vadd.xlane.f32.xlu1 %v1334_v45  ;;  %2482 = vmatpush.bf16.msrb.mxu1 %v5681_v35  ;;  %v5736_v35 = vld [vmem:[#allocation5 + $0x130] sm:$0xf] }
 0x18f   : > { %v1045_v15 = vpop.f32.mrf.mxu3  ;;  %10232 = vst [vmem:[#allocation54_spill] sm:$0xff] %v7565_v50  ;;  %v1271_v63 = vmul.f32 %v7565_v50, %v7565_v50  ;;  %v1272_v33 = vmul.f32 %v7568_v14, %v7568_v14  ;;  %v1187_v29 = vadd.f32 %v7568_v14, %v7565_v50 }
 0x190   : > { %v7548_v58 = vadd.f32 %v1045_v15, %v7279_v16  ;;  %10233 = vst [vmem:[#allocation55_spill] sm:$0xff] %v7568_v14  ;;  %v1269_v15 = vmul.f32 %v7556_v61, %v7556_v61 }
 0x192   : > { %10230 = vst [vmem:[#allocation52_spill] sm:$0xff] %v7548_v58  ;;  %v1179_v45 = vadd.f32 %v1178_v54, %v7548_v58  ;;  %v1266_v3 = vmul.f32 %v7548_v58, %v7548_v58  ;;  %v1342_v54 = vadd.f32 %v1268_v12, %v1267_v59  ;;  %v6089_v58 = vld [vmem:[#allocation5 + $0x74] sm:$0xf] }
 0x194   : > { %1180 = vadd.xlane.f32.xlu2 %v1179_v45  ;;  %v1339_v30 = vadd.f32 %v1338_v43, %v1266_v3  ;;  %v1183_v43 = vadd.f32 %v1182_v36, %v7556_v61  ;;  %v6114_v45 = vld [vmem:[#allocation5 + $0x134] sm:$0xf0]  ;;  %v7581_v3 = vadd.f32 %v1001_v28, %v7267_v9  ;;  %v6128_v36 = vld [vmem:[#allocation5 + $0x1a4] sm:$0xf0]  ;;  %v1003_v61 = vpop.f32.mrf.mxu2 }
 0x195   : > { %v5793_v57 = vor.u32 %v6128_v36, %v5792_v31  ;;  %v957_v31 = vpop.f32.mrf.mxu1 }
 0x196   : > { %1340 = vadd.xlane.f32.xlu1 %v1339_v30  ;;  %10235 = vst [vmem:[#allocation57_spill] sm:$0xff] %v7581_v3  ;;  %v5737_v30 = vor.u32 %v6114_v45, %v5736_v35  ;;  %v1273_v28 = vmul.f32 %v7581_v3, %v7581_v3  ;;  %v7591_v35 = vadd.f32 %v954_v52, %v7260_v6 }
 0x197   : > { %v1047_v62 = vpop.f32.mrf.mxu3  ;;  %2582 = vmatpush.bf16.msra.mxu3 %v5793_v57  ;;  %v7606_v57 = vadd.f32 %v1003_v61, %v7267_v9 }
 0x198   : > { %v7573_v38 = vadd.f32 %v1047_v62, %v7279_v16  ;;  %v1343_v62 = vadd.f32 %v1342_v54, %v1269_v15  ;;  %2532 = vmatpush.bf16.msrb.mxu2 %v5737_v30  ;;  %10236 = vst [vmem:[#allocation58_spill] sm:$0xff] %v7591_v35  ;;  %v7595_v15 = vadd.f32 %v7250_v1, %v7258_v5 }
 0x199   : > { %v1188_v30 = vadd.f32 %v1187_v29, %v7581_v3  ;;  %10239 = vst [vmem:[#allocation61_spill] sm:$0xff] %v7606_v57  ;;  %v1277_v61 = vmul.f32 %v7606_v57, %v7606_v57 }
 0x19a   : > { %10234 = vst [vmem:[#allocation56_spill] sm:$0xff] %v7573_v38  ;;  %v1184_v12 = vadd.f32 %v1183_v43, %v7573_v38  ;;  %v1270_v59 = vmul.f32 %v7573_v38, %v7573_v38  ;;  %v1347_v43 = vadd.f32 %v1272_v33, %v1271_v63  ;;  %v1275_v52 = vmul.f32 %v7595_v15, %v7595_v15 }
 0x19b   : > { %10237 = vst [vmem:[#allocation59_spill] sm:$0xff] %v7595_v15  ;;  %v1192_v29 = vadd.f32 %v7591_v35, %v7595_v15  ;;  %v7615_v33 = vadd.f32 %v7253_v2, %v7258_v5 }
 0x19c   : > { %1185 = vadd.xlane.f32.xlu0 %v1184_v12  ;;  %v1344_v49 = vadd.f32 %v1343_v62, %v1270_v59  ;;  %v1276_v12 = vmul.f32 %v7591_v35, %v7591_v35  ;;  %v1348_v59 = vadd.f32 %v1347_v43, %v1273_v28  ;;  %v7618_v62 = vadd.f32 %v957_v31, %v7260_v6  ;;  %v1006_v36 = vpop.f32.mrf.mxu2  ;;  %v5640_v43 = vld [vmem:[#allocation5 + $0x70] sm:$0xf] }
 0x19d   : > { %10240 = vst [vmem:[#allocation62_spill] sm:$0xff] %v7615_v33  ;;  %v1279_v2 = vmul.f32 %v7615_v33, %v7615_v33 }
 0x19e   : > { %1345 = vadd.xlane.f32.xlu2 %v1344_v49  ;;  %10241 = vst [vmem:[#allocation63_spill] sm:$0xff] %v7618_v62  ;;  %v1352_v28 = vadd.f32 %v1276_v12, %v1275_v52  ;;  %v1280_v31 = vmul.f32 %v7618_v62, %v7618_v62  ;;  %v959_v12 = vpop.f32.mrf.mxu1 }
 0x19f   : > { %v1050_v54 = vpop.f32.mrf.mxu3 }
 0x1a0   : > { %v7598_v45 = vadd.f32 %v1050_v54, %v7279_v16  ;;  %v6090_v54 = vld [vmem:[#allocation5 + $0x74] sm:$0xf0]  ;;  %v1357_v15 = vadd.f32 %v1280_v31, %v1279_v2 }
 0x1a2   : > { %10238 = vst [vmem:[#allocation60_spill] sm:$0xff] %v7598_v45  ;;  %v1189_v1 = vadd.f32 %v1188_v30, %v7598_v45  ;;  %v1274_v49 = vmul.f32 %v7598_v45, %v7598_v45 }
 0x1a4   : > { %1190 = vadd.xlane.f32.xlu0 %v1189_v1  ;;  %v1349_v63 = vadd.f32 %v1348_v59, %v1274_v49  ;;  %v5641_v59 = vor.u32 %v6090_v54, %v5640_v43  ;;  %v1193_v49 = vadd.f32 %v1192_v29, %v7606_v57  ;;  %v1353_v54 = vadd.f32 %v1352_v28, %v1277_v61  ;;  %v5624_v61 = vld [vmem:[#allocation5 + $0x50] sm:$0xf]  ;;  %v1008_v28 = vpop.f32.mrf.mxu2 }
 0x1a5   : > { %v1197_v57 = vadd.f32 %v7618_v62, %v7615_v33  ;;  %v6110_v33 = vld [vmem:[#allocation5 + $0x114] sm:$0xf0] }
 0x1a6   : > { %1350 = vadd.xlane.f32.xlu2 %v1349_v63  ;;  %v7631_v63 = vadd.f32 %v1006_v36, %v7267_v9  ;;  %2430 = vmatpush.bf16.msrb.mxu0 %v5641_v59  ;;  %v7641_v59 = vadd.f32 %v959_v12, %v7260_v6  ;;  %v5616_v12 = vld [vmem:[#allocation5 + $0x40] sm:$0xf] }
 0x1a7   : > { %v1052_v30 = vpop.f32.mrf.mxu3 }
 0x1a8   : > { %v7623_v1 = vadd.f32 %v1052_v30, %v7279_v16  ;;  %10243 = vst [vmem:[#allocation65_spill] sm:$0xff] %v7631_v63  ;;  %v5632_v30 = vld [vmem:[#allocation5 + $0x60] sm:$0xf]  ;;  %v1281_v36 = vmul.f32 %v7631_v63, %v7631_v63  ;;  %v1284_v6 = vmul.f32 %v7641_v59, %v7641_v59 }
 0x1a9   : > { %v5633_v29 = vor.u32 %v6088_v19, %v5632_v30  ;;  %10244 = vst [vmem:[#allocation66_spill] sm:$0xff] %v7641_v59  ;;  %v6086_v19 = vld [vmem:[#allocation5 + $0x54] sm:$0xf0] }
 0x1aa   : > { %10242 = vst [vmem:[#allocation64_spill] sm:$0xff] %v7623_v1  ;;  %v1194_v52 = vadd.f32 %v1193_v49, %v7623_v1  ;;  %v1278_v43 = vmul.f32 %v7623_v1, %v7623_v1  ;;  %v7645_v49 = vadd.f32 %v7262_v7, %v7258_v5  ;;  %v5625_v62 = vor.u32 %v6086_v19, %v5624_v61  ;;  %v5608_v19 = vld [vmem:[#allocation5 + $0x30] sm:$0xf] }
 0x1ab   : > { %2431 = vmatpush.bf16.msrb.mxu0 %v5633_v29  ;;  %v1358_v2 = vadd.f32 %v1357_v15, %v1281_v36  ;;  %v7656_v7 = vadd.f32 %v1008_v28, %v7267_v9  ;;  %v6098_v36 = vld [vmem:[#allocation5 + $0xb4] sm:$0xf0] }
 0x1ac   : > { %1195 = vadd.xlane.f32.xlu1 %v1194_v52  ;;  %v1354_v35 = vadd.f32 %v1353_v54, %v1278_v43  ;;  %10245 = vst [vmem:[#allocation67_spill] sm:$0xff] %v7645_v49  ;;  %v1198_v43 = vadd.f32 %v1197_v57, %v7631_v63  ;;  %v1283_v5 = vmul.f32 %v7645_v49, %v7645_v49  ;;  %v6084_v54 = vld [vmem:[#allocation5 + $0x44] sm:$0xf0] }
 0x1ad   : > { %10247 = vst [vmem:[#allocation69_spill] sm:$0xff] %v7656_v7  ;;  %v5617_v29 = vor.u32 %v6084_v54, %v5616_v12  ;;  %v1202_v15 = vadd.f32 %v7641_v59, %v7645_v49  ;;  %v1285_v9 = vmul.f32 %v7656_v7, %v7656_v7  ;;  %v6112_v59 = vld [vmem:[#allocation5 + $0x124] sm:$0xf0]  ;;  %v5664_v49 = vld [vmem:[#allocation5 + $0xa0] sm:$0xf] }
 0x1ae   : > { %1355 = vadd.xlane.f32.xlu0 %v1354_v35  ;;  %v1362_v61 = vadd.f32 %v1284_v6, %v1283_v5 }
 0x1af   : > { %v1055_v30 = vpop.f32.mrf.mxu3  ;;  %2432 = vmatpush.bf16.msrb.mxu0 %v5625_v62  ;;  %v5672_v62 = vld [vmem:[#allocation5 + $0xb0] sm:$0xf]  ;;  %v1203_v54 = vadd.f32 %v1202_v15, %v7656_v7 }
 0x1b0   : > { %v7648_v52 = vadd.f32 %v1055_v30, %v7279_v16 }
 0x1b2   : > { %10246 = vst [vmem:[#allocation68_spill] sm:$0xff] %v7648_v52  ;;  %v1199_v35 = vadd.f32 %v1198_v43, %v7648_v52  ;;  %v1282_v31 = vmul.f32 %v7648_v52, %v7648_v52  ;;  %v5673_v43 = vor.u32 %v6098_v36, %v5672_v62  ;;  %v6082_v52 = vld [vmem:[#allocation5 + $0x34] sm:$0xf0]  ;;  %v6096_v36 = vld [vmem:[#allocation5 + $0xa4] sm:$0xf0] }
 0x1b3   : > { %2433 = vmatpush.bf16.msrb.mxu0 %v5617_v29  ;;  %v1363_v29 = vadd.f32 %v1362_v61, %v1285_v9 }
 0x1b4   : > { %1200 = vadd.xlane.f32.xlu1 %v1199_v35  ;;  %v1359_v57 = vadd.f32 %v1358_v2, %v1282_v31  ;;  %v5609_v35 = vor.u32 %v6082_v52, %v5608_v19  ;;  %2483 = vmatpush.bf16.msrb.mxu1 %v5673_v43  ;;  %v5600_v52 = vld [vmem:[#allocation5 + $0x20] sm:$0xf]  ;;  %v5784_v43 = vld [vmem:[#allocation5 + $0x190] sm:$0xf] }
 0x1b6   : > { %1360 = vadd.xlane.f32.xlu0 %v1359_v57  ;;  %v5728_v57 = vld [vmem:[#allocation5 + $0x120] sm:$0xf] }
 0x1b7   : > { %v1057_v28 = vpop.f32.mrf.mxu3  ;;  %v1131_v30 = vpop.xlane.xlu0 %1130  ;;  %2434 = vmatpush.bf16.msrb.mxu0 %v5609_v35  ;;  %v5729_v19 = vor.u32 %v6112_v59, %v5728_v57  ;;  %v6126_v35 = vld [vmem:[#allocation5 + $0x194] sm:$0xf0] }
 0x1b8   : > { %v7666_v12 = vadd.f32 %v1057_v28, %v7279_v16  ;;  %v7668_v2 = vmul.f32 0.001953125, %v1131_v30  ;;  %v5665_v28 = vor.u32 %v6096_v36, %v5664_v49  ;;  %v6080_v30 = vld [vmem:[#allocation5 + $0x24] sm:$0xf0]  ;;  %v5785_v63 = vor.u32 %v6126_v35, %v5784_v43  ;;  %v6094_v49 = vld [vmem:[#allocation5 + $0x94] sm:$0xf0] }
 0x1b9   : > { %v1291_v31 = vpop.xlane.xlu1 %1290  ;;  %v5601_v61 = vor.u32 %v6080_v30, %v5600_v52  ;;  %2533 = vmatpush.bf16.msrb.mxu2 %v5729_v19  ;;  %v6124_v36 = vld [vmem:[#allocation5 + $0x184] sm:$0xf0]  ;;  %v5712_v52 = vld [vmem:[#allocation5 + $0x100] sm:$0xf] }
 0x1ba   : > { %10248 = vst [vmem:[#allocation70_spill] sm:$0xff] %v7666_v12  ;;  %v1367_v6 = vmul.f32 0.001953125, %v1291_v31  ;;  %v1383_v5 = vmul.f32 %v7668_v2, %v7668_v2  ;;  %v1204_v62 = vadd.f32 %v1203_v54, %v7666_v12  ;;  %v1286_v16 = vmul.f32 %v7666_v12, %v7666_v12  ;;  %2484 = vmatpush.bf16.msrb.mxu1 %v5665_v28  ;;  %v5720_v31 = vld [vmem:[#allocation5 + $0x110] sm:$0xf]  ;;  %v5648_v30 = vld [vmem:[#allocation5 + $0x80] sm:$0xf] }
 0x1bb   : > { %v5656_v12 = vld [vmem:[#allocation5 + $0x90] sm:$0xf]  ;;  %2435 = vmatpush.bf16.msrb.mxu0 %v5601_v61  ;;  %v5721_v59 = vor.u32 %v6110_v33, %v5720_v31  ;;  %2583 = vmatpush.bf16.msra.mxu3 %v5785_v63  ;;  %v6108_v33 = vld [vmem:[#allocation5 + $0x104] sm:$0xf0] }
 0x1bc   : > { %v1399_v15 = vsub.f32 %v1367_v6, %v1383_v5  ;;  %1205 = vadd.xlane.f32.xlu2 %v1204_v62  ;;  %v1364_v9 = vadd.f32 %v1363_v29, %v1286_v16  ;;  %v5657_v6 = vor.u32 %v6094_v49, %v5656_v12  ;;  %v5592_v5 = vld [vmem:[#allocation5 + $0x10] sm:$0xf]  ;;  %v6078_v62 = vld [vmem:[#allocation5 + $0x14] sm:$0xf0]  ;;  %v5776_v16 = vld [vmem:[#allocation5 + $0x180] sm:$0xf] }
 0x1bd   : > { %2534 = vmatpush.bf16.msrb.mxu2 %v5721_v59  ;;  %v5593_v63 = vor.u32 %v6078_v62, %v5592_v5  ;;  %v5584_v12 = vld [vmem:[#allocation5] sm:$0xf]  ;;  %v6076_v61 = vld [vmem:[#allocation5 + $0x4] sm:$0xf0]  ;;  %v1060_v62 = vld [vmem:[%s10249_s24] sm:$0xf] }
 0x1be   : > { %v1415_v7 = vmax.f32 %v1399_v15, 0.0  ;;  %1365 = vadd.xlane.f32.xlu1 %v1364_v9  ;;  %2485 = vmatpush.bf16.msrb.mxu1 %v5657_v6  ;;  %v5713_v15 = vor.u32 %v6108_v33, %v5712_v52  ;;  %v6092_v9 = vld [vmem:[#allocation5 + $0x84] sm:$0xf0]  ;;  %v5585_v59 = vor.u32 %v6076_v61, %v5584_v12  ;;  %v7700_v61 = vperm.slane %v1060_v62, 1 }
 0x1bf   : > { %v1136_v54 = vpop.xlane.xlu0 %1135  ;;  %v5649_v35 = vor.u32 %v6092_v9, %v5648_v30  ;;  %2436 = vmatpush.bf16.msrb.mxu0 %v5593_v63  ;;  %v7694_v30 = vperm.slane %v1060_v62, 3 }
 0x1c0   : > { %v7676_v1 = vmul.f32 0.001953125, %v1136_v54  ;;  %v7678_v57 = vadd.f32 1e-05, %v1415_v7  ;;  %v5777_v7 = vor.u32 %v6124_v36, %v5776_v16 }
 0x1c1   : > { %v1296_v29 = vpop.xlane.xlu1 %1295  ;;  %2535 = vmatpush.bf16.msrb.mxu2 %v5713_v15  ;;  %v7696_v15 = vperm.slane %v1060_v62, 0 }
 0x1c2   : > { %6352 = vrsqrt.f32 %v7678_v57  ;;  %v1368_v19 = vmul.f32 0.001953125, %v1296_v29  ;;  %v1384_v28 = vmul.f32 %v7676_v1, %v7676_v1  ;;  %2584 = vmatpush.bf16.msra.mxu3 %v5777_v7  ;;  %2486 = vmatpush.bf16.msrb.mxu1 %v5649_v35  ;;  %vm1517_vm2 = vweird.f32 %v7678_v57 }
 0x1c3   : > { %2437 = vmatpush.bf16.msrb.mxu0 %v5585_v59  ;;  %v1437_v3 = vsub.f32 %v7298_v26, %v7676_v1 }
 0x1c4   : > { %v1400_v43 = vsub.f32 %v1368_v19, %v1384_v28  ;;  %v1061_v28 = vld [vmem:[#allocation2] sm:$0xf] }
 0x1c5   : > { %v7698_v12 = vperm.slane %v1061_v28, 0  ;;  %v7733_v50 = vperm.slane %v1061_v28, 3 }
 0x1c6   : > { %v1416_v31 = vmax.f32 %v1400_v43, 0.0  ;;  %v7702_v43 = vperm.slane %v1061_v28, 1 }
 0x1c7   : > { %v1141_v54 = vpop.xlane.xlu2 %1140 }
 0x1c8   : > { %v7683_v49 = vmul.f32 0.001953125, %v1141_v54  ;;  %v6353_v29 = vpop.eup %6352  ;;  %v7685_v6 = vadd.f32 1e-05, %v1416_v31  ;;  %v7706_v54 = vperm.slane %v1060_v62, 2 }
 0x1c9   : > { %v1301_v16 = vpop.xlane.xlu0 %1300  ;;  %v1512_v36 = vmul.f32 %v6353_v29, %v7678_v57  ;;  %vm1518_vm1 = vweird.f32 %v6353_v29 }
 0x1ca   : > { %v1385_v5 = vmul.f32 %v7683_v49, %v7683_v49  ;;  %6354 = vrsqrt.f32 %v7685_v6  ;;  %v1369_v52 = vmul.f32 0.001953125, %v1301_v16  ;;  %v1431_v16 = vsub.f32 %v7265_v8, %v7668_v2  ;;  %vm1519_vm3 = vmor %vm1517_vm2, %vm1518_vm1 }
 0x1cb   : > { %v1513_v19 = vmul.f32 %v6353_v29, %v1512_v36  ;;  %v1432_v36 = vsub.f32 %v7270_v10, %v7668_v2  ;;  %vm1527_vm5 = vweird.f32 %v7685_v6 }
 0x1cc   : > { %v1401_v33 = vsub.f32 %v1369_v52, %v1385_v5  ;;  %v1433_v5 = vsub.f32 %v7273_v11, %v7668_v2 }
 0x1cd   : > { %v1514_v7 = vmul.f32 0.5, %v1513_v19 }
 0x1ce   : > { %v1417_v9 = vmax.f32 %v1401_v33, 0.0  ;;  %v1434_v33 = vsub.f32 %v7289_v21, %v7668_v2  ;;  %v1436_v21 = vsub.f32 %v7286_v20, %v7676_v1 }
 0x1cf   : > { %v1146_v63 = vpop.xlane.xlu2 %1145  ;;  %v1515_v35 = vsub.f32 1.5, %v1514_v7 }
 0x1d0   : > { %v7704_v31 = vmul.f32 0.001953125, %v1146_v63  ;;  %v6355_v59 = vpop.eup %6354  ;;  %v7714_v52 = vadd.f32 1e-05, %v1417_v9  ;;  %v7723_v63 = vperm.slane %v1061_v28, 2  ;;  %v1435_v9 = vsub.f32 %v7293_v24, %v7676_v1 }
 0x1d1   : > { %v1306_v19 = vpop.xlane.xlu1 %1305  ;;  %v1516_v7 = vmul.f32 %v6353_v29, %v1515_v35  ;;  %v1522_v62 = vmul.f32 %v6355_v59, %v7685_v6  ;;  %vm1528_vm4 = vweird.f32 %v6355_v59 }
 0x1d2   : > { %6356 = vrsqrt.f32 %v7714_v52  ;;  %v1386_v8 = vmul.f32 %v7704_v31, %v7704_v31  ;;  %v1370_v10 = vmul.f32 0.001953125, %v1306_v19  ;;  %v1438_v19 = vsub.f32 %v7320_v40, %v7676_v1  ;;  %vm1529_vm6 = vmor %vm1527_vm5, %vm1528_vm4 }
 0x1d3   : > { %v1520_v11 = vsel %vm1519_vm3, %v6353_v29, %v1516_v7  ;;  %v1523_v2 = vmul.f32 %v6355_v59, %v1522_v62  ;;  %vm1537_vm10 = vweird.f32 %v7714_v52 }
 0x1d4   : > { %v1671_v57 = vmul.f32 %v1520_v11, %v1431_v16  ;;  %v1674_v35 = vmul.f32 %v1520_v11, %v1434_v33  ;;  %v1402_v44 = vsub.f32 %v1370_v10, %v1386_v8  ;;  %v1672_v45 = vmul.f32 %v1520_v11, %v1432_v36 }
 0x1d5   : > { %v1524_v14 = vmul.f32 0.5, %v1523_v2  ;;  %v1673_v26 = vmul.f32 %v1520_v11, %v1433_v5 }
 0x1d6   : > { %v1418_v29 = vmax.f32 %v1402_v44, 0.0  ;;  %v1744_v20 = vmul.f32 %v7696_v15, %v1671_v57  ;;  %v1745_v16 = vmul.f32 %v7700_v61, %v1672_v45  ;;  %v1747_v40 = vmul.f32 %v7694_v30, %v1674_v35 }
 0x1d7   : > { %v1151_v7 = vpop.xlane.xlu2 %1150  ;;  %v1525_v33 = vsub.f32 1.5, %v1524_v14  ;;  %v1746_v35 = vmul.f32 %v7706_v54, %v1673_v26 }
 0x1d8   : > { %v7739_v36 = vmul.f32 0.001953125, %v1151_v7  ;;  %v7741_v62 = vpop.eup %6356  ;;  %v7745_v1 = vadd.f32 1e-05, %v1418_v29  ;;  %v1817_v45 = vadd.f32 %v7698_v12, %v1744_v20  ;;  %v1818_v11 = vadd.f32 %v7702_v43, %v1745_v16 }
 0x1d9   : > { %v1311_v28 = vpop.xlane.xlu1 %1310  ;;  %v1526_v8 = vmul.f32 %v6355_v59, %v1525_v33  ;;  %v1532_v14 = vmul.f32 %v7741_v62, %v7714_v52  ;;  %v7763_v24 = vadd.f32 %v7733_v50, %v1747_v40  ;;  %vm1538_vm8 = vweird.f32 %v7741_v62 }
 0x1da   : > { %6358 = vrsqrt.f32 %v7745_v1  ;;  %v1387_v6 = vmul.f32 %v7739_v36, %v7739_v36  ;;  %v1371_v10 = vmul.f32 0.001953125, %v1311_v28  ;;  %vm1881_vm7 = vcmp.ge.f32.partialorder %v1817_v45, 0.0  ;;  %vm1539_vm1 = vmor %vm1537_vm10, %vm1538_vm8 }
 0x1db   : > { %v1530_v2 = vsel %vm1529_vm6, %v6355_v59, %v1526_v8  ;;  %v1533_v57 = vmul.f32 %v7741_v62, %v1532_v14  ;;  %v1945_v28 = vmul.f32 0.01, %v1817_v45  ;;  %v1946_v26 = vmul.f32 0.01, %v1818_v11 }
 0x1dc   : > { %v1675_v7 = vmul.f32 %v1530_v2, %v1435_v9  ;;  %v1403_v20 = vsub.f32 %v1371_v10, %v1387_v6  ;;  %v1676_v33 = vmul.f32 %v1530_v2, %v1436_v21  ;;  %v1678_v5 = vmul.f32 %v1530_v2, %v1438_v19 }
 0x1dd   : > { %v1534_v44 = vmul.f32 0.5, %v1533_v57  ;;  %vm1882_vm9 = vcmp.ge.f32.partialorder %v1818_v11, 0.0  ;;  %v1677_v57 = vmul.f32 %v1530_v2, %v1437_v3  ;;  %vm1547_vm15 = vweird.f32 %v7745_v1 }
 0x1de   : > { %v1419_v38 = vmax.f32 %v1403_v20, 0.0  ;;  %v1748_v59 = vmul.f32 %v7696_v15, %v1675_v7  ;;  %v1749_v8 = vmul.f32 %v7700_v61, %v1676_v33  ;;  %v1751_v7 = vmul.f32 %v7694_v30, %v1678_v5 }
 0x1df   : > { %v1156_v16 = vpop.xlane.xlu0 %1155  ;;  %v1535_v14 = vsub.f32 1.5, %v1534_v44  ;;  %v2009_v20 = vsel %vm1881_vm7, %v1817_v45, %v1945_v28  ;;  %v1819_v33 = vadd.f32 %v7723_v63, %v1746_v35  ;;  %v2010_v29 = vsel %vm1882_vm9, %v1818_v11, %v1946_v26 }
 0x1e0   : > { %v7768_v9 = vmul.f32 0.001953125, %v1156_v16  ;;  %v6359_v21 = vpop.eup %6358  ;;  %v7771_v19 = vadd.f32 1e-05, %v1419_v38  ;;  %v1821_v6 = vadd.f32 %v7698_v12, %v1748_v59  ;;  %v1822_v10 = vadd.f32 %v7702_v43, %v1749_v8 }
 0x1e1   : > { %v1316_v40 = vpop.xlane.xlu2 %1315  ;;  %v1542_v44 = vmul.f32 %v6359_v21, %v7745_v1  ;;  %v1536_v59 = vmul.f32 %v7741_v62, %v1535_v14  ;;  %v1750_v8 = vmul.f32 %v7706_v54, %v1677_v57  ;;  %vm1883_vm13 = vcmp.ge.f32.partialorder %v1819_v33, 0.0 }
 0x1e2   : > { %6360 = vrsqrt.f32 %v7771_v19  ;;  %v1372_v16 = vmul.f32 0.001953125, %v1316_v40  ;;  %v1388_v38 = vmul.f32 %v7768_v9, %v7768_v9  ;;  %vm1885_vm11 = vcmp.ge.f32.partialorder %v1821_v6, 0.0 }
 0x1e3   : > { %v1543_v41 = vmul.f32 %v6359_v21, %v1542_v44  ;;  %v1949_v3 = vmul.f32 0.01, %v1821_v6  ;;  %vm1886_vm12 = vcmp.ge.f32.partialorder %v1822_v10, 0.0  ;;  %v1950_v5 = vmul.f32 0.01, %v1822_v10 }
 0x1e4   : > { %v1404_v2 = vsub.f32 %v1372_v16, %v1388_v38  ;;  %v1947_v35 = vmul.f32 0.01, %v1819_v33  ;;  %v1823_v11 = vadd.f32 %v7723_v63, %v1750_v8  ;;  %vm1548_vm14 = vweird.f32 %v6359_v21  ;;  %v6121_v16 = vld [vmem:[#allocation5 + $0x174] sm:$0xf]  ;;  %v5770_v38 = vld [vmem:[#allocation5 + $0x178] sm:$0xf0] }
 0x1e5   : > { %v1544_v45 = vmul.f32 0.5, %v1543_v41  ;;  %v2013_v28 = vsel %vm1885_vm11, %v1821_v6, %v1949_v3  ;;  %v2014_v48 = vsel %vm1886_vm12, %v1822_v10, %v1950_v5  ;;  %v1824_v44 = vadd.f32 %v7733_v50, %v1751_v7  ;;  %v6137_v7 = vld [vmem:[#allocation5 + $0x1f4] sm:$0xf]  ;;  %vm1549_vm3 = vmor %vm1547_vm15, %vm1548_vm14  ;;  %v5834_v3 = vld [vmem:[#allocation5 + $0x1f8] sm:$0xf0] }
 0x1e6   : > { %v1420_v60 = vmax.f32 %v1404_v2, 0.0  ;;  %v7784_v40 = vpack.c.bf16 %v2013_v28, %v2009_v20  ;;  %v7787_v14 = vpack.c.bf16 %v2014_v48, %v2010_v29  ;;  %vm1887_vm0 = vcmp.ge.f32.partialorder %v1823_v11, 0.0  ;;  %v6105_v28 = vld [vmem:[#allocation5 + $0xf4] sm:$0xf] }
 0x1e7   : > { %v1545_v26 = vsub.f32 1.5, %v1544_v45  ;;  %v1951_v6 = vmul.f32 0.01, %v1823_v11  ;;  %v1161_v10 = vpop.xlane.xlu0 %1160  ;;  %v2011_v1 = vsel %vm1883_vm13, %v1819_v33, %v1947_v35  ;;  %vm1884_vm2 = vcmp.ge.f32.partialorder %v7763_v24, 0.0  ;;  %v5706_v35 = vld [vmem:[#allocation5 + $0xf8] sm:$0xf0] }
 0x1e8   : > { %10250 = vst [vmem:[#allocation71_spill] sm:$0xff] %v7784_v40  ;;  %v7790_v57 = vpop.eup %6360  ;;  %v7793_v41 = vadd.f32 1e-05, %v1420_v60  ;;  %2438 = vmatmul.bf16.vlgmr.msrb.gmra.mxu0 %v7784_v40  ;;  %2487 = vmatmul.bf16.vlgmr.msrb.gmra.mxu1 %v7787_v14  ;;  %v5642_v60 = vld [vmem:[#allocation5 + $0x78] sm:$0xf0]  ;;  %vm1888_vm4 = vcmp.ge.f32.partialorder %v1824_v44, 0.0  ;;  %v7809_v5 = vsel %vm1539_vm1, %v7741_v62, %v1536_v59  ;;  %v5837_v59 = vor.u32 %v6137_v7, %v5834_v3 }
 0x1e9   : > { %10251 = vst [vmem:[#allocation72_spill] sm:$0xff] %v7787_v14  ;;  %v1546_v48 = vmul.f32 %v6359_v21, %v1545_v26  ;;  %v1552_v29 = vmul.f32 %v7790_v57, %v7771_v19  ;;  %v2015_v20 = vsel %vm1887_vm0, %v1823_v11, %v1951_v6  ;;  %v1948_v52 = vmul.f32 0.01, %v7763_v24  ;;  %v1321_v2 = vpop.xlane.xlu2 %1320  ;;  %v6119_v6 = vld [vmem:[#allocation5 + $0x164] sm:$0xf] }
 0x1ea   : > { %6362 = vrsqrt.f32 %v7793_v41  ;;  %v7813_v33 = vpack.c.bf16 %v2015_v20, %v2011_v1  ;;  %v1952_v45 = vmul.f32 0.01, %v1824_v44  ;;  %v5773_v14 = vor.u32 %v6121_v16, %v5770_v38  ;;  %2773 = vmatpush.bf16.msrb.mxu3 %v5837_v59 }
 0x1eb   : > { %v7811_v8 = vsel %vm1549_vm3, %v6359_v21, %v1546_v48  ;;  %v1553_v26 = vmul.f32 %v7790_v57, %v1552_v29  ;;  %v7816_v40 = vmul.f32 0.001953125, %v1161_v10  ;;  %v5645_v11 = vor.u32 %v6089_v58, %v5642_v60 }
 0x1ec   : > { %2536 = vmatmul.bf16.vlgmr.msrb.gmra.mxu2 %v7813_v33  ;;  %v2012_v62 = vsel %vm1884_vm2, %v7763_v24, %v1948_v52  ;;  %v2016_v21 = vsel %vm1888_vm4, %v1824_v44, %v1952_v45  ;;  %v1373_v48 = vmul.f32 0.001953125, %v1321_v2  ;;  %v1443_v38 = vsub.f32 %v7347_v23, %v7704_v31 }
 0x1ed   : > { %v7823_v1 = vpack.c.bf16 %v2016_v21, %v2012_v62  ;;  %2724 = vmatpush.bf16.msra.mxu2 %v5773_v14  ;;  %2626 = vmatpush.bf16.msra.mxu0 %v5645_v11  ;;  %v1389_v16 = vmul.f32 %v7816_v40, %v7816_v40  ;;  %v1446_v10 = vsub.f32 %v7371_v42, %v7704_v31  ;;  %v1554_v45 = vmul.f32 0.5, %v1553_v26  ;;  %v6135_v42 = vld [vmem:[#allocation5 + $0x1e4] sm:$0xf] }
 0x1ee   : > { %v5709_v24 = vor.u32 %v6105_v28, %v5706_v35  ;;  %v5765_v44 = vor.u32 %v6119_v6, %v5762_v34  ;;  %v10252_v20 = vsub.f32 %v7314_v37, %v7683_v49  ;;  %v1683_v23 = vmul.f32 %v7811_v8, %v1443_v38 }
 0x1ef   : > { %v1166_v58 = vpop.xlane.xlu1 %1165  ;;  %2585 = vmatmul.bf16.vlgmr.msra.gmra.mxu3 %v7823_v1  ;;  %v1405_v14 = vsub.f32 %v1373_v48, %v1389_v16  ;;  %v10253_v3 = vsub.f32 %v7317_v39, %v7683_v49  ;;  %v1444_v28 = vsub.f32 %v7339_v17, %v7704_v31  ;;  %v1445_v37 = vsub.f32 %v7350_v27, %v7704_v31  ;;  %v5826_v31 = vld [vmem:[#allocation5 + $0x1e8] sm:$0xf0] }
 0x1f0   : > { %v7831_v29 = vmul.f32 0.001953125, %v1166_v58  ;;  %v7833_v60 = vpop.eup %6362  ;;  %v1679_v52 = vmul.f32 %v7809_v5, %v10252_v20  ;;  %2675 = vmatpush.bf16.msra.mxu1 %v5709_v24  ;;  %v1756_v21 = vmul.f32 %v7696_v15, %v1683_v23  ;;  %v1555_v58 = vsub.f32 1.5, %v1554_v45 }
 0x1f1   : > { %v1326_v7 = vpop.xlane.xlu0 %1325  ;;  %v1680_v2 = vmul.f32 %v7809_v5, %v10253_v3  ;;  %v1562_v34 = vmul.f32 %v7833_v60, %v7793_v41  ;;  %v1421_v35 = vmax.f32 %v1405_v14, 0.0  ;;  %2725 = vmatpush.bf16.msra.mxu2 %v5765_v44  ;;  %v1684_v17 = vmul.f32 %v7811_v8, %v1444_v28 }
 0x1f2   : > { %v1390_v11 = vmul.f32 %v7831_v29, %v7831_v29  ;;  %v1374_v6 = vmul.f32 0.001953125, %v1326_v7  ;;  %v1752_v39 = vmul.f32 %v7696_v15, %v1679_v52  ;;  %v1829_v24 = vadd.f32 %v7698_v12, %v1756_v21 }
 0x1f3   : > { %v1563_v62 = vmul.f32 %v7833_v60, %v1562_v34  ;;  %v7859_v59 = vadd.f32 1e-05, %v1421_v35  ;;  %v1753_v16 = vmul.f32 %v7700_v61, %v1680_v2  ;;  %v1757_v44 = vmul.f32 %v7700_v61, %v1684_v17 }
 0x1f4   : > { %v1406_v27 = vsub.f32 %v1374_v6, %v1390_v11  ;;  %v1825_v48 = vadd.f32 %v7698_v12, %v1752_v39  ;;  %vm1893_vm6 = vcmp.ge.f32.partialorder %v1829_v24, 0.0  ;;  %v10254_v23 = vsub.f32 %v7324_v46, %v7683_v49 }
 0x1f5   : > { %v1564_v38 = vmul.f32 0.5, %v1563_v62  ;;  %6364 = vrsqrt.f32 %v7859_v59  ;;  %v1957_v34 = vmul.f32 0.01, %v1829_v24  ;;  %v1826_v28 = vadd.f32 %v7702_v43, %v1753_v16 }
 0x1f6   : > { %v1422_v20 = vmax.f32 %v1406_v27, 0.0  ;;  %vm1889_vm5 = vcmp.ge.f32.partialorder %v1825_v48, 0.0  ;;  %v1953_v52 = vmul.f32 0.01, %v1825_v48  ;;  %v1681_v3 = vmul.f32 %v7809_v5, %v10254_v23 }
 0x1f7   : > { %v1171_v45 = vpop.xlane.xlu1 %1170  ;;  %v1830_v35 = vadd.f32 %v7702_v43, %v1757_v44  ;;  %v7879_v11 = vmul.f32 %v7790_v57, %v1555_v58  ;;  %v1565_v6 = vsub.f32 1.5, %v1564_v38  ;;  %v1685_v62 = vmul.f32 %v7811_v8, %v1445_v37 }
 0x1f8   : > { %v7874_v2 = vadd.f32 1e-05, %v1422_v20  ;;  %v2017_v46 = vsel %vm1889_vm5, %v1825_v48, %v1953_v52  ;;  %v2021_v21 = vsel %vm1893_vm6, %v1829_v24, %v1957_v34  ;;  %vm1890_vm7 = vcmp.ge.f32.partialorder %v1826_v28, 0.0  ;;  %v6087_v20 = vld [vmem:[#allocation5 + $0x64] sm:$0xf] }
 0x1f9   : > { %vm1558_vm8 = vweird.f32 %v7790_v57  ;;  %v7886_v17 = vmul.f32 0.001953125, %v1171_v45  ;;  %v7888_v27 = vpack.c.bf16 %v2021_v21, %v2017_v46  ;;  %vm1894_vm9 = vcmp.ge.f32.partialorder %v1830_v35, 0.0  ;;  %v5634_v52 = vld [vmem:[#allocation5 + $0x68] sm:$0xf0] }
 0x1fa   : > { %6366 = vrsqrt.f32 %v7874_v2  ;;  %v1954_v16 = vmul.f32 0.01, %v1826_v28  ;;  %vm1568_vm10 = vweird.f32 %v7833_v60  ;;  %v1958_v38 = vmul.f32 0.01, %v1830_v35 }
 0x1fb   : > { %v7890_v58 = vpop.eup %6364  ;;  %v1754_v37 = vmul.f32 %v7706_v54, %v1681_v3  ;;  %v1758_v44 = vmul.f32 %v7706_v54, %v1685_v62  ;;  %v10255_v48 = vsub.f32 %v7342_v18, %v7683_v49  ;;  %vm1557_vm11 = vweird.f32 %v7771_v19  ;;  %2443 = vmatmul.bf16.gmra.mxu0 %v7888_v27 }
 0x1fc   : > { %v7901_v23 = vmul.f32 %v7833_v60, %v1565_v6  ;;  %v1572_v45 = vmul.f32 %v7890_v58, %v7859_v59  ;;  %v2018_v3 = vsel %vm1890_vm7, %v1826_v28, %v1954_v16  ;;  %v1686_v18 = vmul.f32 %v7811_v8, %v1446_v10  ;;  %vm1559_vm2 = vmor %vm1557_vm11, %vm1558_vm8 }
 0x1fd   : > { %v1682_v24 = vmul.f32 %v7809_v5, %v10255_v48  ;;  %vm1567_vm12 = vweird.f32 %v7793_v41  ;;  %v2022_v49 = vsel %vm1894_vm9, %v1830_v35, %v1958_v38  ;;  %v1827_v5 = vadd.f32 %v7723_v63, %v1754_v37 }
 0x1fe   : > { %v1831_v34 = vadd.f32 %v7723_v63, %v1758_v44  ;;  %v1573_v62 = vmul.f32 %v7890_v58, %v1572_v45  ;;  %v7917_v46 = vpack.c.bf16 %v2022_v49, %v2018_v3  ;;  %v1759_v28 = vmul.f32 %v7694_v30, %v1686_v18  ;;  %v1331_v45 = vpop.xlane.xlu0 %1330  ;;  %v6103_v3 = vld [vmem:[#allocation5 + $0xe4] sm:$0xf]  ;;  %v5698_v18 = vld [vmem:[#allocation5 + $0xe8] sm:$0xf0]  ;;  %vm1569_vm3 = vmor %vm1567_vm12, %vm1568_vm10 }
 0x1ff   : > { %v1755_v6 = vmul.f32 %v7694_v30, %v1682_v24  ;;  %v5637_v21 = vor.u32 %v6087_v20, %v5634_v52  ;;  %v1176_v8 = vpop.xlane.xlu2 %1175  ;;  %vm1891_vm13 = vcmp.ge.f32.partialorder %v1827_v5, 0.0  ;;  %v1955_v35 = vmul.f32 0.01, %v1827_v5 }
 0x200   : > { %10256 = vst [vmem:[#allocation73_spill] sm:$0xff] %v7917_v46  ;;  %v7920_v10 = vpop.eup %6366  ;;  %vm1895_vm14 = vcmp.ge.f32.partialorder %v1831_v34, 0.0  ;;  %v1959_v16 = vmul.f32 0.01, %v1831_v34  ;;  %v1574_v38 = vmul.f32 0.5, %v1573_v62  ;;  %vm1578_vm15 = vweird.f32 %v7890_v58  ;;  %2492 = vmatmul.bf16.gmra.mxu1 %v7917_v46 }
 0x201   : > { %v1582_v37 = vmul.f32 %v7920_v10, %v7874_v2  ;;  %v1828_v44 = vadd.f32 %v7733_v50, %v1755_v6  ;;  %2627 = vmatpush.bf16.msra.mxu0 %v5637_v21  ;;  %v2019_v48 = vsel %vm1891_vm13, %v1827_v5, %v1955_v35  ;;  %v1832_v20 = vadd.f32 %v7733_v50, %v1759_v28  ;;  %v1336_v7 = vpop.xlane.xlu1 %1335 }
 0x202   : > { %v2023_v24 = vsel %vm1895_vm14, %v1831_v34, %v1959_v16  ;;  %v5829_v52 = vor.u32 %v6135_v42, %v5826_v31  ;;  %v1575_v49 = vsub.f32 1.5, %v1574_v38  ;;  %v1391_v5 = vmul.f32 %v7886_v17, %v7886_v17  ;;  %v6117_v42 = vld [vmem:[#allocation5 + $0x154] sm:$0xf]  ;;  %v5754_v31 = vld [vmem:[#allocation5 + $0x158] sm:$0xf0] }
 0x203   : > { %v1583_v62 = vmul.f32 %v7920_v10, %v1582_v37  ;;  %v7929_v39 = vpack.c.bf16 %v2023_v24, %v2019_v48  ;;  %vm1892_vm0 = vcmp.ge.f32.partialorder %v1828_v44, 0.0  ;;  %vm1896_vm1 = vcmp.ge.f32.partialorder %v1832_v20, 0.0 }
 0x204   : > { %v1956_v14 = vmul.f32 0.01, %v1828_v44  ;;  %v1960_v26 = vmul.f32 0.01, %v1832_v20  ;;  %2774 = vmatpush.bf16.msrb.mxu3 %v5829_v52  ;;  %v1576_v34 = vmul.f32 %v7890_v58, %v1575_v49  ;;  %v1375_v28 = vmul.f32 0.001953125, %v1331_v45 }
 0x205   : > { %10257 = vst [vmem:[#allocation74_spill] sm:$0xff] %v7929_v39  ;;  %v1584_v6 = vmul.f32 0.5, %v1583_v62  ;;  %2541 = vmatmul.bf16.gmra.mxu2 %v7929_v39  ;;  %v5701_v21 = vor.u32 %v6103_v3, %v5698_v18  ;;  %v7940_v38 = vmul.f32 0.001953125, %v1176_v8  ;;  %v1376_v37 = vmul.f32 0.001953125, %v1336_v7 }
 0x206   : > { %v2020_v35 = vsel %vm1892_vm0, %v1828_v44, %v1956_v14  ;;  %v2024_v16 = vsel %vm1896_vm1, %v1832_v20, %v1960_v26  ;;  %v1560_v48 = vsel %vm1559_vm2, %v7790_v57, %v7879_v11  ;;  %vm1577_vm4 = vweird.f32 %v7859_v59 }
 0x207   : > { %v7949_v24 = vpack.c.bf16 %v2024_v16, %v2020_v35  ;;  %v1407_v19 = vsub.f32 %v1375_v28, %v1391_v5  ;;  %2676 = vmatpush.bf16.msra.mxu1 %v5701_v21  ;;  %v7953_v26 = vsel %vm1569_vm3, %v7833_v60, %v7901_v23  ;;  %vm1579_vm5 = vmor %vm1577_vm4, %vm1578_vm15  ;;  %v1392_v41 = vmul.f32 %v7940_v38, %v7940_v38  ;;  %v1181_v11 = vpop.xlane.xlu2 %1180  ;;  %v10259_v35 = vld [vmem:[#allocation34_spill] sm:$0xff] }
 0x208   : > { %v5757_v14 = vor.u32 %v6117_v42, %v5754_v31  ;;  %v7962_v59 = vsel %vm1579_vm5, %v7890_v58, %v1576_v34  ;;  %v1447_v60 = vsub.f32 %v7362_v55, %v7739_v36  ;;  %v1451_v23 = vsub.f32 %v7389_v25, %v7768_v9 }
 0x209   : > { %10258 = vst [vmem:[#allocation75_spill] sm:$0xff] %v7949_v24  ;;  %2590 = vmatmul.bf16.gmra.mxu3 %v7949_v24  ;;  %v1423_v7 = vmax.f32 %v1407_v19, 0.0  ;;  %v1585_v8 = vsub.f32 1.5, %v1584_v6  ;;  %v1408_v44 = vsub.f32 %v1376_v37, %v1392_v41  ;;  %v1448_v20 = vsub.f32 %v7358_v32, %v7739_v36 }
 0x20a   : > { %2726 = vmatpush.bf16.msra.mxu2 %v5757_v14  ;;  %v1452_v58 = vsub.f32 %v7393_v13, %v7768_v9  ;;  %vm1588_vm6 = vweird.f32 %v7920_v10  ;;  %v1687_v55 = vmul.f32 %v1560_v48, %v1447_v60  ;;  %v1691_v3 = vmul.f32 %v7953_v26, %v1451_v23 }
 0x20b   : > { %v7974_v52 = vadd.f32 1e-05, %v1423_v7  ;;  %v1424_v25 = vmax.f32 %v1408_v44, 0.0  ;;  %v7979_v18 = vmul.f32 0.001953125, %v1181_v11  ;;  %v1688_v49 = vmul.f32 %v1560_v48, %v1448_v20 }
 0x20c   : > { %v1692_v62 = vmul.f32 %v7953_v26, %v1452_v58  ;;  %vm1587_vm7 = vweird.f32 %v7874_v2  ;;  %v1760_v32 = vmul.f32 %v7696_v15, %v1687_v55  ;;  %v1764_v13 = vmul.f32 %v7696_v15, %v1691_v3  ;;  %v6085_v3 = vld [vmem:[#allocation5 + $0x54] sm:$0xf] }
 0x20d   : > { %6368 = vrsqrt.f32 %v7974_v52  ;;  %v1449_v5 = vsub.f32 %v7378_v47, %v7739_v36  ;;  %v1586_v34 = vmul.f32 %v7920_v10, %v1585_v8  ;;  %v7989_v6 = vadd.f32 1e-05, %v1424_v25  ;;  %v5626_v25 = vld [vmem:[#allocation5 + $0x58] sm:$0xf0]  ;;  %vm1589_vm12 = vmor %vm1587_vm7, %vm1588_vm6 }
 0x20e   : > { %v1761_v28 = vmul.f32 %v7700_v61, %v1688_v49  ;;  %v1765_v21 = vmul.f32 %v7700_v61, %v1692_v62  ;;  %v1833_v42 = vadd.f32 %v7698_v12, %v1760_v32  ;;  %v1837_v31 = vadd.f32 %v7698_v12, %v1764_v13 }
 0x20f   : > { %v1453_v16 = vsub.f32 %v10259_v35, %v7768_v9  ;;  %v1689_v37 = vmul.f32 %v1560_v48, %v1449_v5  ;;  %6370 = vrsqrt.f32 %v7989_v6  ;;  %v10260_v41 = vsub.f32 %v7398_v0, %v7739_v36  ;;  %v10261_v36 = vld [vmem:[#allocation52_spill] sm:$0xff] }
 0x210   : > { %v1834_v47 = vadd.f32 %v7702_v43, %v1761_v28  ;;  %v1838_v19 = vadd.f32 %v7702_v43, %v1765_v21  ;;  %vm1897_vm8 = vcmp.ge.f32.partialorder %v1833_v42, 0.0  ;;  %vm1901_vm9 = vcmp.ge.f32.partialorder %v1837_v31, 0.0 }
 0x211   : > { %v1690_v14 = vmul.f32 %v1560_v48, %v10260_v41  ;;  %v1961_v7 = vmul.f32 0.01, %v1833_v42  ;;  %v1965_v11 = vmul.f32 0.01, %v1837_v31  ;;  %v1693_v58 = vmul.f32 %v7953_v26, %v1453_v16 }
 0x212   : > { %vm1898_vm10 = vcmp.ge.f32.partialorder %v1834_v47, 0.0  ;;  %vm1902_vm11 = vcmp.ge.f32.partialorder %v1838_v19, 0.0  ;;  %v1962_v60 = vmul.f32 0.01, %v1834_v47  ;;  %v1966_v23 = vmul.f32 0.01, %v1838_v19 }
 0x213   : > { %v8003_v8 = vpop.eup %6368  ;;  %v2025_v44 = vsel %vm1897_vm8, %v1833_v42, %v1961_v7  ;;  %v2029_v20 = vsel %vm1901_vm9, %v1837_v31, %v1965_v11  ;;  %v1762_v55 = vmul.f32 %v7706_v54, %v1689_v37  ;;  %v1766_v13 = vmul.f32 %v7706_v54, %v1693_v58  ;;  %v6101_v58 = vld [vmem:[#allocation5 + $0xd4] sm:$0xf] }
 0x214   : > { %v1592_v0 = vmul.f32 %v8003_v8, %v7974_v52  ;;  %v8011_v49 = vpack.c.bf16 %v2029_v20, %v2025_v44  ;;  %v2026_v62 = vsel %vm1898_vm10, %v1834_v47, %v1962_v60  ;;  %v2030_v32 = vsel %vm1902_vm11, %v1838_v19, %v1966_v23  ;;  %v6133_v47 = vld [vmem:[#allocation5 + $0x1d4] sm:$0xf]  ;;  %v1341_v20 = vpop.xlane.xlu1 %1340 }
 0x215   : > { %v1835_v5 = vadd.f32 %v7723_v63, %v1762_v55  ;;  %v10263_v28 = vsub.f32 %v7425_v51, %v7768_v9  ;;  %v8019_v42 = vpop.eup %6370  ;;  %v8027_v35 = vpack.c.bf16 %v2030_v32, %v2026_v62  ;;  %v1763_v16 = vmul.f32 %v7694_v30, %v1690_v14  ;;  %v5818_v51 = vld [vmem:[#allocation5 + $0x1d8] sm:$0xf0]  ;;  %v1186_v62 = vpop.xlane.xlu0 %1185 }
 0x216   : > { %10262 = vst [vmem:[#allocation34_spill] sm:$0xff] %v8011_v49  ;;  %v1593_v31 = vmul.f32 %v8003_v8, %v1592_v0  ;;  %2448 = vmatmul.bf16.gmra.mxu0 %v8011_v49  ;;  %v5629_v37 = vor.u32 %v6085_v3, %v5626_v25  ;;  %v8031_v9 = vsel %vm1589_vm12, %v7920_v10, %v1586_v34  ;;  %vm1597_vm15 = vweird.f32 %v7974_v52  ;;  %v5690_v55 = vld [vmem:[#allocation5 + $0xd8] sm:$0xf0]  ;;  %v1346_v32 = vpop.xlane.xlu2 %1345 }
 0x217   : > { %v1694_v21 = vmul.f32 %v7953_v26, %v10263_v28  ;;  %10264 = vst [vmem:[#allocation52_spill] sm:$0xff] %v8027_v35  ;;  %v1602_v26 = vmul.f32 %v8019_v42, %v7989_v6  ;;  %v1839_v2 = vadd.f32 %v7723_v63, %v1766_v13  ;;  %vm1899_vm13 = vcmp.ge.f32.partialorder %v1835_v5, 0.0  ;;  %2497 = vmatmul.bf16.gmra.mxu1 %v8027_v35  ;;  %v5674_v35 = vld [vmem:[#allocation5 + $0xb8] sm:$0xf0] }
 0x218   : > { %v1594_v19 = vmul.f32 0.5, %v1593_v31  ;;  %v1963_v41 = vmul.f32 0.01, %v1835_v5  ;;  %v1836_v14 = vadd.f32 %v7733_v50, %v1763_v16  ;;  %2628 = vmatpush.bf16.msra.mxu0 %v5629_v37  ;;  %v5821_v34 = vor.u32 %v6133_v47, %v5818_v51 }
 0x219   : > { %v1767_v7 = vmul.f32 %v7694_v30, %v1694_v21  ;;  %v1603_v11 = vmul.f32 %v8019_v42, %v1602_v26  ;;  %vm1903_vm14 = vcmp.ge.f32.partialorder %v1839_v2, 0.0  ;;  %v1967_v10 = vmul.f32 0.01, %v1839_v2 }
 0x21a   : > { %v1595_v60 = vsub.f32 1.5, %v1594_v19  ;;  %v2027_v23 = vsel %vm1899_vm13, %v1835_v5, %v1963_v41  ;;  %vm1900_vm0 = vcmp.ge.f32.partialorder %v1836_v14, 0.0  ;;  %v1964_v25 = vmul.f32 0.01, %v1836_v14  ;;  %2775 = vmatpush.bf16.msrb.mxu3 %v5821_v34  ;;  %v10267_v41 = vld [vmem:[#allocation36_spill] sm:$0xff] }
 0x21b   : > { %v1840_v44 = vadd.f32 %v7733_v50, %v1767_v7  ;;  %v2031_v3 = vsel %vm1903_vm14, %v1839_v2, %v1967_v10  ;;  %v1393_v0 = vmul.f32 %v7979_v18, %v7979_v18  ;;  %v1604_v13 = vmul.f32 0.5, %v1603_v11  ;;  %v10268_v10 = vld [vmem:[#allocation39_spill] sm:$0xff] }
 0x21c   : > { %v8044_v28 = vpack.c.bf16 %v2031_v3, %v2027_v23  ;;  %v1596_v5 = vmul.f32 %v8003_v8, %v1595_v60  ;;  %vm1598_vm2 = vweird.f32 %v8003_v8  ;;  %v1377_v31 = vmul.f32 0.001953125, %v1341_v20  ;;  %v10269_v60 = vld [vmem:[#allocation35_spill] sm:$0xff] }
 0x21d   : > { %vm1904_vm1 = vcmp.ge.f32.partialorder %v1840_v44, 0.0  ;;  %v1968_v21 = vmul.f32 0.01, %v1840_v44  ;;  %v5693_v16 = vor.u32 %v6101_v58, %v5690_v55  ;;  %v2028_v37 = vsel %vm1900_vm0, %v1836_v14, %v1964_v25  ;;  %vm1599_vm4 = vmor %vm1597_vm15, %vm1598_vm2  ;;  %v10270_v58 = vld [vmem:[#allocation38_spill] sm:$0xff] }
 0x21e   : > { %10265 = vst [vmem:[#allocation76_spill] sm:$0xff] %v8044_v28  ;;  %2546 = vmatmul.bf16.gmra.mxu2 %v8044_v28  ;;  %v8049_v51 = vmul.f32 0.001953125, %v1186_v62  ;;  %v1378_v26 = vmul.f32 0.001953125, %v1346_v32  ;;  %vm1608_vm3 = vweird.f32 %v8019_v42  ;;  %v1409_v19 = vsub.f32 %v1377_v31, %v1393_v0  ;;  %v10271_v62 = vld [vmem:[#allocation37_spill] sm:$0xff] }
 0x21f   : > { %v2032_v47 = vsel %vm1904_vm1, %v1840_v44, %v1968_v21  ;;  %2677 = vmatpush.bf16.msra.mxu1 %v5693_v16  ;;  %v1455_v7 = vsub.f32 %v10267_v41, %v7816_v40  ;;  %v1605_v11 = vsub.f32 1.5, %v1604_v13  ;;  %v1459_v34 = vsub.f32 %v10268_v10, %v7831_v29 }
 0x220   : > { %v8052_v2 = vpack.c.bf16 %v2032_v47, %v2028_v37  ;;  %v1394_v14 = vmul.f32 %v8049_v51, %v8049_v51  ;;  %v1456_v23 = vsub.f32 %v10269_v60, %v7816_v40  ;;  %v8065_v44 = vsel %vm1599_vm4, %v8003_v8, %v1596_v5  ;;  %v10272_v5 = vld [vmem:[#allocation40_spill] sm:$0xff] }
 0x221   : > { %vm1607_vm5 = vweird.f32 %v7989_v6  ;;  %v1425_v20 = vmax.f32 %v1409_v19, 0.0  ;;  %v1695_v52 = vmul.f32 %v7962_v59, %v1455_v7  ;;  %v1460_v55 = vsub.f32 %v10270_v58, %v7831_v29 }
 0x222   : > { %10266 = vst [vmem:[#allocation77_spill] sm:$0xff] %v8052_v2  ;;  %2595 = vmatmul.bf16.gmra.mxu3 %v8052_v2  ;;  %v1410_v3 = vsub.f32 %v1378_v26, %v1394_v14  ;;  %v1699_v25 = vmul.f32 %v8031_v9, %v1459_v34  ;;  %v1696_v0 = vmul.f32 %v7962_v59, %v1456_v23  ;;  %vm1609_vm10 = vmor %vm1607_vm5, %vm1608_vm3  ;;  %v6097_v2 = vld [vmem:[#allocation5 + $0xb4] sm:$0xf] }
 0x223   : > { %v1457_v32 = vsub.f32 %v10271_v62, %v7816_v40  ;;  %v8076_v8 = vadd.f32 1e-05, %v1425_v20  ;;  %v1768_v13 = vmul.f32 %v7696_v15, %v1695_v52  ;;  %v1700_v21 = vmul.f32 %v8031_v9, %v1460_v55  ;;  %v10273_v52 = vld [vmem:[#allocation56_spill] sm:$0xff] }
 0x224   : > { %v1461_v31 = vsub.f32 %v10272_v5, %v7831_v29  ;;  %v1426_v16 = vmax.f32 %v1410_v3, 0.0  ;;  %v1772_v37 = vmul.f32 %v7696_v15, %v1699_v25  ;;  %v1769_v47 = vmul.f32 %v7700_v61, %v1696_v0 }
 0x225   : > { %v1697_v26 = vmul.f32 %v7962_v59, %v1457_v32  ;;  %v1606_v19 = vmul.f32 %v8019_v42, %v1605_v11  ;;  %6372 = vrsqrt.f32 %v8076_v8  ;;  %v1841_v41 = vadd.f32 %v7698_v12, %v1768_v13 }
 0x226   : > { %v1773_v7 = vmul.f32 %v7700_v61, %v1700_v21  ;;  %v8089_v14 = vadd.f32 1e-05, %v1426_v16  ;;  %v1845_v10 = vadd.f32 %v7698_v12, %v1772_v37  ;;  %v1842_v34 = vadd.f32 %v7702_v43, %v1769_v47 }
 0x227   : > { %v1701_v60 = vmul.f32 %v8031_v9, %v1461_v31  ;;  %vm1905_vm6 = vcmp.ge.f32.partialorder %v1841_v41, 0.0  ;;  %v1969_v23 = vmul.f32 0.01, %v1841_v41  ;;  %v1770_v11 = vmul.f32 %v7706_v54, %v1697_v26 }
 0x228   : > { %v1846_v20 = vadd.f32 %v7702_v43, %v1773_v7  ;;  %6374 = vrsqrt.f32 %v8089_v14  ;;  %vm1909_vm7 = vcmp.ge.f32.partialorder %v1845_v10, 0.0  ;;  %v1973_v55 = vmul.f32 0.01, %v1845_v10 }
 0x229   : > { %v2033_v3 = vsel %vm1905_vm6, %v1841_v41, %v1969_v23  ;;  %vm1906_vm8 = vcmp.ge.f32.partialorder %v1842_v34, 0.0  ;;  %v1970_v25 = vmul.f32 0.01, %v1842_v34  ;;  %v1774_v32 = vmul.f32 %v7706_v54, %v1701_v60 }
 0x22a   : > { %vm1910_vm9 = vcmp.ge.f32.partialorder %v1846_v20, 0.0  ;;  %v2037_v0 = vsel %vm1909_vm7, %v1845_v10, %v1973_v55  ;;  %v1974_v62 = vmul.f32 0.01, %v1846_v20  ;;  %v1843_v13 = vadd.f32 %v7723_v63, %v1770_v11  ;;  %v6083_v55 = vld [vmem:[#allocation5 + $0x44] sm:$0xf] }
 0x22b   : > { %v8105_v21 = vpop.eup %6372  ;;  %v8108_v5 = vsel %vm1609_vm10, %v8019_v42, %v1606_v19  ;;  %v8110_v31 = vpack.c.bf16 %v2037_v0, %v2033_v3  ;;  %v10275_v16 = vsub.f32 %v7448_v4, %v7816_v40  ;;  %v10276_v6 = vsub.f32 %v7473_v22, %v7831_v29  ;;  %v6115_v19 = vld [vmem:[#allocation5 + $0x144] sm:$0xf]  ;;  %v1191_v22 = vpop.xlane.xlu0 %1190  ;;  %v5618_v3 = vld [vmem:[#allocation5 + $0x48] sm:$0xf0] }
 0x22c   : > { %v1612_v26 = vmul.f32 %v8105_v21, %v8076_v8  ;;  %v2034_v41 = vsel %vm1906_vm8, %v1842_v34, %v1970_v25  ;;  %v2038_v7 = vsel %vm1910_vm9, %v1846_v20, %v1974_v62  ;;  %v1847_v42 = vadd.f32 %v7723_v63, %v1774_v32  ;;  %v1196_v25 = vpop.xlane.xlu1 %1195 }
 0x22d   : > { %10274 = vst [vmem:[#allocation36_spill] sm:$0xff] %v8110_v31  ;;  %v1698_v37 = vmul.f32 %v7962_v59, %v10275_v16  ;;  %v1702_v47 = vmul.f32 %v8031_v9, %v10276_v6  ;;  %2453 = vmatmul.bf16.gmra.mxu0 %v8110_v31  ;;  %v8124_v10 = vpack.c.bf16 %v2038_v7, %v2034_v41  ;;  %vm1907_vm11 = vcmp.ge.f32.partialorder %v1843_v13, 0.0  ;;  %v5746_v59 = vld [vmem:[#allocation5 + $0x148] sm:$0xf0] }
 0x22e   : > { %v1971_v4 = vmul.f32 0.01, %v1843_v13  ;;  %v8127_v29 = vpop.eup %6374  ;;  %v1613_v9 = vmul.f32 %v8105_v21, %v1612_v26  ;;  %vm1911_vm12 = vcmp.ge.f32.partialorder %v1847_v42, 0.0  ;;  %v1975_v34 = vmul.f32 0.01, %v1847_v42 }
 0x22f   : > { %10277 = vst [vmem:[#allocation39_spill] sm:$0xff] %v8124_v10  ;;  %v1771_v40 = vmul.f32 %v7694_v30, %v1698_v37  ;;  %v1775_v60 = vmul.f32 %v7694_v30, %v1702_v47  ;;  %vm1617_vm13 = vweird.f32 %v8076_v8  ;;  %v1622_v23 = vmul.f32 %v8127_v29, %v8089_v14  ;;  %2502 = vmatmul.bf16.gmra.mxu1 %v8124_v10  ;;  %v6131_v37 = vld [vmem:[#allocation5 + $0x1c4] sm:$0xf]  ;;  %v5810_v6 = vld [vmem:[#allocation5 + $0x1c8] sm:$0xf0] }
 0x230   : > { %v2035_v20 = vsel %vm1907_vm11, %v1843_v13, %v1971_v4  ;;  %v1614_v0 = vmul.f32 0.5, %v1613_v9  ;;  %v2039_v62 = vsel %vm1911_vm12, %v1847_v42, %v1975_v34  ;;  %v5749_v16 = vor.u32 %v6115_v19, %v5746_v59  ;;  %v1351_v59 = vpop.xlane.xlu2 %1350  ;;  %v6099_v9 = vld [vmem:[#allocation5 + $0xc4] sm:$0xf]  ;;  %v5682_v34 = vld [vmem:[#allocation5 + $0xc8] sm:$0xf0] }
 0x231   : > { %v1844_v11 = vadd.f32 %v7733_v50, %v1771_v40  ;;  %v1848_v32 = vadd.f32 %v7733_v50, %v1775_v60  ;;  %v1623_v47 = vmul.f32 %v8127_v29, %v1622_v23  ;;  %v8138_v26 = vpack.c.bf16 %v2039_v62, %v2035_v20  ;;  %v6113_v20 = vld [vmem:[#allocation5 + $0x134] sm:$0xf] }
 0x232   : > { %v1615_v7 = vsub.f32 1.5, %v1614_v0  ;;  %2727 = vmatpush.bf16.msra.mxu2 %v5749_v16  ;;  %v8140_v4 = vmul.f32 0.001953125, %v1191_v22  ;;  %vm1627_vm0 = vweird.f32 %v8089_v14  ;;  %v5621_v42 = vor.u32 %v6083_v55, %v5618_v3  ;;  %v5738_v22 = vld [vmem:[#allocation5 + $0x138] sm:$0xf0]  ;;  %v10280_v55 = vld [vmem:[#allocation54_spill] sm:$0xff]  ;;  %v10285_v14 = vld [vmem:[#allocation45_spill] sm:$0xff] }
 0x233   : > { %10278 = vst [vmem:[#allocation35_spill] sm:$0xff] %v8138_v26  ;;  %vm1908_vm14 = vcmp.ge.f32.partialorder %v1844_v11, 0.0  ;;  %v1972_v41 = vmul.f32 0.01, %v1844_v11  ;;  %vm1912_vm15 = vcmp.ge.f32.partialorder %v1848_v32, 0.0  ;;  %v1624_v40 = vmul.f32 0.5, %v1623_v47  ;;  %2551 = vmatmul.bf16.gmra.mxu2 %v8138_v26 }
 0x234   : > { %v1976_v13 = vmul.f32 0.01, %v1848_v32  ;;  %v5813_v19 = vor.u32 %v6131_v37, %v5810_v6  ;;  %vm1618_vm1 = vweird.f32 %v8105_v21  ;;  %vm1628_vm2 = vweird.f32 %v8127_v29  ;;  %2629 = vmatpush.bf16.msra.mxu0 %v5621_v42  ;;  %v1356_v37 = vpop.xlane.xlu0 %1355  ;;  %v10281_v6 = vld [vmem:[#allocation55_spill] sm:$0xff] }
 0x235   : > { %v2036_v60 = vsel %vm1908_vm14, %v1844_v11, %v1972_v41  ;;  %v1616_v0 = vmul.f32 %v8105_v21, %v1615_v7  ;;  %v1625_v62 = vsub.f32 1.5, %v1624_v40  ;;  %v1379_v58 = vmul.f32 0.001953125, %v1351_v59  ;;  %vm1619_vm3 = vmor %vm1617_vm13, %vm1618_vm1  ;;  %v10282_v7 = vld [vmem:[#allocation57_spill] sm:$0xff]  ;;  %v10283_v59 = vld [vmem:[#allocation60_spill] sm:$0xff] }
 0x236   : > { %v2040_v23 = vsel %vm1912_vm15, %v1848_v32, %v1976_v13  ;;  %2776 = vmatpush.bf16.msrb.mxu3 %v5813_v19  ;;  %v1395_v11 = vmul.f32 %v8140_v4, %v8140_v4  ;;  %v5685_v32 = vor.u32 %v6099_v9, %v5682_v34  ;;  %v8164_v40 = vmul.f32 0.001953125, %v1196_v25  ;;  %v1201_v19 = vpop.xlane.xlu1 %1200  ;;  %vm1629_vm4 = vmor %vm1627_vm0, %vm1628_vm2  ;;  %v10291_v47 = vld [vmem:[#allocation63_spill] sm:$0xff] }
 0x237   : > { %v8148_v16 = vpack.c.bf16 %v2040_v23, %v2036_v60  ;;  %v1626_v41 = vmul.f32 %v8127_v29, %v1625_v62  ;;  %v5741_v42 = vor.u32 %v6113_v20, %v5738_v22  ;;  %v1380_v34 = vmul.f32 0.001953125, %v1356_v37  ;;  %v10284_v20 = vld [vmem:[#allocation41_spill] sm:$0xff]  ;;  %v10287_v37 = vld [vmem:[#allocation58_spill] sm:$0xff] }
 0x238   : > { %v1411_v9 = vsub.f32 %v1379_v58, %v1395_v11  ;;  %2678 = vmatpush.bf16.msra.mxu1 %v5685_v32  ;;  %v8172_v60 = vmul.f32 0.001953125, %v1201_v19  ;;  %v8175_v23 = vsel %vm1619_vm3, %v8105_v21, %v1616_v0  ;;  %v1463_v22 = vsub.f32 %v10284_v20, %v7886_v17  ;;  %v10286_v58 = vld [vmem:[#allocation59_spill] sm:$0xff]  ;;  %v10290_v19 = vld [vmem:[#allocation62_spill] sm:$0xff] }
 0x239   : > { %10279 = vst [vmem:[#allocation38_spill] sm:$0xff] %v8148_v16  ;;  %2600 = vmatmul.bf16.gmra.mxu3 %v8148_v16  ;;  %v8178_v25 = vsel %vm1629_vm4, %v8127_v29, %v1626_v41  ;;  %2728 = vmatpush.bf16.msra.mxu2 %v5741_v42  ;;  %v1467_v62 = vsub.f32 %v10285_v14, %v7940_v38  ;;  %v10288_v29 = vld [vmem:[#allocation61_spill] sm:$0xff]  ;;  %v10289_v41 = vld [vmem:[#allocation64_spill] sm:$0xff]  ;;  %v10292_v0 = vld [vmem:[#allocation42_spill] sm:$0xff] }
 0x23a   : > { %v1427_v13 = vmax.f32 %v1411_v9, 0.0  ;;  %v1396_v21 = vmul.f32 %v8164_v40, %v8164_v40  ;;  %v1703_v9 = vmul.f32 %v8065_v44, %v1463_v22  ;;  %v1464_v48 = vsub.f32 %v10292_v0, %v7886_v17  ;;  %v10293_v42 = vld [vmem:[#allocation44_spill] sm:$0xff]  ;;  %v10294_v20 = vld [vmem:[#allocation43_spill] sm:$0xff]  ;;  %v10295_v22 = vld [vmem:[#allocation46_spill] sm:$0xff] }
 0x23b   : > { %v1707_v11 = vmul.f32 %v8108_v5, %v1467_v62  ;;  %v1468_v45 = vsub.f32 %v10293_v42, %v7940_v38  ;;  %v1465_v57 = vsub.f32 %v10294_v20, %v7886_v17 }
 0x23c   : > { %v8197_v14 = vadd.f32 1e-05, %v1427_v13  ;;  %v1412_v8 = vsub.f32 %v1380_v34, %v1396_v21  ;;  %v1776_v3 = vmul.f32 %v7696_v15, %v1703_v9  ;;  %v1469_v21 = vsub.f32 %v10295_v22, %v7940_v38 }
 0x23d   : > { %v1780_v34 = vmul.f32 %v7696_v15, %v1707_v11  ;;  %v1704_v9 = vmul.f32 %v8065_v44, %v1464_v48  ;;  %v1708_v0 = vmul.f32 %v8108_v5, %v1468_v45  ;;  %v1705_v32 = vmul.f32 %v8065_v44, %v1465_v57  ;;  %v10297_v57 = vld [vmem:[#allocation65_spill] sm:$0xff] }
 0x23e   : > { %6376 = vrsqrt.f32 %v8197_v14  ;;  %v1428_v13 = vmax.f32 %v1412_v8, 0.0  ;;  %v1849_v62 = vadd.f32 %v7698_v12, %v1776_v3  ;;  %v1709_v16 = vmul.f32 %v8108_v5, %v1469_v21  ;;  %v1366_v46 = vpop.xlane.xlu1 %1365 }
 0x23f   : > { %v1853_v20 = vadd.f32 %v7698_v12, %v1780_v34  ;;  %v10296_v8 = vsub.f32 %v7498_v53, %v7886_v17  ;;  %v1777_v3 = vmul.f32 %v7700_v61, %v1704_v9  ;;  %v1781_v48 = vmul.f32 %v7700_v61, %v1708_v0 }
 0x240   : > { %v8217_v42 = vadd.f32 1e-05, %v1428_v13  ;;  %vm1913_vm5 = vcmp.ge.f32.partialorder %v1849_v62, 0.0  ;;  %v1977_v22 = vmul.f32 0.01, %v1849_v62  ;;  %v1778_v17 = vmul.f32 %v7706_v54, %v1705_v32 }
 0x241   : > { %v1706_v11 = vmul.f32 %v8065_v44, %v10296_v8  ;;  %vm1917_vm6 = vcmp.ge.f32.partialorder %v1853_v20, 0.0  ;;  %v1981_v13 = vmul.f32 0.01, %v1853_v20  ;;  %v1850_v21 = vadd.f32 %v7702_v43, %v1777_v3  ;;  %v6081_v3 = vld [vmem:[#allocation5 + $0x34] sm:$0xf] }
 0x242   : > { %6378 = vrsqrt.f32 %v8217_v42  ;;  %v2041_v34 = vsel %vm1913_vm5, %v1849_v62, %v1977_v22  ;;  %v1854_v53 = vadd.f32 %v7702_v43, %v1781_v48  ;;  %v1782_v9 = vmul.f32 %v7706_v54, %v1709_v16  ;;  %v10299_v22 = vld [vmem:[#allocation68_spill] sm:$0xff] }
 0x243   : > { %v2045_v8 = vsel %vm1917_vm6, %v1853_v20, %v1981_v13  ;;  %v10298_v0 = vsub.f32 %v7523_v56, %v7940_v38  ;;  %v1779_v45 = vmul.f32 %v7694_v30, %v1706_v11  ;;  %vm1914_vm7 = vcmp.ge.f32.partialorder %v1850_v21, 0.0 }
 0x244   : > { %v8233_v44 = vpop.eup %6376  ;;  %v8245_v48 = vpack.c.bf16 %v2045_v8, %v2041_v34  ;;  %vm1918_vm8 = vcmp.ge.f32.partialorder %v1854_v53, 0.0  ;;  %v1978_v32 = vmul.f32 0.01, %v1850_v21  ;;  %v1982_v20 = vmul.f32 0.01, %v1854_v53 }
 0x245   : > { %v1710_v26 = vmul.f32 %v8108_v5, %v10298_v0  ;;  %v1632_v62 = vmul.f32 %v8233_v44, %v8197_v14  ;;  %v1851_v16 = vadd.f32 %v7723_v63, %v1778_v17  ;;  %v1855_v38 = vadd.f32 %v7723_v63, %v1782_v9  ;;  %v5610_v9 = vld [vmem:[#allocation5 + $0x38] sm:$0xf0] }
 0x246   : > { %10300 = vst [vmem:[#allocation37_spill] sm:$0xff] %v8245_v48  ;;  %2458 = vmatmul.bf16.gmra.mxu0 %v8245_v48  ;;  %v1852_v11 = vadd.f32 %v7733_v50, %v1779_v45  ;;  %v2042_v34 = vsel %vm1914_vm7, %v1850_v21, %v1978_v32  ;;  %v2046_v8 = vsel %vm1918_vm8, %v1854_v53, %v1982_v20  ;;  %vm1638_vm10 = vweird.f32 %v8233_v44  ;;  %v6129_v48 = vld [vmem:[#allocation5 + $0x1b4] sm:$0xf]  ;;  %v5802_v21 = vld [vmem:[#allocation5 + $0x1b8] sm:$0xf0] }
 0x247   : > { %v1633_v56 = vmul.f32 %v8233_v44, %v1632_v62  ;;  %v1783_v5 = vmul.f32 %v7694_v30, %v1710_v26  ;;  %vm1915_vm9 = vcmp.ge.f32.partialorder %v1851_v16, 0.0  ;;  %v1979_v0 = vmul.f32 0.01, %v1851_v16 }
 0x248   : > { %v8253_v13 = vpop.eup %6378  ;;  %v8258_v62 = vpack.c.bf16 %v2046_v8, %v2042_v34  ;;  %vm1919_vm11 = vcmp.ge.f32.partialorder %v1855_v38, 0.0  ;;  %v1983_v26 = vmul.f32 0.01, %v1855_v38  ;;  %vm1916_vm12 = vcmp.ge.f32.partialorder %v1852_v11, 0.0 }
 0x249   : > { %v1634_v10 = vmul.f32 0.5, %v1633_v56  ;;  %v1642_v17 = vmul.f32 %v8253_v13, %v8217_v42  ;;  %v2043_v45 = vsel %vm1915_vm9, %v1851_v16, %v1979_v0  ;;  %v1856_v31 = vadd.f32 %v7733_v50, %v1783_v5  ;;  %v1361_v56 = vpop.xlane.xlu0 %1360 }
 0x24a   : > { %10301 = vst [vmem:[#allocation40_spill] sm:$0xff] %v8258_v62  ;;  %2507 = vmatmul.bf16.gmra.mxu1 %v8258_v62  ;;  %v1980_v20 = vmul.f32 0.01, %v1852_v11  ;;  %v2047_v28 = vsel %vm1919_vm11, %v1855_v38, %v1983_v26  ;;  %v5613_v8 = vor.u32 %v6081_v3, %v5610_v9  ;;  %v1397_v62 = vmul.f32 %v8172_v60, %v8172_v60  ;;  %v10304_v26 = vld [vmem:[#allocation67_spill] sm:$0xff] }
 0x24b   : > { %v1635_v53 = vsub.f32 1.5, %v1634_v10  ;;  %v1643_v32 = vmul.f32 %v8253_v13, %v1642_v17  ;;  %vm1920_vm13 = vcmp.ge.f32.partialorder %v1856_v31, 0.0  ;;  %v1984_v34 = vmul.f32 0.01, %v1856_v31  ;;  %v1206_v10 = vpop.xlane.xlu2 %1205 }
 0x24c   : > { %v8264_v0 = vpack.c.bf16 %v2047_v28, %v2043_v45  ;;  %v2044_v5 = vsel %vm1916_vm12, %v1852_v11, %v1980_v20  ;;  %2630 = vmatpush.bf16.msra.mxu0 %v5613_v8  ;;  %v5805_v17 = vor.u32 %v6129_v48, %v5802_v21  ;;  %v1381_v39 = vmul.f32 0.001953125, %v1361_v56  ;;  %v10306_v21 = vld [vmem:[#allocation48_spill] sm:$0xff] }
 0x24d   : > { %v1636_v49 = vmul.f32 %v8233_v44, %v1635_v53  ;;  %v1644_v16 = vmul.f32 0.5, %v1643_v32  ;;  %v2048_v24 = vsel %vm1920_vm13, %v1856_v31, %v1984_v34  ;;  %vm1637_vm14 = vweird.f32 %v8197_v14  ;;  %v10308_v32 = vld [vmem:[#allocation69_spill] sm:$0xff] }
 0x24e   : > { %2556 = vmatmul.bf16.gmra.mxu2 %v8264_v0  ;;  %v8270_v3 = vpack.c.bf16 %v2048_v24, %v2044_v5  ;;  %v5677_v9 = vor.u32 %v6097_v2, %v5674_v35  ;;  %vm1639_vm15 = vmor %vm1637_vm14, %vm1638_vm10  ;;  %vm1647_vm0 = vweird.f32 %v8217_v42  ;;  %vm1648_vm1 = vweird.f32 %v8253_v13  ;;  %2777 = vmatpush.bf16.msrb.mxu3 %v5805_v17  ;;  %v10303_v35 = vld [vmem:[#allocation47_spill] sm:$0xff] }
 0x24f   : > { %v1645_v38 = vsub.f32 1.5, %v1644_v16  ;;  %v1413_v28 = vsub.f32 %v1381_v39, %v1397_v62  ;;  %v8276_v31 = vmul.f32 0.001953125, %v1206_v10  ;;  %v8279_v48 = vsel %vm1639_vm15, %v8233_v44, %v1636_v49  ;;  %v10305_v39 = vld [vmem:[#allocation51_spill] sm:$0xff]  ;;  %v10307_v44 = vld [vmem:[#allocation66_spill] sm:$0xff]  ;;  %vm1649_vm2 = vmor %vm1647_vm0, %vm1648_vm1 }
 0x250   : > { %10302 = vst [vmem:[#allocation56_spill] sm:$0xff] %v8270_v3  ;;  %2605 = vmatmul.bf16.gmra.mxu3 %v8270_v3  ;;  %2679 = vmatpush.bf16.msra.mxu1 %v5677_v9  ;;  %v1382_v24 = vmul.f32 0.001953125, %v1366_v46  ;;  %v1471_v2 = vsub.f32 %v10303_v35, %v7979_v18  ;;  %v1475_v62 = vsub.f32 %v10305_v39, %v8049_v51  ;;  %v10309_v16 = vld [vmem:[#allocation50_spill] sm:$0xff] }
 0x251   : > { %v1646_v14 = vmul.f32 %v8253_v13, %v1645_v38  ;;  %v1429_v11 = vmax.f32 %v1413_v28, 0.0  ;;  %v1472_v49 = vsub.f32 %v10306_v21, %v7979_v18  ;;  %v1398_v46 = vmul.f32 %v8276_v31, %v8276_v31  ;;  %v10310_v28 = vld [vmem:[#allocation49_spill] sm:$0xff] }
 0x252   : > { %v1711_v56 = vmul.f32 %v8175_v23, %v1471_v2  ;;  %v1715_v8 = vmul.f32 %v8178_v25, %v1475_v62  ;;  %v1476_v5 = vsub.f32 %v10309_v16, %v8049_v51  ;;  %v1473_v35 = vsub.f32 %v10310_v28, %v7979_v18 }
 0x253   : > { %v8302_v34 = vadd.f32 1e-05, %v1429_v11  ;;  %v1712_v10 = vmul.f32 %v8175_v23, %v1472_v49  ;;  %v8309_v17 = vsel %vm1649_vm2, %v8253_v13, %v1646_v14  ;;  %v1414_v38 = vsub.f32 %v1382_v24, %v1398_v46  ;;  %v10311_v11 = vld [vmem:[#allocation53_spill] sm:$0xff]  ;;  %v10312_v24 = vld [vmem:[#allocation70_spill] sm:$0xff] }
 0x254   : > { %v1784_v9 = vmul.f32 %v7696_v15, %v1711_v56  ;;  %v1788_v42 = vmul.f32 %v7696_v15, %v1715_v8  ;;  %v1716_v2 = vmul.f32 %v8178_v25, %v1476_v5  ;;  %v1477_v39 = vsub.f32 %v10311_v11, %v8049_v51 }
 0x255   : > { %6380 = vrsqrt.f32 %v8302_v34  ;;  %v1430_v62 = vmax.f32 %v1414_v38, 0.0  ;;  %v1785_v13 = vmul.f32 %v7700_v61, %v1712_v10  ;;  %v1713_v14 = vmul.f32 %v8175_v23, %v1473_v35 }
 0x256   : > { %v1857_v21 = vadd.f32 %v7698_v12, %v1784_v9  ;;  %v1861_v46 = vadd.f32 %v7698_v12, %v1788_v42  ;;  %v1789_v56 = vmul.f32 %v7700_v61, %v1716_v2  ;;  %v1717_v8 = vmul.f32 %v8178_v25, %v1477_v39 }
 0x257   : > { %v8327_v16 = vadd.f32 1e-05, %v1430_v62  ;;  %v1858_v38 = vadd.f32 %v7702_v43, %v1785_v13  ;;  %v1786_v28 = vmul.f32 %v7706_v54, %v1713_v14  ;;  %v10313_v42 = vsub.f32 %v10261_v36, %v7979_v18 }
 0x258   : > { %vm1921_vm3 = vcmp.ge.f32.partialorder %v1857_v21, 0.0  ;;  %v1985_v5 = vmul.f32 0.01, %v1857_v21  ;;  %vm1925_vm4 = vcmp.ge.f32.partialorder %v1861_v46, 0.0  ;;  %v1989_v9 = vmul.f32 0.01, %v1861_v46 }
 0x259   : > { %v1862_v10 = vadd.f32 %v7702_v43, %v1789_v56  ;;  %6382 = vrsqrt.f32 %v8327_v16  ;;  %vm1922_vm5 = vcmp.ge.f32.partialorder %v1858_v38, 0.0  ;;  %v1714_v2 = vmul.f32 %v8175_v23, %v10313_v42 }
 0x25a   : > { %v2049_v35 = vsel %vm1921_vm3, %v1857_v21, %v1985_v5  ;;  %v2053_v39 = vsel %vm1925_vm4, %v1861_v46, %v1989_v9  ;;  %v1986_v62 = vmul.f32 0.01, %v1858_v38  ;;  %vm1657_vm7 = vweird.f32 %v8302_v34  ;;  %v6111_v21 = vld [vmem:[#allocation5 + $0x124] sm:$0xf]  ;;  %v5730_v5 = vld [vmem:[#allocation5 + $0x128] sm:$0xf0] }
 0x25b   : > { %v6381_v11 = vpop.eup %6380  ;;  %vm1926_vm6 = vcmp.ge.f32.partialorder %v1862_v10, 0.0  ;;  %v1990_v13 = vmul.f32 0.01, %v1862_v10  ;;  %v8339_v56 = vpack.c.bf16 %v2053_v39, %v2049_v35  ;;  %v1790_v14 = vmul.f32 %v7706_v54, %v1717_v8 }
 0x25c   : > { %v1652_v49 = vmul.f32 %v6381_v11, %v8302_v34  ;;  %v2050_v20 = vsel %vm1922_vm5, %v1858_v38, %v1986_v62  ;;  %v1859_v18 = vadd.f32 %v7723_v63, %v1786_v28  ;;  %v10315_v36 = vsub.f32 %v10273_v52, %v8049_v51  ;;  %v6079_v28 = vld [vmem:[#allocation5 + $0x24] sm:$0xf] }
 0x25d   : > { %10314 = vst [vmem:[#allocation54_spill] sm:$0xff] %v8339_v56  ;;  %v2054_v53 = vsel %vm1926_vm6, %v1862_v10, %v1990_v13  ;;  %2463 = vmatmul.bf16.gmra.mxu0 %v8339_v56  ;;  %v1863_v35 = vadd.f32 %v7723_v63, %v1790_v14  ;;  %v1787_v8 = vmul.f32 %v7694_v30, %v1714_v2  ;;  %vm1658_vm10 = vweird.f32 %v6381_v11  ;;  %v6127_v2 = vld [vmem:[#allocation5 + $0x1a4] sm:$0xf]  ;;  %v5794_v13 = vld [vmem:[#allocation5 + $0x1a8] sm:$0xf0] }
 0x25e   : > { %v1718_v23 = vmul.f32 %v8178_v25, %v10315_v36  ;;  %v1653_v46 = vmul.f32 %v6381_v11, %v1652_v49  ;;  %v8348_v9 = vpack.c.bf16 %v2054_v53, %v2050_v20  ;;  %vm1923_vm8 = vcmp.ge.f32.partialorder %v1859_v18, 0.0  ;;  %v5602_v25 = vld [vmem:[#allocation5 + $0x28] sm:$0xf0]  ;;  %v6095_v14 = vld [vmem:[#allocation5 + $0xa4] sm:$0xf]  ;;  %vm1659_vm14 = vmor %vm1657_vm7, %vm1658_vm10 }
 0x25f   : > { %v1987_v42 = vmul.f32 0.01, %v1859_v18  ;;  %v5733_v10 = vor.u32 %v6111_v21, %v5730_v5  ;;  %v6383_v39 = vpop.eup %6382  ;;  %vm1927_vm9 = vcmp.ge.f32.partialorder %v1863_v35, 0.0  ;;  %v1991_v51 = vmul.f32 0.01, %v1863_v35 }
 0x260   : > { %10316 = vst [vmem:[#allocation55_spill] sm:$0xff] %v8348_v9  ;;  %v1791_v38 = vmul.f32 %v7694_v30, %v1718_v23  ;;  %v1654_v62 = vmul.f32 0.5, %v1653_v46  ;;  %2512 = vmatmul.bf16.gmra.mxu1 %v8348_v9  ;;  %v1860_v52 = vadd.f32 %v7733_v50, %v1787_v8  ;;  %v1662_v53 = vmul.f32 %v6383_v39, %v8327_v16  ;;  %v5666_v23 = vld [vmem:[#allocation5 + $0xa8] sm:$0xf0] }
 0x261   : > { %vm1667_vm11 = vweird.f32 %v8327_v16  ;;  %v2051_v20 = vsel %vm1923_vm8, %v1859_v18, %v1987_v42  ;;  %2729 = vmatpush.bf16.msra.mxu2 %v5733_v10  ;;  %v2055_v5 = vsel %vm1927_vm9, %v1863_v35, %v1991_v51  ;;  %v5605_v3 = vor.u32 %v6079_v28, %v5602_v25 }
 0x262   : > { %v1864_v49 = vadd.f32 %v7733_v50, %v1791_v38  ;;  %v1655_v21 = vsub.f32 1.5, %v1654_v62  ;;  %vm1924_vm12 = vcmp.ge.f32.partialorder %v1860_v52, 0.0  ;;  %v1988_v36 = vmul.f32 0.01, %v1860_v52 }
 0x263   : > { %v1663_v46 = vmul.f32 %v6383_v39, %v1662_v53  ;;  %v8358_v8 = vpack.c.bf16 %v2055_v5, %v2051_v20  ;;  %v5797_v18 = vor.u32 %v6127_v2, %v5794_v13  ;;  %v5669_v38 = vor.u32 %v6095_v14, %v5666_v23  ;;  %2631 = vmatpush.bf16.msra.mxu0 %v5605_v3 }
 0x264   : > { %vm1928_vm13 = vcmp.ge.f32.partialorder %v1864_v49, 0.0  ;;  %v1992_v45 = vmul.f32 0.01, %v1864_v49  ;;  %v1656_v9 = vmul.f32 %v6381_v11, %v1655_v21  ;;  %v2052_v56 = vsel %vm1924_vm12, %v1860_v52, %v1988_v36 }
 0x265   : > { %v1664_v42 = vmul.f32 0.5, %v1663_v46  ;;  %2561 = vmatmul.bf16.gmra.mxu2 %v8358_v8  ;;  %v10317_v10 = vsub.f32 %v10280_v55, %v8140_v4  ;;  %vm1668_vm15 = vweird.f32 %v6383_v39  ;;  %2778 = vmatpush.bf16.msrb.mxu3 %v5797_v18  ;;  %v10318_v34 = vsub.f32 %v10286_v58, %v8164_v40 }
 0x266   : > { %v2056_v35 = vsel %vm1928_vm13, %v1864_v49, %v1992_v45  ;;  %v8368_v51 = vsel %vm1659_vm14, %v6381_v11, %v1656_v9  ;;  %2680 = vmatpush.bf16.msra.mxu1 %v5669_v38  ;;  %v10319_v55 = vsub.f32 %v10281_v6, %v8140_v4  ;;  %v10321_v9 = vsub.f32 %v10282_v7, %v8140_v4  ;;  %vm1669_vm0 = vmor %vm1667_vm11, %vm1668_vm15  ;;  %v6077_v38 = vld [vmem:[#allocation5 + $0x14] sm:$0xf] }
 0x267   : > { %v1719_v62 = vmul.f32 %v8279_v48, %v10317_v10  ;;  %v8370_v52 = vpack.c.bf16 %v2056_v35, %v2052_v56  ;;  %v1723_v28 = vmul.f32 %v8309_v17, %v10318_v34  ;;  %v1665_v25 = vsub.f32 1.5, %v1664_v42  ;;  %v6109_v42 = vld [vmem:[#allocation5 + $0x114] sm:$0xf]  ;;  %v5722_v35 = vld [vmem:[#allocation5 + $0x118] sm:$0xf0] }
 0x268   : > { %v1720_v11 = vmul.f32 %v8279_v48, %v10319_v55  ;;  %v10320_v56 = vsub.f32 %v10287_v37, %v8164_v40  ;;  %v1721_v53 = vmul.f32 %v8279_v48, %v10321_v9  ;;  %v10322_v20 = vsub.f32 %v10288_v29, %v8164_v40  ;;  %v6125_v34 = vld [vmem:[#allocation5 + $0x194] sm:$0xf]  ;;  %v5786_v55 = vld [vmem:[#allocation5 + $0x198] sm:$0xf0] }
 0x269   : > { %v1792_v45 = vmul.f32 %v7696_v15, %v1719_v62  ;;  %2610 = vmatmul.bf16.gmra.mxu3 %v8370_v52  ;;  %v1796_v58 = vmul.f32 %v7696_v15, %v1723_v28  ;;  %v10323_v49 = vsub.f32 %v10283_v59, %v8140_v4  ;;  %v1666_v2 = vmul.f32 %v6383_v39, %v1665_v25  ;;  %v6093_v9 = vld [vmem:[#allocation5 + $0x94] sm:$0xf] }
 0x26a   : > { %v1724_v3 = vmul.f32 %v8309_v17, %v10320_v56  ;;  %v1725_v6 = vmul.f32 %v8309_v17, %v10322_v20  ;;  %v1793_v14 = vmul.f32 %v7700_v61, %v1720_v11  ;;  %v1794_v29 = vmul.f32 %v7706_v54, %v1721_v53  ;;  %v5658_v53 = vld [vmem:[#allocation5 + $0x98] sm:$0xf0]  ;;  %v8422_v20 = vpop.f32.mrf.mxu0 }
 0x26b   : > { %v1722_v37 = vmul.f32 %v8279_v48, %v10323_v49  ;;  %v1865_v13 = vadd.f32 %v7698_v12, %v1792_v45  ;;  %v1869_v7 = vadd.f32 %v7698_v12, %v1796_v58  ;;  %v10324_v4 = vsub.f32 %v10289_v41, %v8164_v40 }
 0x26c   : > { %v1797_v21 = vmul.f32 %v7700_v61, %v1724_v3  ;;  %v1798_v5 = vmul.f32 %v7706_v54, %v1725_v6  ;;  %v8412_v48 = vsel %vm1669_vm0, %v6383_v39, %v1666_v2  ;;  %v1866_v23 = vadd.f32 %v7702_v43, %v1793_v14  ;;  %v8424_v6 = vpop.f32.mrf.mxu1 }
 0x26d   : > { %v1726_v59 = vmul.f32 %v8309_v17, %v10324_v4  ;;  %vm1929_vm1 = vcmp.ge.f32.partialorder %v1865_v13, 0.0  ;;  %v1993_v36 = vmul.f32 0.01, %v1865_v13  ;;  %vm1933_vm2 = vcmp.ge.f32.partialorder %v1869_v7, 0.0  ;;  %v5594_v17 = vld [vmem:[#allocation5 + $0x18] sm:$0xf0] }
 0x26e   : > { %v1997_v16 = vmul.f32 0.01, %v1869_v7  ;;  %v1870_v46 = vadd.f32 %v7702_v43, %v1797_v21  ;;  %v1867_v18 = vadd.f32 %v7723_v63, %v1794_v29  ;;  %vm1930_vm3 = vcmp.ge.f32.partialorder %v1866_v23, 0.0 }
 0x26f   : > { %v2057_v10 = vsel %vm1929_vm1, %v1865_v13, %v1993_v36  ;;  %v1994_v40 = vmul.f32 0.01, %v1866_v23  ;;  %v1871_v41 = vadd.f32 %v7723_v63, %v1798_v5  ;;  %v1795_v3 = vmul.f32 %v7694_v30, %v1722_v37  ;;  %v8433_v5 = vld [vmem:[#allocation7] sm:$0x3] }
 0x270   : > { %v2061_v39 = vsel %vm1933_vm2, %v1869_v7, %v1997_v16  ;;  %vm1934_vm4 = vcmp.ge.f32.partialorder %v1870_v46, 0.0  ;;  %v1998_v62 = vmul.f32 0.01, %v1870_v46  ;;  %vm1931_vm5 = vcmp.ge.f32.partialorder %v1867_v18, 0.0 }
 0x271   : > { %v8418_v28 = vpack.c.bf16 %v2061_v39, %v2057_v10  ;;  %v2058_v25 = vsel %vm1930_vm3, %v1866_v23, %v1994_v40  ;;  %vm1935_vm6 = vcmp.ge.f32.partialorder %v1871_v41, 0.0  ;;  %v1995_v45 = vmul.f32 0.01, %v1867_v18 }
 0x272   : > { %v2062_v11 = vsel %vm1934_vm4, %v1870_v46, %v1998_v62  ;;  %v1999_v56 = vmul.f32 0.01, %v1871_v41  ;;  %v1799_v58 = vmul.f32 %v7694_v30, %v1726_v59  ;;  %v5725_v13 = vor.u32 %v6109_v42, %v5722_v35 }
 0x273   : > { %2468 = vmatmul.bf16.gmra.mxu0 %v8418_v28  ;;  %v8427_v49 = vpack.c.bf16 %v2062_v11, %v2058_v25  ;;  %v2059_v2 = vsel %vm1931_vm5, %v1867_v18, %v1995_v45  ;;  %v5597_v14 = vor.u32 %v6077_v38, %v5594_v17  ;;  %v1868_v37 = vadd.f32 %v7733_v50, %v1795_v3 }
 0x274   : > { %v2063_v21 = vsel %vm1935_vm6, %v1871_v41, %v1999_v56  ;;  %v1872_v7 = vadd.f32 %v7733_v50, %v1799_v58  ;;  %v5789_v29 = vor.u32 %v6125_v34, %v5786_v55  ;;  %2730 = vmatpush.bf16.msra.mxu2 %v5725_v13  ;;  %v5661_v59 = vor.u32 %v6093_v9, %v5658_v53  ;;  %v8481_v9 = vpop.f32.mrf.mxu2  ;;  %v8494_v13 = vpop.f32.mrf.mxu1 }
 0x275   : > { %2517 = vmatmul.bf16.gmra.mxu1 %v8427_v49  ;;  %v8436_v4 = vpack.c.bf16 %v2063_v21, %v2059_v2  ;;  %v10325_v36 = vsub.f32 %v10290_v19, %v8172_v60  ;;  %vm1932_vm7 = vcmp.ge.f32.partialorder %v1868_v37, 0.0  ;;  %v1996_v16 = vmul.f32 0.01, %v1868_v37  ;;  %2632 = vmatpush.bf16.msra.mxu0 %v5597_v14 }
 0x276   : > { %vm1936_vm8 = vcmp.ge.f32.partialorder %v1872_v7, 0.0  ;;  %v2000_v46 = vmul.f32 0.01, %v1872_v7  ;;  %2779 = vmatpush.bf16.msrb.mxu3 %v5789_v29  ;;  %2681 = vmatpush.bf16.msra.mxu1 %v5661_v59  ;;  %v10326_v18 = vsub.f32 %v10304_v26, %v8276_v31  ;;  %v10327_v19 = vsub.f32 %v10291_v47, %v8172_v60  ;;  %v5586_v29 = vld [vmem:[#allocation5 + $0x8] sm:$0xf0] }
 0x277   : > { %v1727_v23 = vmul.f32 %v8368_v51, %v10325_v36  ;;  %2566 = vmatmul.bf16.gmra.mxu2 %v8436_v4  ;;  %v8453_v10 = vperm.slane %v8433_v5, 0  ;;  %v2060_v40 = vsel %vm1932_vm7, %v1868_v37, %v1996_v16  ;;  %v10328_v17 = vsub.f32 %v10307_v44, %v8276_v31  ;;  %v6107_v37 = vld [vmem:[#allocation5 + $0x104] sm:$0xf]  ;;  %v5778_v16 = vld [vmem:[#allocation5 + $0x188] sm:$0xf0] }
 0x278   : > { %v1731_v42 = vmul.f32 %v8412_v48, %v10326_v18  ;;  %v1728_v38 = vmul.f32 %v8368_v51, %v10327_v19  ;;  %v2064_v41 = vsel %vm1936_vm8, %v1872_v7, %v2000_v46  ;;  %v10329_v26 = vsub.f32 %v10297_v57, %v8172_v60  ;;  %v5714_v7 = vld [vmem:[#allocation5 + $0x108] sm:$0xf0] }
 0x279   : > { %v1800_v35 = vmul.f32 %v7696_v15, %v1727_v23  ;;  %v1732_v39 = vmul.f32 %v8412_v48, %v10328_v17  ;;  %v8463_v34 = vpack.c.bf16 %v2064_v41, %v2060_v40  ;;  %v10330_v44 = vsub.f32 %v10308_v32, %v8276_v31  ;;  %v8483_v32 = vpop.f32.mrf.mxu3  ;;  %v5650_v19 = vld [vmem:[#allocation5 + $0x88] sm:$0xf0] }
 0x27a   : > { %v1729_v62 = vmul.f32 %v8368_v51, %v10329_v26  ;;  %v1804_v47 = vmul.f32 %v7696_v15, %v1731_v42  ;;  %v1801_v45 = vmul.f32 %v7700_v61, %v1728_v38  ;;  %v10331_v57 = vsub.f32 %v10299_v22, %v8172_v60 }
 0x27b   : > { %v1873_v25 = vadd.f32 %v7698_v12, %v1800_v35  ;;  %v1805_v55 = vmul.f32 %v7700_v61, %v1732_v39  ;;  %v1733_v11 = vmul.f32 %v8412_v48, %v10330_v44  ;;  %2615 = vmatmul.bf16.gmra.mxu3 %v8463_v34  ;;  %v10332_v22 = vsub.f32 %v10312_v24, %v8276_v31  ;;  %v6091_v35 = vld [vmem:[#allocation5 + $0x84] sm:$0xf] }
 0x27c   : > { %v1802_v56 = vmul.f32 %v7706_v54, %v1729_v62  ;;  %v1730_v3 = vmul.f32 %v8368_v51, %v10331_v57  ;;  %v1877_v15 = vadd.f32 %v7698_v12, %v1804_v47  ;;  %v1874_v61 = vadd.f32 %v7702_v43, %v1801_v45  ;;  %v8492_v12 = vpop.f32.mrf.mxu0  ;;  %v8509_v44 = vpop.f32.mrf.mxu2 }
 0x27d   : > { %vm1937_vm9 = vcmp.ge.f32.partialorder %v1873_v25, 0.0  ;;  %v2001_v58 = vmul.f32 0.01, %v1873_v25  ;;  %v1878_v53 = vadd.f32 %v7702_v43, %v1805_v55  ;;  %v1806_v2 = vmul.f32 %v7706_v54, %v1733_v11  ;;  %v6075_v43 = vld [vmem:[#allocation5 + $0x4] sm:$0xf] }
 0x27e   : > { %v1875_v60 = vadd.f32 %v7723_v63, %v1802_v56  ;;  %v1734_v51 = vmul.f32 %v8412_v48, %v10332_v22  ;;  %vm1941_vm10 = vcmp.ge.f32.partialorder %v1877_v15, 0.0  ;;  %v2005_v14 = vmul.f32 0.01, %v1877_v15  ;;  %v6123_v54 = vld [vmem:[#allocation5 + $0x184] sm:$0xf] }
 0x27f   : > { %v2065_v21 = vsel %vm1937_vm9, %v1873_v25, %v2001_v58  ;;  %vm1938_vm11 = vcmp.ge.f32.partialorder %v1874_v61, 0.0  ;;  %vm1942_vm12 = vcmp.ge.f32.partialorder %v1878_v53, 0.0  ;;  %v2002_v59 = vmul.f32 0.01, %v1874_v61 }
 0x280   : > { %v2006_v36 = vmul.f32 0.01, %v1878_v53  ;;  %v1879_v31 = vadd.f32 %v7723_v63, %v1806_v2  ;;  %v2069_v24 = vsel %vm1941_vm10, %v1877_v15, %v2005_v14  ;;  %vm1939_vm13 = vcmp.ge.f32.partialorder %v1875_v60, 0.0 }
 0x281   : > { %v2003_v48 = vmul.f32 0.01, %v1875_v60  ;;  %v1803_v23 = vmul.f32 %v7694_v30, %v1730_v3  ;;  %v8498_v46 = vpack.c.bf16 %v2069_v24, %v2065_v21  ;;  %v2066_v18 = vsel %vm1938_vm11, %v1874_v61, %v2002_v59  ;;  %v8511_v11 = vpop.f32.mrf.mxu3  ;;  %v2493_v3 = vpop.f32.mrf.mxu1 }
 0x282   : > { %v2070_v42 = vsel %vm1942_vm12, %v1878_v53, %v2006_v36  ;;  %vm1943_vm14 = vcmp.ge.f32.partialorder %v1879_v31, 0.0  ;;  %v2007_v40 = vmul.f32 0.01, %v1879_v31  ;;  %v1807_v63 = vmul.f32 %v7694_v30, %v1734_v51 }
 0x283   : > { %v8501_v38 = vpack.c.bf16 %v2070_v42, %v2066_v18  ;;  %v2067_v41 = vsel %vm1939_vm13, %v1875_v60, %v2003_v48  ;;  %v1876_v17 = vadd.f32 %v7733_v50, %v1803_v23  ;;  %v5717_v39 = vor.u32 %v6107_v37, %v5714_v7  ;;  %2473 = vmatmul.bf16.gmra.mxu0 %v8498_v46  ;;  %v10335_v18 = vld [vmem:[#allocation73_spill] sm:$0xff] }
 0x284   : > { %v5589_v26 = vor.u32 %v6075_v43, %v5586_v29  ;;  %v5781_v62 = vor.u32 %v6123_v54, %v5778_v16  ;;  %v2071_v47 = vsel %vm1943_vm14, %v1879_v31, %v2007_v40  ;;  %v1880_v25 = vadd.f32 %v7733_v50, %v1807_v63  ;;  %v2444_v57 = vpop.f32.mrf.mxu0  ;;  %v10333_v43 = vld [vmem:[#allocation71_spill] sm:$0xff]  ;;  %v10334_v29 = vld [vmem:[#allocation72_spill] sm:$0xff] }
 0x285   : > { %v5653_v45 = vor.u32 %v6091_v35, %v5650_v19  ;;  %v2440_v55 = vadd.f32 %v8422_v20, %v8453_v10  ;;  %v8513_v56 = vpack.c.bf16 %v2071_v47, %v2067_v41  ;;  %vm1940_vm15 = vcmp.ge.f32.partialorder %v1876_v17, 0.0  ;;  %2731 = vmatpush.bf16.msra.mxu2 %v5717_v39  ;;  %2522 = vmatmul.bf16.gmra.mxu1 %v8501_v38  ;;  %v10337_v19 = vld [vmem:[#allocation75_spill] sm:$0xff]  ;;  %v10338_v39 = vld [vmem:[#allocation34_spill] sm:$0xff] }
 0x286   : > { %v2004_v30 = vmul.f32 0.01, %v1876_v17  ;;  %2633 = vmatpush.bf16.msra.mxu0 %v5589_v26  ;;  %vm1944_vm0 = vcmp.ge.f32.partialorder %v1880_v25, 0.0  ;;  %v2008_v50 = vmul.f32 0.01, %v1880_v25  ;;  %2780 = vmatpush.bf16.msrb.mxu3 %v5781_v62  ;;  %v2445_v20 = vadd.f32 %v2444_v57, %v8453_v10  ;;  %v10339_v26 = vld [vmem:[#allocation52_spill] sm:$0xff] }
 0x287   : > { %v2489_v15 = vadd.f32 %v8424_v6, %v2440_v55  ;;  %2682 = vmatpush.bf16.msra.mxu1 %v5653_v45  ;;  %2571 = vmatmul.bf16.gmra.mxu2 %v8513_v56  ;;  %v10340_v62 = vld [vmem:[#allocation76_spill] sm:$0xff]  ;;  %v10341_v45 = vld [vmem:[#allocation77_spill] sm:$0xff] }
 0x288   : > { %v2068_v58 = vsel %vm1940_vm15, %v1876_v17, %v2004_v30  ;;  %v2072_v61 = vsel %vm1944_vm0, %v1880_v25, %v2008_v50  ;;  %v2494_v2 = vadd.f32 %v2493_v3, %v2445_v20  ;;  %v2542_v51 = vpop.f32.mrf.mxu2  ;;  %v10342_v50 = vld [vmem:[#allocation36_spill] sm:$0xff] }
 0x289   : > { %v2538_v53 = vadd.f32 %v8481_v9, %v2489_v15  ;;  %v8520_v60 = vpack.c.bf16 %v2072_v61, %v2068_v58  ;;  %v8528_v21 = vpop.f32.mrf.mxu1  ;;  %v10343_v15 = vld [vmem:[#allocation39_spill] sm:$0xff] }
 0x28a   : > { %v2543_v14 = vadd.f32 %v2542_v51, %v2494_v2  ;;  %v10344_v61 = vld [vmem:[#allocation35_spill] sm:$0xff] }
 0x28b   : > { %v8523_v22 = vadd.f32 %v8483_v32, %v2538_v53  ;;  %2620 = vmatmul.bf16.gmra.mxu3 %v8520_v60 }
 0x28c   : > { %v8526_v6 = vpop.f32.mrf.mxu0  ;;  %v2591_v37 = vpop.f32.mrf.mxu3 }
 0x28d   : > { %v8530_v7 = vadd.f32 %v2591_v37, %v2543_v14  ;;  %v10345_v14 = vld [vmem:[#allocation38_spill] sm:$0xff] }
 0x290   : > { %v8536_v36 = vpop.f32.mrf.mxu2 }
 0x293   : > { %2634 = vmatmul.bf16.vlgmr.msra.gmra.mxu0 %v10333_v43  ;;  %v10346_v43 = vld [vmem:[#allocation37_spill] sm:$0xff] }
 0x294   : > { %v2449_v9 = vpop.f32.mrf.mxu0  ;;  %v2498_v32 = vpop.f32.mrf.mxu1 }
 0x295   : > { %2683 = vmatmul.bf16.vlgmr.msra.gmra.mxu1 %v10334_v29  ;;  %v2450_v54 = vadd.f32 %v2449_v9, %v8453_v10  ;;  %v8539_v31 = vpop.f32.mrf.mxu3 }
 0x297   : > { %2732 = vmatmul.bf16.vlgmr.msra.gmra.mxu2 %v7813_v33  ;;  %v2499_v59 = vadd.f32 %v2498_v32, %v2450_v54  ;;  %v10336_v33 = vld [vmem:[#allocation74_spill] sm:$0xff]  ;;  %v10347_v32 = vld [vmem:[#allocation40_spill] sm:$0xff] }
 0x29b   : > { %2781 = vmatmul.bf16.vlgmr.msrb.gmra.mxu3 %v7823_v1 }
 0x29c   : > { %v8541_v24 = vpop.f32.mrf.mxu0  ;;  %v8544_v16 = vpop.f32.mrf.mxu1 }
 0x2a1   : > { %v2547_v48 = vpop.f32.mrf.mxu2 }
 0x2a2   : > { %v2548_v23 = vadd.f32 %v2547_v48, %v2499_v59 }
 0x2a3   : > { %2639 = vmatmul.bf16.gmra.mxu0 %v7888_v27 }
 0x2a5   : > { %2688 = vmatmul.bf16.gmra.mxu1 %v10335_v18  ;;  %v2596_v42 = vpop.f32.mrf.mxu3  ;;  %v10348_v18 = vld [vmem:[#allocation56_spill] sm:$0xff] }
 0x2a6   : > { %v8547_v35 = vadd.f32 %v2596_v42, %v2548_v23 }
 0x2a7   : > { %2737 = vmatmul.bf16.gmra.mxu2 %v10336_v33 }
 0x2a9   : > { %v8552_v41 = vpop.f32.mrf.mxu2 }
 0x2aa   : > { %v2454_v1 = vpop.f32.mrf.mxu0 }
 0x2ab   : > { %2786 = vmatmul.bf16.gmra.mxu3 %v10337_v19  ;;  %v2455_v40 = vadd.f32 %v2454_v1, %v8453_v10 }
 0x2ac   : > { %v2503_v63 = vpop.f32.mrf.mxu1 }
 0x2ad   : > { %v2504_v17 = vadd.f32 %v2503_v63, %v2455_v40  ;;  %v8554_v27 = vpop.f32.mrf.mxu3 }
 0x2b2   : > { %v8560_v30 = vpop.f32.mrf.mxu0 }
 0x2b3   : > { %2644 = vmatmul.bf16.gmra.mxu0 %v10338_v39  ;;  %v10350_v39 = vld [vmem:[#allocation55_spill] sm:$0xff] }
 0x2b4   : > { %v8564_v3 = vpop.f32.mrf.mxu1 }
 0x2b5   : > { %2693 = vmatmul.bf16.gmra.mxu1 %v10339_v26 }
 0x2b6   : > { %v2552_v47 = vpop.f32.mrf.mxu2 }
 0x2b7   : > { %2742 = vmatmul.bf16.gmra.mxu2 %v10340_v62  ;;  %v2553_v25 = vadd.f32 %v2552_v47, %v2504_v17  ;;  %v10349_v17 = vld [vmem:[#allocation54_spill] sm:$0xff] }
 0x2bb   : > { %2791 = vmatmul.bf16.gmra.mxu3 %v10341_v45 }
 0x2bc   : > { %v2601_v55 = vpop.f32.mrf.mxu3 }
 0x2bd   : > { %v8562_v57 = vadd.f32 %v2601_v55, %v2553_v25 }
 0x2be   : > { %v8570_v53 = vpop.f32.mrf.mxu2 }
 0x2c3   : > { %2649 = vmatmul.bf16.gmra.mxu0 %v10342_v50  ;;  %v2459_v20 = vpop.f32.mrf.mxu0 }
 0x2c4   : > { %v2460_v58 = vadd.f32 %v2459_v20, %v8453_v10  ;;  %v8573_v37 = vpop.f32.mrf.mxu3 }
 0x2c5   : > { %2698 = vmatmul.bf16.gmra.mxu1 %v10343_v15 }
 0x2c7   : > { %2747 = vmatmul.bf16.gmra.mxu2 %v10344_v61  ;;  %v2508_v2 = vpop.f32.mrf.mxu1 }
 0x2c8   : > { %v2509_v51 = vadd.f32 %v2508_v2, %v2460_v58 }
 0x2cb   : > { %2796 = vmatmul.bf16.gmra.mxu3 %v10345_v14  ;;  %v8576_v29 = vpop.f32.mrf.mxu0 }
 0x2cf   : > { %v8579_v48 = vpop.f32.mrf.mxu1 }
 0x2d1   : > { %v2557_v9 = vpop.f32.mrf.mxu2 }
 0x2d2   : > { %v2558_v54 = vadd.f32 %v2557_v9, %v2509_v51 }
 0x2d3   : > { %2654 = vmatmul.bf16.gmra.mxu0 %v10346_v43  ;;  %v2606_v59 = vpop.f32.mrf.mxu3 }
 0x2d4   : > { %v8581_v23 = vadd.f32 %v2606_v59, %v2558_v54 }
 0x2d5   : > { %2703 = vmatmul.bf16.gmra.mxu1 %v10347_v32 }
 0x2d7   : > { %2752 = vmatmul.bf16.gmra.mxu2 %v8264_v0 }
 0x2d9   : > { %v8586_v1 = vpop.f32.mrf.mxu2 }
 0x2da   : > { %v2464_v42 = vpop.f32.mrf.mxu0 }
 0x2db   : > { %2801 = vmatmul.bf16.gmra.mxu3 %v10348_v18  ;;  %v2465_v33 = vadd.f32 %v2464_v42, %v8453_v10  ;;  %v8588_v63 = vpop.f32.mrf.mxu3 }
 0x2dd   : > { %v2513_v19 = vpop.f32.mrf.mxu1 }
 0x2de   : > { %v2514_v40 = vadd.f32 %v2513_v19, %v2465_v33 }
 0x2e2   : > { %v8592_v26 = vpop.f32.mrf.mxu0 }
 0x2e3   : > { %2659 = vmatmul.bf16.gmra.mxu0 %v10349_v17 }
 0x2e5   : > { %2708 = vmatmul.bf16.gmra.mxu1 %v10350_v39  ;;  %v8595_v0 = vpop.f32.mrf.mxu1 }
 0x2e7   : > { %2757 = vmatmul.bf16.gmra.mxu2 %v8358_v8 }
 0x2e8   : > { %v2562_v62 = vpop.f32.mrf.mxu2 }
 0x2e9   : > { %v2563_v47 = vadd.f32 %v2562_v62, %v2514_v40 }
 0x2eb   : > { %2806 = vmatmul.bf16.gmra.mxu3 %v8370_v52 }
 0x2ec   : > { %v2611_v25 = vpop.f32.mrf.mxu3 }
 0x2ed   : > { %v8598_v45 = vadd.f32 %v2611_v25, %v2563_v47 }
 0x2f0   : > { %v2469_v55 = vpop.f32.mrf.mxu0  ;;  %v8601_v15 = vpop.f32.mrf.mxu2 }
 0x2f1   : > { %v2470_v50 = vadd.f32 %v2469_v55, %v8453_v10 }
 0x2f2   : > { %v2518_v20 = vpop.f32.mrf.mxu1 }
 0x2f3   : > { %v2519_v58 = vadd.f32 %v2518_v20, %v2470_v50  ;;  %2664 = vmatmul.bf16.gmra.mxu0 %v8418_v28 }
 0x2f4   : > { %v8604_v61 = vpop.f32.mrf.mxu3 }
 0x2f5   : > { %2713 = vmatmul.bf16.gmra.mxu1 %v8427_v49 }
 0x2f7   : > { %2762 = vmatmul.bf16.gmra.mxu2 %v8436_v4 }
 0x2f8   : > { %v8608_v8 = vpop.f32.mrf.mxu0 }
 0x2fa   : > { %v2567_v52 = vpop.f32.mrf.mxu2  ;;  %v8610_v2 = vpop.f32.mrf.mxu1 }
 0x2fb   : > { %2811 = vmatmul.bf16.gmra.mxu3 %v8463_v34  ;;  %v2568_v51 = vadd.f32 %v2567_v52, %v2519_v58 }
 0x2fe   : > { %v2616_v14 = vpop.f32.mrf.mxu3 }
 0x2ff   : > { %v8613_v43 = vadd.f32 %v2616_v14, %v2568_v51 }
 0x300   : > { %v2474_v9 = vpop.f32.mrf.mxu0 }
 0x301   : > { %v2475_v28 = vadd.f32 %v2474_v9, %v8453_v10 }
 0x302   : > { %v8616_v54 = vpop.f32.mrf.mxu2  ;;  %v2523_v32 = vpop.f32.mrf.mxu1 }
 0x303   : > { %v2524_v49 = vadd.f32 %v2523_v32, %v2475_v28  ;;  %2669 = vmatmul.bf16.gmra.mxu0 %v8498_v46  ;;  %v8631_v46 = vperm.slane %v8433_v5, 1 }
 0x305   : > { %2718 = vmatmul.bf16.gmra.mxu1 %v8501_v38 }
 0x306   : > { %v8620_v4 = vpop.f32.mrf.mxu3 }
 0x307   : > { %2767 = vmatmul.bf16.gmra.mxu2 %v8513_v56 }
 0x308   : > { %v8623_v34 = vpop.f32.mrf.mxu0 }
 0x30a   : > { %v2572_v59 = vpop.f32.mrf.mxu2  ;;  %v8625_v18 = vpop.f32.mrf.mxu1 }
 0x30b   : > { %2816 = vmatmul.bf16.gmra.mxu3 %v8520_v60  ;;  %v2573_v42 = vadd.f32 %v2572_v59, %v2524_v49  ;;  %v2442_v60 = vadd.f32 %v8492_v12, %v8453_v10  ;;  %v2921_v12 = vmul.f32 %v8523_v22, %v8523_v22 }
 0x30d   : > { %v2491_v5 = vadd.f32 %v8494_v13, %v2442_v60 }
 0x30e   : > { %v2621_v33 = vpop.f32.mrf.mxu3 }
 0x30f   : > { %v8628_v19 = vadd.f32 %v2621_v33, %v2573_v42  ;;  %v2540_v51 = vadd.f32 %v8509_v44, %v2491_v5 }
 0x310   : > { %v2635_v40 = vpop.f32.mrf.mxu0 }
 0x311   : > { %v2636_v56 = vadd.f32 %v2635_v40, %v8631_v46  ;;  %v8652_v33 = vadd.f32 %v8511_v11, %v2540_v51  ;;  %v2447_v51 = vadd.f32 %v8526_v6, %v8453_v10  ;;  %v6154_v6 = vld [vmem:[%s10094_s9 + $0x74] sm:$0xf0] }
 0x312   : > { %v8633_v38 = vpop.f32.mrf.mxu2  ;;  %v2684_v17 = vpop.f32.mrf.mxu1 }
 0x313   : > { %v2685_v47 = vadd.f32 %v2684_v17, %v2636_v56  ;;  %v6153_v56 = vld [vmem:[%s10094_s9 + $0x74] sm:$0xf]  ;;  %v2923_v11 = vmul.f32 %v8652_v33, %v8652_v33 }
 0x316   : > { %v8636_v39 = vpop.f32.mrf.mxu3 }
 0x318   : > { %v2637_v62 = vpop.f32.mrf.mxu0 }
 0x319   : > { %v2638_v20 = vadd.f32 %v2637_v62, %v8631_v46  ;;  %v5898_v62 = vld [vmem:[%s10094_s9 + $0x78] sm:$0xf0] }
 0x31a   : > { %v2733_v25 = vpop.f32.mrf.mxu2  ;;  %v2686_v55 = vpop.f32.mrf.mxu1 }
 0x31b   : > { %v2734_v50 = vadd.f32 %v2733_v25, %v2685_v47  ;;  %v2687_v9 = vadd.f32 %v2686_v55, %v2638_v20  ;;  %v6169_v47 = vld [vmem:[%s10094_s9 + $0xf4] sm:$0xf]  ;;  %v5901_v25 = vor.u32 %v6153_v56, %v5898_v62  ;;  %v5962_v55 = vld [vmem:[%s10094_s9 + $0xf8] sm:$0xf0] }
 0x31d   : > { %3754 = vmatpush.bf16.msrb.mxu2 %v5901_v25 }
 0x31e   : > { %v2782_v58 = vpop.f32.mrf.mxu3 }
 0x31f   : > { %v8642_v52 = vadd.f32 %v2782_v58, %v2734_v50  ;;  %v5965_v58 = vor.u32 %v6169_v47, %v5962_v55  ;;  %v6170_v47 = vld [vmem:[%s10094_s9 + $0xf4] sm:$0xf0] }
 0x320   : > { %v2640_v14 = vpop.f32.mrf.mxu0 }
 0x321   : > { %v2857_v28 = vadd.f32 %v8642_v52, %v8523_v22  ;;  %v2922_v32 = vmul.f32 %v8642_v52, %v8642_v52  ;;  %v2641_v44 = vadd.f32 %v2640_v14, %v8631_v46  ;;  %3803 = vmatpush.bf16.msra.mxu3 %v5965_v58 }
 0x322   : > { %v2735_v49 = vpop.f32.mrf.mxu2  ;;  %v2689_v59 = vpop.f32.mrf.mxu1 }
 0x323   : > { %2858 = vadd.xlane.f32.xlu2 %v2857_v28  ;;  %v2736_v13 = vadd.f32 %v2735_v49, %v2687_v9  ;;  %v2953_v42 = vadd.f32 %v2922_v32, %v2921_v12  ;;  %v2690_v50 = vadd.f32 %v2689_v59, %v2641_v44  ;;  %v2496_v49 = vadd.f32 %v8528_v21, %v2447_v51  ;;  %v5960_v44 = vld [vmem:[%s10094_s9 + $0xf0] sm:$0xf] }
 0x324   : > { %v2925_v21 = vmul.f32 %v8530_v7, %v8530_v7  ;;  %v5961_v55 = vor.u32 %v6170_v47, %v5960_v44 }
 0x325   : > { %2954 = vadd.xlane.f32.xlu1 %v2953_v42  ;;  %v5896_v42 = vld [vmem:[%s10094_s9 + $0x70] sm:$0xf] }
 0x326   : > { %v2784_v40 = vpop.f32.mrf.mxu3  ;;  %v5897_v62 = vor.u32 %v6154_v6, %v5896_v42  ;;  %3705 = vmatpush.bf16.msrb.mxu1 %v5961_v55  ;;  %v5954_v42 = vld [vmem:[%s10094_s9 + $0xe8] sm:$0xf0] }
 0x327   : > { %v8655_v17 = vadd.f32 %v2784_v40, %v2736_v13  ;;  %v2545_v40 = vadd.f32 %v8536_v36, %v2496_v49 }
 0x328   : > { %v2642_v60 = vpop.f32.mrf.mxu0  ;;  %3656 = vmatpush.bf16.msrb.mxu0 %v5897_v62 }
 0x329   : > { %v2860_v20 = vadd.f32 %v8655_v17, %v8652_v33  ;;  %v2924_v5 = vmul.f32 %v8655_v17, %v8655_v17  ;;  %v2643_v32 = vadd.f32 %v2642_v60, %v8631_v46  ;;  %v8701_v58 = vadd.f32 %v8539_v31, %v2545_v40 }
 0x32a   : > { %v2738_v14 = vpop.f32.mrf.mxu2  ;;  %v2691_v9 = vpop.f32.mrf.mxu1 }
 0x32b   : > { %2861 = vadd.xlane.f32.xlu0 %v2860_v20  ;;  %v2739_v28 = vadd.f32 %v2738_v14, %v2690_v50  ;;  %v2956_v12 = vadd.f32 %v2924_v5, %v2923_v11  ;;  %v2692_v11 = vadd.f32 %v2691_v9, %v2643_v32  ;;  %v6167_v32 = vld [vmem:[%s10094_s9 + $0xe4] sm:$0xf]  ;;  %v2927_v31 = vmul.f32 %v8701_v58, %v8701_v58 }
 0x32d   : > { %2957 = vadd.xlane.f32.xlu2 %v2956_v12  ;;  %v5890_v12 = vld [vmem:[%s10094_s9 + $0x68] sm:$0xf0] }
 0x32e   : > { %v2787_v59 = vpop.f32.mrf.mxu3 }
 0x32f   : > { %v8679_v13 = vadd.f32 %v2787_v59, %v2739_v28  ;;  %v6151_v28 = vld [vmem:[%s10094_s9 + $0x64] sm:$0xf] }
 0x330   : > { %v2645_v56 = vpop.f32.mrf.mxu0  ;;  %v5893_v59 = vor.u32 %v6151_v28, %v5890_v12  ;;  %v6168_v12 = vld [vmem:[%s10094_s9 + $0xe4] sm:$0xf0] }
 0x331   : > { %v2863_v60 = vadd.f32 %v8679_v13, %v8530_v7  ;;  %v2926_v25 = vmul.f32 %v8679_v13, %v8679_v13  ;;  %v2646_v51 = vadd.f32 %v2645_v56, %v8631_v46  ;;  %v2452_v56 = vadd.f32 %v8541_v24, %v8453_v10  ;;  %v6152_v24 = vld [vmem:[%s10094_s9 + $0x64] sm:$0xf0] }
 0x332   : > { %v2740_v50 = vpop.f32.mrf.mxu2  ;;  %v2694_v20 = vpop.f32.mrf.mxu1  ;;  %3755 = vmatpush.bf16.msrb.mxu2 %v5893_v59 }
 0x333   : > { %2864 = vadd.xlane.f32.xlu0 %v2863_v60  ;;  %v2741_v36 = vadd.f32 %v2740_v50, %v2692_v11  ;;  %v2959_v5 = vadd.f32 %v2926_v25, %v2925_v21  ;;  %v2695_v6 = vadd.f32 %v2694_v20, %v2646_v51  ;;  %v5957_v21 = vor.u32 %v6167_v32, %v5954_v42 }
 0x334   : > { %v2501_v55 = vadd.f32 %v8544_v16, %v2452_v56  ;;  %v2929_v16 = vmul.f32 %v8547_v35, %v8547_v35 }
 0x335   : > { %2960 = vadd.xlane.f32.xlu2 %v2959_v5  ;;  %3804 = vmatpush.bf16.msra.mxu3 %v5957_v21  ;;  %v5952_v5 = vld [vmem:[%s10094_s9 + $0xe0] sm:$0xf] }
 0x336   : > { %v2789_v14 = vpop.f32.mrf.mxu3  ;;  %v2550_v51 = vadd.f32 %v8552_v41, %v2501_v55  ;;  %v5953_v59 = vor.u32 %v6168_v12, %v5952_v5 }
 0x337   : > { %v8704_v9 = vadd.f32 %v2789_v14, %v2741_v36  ;;  %v5888_v36 = vld [vmem:[%s10094_s9 + $0x60] sm:$0xf] }
 0x338   : > { %v2647_v49 = vpop.f32.mrf.mxu0  ;;  %v5889_v28 = vor.u32 %v6152_v24, %v5888_v36  ;;  %3706 = vmatpush.bf16.msrb.mxu1 %v5953_v59 }
 0x339   : > { %v2866_v44 = vadd.f32 %v8704_v9, %v8701_v58  ;;  %v2928_v40 = vmul.f32 %v8704_v9, %v8704_v9  ;;  %v2648_v25 = vadd.f32 %v2647_v49, %v8631_v46 }
 0x33a   : > { %v2743_v62 = vpop.f32.mrf.mxu2  ;;  %v2696_v47 = vpop.f32.mrf.mxu1  ;;  %3657 = vmatpush.bf16.msrb.mxu0 %v5889_v28 }
 0x33b   : > { %2867 = vadd.xlane.f32.xlu1 %v2866_v44  ;;  %v2744_v11 = vadd.f32 %v2743_v62, %v2695_v6  ;;  %v2962_v60 = vadd.f32 %v2928_v40, %v2927_v31  ;;  %v2697_v32 = vadd.f32 %v2696_v47, %v2648_v25  ;;  %v8750_v40 = vadd.f32 %v8554_v27, %v2550_v51  ;;  %v6149_v47 = vld [vmem:[%s10094_s9 + $0x54] sm:$0xf] }
 0x33d   : > { %2963 = vadd.xlane.f32.xlu0 %v2962_v60  ;;  %v6165_v60 = vld [vmem:[%s10094_s9 + $0xd4] sm:$0xf]  ;;  %v2931_v27 = vmul.f32 %v8750_v40, %v8750_v40 }
 0x33e   : > { %v2792_v50 = vpop.f32.mrf.mxu3 }
 0x33f   : > { %v8728_v20 = vadd.f32 %v2792_v50, %v2744_v11  ;;  %v5882_v11 = vld [vmem:[%s10094_s9 + $0x58] sm:$0xf0] }
 0x340   : > { %v2650_v14 = vpop.f32.mrf.mxu0  ;;  %v5885_v55 = vor.u32 %v6149_v47, %v5882_v11  ;;  %v5946_v50 = vld [vmem:[%s10094_s9 + $0xd8] sm:$0xf0]  ;;  %v6166_v47 = vld [vmem:[%s10094_s9 + $0xd4] sm:$0xf0] }
 0x341   : > { %v2869_v31 = vadd.f32 %v8728_v20, %v8547_v35  ;;  %v2930_v49 = vmul.f32 %v8728_v20, %v8728_v20  ;;  %v2651_v21 = vadd.f32 %v2650_v14, %v8631_v46  ;;  %v5949_v51 = vor.u32 %v6165_v60, %v5946_v50 }
 0x342   : > { %v2745_v42 = vpop.f32.mrf.mxu2  ;;  %v2699_v6 = vpop.f32.mrf.mxu1  ;;  %3756 = vmatpush.bf16.msrb.mxu2 %v5885_v55 }
 0x343   : > { %2870 = vadd.xlane.f32.xlu1 %v2869_v31  ;;  %v2746_v41 = vadd.f32 %v2745_v42, %v2697_v32  ;;  %v2965_v44 = vadd.f32 %v2930_v49, %v2929_v16  ;;  %v2700_v36 = vadd.f32 %v2699_v6, %v2651_v21  ;;  %v2457_v16 = vadd.f32 %v8560_v30, %v8453_v10  ;;  %v5880_v6 = vld [vmem:[%s10094_s9 + $0x50] sm:$0xf]  ;;  %v6150_v30 = vld [vmem:[%s10094_s9 + $0x54] sm:$0xf0] }
 0x344   : > { %3805 = vmatpush.bf16.msra.mxu3 %v5949_v51 }
 0x345   : > { %2966 = vadd.xlane.f32.xlu0 %v2965_v44  ;;  %v2506_v49 = vadd.f32 %v8564_v3, %v2457_v16  ;;  %v2933_v3 = vmul.f32 %v8562_v57, %v8562_v57 }
 0x346   : > { %v2794_v56 = vpop.f32.mrf.mxu3 }
 0x347   : > { %v8753_v62 = vadd.f32 %v2794_v56, %v2746_v41  ;;  %v5944_v41 = vld [vmem:[%s10094_s9 + $0xd0] sm:$0xf]  ;;  %v2555_v44 = vadd.f32 %v8570_v53, %v2506_v49  ;;  %v5881_v56 = vor.u32 %v6150_v30, %v5880_v6  ;;  %v5938_v49 = vld [vmem:[%s10094_s9 + $0xc8] sm:$0xf0] }
 0x348   : > { %v2652_v25 = vpop.f32.mrf.mxu0 }
 0x349   : > { %v2872_v24 = vadd.f32 %v8753_v62, %v8750_v40  ;;  %v2932_v5 = vmul.f32 %v8753_v62, %v8753_v62  ;;  %v2653_v31 = vadd.f32 %v2652_v25, %v8631_v46  ;;  %v5945_v25 = vor.u32 %v6166_v47, %v5944_v41  ;;  %3658 = vmatpush.bf16.msrb.mxu0 %v5881_v56 }
 0x34a   : > { %v2748_v14 = vpop.f32.mrf.mxu2  ;;  %v2701_v28 = vpop.f32.mrf.mxu1 }
 0x34b   : > { %2873 = vadd.xlane.f32.xlu2 %v2872_v24  ;;  %v2749_v12 = vadd.f32 %v2748_v14, %v2700_v36  ;;  %v2968_v32 = vadd.f32 %v2932_v5, %v2931_v27  ;;  %v2702_v11 = vadd.f32 %v2701_v28, %v2653_v31  ;;  %3707 = vmatpush.bf16.msrb.mxu1 %v5945_v25  ;;  %v6147_v14 = vld [vmem:[%s10094_s9 + $0x44] sm:$0xf]  ;;  %v5874_v28 = vld [vmem:[%s10094_s9 + $0x48] sm:$0xf0] }
 0x34c   : > { %v8799_v24 = vadd.f32 %v8573_v37, %v2555_v44  ;;  %v5877_v31 = vor.u32 %v6147_v14, %v5874_v28  ;;  %v2462_v44 = vadd.f32 %v8576_v29, %v8453_v10  ;;  %v6148_v29 = vld [vmem:[%s10094_s9 + $0x44] sm:$0xf0] }
 0x34d   : > { %2969 = vadd.xlane.f32.xlu1 %v2968_v32 }
 0x34e   : > { %v2797_v59 = vpop.f32.mrf.mxu3  ;;  %v2935_v37 = vmul.f32 %v8799_v24, %v8799_v24  ;;  %3757 = vmatpush.bf16.msrb.mxu2 %v5877_v31 }
 0x34f   : > { %v8777_v42 = vadd.f32 %v2797_v59, %v2749_v12  ;;  %v6163_v12 = vld [vmem:[%s10094_s9 + $0xc4] sm:$0xf] }
 0x350   : > { %v2655_v21 = vpop.f32.mrf.mxu0  ;;  %v5941_v41 = vor.u32 %v6163_v12, %v5938_v49 }
 0x351   : > { %v2875_v60 = vadd.f32 %v8777_v42, %v8562_v57  ;;  %v2934_v27 = vmul.f32 %v8777_v42, %v8777_v42  ;;  %v2656_v5 = vadd.f32 %v2655_v21, %v8631_v46 }
 0x352   : > { %v2750_v55 = vpop.f32.mrf.mxu2  ;;  %v2704_v50 = vpop.f32.mrf.mxu1  ;;  %3806 = vmatpush.bf16.msra.mxu3 %v5941_v41 }
 0x353   : > { %2876 = vadd.xlane.f32.xlu2 %v2875_v60  ;;  %v2751_v53 = vadd.f32 %v2750_v55, %v2702_v11  ;;  %v2971_v36 = vadd.f32 %v2934_v27, %v2933_v3  ;;  %v2705_v59 = vadd.f32 %v2704_v50, %v2656_v5  ;;  %v2511_v60 = vadd.f32 %v8579_v48, %v2462_v44  ;;  %v5872_v55 = vld [vmem:[%s10094_s9 + $0x40] sm:$0xf]  ;;  %v6145_v44 = vld [vmem:[%s10094_s9 + $0x34] sm:$0xf] }
 0x354   : > { %v5936_v50 = vld [vmem:[%s10094_s9 + $0xc0] sm:$0xf]  ;;  %v2937_v48 = vmul.f32 %v8581_v23, %v8581_v23  ;;  %v5873_v5 = vor.u32 %v6148_v29, %v5872_v55 }
 0x355   : > { %2972 = vadd.xlane.f32.xlu1 %v2971_v36 }
 0x356   : > { %v2799_v51 = vpop.f32.mrf.mxu3  ;;  %3659 = vmatpush.bf16.msrb.mxu0 %v5873_v5 }
 0x357   : > { %v8802_v16 = vadd.f32 %v2799_v51, %v2751_v53  ;;  %v2560_v53 = vadd.f32 %v8586_v1, %v2511_v60  ;;  %v6164_v51 = vld [vmem:[%s10094_s9 + $0xc4] sm:$0xf0] }
 0x358   : > { %v2657_v32 = vpop.f32.mrf.mxu0 }
 0x359   : > { %v2878_v6 = vadd.f32 %v8802_v16, %v8799_v24  ;;  %v2936_v30 = vmul.f32 %v8802_v16, %v8802_v16  ;;  %v2658_v11 = vadd.f32 %v2657_v32, %v8631_v46 }
 0x35a   : > { %v2753_v3 = vpop.f32.mrf.mxu2  ;;  %v2706_v21 = vpop.f32.mrf.mxu1 }
 0x35b   : > { %2879 = vadd.xlane.f32.xlu0 %v2878_v6  ;;  %v2754_v56 = vadd.f32 %v2753_v3, %v2705_v59  ;;  %v2974_v47 = vadd.f32 %v2936_v30, %v2935_v37  ;;  %v2707_v14 = vadd.f32 %v2706_v21, %v2658_v11  ;;  %v5937_v37 = vor.u32 %v6164_v51, %v5936_v50  ;;  %v5866_v3 = vld [vmem:[%s10094_s9 + $0x38] sm:$0xf0]  ;;  %v6161_v21 = vld [vmem:[%s10094_s9 + $0xb4] sm:$0xf] }
 0x35c   : > { %v8848_v59 = vadd.f32 %v8588_v63, %v2560_v53  ;;  %v5930_v11 = vld [vmem:[%s10094_s9 + $0xb8] sm:$0xf0]  ;;  %v2467_v50 = vadd.f32 %v8592_v26, %v8453_v10  ;;  %v6146_v26 = vld [vmem:[%s10094_s9 + $0x34] sm:$0xf0] }
 0x35d   : > { %2975 = vadd.xlane.f32.xlu2 %v2974_v47  ;;  %3708 = vmatpush.bf16.msrb.mxu1 %v5937_v37  ;;  %v5869_v47 = vor.u32 %v6145_v44, %v5866_v3  ;;  %v5933_v29 = vor.u32 %v6161_v21, %v5930_v11  ;;  %v5864_v37 = vld [vmem:[%s10094_s9 + $0x30] sm:$0xf] }
 0x35e   : > { %v2802_v27 = vpop.f32.mrf.mxu3  ;;  %v2939_v63 = vmul.f32 %v8848_v59, %v8848_v59 }
 0x35f   : > { %v8826_v25 = vadd.f32 %v2802_v27, %v2754_v56  ;;  %3758 = vmatpush.bf16.msrb.mxu2 %v5869_v47  ;;  %3807 = vmatpush.bf16.msra.mxu3 %v5933_v29  ;;  %v6143_v29 = vld [vmem:[%s10094_s9 + $0x24] sm:$0xf] }
 0x360   : > { %v2660_v36 = vpop.f32.mrf.mxu0 }
 0x361   : > { %v2881_v28 = vadd.f32 %v8826_v25, %v8581_v23  ;;  %v2938_v12 = vmul.f32 %v8826_v25, %v8826_v25  ;;  %v2661_v6 = vadd.f32 %v2660_v36, %v8631_v46 }
 0x362   : > { %v2755_v32 = vpop.f32.mrf.mxu2  ;;  %v2709_v31 = vpop.f32.mrf.mxu1 }
 0x363   : > { %2882 = vadd.xlane.f32.xlu0 %v2881_v28  ;;  %v2756_v1 = vadd.f32 %v2755_v32, %v2707_v14  ;;  %v2977_v49 = vadd.f32 %v2938_v12, %v2937_v48  ;;  %v2710_v60 = vadd.f32 %v2709_v31, %v2661_v6  ;;  %v2516_v14 = vadd.f32 %v8595_v0, %v2467_v50  ;;  %v5928_v32 = vld [vmem:[%s10094_s9 + $0xb0] sm:$0xf]  ;;  %v6162_v6 = vld [vmem:[%s10094_s9 + $0xb4] sm:$0xf0]  ;;  %v5858_v50 = vld [vmem:[%s10094_s9 + $0x28] sm:$0xf0] }
 0x364   : > { %v2941_v0 = vmul.f32 %v8598_v45, %v8598_v45  ;;  %v5929_v21 = vor.u32 %v6162_v6, %v5928_v32  ;;  %v2472_v32 = vadd.f32 %v8608_v8, %v8453_v10 }
 0x365   : > { %2978 = vadd.xlane.f32.xlu2 %v2977_v49  ;;  %v2565_v31 = vadd.f32 %v8601_v15, %v2516_v14  ;;  %v5865_v49 = vor.u32 %v6146_v26, %v5864_v37  ;;  %v6159_v14 = vld [vmem:[%s10094_s9 + $0xa4] sm:$0xf] }
 0x366   : > { %v2804_v30 = vpop.f32.mrf.mxu3  ;;  %3709 = vmatpush.bf16.msrb.mxu1 %v5929_v21 }
 0x367   : > { %v8851_v41 = vadd.f32 %v2804_v30, %v2756_v1  ;;  %3660 = vmatpush.bf16.msrb.mxu0 %v5865_v49  ;;  %v8897_v11 = vadd.f32 %v8604_v61, %v2565_v31 }
 0x368   : > { %v2662_v56 = vpop.f32.mrf.mxu0 }
 0x369   : > { %v2884_v27 = vadd.f32 %v8851_v41, %v8848_v59  ;;  %v2940_v55 = vmul.f32 %v8851_v41, %v8851_v41  ;;  %v2663_v51 = vadd.f32 %v2662_v56, %v8631_v46 }
 0x36a   : > { %v2758_v53 = vpop.f32.mrf.mxu2  ;;  %v2711_v48 = vpop.f32.mrf.mxu1 }
 0x36b   : > { %2885 = vadd.xlane.f32.xlu1 %v2884_v27  ;;  %v2759_v36 = vadd.f32 %v2758_v53, %v2710_v60  ;;  %v2980_v5 = vadd.f32 %v2940_v55, %v2939_v63  ;;  %v2712_v30 = vadd.f32 %v2711_v48, %v2663_v51  ;;  %v5861_v48 = vor.u32 %v6143_v29, %v5858_v50 }
 0x36d   : > { %2981 = vadd.xlane.f32.xlu0 %v2980_v5  ;;  %v2943_v5 = vmul.f32 %v8897_v11, %v8897_v11  ;;  %3759 = vmatpush.bf16.msrb.mxu2 %v5861_v48 }
 0x36e   : > { %v2807_v28 = vpop.f32.mrf.mxu3 }
 0x36f   : > { %v8875_v12 = vadd.f32 %v2807_v28, %v2759_v36  ;;  %v5922_v28 = vld [vmem:[%s10094_s9 + $0xa8] sm:$0xf0] }
 0x370   : > { %v2665_v1 = vpop.f32.mrf.mxu0  ;;  %v5925_v26 = vor.u32 %v6159_v14, %v5922_v28 }
 0x371   : > { %v2887_v44 = vadd.f32 %v8875_v12, %v8598_v45  ;;  %v2942_v3 = vmul.f32 %v8875_v12, %v8875_v12  ;;  %v2666_v60 = vadd.f32 %v2665_v1, %v8631_v46 }
 0x372   : > { %v2760_v63 = vpop.f32.mrf.mxu2  ;;  %v2714_v56 = vpop.f32.mrf.mxu1  ;;  %3808 = vmatpush.bf16.msra.mxu3 %v5925_v26 }
 0x373   : > { %2888 = vadd.xlane.f32.xlu1 %v2887_v44  ;;  %v2761_v15 = vadd.f32 %v2760_v63, %v2712_v30  ;;  %v2983_v47 = vadd.f32 %v2942_v3, %v2941_v0  ;;  %v2715_v36 = vadd.f32 %v2714_v56, %v2666_v60  ;;  %v2521_v30 = vadd.f32 %v8610_v2, %v2472_v32 }
 0x374   : > { %v2945_v3 = vmul.f32 %v8613_v43, %v8613_v43 }
 0x375   : > { %2984 = vadd.xlane.f32.xlu0 %v2983_v47  ;;  %v2570_v63 = vadd.f32 %v8616_v54, %v2521_v30  ;;  %v2949_v30 = vmul.f32 %v8628_v19, %v8628_v19 }
 0x376   : > { %v2809_v27 = vpop.f32.mrf.mxu3 }
 0x377   : > { %v8900_v55 = vadd.f32 %v2809_v27, %v2761_v15  ;;  %v8934_v2 = vadd.f32 %v8620_v4, %v2570_v63 }
 0x378   : > { %v2667_v53 = vpop.f32.mrf.mxu0 }
 0x379   : > { %v2890_v61 = vadd.f32 %v8900_v55, %v8897_v11  ;;  %v2944_v51 = vmul.f32 %v8900_v55, %v8900_v55  ;;  %v2668_v49 = vadd.f32 %v2667_v53, %v8631_v46 }
 0x37a   : > { %v2763_v37 = vpop.f32.mrf.mxu2  ;;  %v2716_v1 = vpop.f32.mrf.mxu1 }
 0x37b   : > { %2891 = vadd.xlane.f32.xlu2 %v2890_v61  ;;  %v2764_v31 = vadd.f32 %v2763_v37, %v2715_v36  ;;  %v2986_v0 = vadd.f32 %v2944_v51, %v2943_v5  ;;  %v2717_v8 = vadd.f32 %v2716_v1, %v2668_v49  ;;  %v2947_v61 = vmul.f32 %v8934_v2, %v8934_v2 }
 0x37c   : > { %v2477_v37 = vadd.f32 %v8623_v34, %v8453_v10 }
 0x37d   : > { %2987 = vadd.xlane.f32.xlu1 %v2986_v0 }
 0x37e   : > { %v2812_v6 = vpop.f32.mrf.mxu3  ;;  %v2526_v0 = vadd.f32 %v8625_v18, %v2477_v37 }
 0x37f   : > { %v8924_v44 = vadd.f32 %v2812_v6, %v2764_v31 }
 0x380   : > { %v2670_v21 = vpop.f32.mrf.mxu0  ;;  %v2575_v10 = vadd.f32 %v8633_v38, %v2526_v0  ;;  %v6144_v38 = vld [vmem:[%s10094_s9 + $0x24] sm:$0xf0]  ;;  %v6141_v0 = vld [vmem:[%s10094_s9 + $0x14] sm:$0xf] }
 0x381   : > { %v2893_v56 = vadd.f32 %v8924_v44, %v8613_v43  ;;  %v2946_v15 = vmul.f32 %v8924_v44, %v8924_v44  ;;  %v2671_v29 = vadd.f32 %v2670_v21, %v8631_v46 }
 0x382   : > { %v2765_v47 = vpop.f32.mrf.mxu2  ;;  %v2719_v53 = vpop.f32.mrf.mxu1  ;;  %v8959_v18 = vadd.f32 %v8636_v39, %v2575_v10  ;;  %v5920_v39 = vld [vmem:[%s10094_s9 + $0xa0] sm:$0xf] }
 0x383   : > { %2894 = vadd.xlane.f32.xlu2 %v2893_v56  ;;  %v2766_v60 = vadd.f32 %v2765_v47, %v2717_v8  ;;  %v2989_v27 = vadd.f32 %v2946_v15, %v2945_v3  ;;  %v2720_v48 = vadd.f32 %v2719_v53, %v2671_v29  ;;  %v5856_v47 = vld [vmem:[%s10094_s9 + $0x20] sm:$0xf]  ;;  %v6160_v29 = vld [vmem:[%s10094_s9 + $0xa4] sm:$0xf0] }
 0x385   : > { %2990 = vadd.xlane.f32.xlu1 %v2989_v27  ;;  %v5857_v27 = vor.u32 %v6144_v38, %v5856_v47  ;;  %v6158_v38 = vld [vmem:[%s10094_s9 + $0x94] sm:$0xf0] }
 0x386   : > { %v2814_v50 = vpop.f32.mrf.mxu3 }
 0x387   : > { %v8937_v54 = vadd.f32 %v2814_v50, %v2766_v60  ;;  %3661 = vmatpush.bf16.msrb.mxu0 %v5857_v27 }
 0x388   : > { %v2672_v4 = vpop.f32.mrf.mxu0 }
 0x389   : > { %v2896_v36 = vadd.f32 %v8937_v54, %v8934_v2  ;;  %v2948_v5 = vmul.f32 %v8937_v54, %v8937_v54  ;;  %v2673_v26 = vadd.f32 %v2672_v4, %v8631_v46 }
 0x38a   : > { %v2768_v51 = vpop.f32.mrf.mxu2  ;;  %v2721_v1 = vpop.f32.mrf.mxu1 }
 0x38b   : > { %2897 = vadd.xlane.f32.xlu0 %v2896_v36  ;;  %v2769_v14 = vadd.f32 %v2768_v51, %v2720_v48  ;;  %v2992_v28 = vadd.f32 %v2948_v5, %v2947_v61  ;;  %v2722_v49 = vadd.f32 %v2721_v1, %v2673_v26  ;;  %v2951_v36 = vmul.f32 %v8959_v18, %v8959_v18  ;;  %v5850_v1 = vld [vmem:[%s10094_s9 + $0x18] sm:$0xf0] }
 0x38c   : > { %v5921_v5 = vor.u32 %v6160_v29, %v5920_v39  ;;  %v5853_v10 = vor.u32 %v6141_v0, %v5850_v1  ;;  %v5842_v0 = vld [vmem:[%s10094_s9 + $0x8] sm:$0xf0] }
 0x38d   : > { %2993 = vadd.xlane.f32.xlu2 %v2992_v28 }
 0x38e   : > { %v2817_v32 = vpop.f32.mrf.mxu3  ;;  %3710 = vmatpush.bf16.msrb.mxu1 %v5921_v5  ;;  %3760 = vmatpush.bf16.msrb.mxu2 %v5853_v10 }
 0x38f   : > { %v8948_v31 = vadd.f32 %v2817_v32, %v2769_v14 }
 0x391   : > { %v2899_v6 = vadd.f32 %v8948_v31, %v8628_v19  ;;  %v2950_v3 = vmul.f32 %v8948_v31, %v8948_v31 }
 0x392   : > { %v2770_v34 = vpop.f32.mrf.mxu2 }
 0x393   : > { %2900 = vadd.xlane.f32.xlu0 %v2899_v6  ;;  %v2771_v46 = vadd.f32 %v2770_v34, %v2722_v49  ;;  %v2995_v21 = vadd.f32 %v2950_v3, %v2949_v30  ;;  %v6157_v49 = vld [vmem:[%s10094_s9 + $0x94] sm:$0xf]  ;;  %v5914_v6 = vld [vmem:[%s10094_s9 + $0x98] sm:$0xf0] }
 0x394   : > { %v5917_v34 = vor.u32 %v6157_v49, %v5914_v6 }
 0x395   : > { %2996 = vadd.xlane.f32.xlu2 %v2995_v21  ;;  %v6142_v21 = vld [vmem:[%s10094_s9 + $0x14] sm:$0xf0] }
 0x396   : > { %v2819_v63 = vpop.f32.mrf.mxu3  ;;  %v2859_v8 = vpop.xlane.xlu2 %2858  ;;  %3809 = vmatpush.bf16.msra.mxu3 %v5917_v34 }
 0x397   : > { %v8961_v56 = vadd.f32 %v2819_v63, %v2771_v46  ;;  %v8963_v15 = vmul.f32 0.00390625, %v2859_v8  ;;  %v5848_v46 = vld [vmem:[%s10094_s9 + $0x10] sm:$0xf] }
 0x398   : > { %v2955_v60 = vpop.xlane.xlu1 %2954  ;;  %v5912_v63 = vld [vmem:[%s10094_s9 + $0x90] sm:$0xf]  ;;  %v5849_v47 = vor.u32 %v6142_v21, %v5848_v46 }
 0x399   : > { %v3001_v50 = vmul.f32 0.00390625, %v2955_v60  ;;  %v3017_v53 = vmul.f32 %v8963_v15, %v8963_v15  ;;  %v2902_v48 = vadd.f32 %v8961_v56, %v8959_v18  ;;  %v2952_v61 = vmul.f32 %v8961_v56, %v8961_v56 }
 0x39a   : > { %v5913_v60 = vor.u32 %v6158_v38, %v5912_v63  ;;  %3662 = vmatpush.bf16.msrb.mxu0 %v5849_v47  ;;  %v2822_v63 = vld [vmem:[#allocation8] sm:$0x3] }
 0x39b   : > { %v3033_v51 = vsub.f32 %v3001_v50, %v3017_v53  ;;  %2903 = vadd.xlane.f32.xlu1 %v2902_v48  ;;  %v2998_v4 = vadd.f32 %v2952_v61, %v2951_v36 }
 0x39c   : > { %3711 = vmatpush.bf16.msrb.mxu1 %v5913_v60  ;;  %v3065_v60 = vsub.f32 %v8523_v22, %v8963_v15  ;;  %v6140_v22 = vld [vmem:[%s10094_s9 + $0x4] sm:$0xf0] }
 0x39d   : > { %v3049_v14 = vmax.f32 %v3033_v51, 0.0  ;;  %2999 = vadd.xlane.f32.xlu0 %v2998_v4 }
 0x39e   : > { %v2862_v28 = vpop.xlane.xlu0 %2861 }
 0x39f   : > { %v3097_v37 = vadd.f32 1e-05, %v3049_v14  ;;  %v8985_v26 = vmul.f32 0.00390625, %v2862_v28 }
 0x3a0   : > { %v2958_v32 = vpop.xlane.xlu2 %2957 }
 0x3a1   : > { %6384 = vrsqrt.f32 %v3097_v37  ;;  %v3018_v30 = vmul.f32 %v8985_v26, %v8985_v26  ;;  %v3002_v3 = vmul.f32 0.00390625, %v2958_v32  ;;  %v6139_v32 = vld [vmem:[%s10094_s9 + $0x4] sm:$0xf]  ;;  %vm3119_vm2 = vweird.f32 %v3097_v37 }
 0x3a2   : > { %v5845_v6 = vor.u32 %v6139_v32, %v5842_v0  ;;  %v6156_v32 = vld [vmem:[%s10094_s9 + $0x84] sm:$0xf0] }
 0x3a3   : > { %v3034_v8 = vsub.f32 %v3002_v3, %v3018_v30  ;;  %v6155_v30 = vld [vmem:[%s10094_s9 + $0x84] sm:$0xf]  ;;  %v5906_v3 = vld [vmem:[%s10094_s9 + $0x88] sm:$0xf0] }
 0x3a4   : > { %v5909_v46 = vor.u32 %v6155_v30, %v5906_v3  ;;  %3761 = vmatpush.bf16.msrb.mxu2 %v5845_v6 }
 0x3a5   : > { %v3050_v27 = vmax.f32 %v3034_v8, 0.0 }
 0x3a6   : > { %v2865_v39 = vpop.xlane.xlu0 %2864  ;;  %3810 = vmatpush.bf16.msra.mxu3 %v5909_v46 }
 0x3a7   : > { %v6385_v29 = vpop.eup %6384  ;;  %v9013_v50 = vmul.f32 0.00390625, %v2865_v39  ;;  %v9015_v48 = vadd.f32 1e-05, %v3050_v27 }
 0x3a8   : > { %v3114_v53 = vmul.f32 %v6385_v29, %v3097_v37  ;;  %v2961_v36 = vpop.xlane.xlu2 %2960  ;;  %vm3120_vm1 = vweird.f32 %v6385_v29 }
 0x3a9   : > { %v3019_v61 = vmul.f32 %v9013_v50, %v9013_v50  ;;  %v3003_v5 = vmul.f32 0.00390625, %v2961_v36  ;;  %6386 = vrsqrt.f32 %v9015_v48  ;;  %vm3121_vm3 = vmor %vm3119_vm2, %vm3120_vm1  ;;  %v2823_v36 = vld [vmem:[#allocation10] sm:$0x3]  ;;  %vm3129_vm5 = vweird.f32 %v9015_v48 }
 0x3aa   : > { %v3115_v51 = vmul.f32 %v6385_v29, %v3114_v53  ;;  %v3066_v53 = vsub.f32 %v8642_v52, %v8963_v15  ;;  %v5904_v52 = vld [vmem:[%s10094_s9 + $0x80] sm:$0xf]  ;;  %v9055_v15 = vperm.slane %v2822_v63, 1  ;;  %v9060_v0 = vperm.slane %v2823_v36, 0 }
 0x3ab   : > { %v3035_v4 = vsub.f32 %v3003_v5, %v3019_v61  ;;  %v9042_v61 = vperm.slane %v2822_v63, 0  ;;  %v5905_v6 = vor.u32 %v6156_v32, %v5904_v52  ;;  %v9062_v3 = vperm.slane %v2823_v36, 1 }
 0x3ac   : > { %v3116_v14 = vmul.f32 0.5, %v3115_v51 }
 0x3ad   : > { %v3051_v28 = vmax.f32 %v3035_v4, 0.0  ;;  %v5840_v4 = vld [vmem:[%s10094_s9] sm:$0xf]  ;;  %3712 = vmatpush.bf16.msrb.mxu1 %v5905_v6  ;;  %v3070_v6 = vsub.f32 %v8679_v13, %v9013_v50 }
 0x3ae   : > { %v3117_v1 = vsub.f32 1.5, %v3116_v14  ;;  %v2868_v49 = vpop.xlane.xlu1 %2867 }
 0x3af   : > { %v9032_v10 = vadd.f32 1e-05, %v3051_v28  ;;  %v9034_v34 = vmul.f32 0.00390625, %v2868_v49  ;;  %v6387_v21 = vpop.eup %6386  ;;  %v5841_v49 = vor.u32 %v6140_v22, %v5840_v4 }
 0x3b0   : > { %v3118_v8 = vmul.f32 %v6385_v29, %v3117_v1  ;;  %v2964_v47 = vpop.xlane.xlu0 %2963  ;;  %v3124_v38 = vmul.f32 %v6387_v21, %v9015_v48  ;;  %vm3130_vm4 = vweird.f32 %v6387_v21 }
 0x3b1   : > { %6388 = vrsqrt.f32 %v9032_v10  ;;  %v3004_v39 = vmul.f32 0.00390625, %v2964_v47  ;;  %v3020_v5 = vmul.f32 %v9034_v34, %v9034_v34  ;;  %3663 = vmatpush.bf16.msrb.mxu0 %v5841_v49  ;;  %vm3131_vm6 = vmor %vm3129_vm5, %vm3130_vm4  ;;  %vm3139_vm8 = vweird.f32 %v9032_v10 }
 0x3b2   : > { %v3122_v27 = vsel %vm3121_vm3, %v6385_v29, %v3118_v8  ;;  %v3125_v37 = vmul.f32 %v6387_v21, %v3124_v38 }
 0x3b3   : > { %v3273_v51 = vmul.f32 %v3122_v27, %v3065_v60  ;;  %v3274_v29 = vmul.f32 %v3122_v27, %v3066_v53  ;;  %v3036_v28 = vsub.f32 %v3004_v39, %v3020_v5  ;;  %v3068_v5 = vsub.f32 %v8655_v17, %v8985_v26 }
 0x3b4   : > { %v3126_v14 = vmul.f32 0.5, %v3125_v37  ;;  %v3067_v37 = vsub.f32 %v8652_v33, %v8985_v26 }
 0x3b5   : > { %v3052_v8 = vmax.f32 %v3036_v28, 0.0  ;;  %v3310_v63 = vmul.f32 %v9042_v61, %v3273_v51  ;;  %v3311_v27 = vmul.f32 %v9055_v15, %v3274_v29 }
 0x3b6   : > { %v2871_v1 = vpop.xlane.xlu1 %2870  ;;  %v3127_v46 = vsub.f32 1.5, %v3126_v14 }
 0x3b7   : > { %v6389_v30 = vpop.eup %6388  ;;  %v9067_v38 = vmul.f32 0.00390625, %v2871_v1  ;;  %v9070_v53 = vadd.f32 1e-05, %v3052_v8  ;;  %v3347_v28 = vadd.f32 %v9060_v0, %v3310_v63  ;;  %v3348_v33 = vadd.f32 %v9062_v3, %v3311_v27 }
 0x3b8   : > { %v3134_v47 = vmul.f32 %v6389_v30, %v9032_v10  ;;  %v2967_v60 = vpop.xlane.xlu0 %2966  ;;  %v3128_v39 = vmul.f32 %v6387_v21, %v3127_v46  ;;  %vm3140_vm7 = vweird.f32 %v6389_v30 }
 0x3b9   : > { %v3005_v36 = vmul.f32 0.00390625, %v2967_v60  ;;  %v3021_v51 = vmul.f32 %v9067_v38, %v9067_v38  ;;  %6390 = vrsqrt.f32 %v9070_v53  ;;  %vm3141_vm9 = vmor %vm3139_vm8, %vm3140_vm7  ;;  %vm3379_vm10 = vcmp.ge.f32.partialorder %v3347_v28, 0.0 }
 0x3ba   : > { %v3135_v48 = vmul.f32 %v6389_v30, %v3134_v47  ;;  %v3132_v4 = vsel %vm3131_vm6, %v6387_v21, %v3128_v39  ;;  %v3069_v21 = vsub.f32 %v8530_v7, %v9013_v50  ;;  %v3411_v13 = vmul.f32 0.01, %v3347_v28 }
 0x3bb   : > { %v3275_v22 = vmul.f32 %v3132_v4, %v3067_v37  ;;  %v3276_v52 = vmul.f32 %v3132_v4, %v3068_v5  ;;  %v3037_v14 = vsub.f32 %v3005_v36, %v3021_v51  ;;  %v3412_v37 = vmul.f32 0.01, %v3348_v33 }
 0x3bc   : > { %v3136_v29 = vmul.f32 0.5, %v3135_v48  ;;  %vm3380_vm11 = vcmp.ge.f32.partialorder %v3348_v33, 0.0  ;;  %vm3149_vm15 = vweird.f32 %v9070_v53 }
 0x3bd   : > { %v3312_v17 = vmul.f32 %v9042_v61, %v3275_v22  ;;  %v3313_v26 = vmul.f32 %v9055_v15, %v3276_v52  ;;  %v3053_v1 = vmax.f32 %v3037_v14, 0.0 }
 0x3be   : > { %v3137_v32 = vsub.f32 1.5, %v3136_v29  ;;  %v2874_v49 = vpop.xlane.xlu2 %2873  ;;  %v3443_v29 = vsel %vm3379_vm10, %v3347_v28, %v3411_v13 }
 0x3bf   : > { %v9089_v46 = vmul.f32 0.00390625, %v2874_v49  ;;  %v3349_v8 = vadd.f32 %v9060_v0, %v3312_v17  ;;  %v3350_v63 = vadd.f32 %v9062_v3, %v3313_v26  ;;  %v9093_v60 = vadd.f32 1e-05, %v3053_v1  ;;  %v6391_v39 = vpop.eup %6390 }
 0x3c0   : > { %v3138_v47 = vmul.f32 %v6389_v30, %v3137_v32  ;;  %v2970_v27 = vpop.xlane.xlu1 %2969  ;;  %v3144_v10 = vmul.f32 %v6391_v39, %v9070_v53  ;;  %v3444_v32 = vsel %vm3380_vm11, %v3348_v33, %v3412_v37  ;;  %vm3150_vm14 = vweird.f32 %v6391_v39 }
 0x3c1   : > { %v3006_v36 = vmul.f32 0.00390625, %v2970_v27  ;;  %v3022_v7 = vmul.f32 %v9089_v46, %v9089_v46  ;;  %6392 = vrsqrt.f32 %v9093_v60  ;;  %vm3381_vm12 = vcmp.ge.f32.partialorder %v3349_v8, 0.0  ;;  %vm3151_vm0 = vmor %vm3149_vm15, %vm3150_vm14 }
 0x3c2   : > { %v3142_v50 = vsel %vm3141_vm9, %v6389_v30, %v3138_v47  ;;  %v3145_v4 = vmul.f32 %v6391_v39, %v3144_v10  ;;  %v3413_v22 = vmul.f32 0.01, %v3349_v8  ;;  %vm3382_vm13 = vcmp.ge.f32.partialorder %v3350_v63, 0.0 }
 0x3c3   : > { %v3277_v5 = vmul.f32 %v3142_v50, %v3069_v21  ;;  %v3278_v48 = vmul.f32 %v3142_v50, %v3070_v6  ;;  %v3038_v51 = vsub.f32 %v3006_v36, %v3022_v7  ;;  %v3414_v14 = vmul.f32 0.01, %v3350_v63 }
 0x3c4   : > { %v3146_v17 = vmul.f32 0.5, %v3145_v4  ;;  %v3445_v26 = vsel %vm3381_vm12, %v3349_v8, %v3413_v22  ;;  %v3071_v10 = vsub.f32 %v8701_v58, %v9034_v34  ;;  %v3072_v37 = vsub.f32 %v8704_v9, %v9034_v34 }
 0x3c5   : > { %v3054_v52 = vmax.f32 %v3038_v51, 0.0  ;;  %v3314_v1 = vmul.f32 %v9042_v61, %v3277_v5  ;;  %v3475_v47 = vpack.c.bf16 %v3445_v26, %v3443_v29  ;;  %v3446_v21 = vsel %vm3382_vm13, %v3350_v63, %v3414_v14 }
 0x3c6   : > { %v2877_v30 = vpop.xlane.xlu2 %2876  ;;  %v3147_v36 = vsub.f32 1.5, %v3146_v17  ;;  %v3476_v7 = vpack.c.bf16 %v3446_v21, %v3444_v32  ;;  %v3315_v28 = vmul.f32 %v9055_v15, %v3278_v48  ;;  %v3073_v53 = vsub.f32 %v8547_v35, %v9067_v38 }
 0x3c7   : > { %v9101_v49 = vadd.f32 1e-05, %v3054_v52  ;;  %v9103_v6 = vmul.f32 0.00390625, %v2877_v30  ;;  %v6393_v27 = vpop.eup %6392  ;;  %3664 = vmatmul.bf16.vlgmr.msrb.gmra.mxu0 %v3475_v47  ;;  %3762 = vmatmul.bf16.vlgmr.msrb.gmra.mxu2 %v3475_v47  ;;  %v3351_v63 = vadd.f32 %v9060_v0, %v3314_v1  ;;  %v3074_v58 = vsub.f32 %v8728_v20, %v9067_v38 }
 0x3c8   : > { %v2973_v50 = vpop.xlane.xlu1 %2972  ;;  %v3154_v13 = vmul.f32 %v6393_v27, %v9093_v60  ;;  %v3148_v33 = vmul.f32 %v6391_v39, %v3147_v36  ;;  %3713 = vmatmul.bf16.vlgmr.msrb.gmra.mxu1 %v3476_v7  ;;  %3811 = vmatmul.bf16.vlgmr.msra.gmra.mxu3 %v3476_v7  ;;  %v3352_v4 = vadd.f32 %v9062_v3, %v3315_v28  ;;  %vm3159_vm1 = vweird.f32 %v9093_v60 }
 0x3c9   : > { %6394 = vrsqrt.f32 %v9101_v49  ;;  %v3007_v8 = vmul.f32 0.00390625, %v2973_v50  ;;  %v3023_v48 = vmul.f32 %v9103_v6, %v9103_v6  ;;  %vm3160_vm2 = vweird.f32 %v6393_v27 }
 0x3ca   : > { %v3155_v5 = vmul.f32 %v6393_v27, %v3154_v13  ;;  %v3152_v51 = vsel %vm3151_vm0, %v6391_v39, %v3148_v33  ;;  %v3415_v34 = vmul.f32 0.01, %v3351_v63  ;;  %vm3383_vm3 = vcmp.ge.f32.partialorder %v3351_v63, 0.0  ;;  %vm3161_vm6 = vmor %vm3159_vm1, %vm3160_vm2 }
 0x3cb   : > { %v3279_v22 = vmul.f32 %v3152_v51, %v3071_v10  ;;  %v3280_v52 = vmul.f32 %v3152_v51, %v3072_v37  ;;  %v3039_v14 = vsub.f32 %v3007_v8, %v3023_v48  ;;  %v3416_v21 = vmul.f32 0.01, %v3352_v4 }
 0x3cc   : > { %v3156_v29 = vmul.f32 0.5, %v3155_v5  ;;  %vm3169_vm4 = vweird.f32 %v9101_v49  ;;  %vm3384_vm5 = vcmp.ge.f32.partialorder %v3352_v4, 0.0  ;;  %v3447_v33 = vsel %vm3383_vm3, %v3351_v63, %v3415_v34 }
 0x3cd   : > { %v3055_v39 = vmax.f32 %v3039_v14, 0.0  ;;  %v3316_v35 = vmul.f32 %v9042_v61, %v3279_v22  ;;  %v3317_v47 = vmul.f32 %v9055_v15, %v3280_v52  ;;  %v3448_v48 = vsel %vm3384_vm5, %v3352_v4, %v3416_v21 }
 0x3ce   : > { %v2880_v9 = vpop.xlane.xlu0 %2879  ;;  %v3157_v26 = vsub.f32 1.5, %v3156_v29 }
 0x3cf   : > { %v6395_v17 = vpop.eup %6394  ;;  %v9123_v32 = vmul.f32 0.00390625, %v2880_v9  ;;  %v9129_v38 = vadd.f32 1e-05, %v3055_v39  ;;  %v3353_v28 = vadd.f32 %v9060_v0, %v3316_v35  ;;  %v3354_v8 = vadd.f32 %v9062_v3, %v3317_v47 }
 0x3d0   : > { %v3164_v30 = vmul.f32 %v6395_v17, %v9101_v49  ;;  %v2976_v1 = vpop.xlane.xlu2 %2975  ;;  %v3158_v20 = vmul.f32 %v6393_v27, %v3157_v26  ;;  %vm3170_vm9 = vweird.f32 %v6395_v17 }
 0x3d1   : > { %v3024_v7 = vmul.f32 %v9123_v32, %v9123_v32  ;;  %v3008_v50 = vmul.f32 0.00390625, %v2976_v1  ;;  %6396 = vrsqrt.f32 %v9129_v38  ;;  %vm3385_vm7 = vcmp.ge.f32.partialorder %v3353_v28, 0.0  ;;  %vm3171_vm10 = vmor %vm3169_vm4, %vm3170_vm9 }
 0x3d2   : > { %v3165_v36 = vmul.f32 %v6395_v17, %v3164_v30  ;;  %v3162_v13 = vsel %vm3161_vm6, %v6393_v27, %v3158_v20  ;;  %v3417_v60 = vmul.f32 0.01, %v3353_v28  ;;  %vm3386_vm8 = vcmp.ge.f32.partialorder %v3354_v8, 0.0 }
 0x3d3   : > { %v3281_v10 = vmul.f32 %v3162_v13, %v3073_v53  ;;  %v3040_v5 = vsub.f32 %v3008_v50, %v3024_v7  ;;  %v3418_v51 = vmul.f32 0.01, %v3354_v8  ;;  %v3282_v22 = vmul.f32 %v3162_v13, %v3074_v58 }
 0x3d4   : > { %v3166_v37 = vmul.f32 0.5, %v3165_v36  ;;  %v3449_v27 = vsel %vm3385_vm7, %v3353_v28, %v3417_v60  ;;  %v3075_v58 = vsub.f32 %v8750_v40, %v9089_v46  ;;  %v3076_v1 = vsub.f32 %v8753_v62, %v9089_v46 }
 0x3d5   : > { %v3056_v29 = vmax.f32 %v3040_v5, 0.0  ;;  %v3450_v26 = vsel %vm3386_vm8, %v3354_v8, %v3418_v51  ;;  %v3318_v63 = vmul.f32 %v9042_v61, %v3281_v10  ;;  %v3477_v39 = vpack.c.bf16 %v3449_v27, %v3447_v33 }
 0x3d6   : > { %v3167_v52 = vsub.f32 1.5, %v3166_v37  ;;  %v2883_v14 = vpop.xlane.xlu0 %2882  ;;  %v3478_v4 = vpack.c.bf16 %v3450_v26, %v3448_v48  ;;  %v3319_v40 = vmul.f32 %v9055_v15, %v3282_v22  ;;  %v3077_v33 = vsub.f32 %v8562_v57, %v9103_v6 }
 0x3d7   : > { %v9139_v9 = vmul.f32 0.00390625, %v2883_v14  ;;  %v9142_v53 = vadd.f32 1e-05, %v3056_v29  ;;  %v6397_v30 = vpop.eup %6396  ;;  %3669 = vmatmul.bf16.gmra.mxu0 %v3477_v39  ;;  %3767 = vmatmul.bf16.gmra.mxu2 %v3477_v39  ;;  %v3355_v49 = vadd.f32 %v9060_v0, %v3318_v63  ;;  %v3078_v5 = vsub.f32 %v8777_v42, %v9103_v6 }
 0x3d8   : > { %v3168_v34 = vmul.f32 %v6395_v17, %v3167_v52  ;;  %v2979_v35 = vpop.xlane.xlu2 %2978  ;;  %v3174_v36 = vmul.f32 %v6397_v30, %v9129_v38  ;;  %3718 = vmatmul.bf16.gmra.mxu1 %v3478_v4  ;;  %3816 = vmatmul.bf16.gmra.mxu3 %v3478_v4  ;;  %v3356_v37 = vadd.f32 %v9062_v3, %v3319_v40  ;;  %vm3180_vm11 = vweird.f32 %v6397_v30 }
 0x3d9   : > { %v3025_v47 = vmul.f32 %v9139_v9, %v9139_v9  ;;  %v3009_v21 = vmul.f32 0.00390625, %v2979_v35  ;;  %6398 = vrsqrt.f32 %v9142_v53  ;;  %v3419_v14 = vmul.f32 0.01, %v3355_v49 }
 0x3da   : > { %v3172_v20 = vsel %vm3171_vm10, %v6395_v17, %v3168_v34  ;;  %v3175_v46 = vmul.f32 %v6397_v30, %v3174_v36  ;;  %vm3179_vm12 = vweird.f32 %v9129_v38  ;;  %vm3387_vm13 = vcmp.ge.f32.partialorder %v3355_v49, 0.0 }
 0x3db   : > { %v3283_v7 = vmul.f32 %v3172_v20, %v3075_v58  ;;  %v3284_v50 = vmul.f32 %v3172_v20, %v3076_v1  ;;  %v3041_v62 = vsub.f32 %v3009_v21, %v3025_v47  ;;  %vm3388_vm14 = vcmp.ge.f32.partialorder %v3356_v37, 0.0  ;;  %vm3181_vm15 = vmor %vm3179_vm12, %vm3180_vm11 }
 0x3dc   : > { %v3176_v8 = vmul.f32 0.5, %v3175_v46  ;;  %v3420_v26 = vmul.f32 0.01, %v3356_v37  ;;  %v3451_v35 = vsel %vm3387_vm13, %v3355_v49, %v3419_v14  ;;  %vm3189_vm3 = vweird.f32 %v9142_v53 }
 0x3dd   : > { %v3057_v28 = vmax.f32 %v3041_v62, 0.0  ;;  %v3320_v13 = vmul.f32 %v9042_v61, %v3283_v7  ;;  %v3321_v17 = vmul.f32 %v9055_v15, %v3284_v50 }
 0x3de   : > { %v2886_v10 = vpop.xlane.xlu1 %2885  ;;  %v3177_v52 = vsub.f32 1.5, %v3176_v8  ;;  %v3452_v40 = vsel %vm3388_vm14, %v3356_v37, %v3420_v26 }
 0x3df   : > { %v9164_v48 = vadd.f32 1e-05, %v3057_v28  ;;  %v9166_v60 = vmul.f32 0.00390625, %v2886_v10  ;;  %v3357_v51 = vadd.f32 %v9060_v0, %v3320_v13  ;;  %v6399_v22 = vpop.eup %6398  ;;  %v3358_v57 = vadd.f32 %v9062_v3, %v3321_v17 }
 0x3e0   : > { %v2982_v29 = vpop.xlane.xlu0 %2981  ;;  %v3184_v27 = vmul.f32 %v6399_v22, %v9142_v53  ;;  %v3178_v42 = vmul.f32 %v6397_v30, %v3177_v52  ;;  %vm3190_vm2 = vweird.f32 %v6399_v22 }
 0x3e1   : > { %6400 = vrsqrt.f32 %v9164_v48  ;;  %v3010_v6 = vmul.f32 0.00390625, %v2982_v29  ;;  %v3026_v34 = vmul.f32 %v9166_v60, %v9166_v60  ;;  %vm3389_vm0 = vcmp.ge.f32.partialorder %v3357_v51, 0.0  ;;  %vm3191_vm4 = vmor %vm3189_vm3, %vm3190_vm2 }
 0x3e2   : > { %v3185_v63 = vmul.f32 %v6399_v22, %v3184_v27  ;;  %v3421_v39 = vmul.f32 0.01, %v3357_v51  ;;  %v3182_v4 = vsel %vm3181_vm15, %v6397_v30, %v3178_v42  ;;  %vm3390_vm1 = vcmp.ge.f32.partialorder %v3358_v57, 0.0 }
 0x3e3   : > { %v3422_v38 = vmul.f32 0.01, %v3358_v57  ;;  %v3285_v58 = vmul.f32 %v3182_v4, %v3077_v33  ;;  %v3042_v47 = vsub.f32 %v3010_v6, %v3026_v34  ;;  %v3286_v21 = vmul.f32 %v3182_v4, %v3078_v5 }
 0x3e4   : > { %v3186_v1 = vmul.f32 0.5, %v3185_v63  ;;  %v3453_v36 = vsel %vm3389_vm0, %v3357_v51, %v3421_v39  ;;  %v3079_v30 = vsub.f32 %v8799_v24, %v9123_v32  ;;  %v3080_v5 = vsub.f32 %v8802_v16, %v9123_v32 }
 0x3e5   : > { %v3454_v7 = vsel %vm3390_vm1, %v3358_v57, %v3422_v38  ;;  %v3058_v46 = vmax.f32 %v3042_v47, 0.0  ;;  %v3479_v13 = vpack.c.bf16 %v3453_v36, %v3451_v35  ;;  %v3322_v37 = vmul.f32 %v9042_v61, %v3285_v58 }
 0x3e6   : > { %v2889_v20 = vpop.xlane.xlu1 %2888  ;;  %v3187_v62 = vsub.f32 1.5, %v3186_v1  ;;  %v3480_v17 = vpack.c.bf16 %v3454_v7, %v3452_v40  ;;  %v3323_v53 = vmul.f32 %v9055_v15, %v3286_v21  ;;  %v3081_v39 = vsub.f32 %v8581_v23, %v9139_v9 }
 0x3e7   : > { %v6401_v50 = vpop.eup %6400  ;;  %v9176_v28 = vmul.f32 0.00390625, %v2889_v20  ;;  %v9182_v10 = vadd.f32 1e-05, %v3058_v46  ;;  %3674 = vmatmul.bf16.gmra.mxu0 %v3479_v13  ;;  %3772 = vmatmul.bf16.gmra.mxu2 %v3479_v13  ;;  %v3359_v32 = vadd.f32 %v9060_v0, %v3322_v37  ;;  %v3082_v4 = vsub.f32 %v8826_v25, %v9139_v9 }
 0x3e8   : > { %v3194_v49 = vmul.f32 %v6401_v50, %v9164_v48  ;;  %v2985_v33 = vpop.xlane.xlu0 %2984  ;;  %v3188_v8 = vmul.f32 %v6399_v22, %v3187_v62  ;;  %3723 = vmatmul.bf16.gmra.mxu1 %v3480_v17  ;;  %3821 = vmatmul.bf16.gmra.mxu3 %v3480_v17  ;;  %vm3200_vm5 = vweird.f32 %v6401_v50  ;;  %v3360_v42 = vadd.f32 %v9062_v3, %v3323_v53 }
 0x3e9   : > { %v3011_v24 = vmul.f32 0.00390625, %v2985_v33  ;;  %v3027_v52 = vmul.f32 %v9176_v28, %v9176_v28  ;;  %6402 = vrsqrt.f32 %v9182_v10  ;;  %vm3199_vm6 = vweird.f32 %v9164_v48 }
 0x3ea   : > { %v3195_v51 = vmul.f32 %v6401_v50, %v3194_v49  ;;  %v3192_v29 = vsel %vm3191_vm4, %v6399_v22, %v3188_v8  ;;  %vm3201_vm7 = vmor %vm3199_vm6, %vm3200_vm5  ;;  %vm3391_vm8 = vcmp.ge.f32.partialorder %v3359_v32, 0.0  ;;  %v3423_v25 = vmul.f32 0.01, %v3359_v32 }
 0x3eb   : > { %v3287_v14 = vmul.f32 %v3192_v29, %v3079_v30  ;;  %v3288_v57 = vmul.f32 %v3192_v29, %v3080_v5  ;;  %v3043_v16 = vsub.f32 %v3011_v24, %v3027_v52  ;;  %v3424_v40 = vmul.f32 0.01, %v3360_v42 }
 0x3ec   : > { %v3196_v27 = vmul.f32 0.5, %v3195_v51  ;;  %vm3392_vm9 = vcmp.ge.f32.partialorder %v3360_v42, 0.0  ;;  %v3455_v17 = vsel %vm3391_vm8, %v3359_v32, %v3423_v25  ;;  %vm3209_vm13 = vweird.f32 %v9182_v10 }
 0x3ed   : > { %v3059_v26 = vmax.f32 %v3043_v16, 0.0  ;;  %v3324_v22 = vmul.f32 %v9042_v61, %v3287_v14  ;;  %v3325_v34 = vmul.f32 %v9055_v15, %v3288_v57  ;;  %v3456_v5 = vsel %vm3392_vm9, %v3360_v42, %v3424_v40 }
 0x3ee   : > { %v3197_v6 = vsub.f32 1.5, %v3196_v27  ;;  %v2892_v63 = vpop.xlane.xlu2 %2891 }
 0x3ef   : > { %v9201_v35 = vmul.f32 0.00390625, %v2892_v63  ;;  %v9203_v58 = vadd.f32 1e-05, %v3059_v26  ;;  %v3361_v47 = vadd.f32 %v9060_v0, %v3324_v22  ;;  %v3362_v21 = vadd.f32 %v9062_v3, %v3325_v34  ;;  %v6403_v20 = vpop.eup %6402 }
 0x3f0   : > { %v3198_v38 = vmul.f32 %v6401_v50, %v3197_v6  ;;  %v2988_v1 = vpop.xlane.xlu1 %2987  ;;  %v3204_v48 = vmul.f32 %v6403_v20, %v9182_v10  ;;  %vm3210_vm12 = vweird.f32 %v6403_v20  ;;  %v3083_v6 = vsub.f32 %v8848_v59, %v9166_v60 }
 0x3f1   : > { %v3012_v36 = vmul.f32 0.00390625, %v2988_v1  ;;  %v3028_v23 = vmul.f32 %v9201_v35, %v9201_v35  ;;  %6404 = vrsqrt.f32 %v9203_v58  ;;  %vm3393_vm10 = vcmp.ge.f32.partialorder %v3361_v47, 0.0  ;;  %vm3211_vm14 = vmor %vm3209_vm13, %vm3210_vm12 }
 0x3f2   : > { %v3202_v9 = vsel %vm3201_vm7, %v6401_v50, %v3198_v38  ;;  %v3205_v13 = vmul.f32 %v6403_v20, %v3204_v48  ;;  %v3425_v30 = vmul.f32 0.01, %v3361_v47  ;;  %vm3394_vm11 = vcmp.ge.f32.partialorder %v3362_v21, 0.0 }
 0x3f3   : > { %v3289_v7 = vmul.f32 %v3202_v9, %v3081_v39  ;;  %v3290_v62 = vmul.f32 %v3202_v9, %v3082_v4  ;;  %v3044_v46 = vsub.f32 %v3012_v36, %v3028_v23  ;;  %v3426_v33 = vmul.f32 0.01, %v3362_v21 }
 0x3f4   : > { %v3206_v8 = vmul.f32 0.5, %v3205_v13  ;;  %v3457_v37 = vsel %vm3393_vm10, %v3361_v47, %v3425_v30  ;;  %v3084_v34 = vsub.f32 %v8851_v41, %v9166_v60  ;;  %v3085_v38 = vsub.f32 %v8598_v45, %v9176_v28 }
 0x3f5   : > { %v3060_v49 = vmax.f32 %v3044_v46, 0.0  ;;  %v3326_v51 = vmul.f32 %v9042_v61, %v3289_v7  ;;  %v3481_v52 = vpack.c.bf16 %v3457_v37, %v3455_v17  ;;  %v3458_v29 = vsel %vm3394_vm11, %v3362_v21, %v3426_v33 }
 0x3f6   : > { %v2895_v50 = vpop.xlane.xlu2 %2894  ;;  %v3207_v57 = vsub.f32 1.5, %v3206_v8  ;;  %v3482_v27 = vpack.c.bf16 %v3458_v29, %v3456_v5  ;;  %v3327_v32 = vmul.f32 %v9055_v15, %v3290_v62  ;;  %v3086_v41 = vsub.f32 %v8875_v12, %v9176_v28 }
 0x3f7   : > { %v9213_v24 = vadd.f32 1e-05, %v3060_v49  ;;  %v9215_v53 = vmul.f32 0.00390625, %v2895_v50  ;;  %v6405_v14 = vpop.eup %6404  ;;  %3679 = vmatmul.bf16.gmra.mxu0 %v3481_v52  ;;  %v3363_v22 = vadd.f32 %v9060_v0, %v3326_v51  ;;  %3777 = vmatmul.bf16.gmra.mxu2 %v3481_v52  ;;  %vm3219_vm15 = vweird.f32 %v9203_v58 }
 0x3f8   : > { %v2991_v16 = vpop.xlane.xlu1 %2990  ;;  %v3214_v42 = vmul.f32 %v6405_v14, %v9203_v58  ;;  %v3208_v26 = vmul.f32 %v6403_v20, %v3207_v57  ;;  %3728 = vmatmul.bf16.gmra.mxu1 %v3482_v27  ;;  %3826 = vmatmul.bf16.gmra.mxu3 %v3482_v27  ;;  %v3364_v10 = vadd.f32 %v9062_v3, %v3327_v32  ;;  %vm3220_vm0 = vweird.f32 %v6405_v14 }
 0x3f9   : > { %6406 = vrsqrt.f32 %v9213_v24  ;;  %v3013_v63 = vmul.f32 0.00390625, %v2991_v16  ;;  %v3029_v59 = vmul.f32 %v9215_v53, %v9215_v53  ;;  %v3427_v23 = vmul.f32 0.01, %v3363_v22  ;;  %vm3221_vm4 = vmor %vm3219_vm15, %vm3220_vm0 }
 0x3fa   : > { %v3215_v39 = vmul.f32 %v6405_v14, %v3214_v42  ;;  %v3212_v4 = vsel %vm3211_vm14, %v6403_v20, %v3208_v26  ;;  %vm3395_vm1 = vcmp.ge.f32.partialorder %v3363_v22, 0.0  ;;  %v3428_v46 = vmul.f32 0.01, %v3364_v10 }
 0x3fb   : > { %v3291_v1 = vmul.f32 %v3212_v4, %v3083_v6  ;;  %v3292_v47 = vmul.f32 %v3212_v4, %v3084_v34  ;;  %v3045_v36 = vsub.f32 %v3013_v63, %v3029_v59  ;;  %vm3229_vm2 = vweird.f32 %v9213_v24 }
 0x3fc   : > { %v3216_v21 = vmul.f32 0.5, %v3215_v39  ;;  %vm3396_vm3 = vcmp.ge.f32.partialorder %v3364_v10, 0.0  ;;  %v3459_v8 = vsel %vm3395_vm1, %v3363_v22, %v3427_v23 }
 0x3fd   : > { %v3061_v20 = vmax.f32 %v3045_v36, 0.0  ;;  %v3328_v45 = vmul.f32 %v9042_v61, %v3291_v1  ;;  %v3329_v62 = vmul.f32 %v9055_v15, %v3292_v47  ;;  %v3460_v52 = vsel %vm3396_vm3, %v3364_v10, %v3428_v46 }
 0x3fe   : > { %v2898_v60 = vpop.xlane.xlu0 %2897  ;;  %v3217_v9 = vsub.f32 1.5, %v3216_v21  ;;  %v3088_v10 = vsub.f32 %v8900_v55, %v9201_v35 }
 0x3ff   : > { %v6407_v25 = vpop.eup %6406  ;;  %v9234_v48 = vmul.f32 0.00390625, %v2898_v60  ;;  %v9240_v28 = vadd.f32 1e-05, %v3061_v20  ;;  %v3365_v17 = vadd.f32 %v9060_v0, %v3328_v45  ;;  %v3366_v37 = vadd.f32 %v9062_v3, %v3329_v62 }
 0x400   : > { %v3224_v40 = vmul.f32 %v6407_v25, %v9213_v24  ;;  %v2994_v7 = vpop.xlane.xlu2 %2993  ;;  %v3218_v12 = vmul.f32 %v6405_v14, %v3217_v9  ;;  %vm3230_vm7 = vweird.f32 %v6407_v25  ;;  %v3089_v20 = vsub.f32 %v8613_v43, %v9215_v53 }
 0x401   : > { %v3030_v30 = vmul.f32 %v9234_v48, %v9234_v48  ;;  %v3014_v49 = vmul.f32 0.00390625, %v2994_v7  ;;  %6408 = vrsqrt.f32 %v9240_v28  ;;  %vm3397_vm5 = vcmp.ge.f32.partialorder %v3365_v17, 0.0  ;;  %vm3231_vm8 = vmor %vm3229_vm2, %vm3230_vm7 }
 0x402   : > { %v3225_v13 = vmul.f32 %v6407_v25, %v3224_v40  ;;  %v3222_v33 = vsel %vm3221_vm4, %v6405_v14, %v3218_v12  ;;  %v3429_v58 = vmul.f32 0.01, %v3365_v17  ;;  %vm3398_vm6 = vcmp.ge.f32.partialorder %v3366_v37, 0.0 }
 0x403   : > { %v3293_v5 = vmul.f32 %v3222_v33, %v3085_v38  ;;  %v3046_v51 = vsub.f32 %v3014_v49, %v3030_v30  ;;  %v3430_v29 = vmul.f32 0.01, %v3366_v37  ;;  %v3294_v57 = vmul.f32 %v3222_v33, %v3086_v41 }
 0x404   : > { %v3226_v50 = vmul.f32 0.5, %v3225_v13  ;;  %v3461_v6 = vsel %vm3397_vm5, %v3365_v17, %v3429_v58  ;;  %v3087_v38 = vsub.f32 %v8897_v11, %v9201_v35  ;;  %v3090_v7 = vsub.f32 %v8924_v44, %v9215_v53 }
 0x405   : > { %v3062_v16 = vmax.f32 %v3046_v51, 0.0  ;;  %v3462_v14 = vsel %vm3398_vm6, %v3366_v37, %v3430_v29  ;;  %v3330_v26 = vmul.f32 %v9042_v61, %v3293_v5  ;;  %v3483_v34 = vpack.c.bf16 %v3461_v6, %v3459_v8 }
 0x406   : > { %v3227_v27 = vsub.f32 1.5, %v3226_v50  ;;  %v2901_v32 = vpop.xlane.xlu0 %2900  ;;  %v3484_v39 = vpack.c.bf16 %v3462_v14, %v3460_v52  ;;  %v3331_v11 = vmul.f32 %v9055_v15, %v3294_v57  ;;  %vm3239_vm10 = vweird.f32 %v9240_v28 }
 0x407   : > { %v9250_v42 = vmul.f32 0.00390625, %v2901_v32  ;;  %v9253_v22 = vadd.f32 1e-05, %v3062_v16  ;;  %v6409_v4 = vpop.eup %6408  ;;  %3684 = vmatmul.bf16.gmra.mxu0 %v3483_v34  ;;  %3782 = vmatmul.bf16.gmra.mxu2 %v3483_v34  ;;  %v3367_v24 = vadd.f32 %v9060_v0, %v3330_v26 }
 0x408   : > { %v3228_v63 = vmul.f32 %v6407_v25, %v3227_v27  ;;  %v2997_v59 = vpop.xlane.xlu2 %2996  ;;  %v3234_v36 = vmul.f32 %v6409_v4, %v9240_v28  ;;  %3733 = vmatmul.bf16.gmra.mxu1 %v3484_v39  ;;  %3831 = vmatmul.bf16.gmra.mxu3 %v3484_v39  ;;  %v3368_v40 = vadd.f32 %v9062_v3, %v3331_v11  ;;  %vm3240_vm9 = vweird.f32 %v6409_v4 }
 0x409   : > { %v3015_v1 = vmul.f32 0.00390625, %v2997_v59  ;;  %v3031_v47 = vmul.f32 %v9250_v42, %v9250_v42  ;;  %6410 = vrsqrt.f32 %v9253_v22  ;;  %v3431_v17 = vmul.f32 0.01, %v3367_v24  ;;  %vm3241_vm13 = vmor %vm3239_vm10, %vm3240_vm9 }
 0x40a   : > { %v3232_v21 = vsel %vm3231_vm8, %v6407_v25, %v3228_v63  ;;  %v3235_v35 = vmul.f32 %v6409_v4, %v3234_v36  ;;  %vm3399_vm11 = vcmp.ge.f32.partialorder %v3367_v24, 0.0  ;;  %vm3400_vm12 = vcmp.ge.f32.partialorder %v3368_v40, 0.0 }
 0x40b   : > { %v3295_v41 = vmul.f32 %v3232_v21, %v3087_v38  ;;  %v3296_v60 = vmul.f32 %v3232_v21, %v3088_v10  ;;  %v3047_v55 = vsub.f32 %v3015_v1, %v3031_v47  ;;  %v3432_v37 = vmul.f32 0.01, %v3368_v40 }
 0x40c   : > { %v3236_v45 = vmul.f32 0.5, %v3235_v35  ;;  %v3463_v28 = vsel %vm3399_vm11, %v3367_v24, %v3431_v17  ;;  %vm3249_vm1 = vweird.f32 %v9253_v22  ;;  %v3092_v21 = vsub.f32 %v8937_v54, %v9234_v48 }
 0x40d   : > { %v3063_v23 = vmax.f32 %v3047_v55, 0.0  ;;  %v3332_v9 = vmul.f32 %v9042_v61, %v3295_v41  ;;  %v3333_v25 = vmul.f32 %v9055_v15, %v3296_v60  ;;  %v3464_v6 = vsel %vm3400_vm12, %v3368_v40, %v3432_v37 }
 0x40e   : > { %v2904_v46 = vpop.xlane.xlu1 %2903  ;;  %v3237_v30 = vsub.f32 1.5, %v3236_v45  ;;  %v3093_v45 = vsub.f32 %v8628_v19, %v9250_v42 }
 0x40f   : > { %v9275_v62 = vadd.f32 1e-05, %v3063_v23  ;;  %v3369_v12 = vadd.f32 %v9060_v0, %v3332_v9  ;;  %v6411_v13 = vpop.eup %6410  ;;  %v9278_v49 = vmul.f32 0.00390625, %v2904_v46  ;;  %v3370_v33 = vadd.f32 %v9062_v3, %v3333_v25 }
 0x410   : > { %v3244_v43 = vmul.f32 %v6411_v13, %v9253_v22  ;;  %v3000_v44 = vpop.xlane.xlu0 %2999  ;;  %v3238_v53 = vmul.f32 %v6409_v4, %v3237_v30  ;;  %vm3250_vm0 = vweird.f32 %v6411_v13 }
 0x411   : > { %6412 = vrsqrt.f32 %v9275_v62  ;;  %v3032_v8 = vmul.f32 %v9278_v49, %v9278_v49  ;;  %v3016_v50 = vmul.f32 0.00390625, %v3000_v44  ;;  %vm3401_vm14 = vcmp.ge.f32.partialorder %v3369_v12, 0.0  ;;  %vm3251_vm2 = vmor %vm3249_vm1, %vm3250_vm0 }
 0x412   : > { %v3245_v5 = vmul.f32 %v6411_v13, %v3244_v43  ;;  %v3433_v51 = vmul.f32 0.01, %v3369_v12  ;;  %v3242_v52 = vsel %vm3241_vm13, %v6409_v4, %v3238_v53  ;;  %vm3402_vm15 = vcmp.ge.f32.partialorder %v3370_v33, 0.0 }
 0x413   : > { %v3434_v58 = vmul.f32 0.01, %v3370_v33  ;;  %v3297_v29 = vmul.f32 %v3242_v52, %v3089_v20  ;;  %v3048_v27 = vsub.f32 %v3016_v50, %v3032_v8  ;;  %v3298_v16 = vmul.f32 %v3242_v52, %v3090_v7 }
 0x414   : > { %v3246_v57 = vmul.f32 0.5, %v3245_v5  ;;  %v3465_v32 = vsel %vm3401_vm14, %v3369_v12, %v3433_v51  ;;  %v3091_v4 = vsub.f32 %v8934_v2, %v9234_v48  ;;  %vm3259_vm4 = vweird.f32 %v9275_v62 }
 0x415   : > { %v3466_v14 = vsel %vm3402_vm15, %v3370_v33, %v3434_v58  ;;  %v3064_v34 = vmax.f32 %v3048_v27, 0.0  ;;  %v3485_v39 = vpack.c.bf16 %v3465_v32, %v3463_v28  ;;  %v3334_v47 = vmul.f32 %v9042_v61, %v3297_v29 }
 0x416   : > { %v3247_v63 = vsub.f32 1.5, %v3246_v57  ;;  %v3486_v59 = vpack.c.bf16 %v3466_v14, %v3464_v6  ;;  %v3335_v11 = vmul.f32 %v9055_v15, %v3298_v16  ;;  %v3095_v28 = vsub.f32 %v8959_v18, %v9278_v49 }
 0x417   : > { %v6413_v26 = vpop.eup %6412  ;;  %v3112_v1 = vadd.f32 1e-05, %v3064_v34  ;;  %3689 = vmatmul.bf16.gmra.mxu0 %v3485_v39  ;;  %3787 = vmatmul.bf16.gmra.mxu2 %v3485_v39  ;;  %v3371_v55 = vadd.f32 %v9060_v0, %v3334_v47  ;;  %v3096_v58 = vsub.f32 %v8961_v56, %v9278_v49 }
 0x418   : > { %v3254_v38 = vmul.f32 %v6413_v26, %v9275_v62  ;;  %v3248_v10 = vmul.f32 %v6411_v13, %v3247_v63  ;;  %3738 = vmatmul.bf16.gmra.mxu1 %v3486_v59  ;;  %3836 = vmatmul.bf16.gmra.mxu3 %v3486_v59  ;;  %vm3260_vm3 = vweird.f32 %v6413_v26  ;;  %v3372_v24 = vadd.f32 %v9062_v3, %v3335_v11 }
 0x419   : > { %6414 = vrsqrt.f32 %v3112_v1  ;;  %vm3261_vm5 = vmor %vm3259_vm4, %vm3260_vm3  ;;  %vm3403_vm6 = vcmp.ge.f32.partialorder %v3371_v55, 0.0  ;;  %v3435_v40 = vmul.f32 0.01, %v3371_v55  ;;  %vm3269_vm11 = vweird.f32 %v3112_v1 }
 0x41a   : > { %v3255_v36 = vmul.f32 %v6413_v26, %v3254_v38  ;;  %v3252_v41 = vsel %vm3251_vm2, %v6411_v13, %v3248_v10  ;;  %v3436_v12 = vmul.f32 0.01, %v3372_v24  ;;  %v3094_v13 = vsub.f32 %v8948_v31, %v9250_v42 }
 0x41b   : > { %v3299_v2 = vmul.f32 %v3252_v41, %v3091_v4  ;;  %v3300_v60 = vmul.f32 %v3252_v41, %v3092_v21  ;;  %vm3404_vm8 = vcmp.ge.f32.partialorder %v3372_v24, 0.0  ;;  %v3467_v44 = vsel %vm3403_vm6, %v3371_v55, %v3435_v40 }
 0x41c   : > { %v3256_v22 = vmul.f32 0.5, %v3255_v36  ;;  %v3468_v37 = vsel %vm3404_vm8, %v3372_v24, %v3436_v12 }
 0x41d   : > { %v3336_v54 = vmul.f32 %v9042_v61, %v3299_v2  ;;  %v3337_v48 = vmul.f32 %v9055_v15, %v3300_v60 }
 0x41e   : > { %v3257_v35 = vsub.f32 1.5, %v3256_v22 }
 0x41f   : > { %v3373_v9 = vadd.f32 %v9060_v0, %v3336_v54  ;;  %v3374_v25 = vadd.f32 %v9062_v3, %v3337_v48  ;;  %v6415_v20 = vpop.eup %6414 }
 0x420   : > { %v3258_v23 = vmul.f32 %v6413_v26, %v3257_v35  ;;  %v3264_v46 = vmul.f32 %v6415_v20, %v3112_v1  ;;  %vm3270_vm10 = vweird.f32 %v6415_v20 }
 0x421   : > { %vm3405_vm7 = vcmp.ge.f32.partialorder %v3373_v9, 0.0  ;;  %v3437_v30 = vmul.f32 0.01, %v3373_v9  ;;  %vm3406_vm9 = vcmp.ge.f32.partialorder %v3374_v25, 0.0  ;;  %v3438_v17 = vmul.f32 0.01, %v3374_v25  ;;  %vm3271_vm12 = vmor %vm3269_vm11, %vm3270_vm10 }
 0x422   : > { %v3262_v7 = vsel %vm3261_vm5, %v6413_v26, %v3258_v23  ;;  %v3265_v62 = vmul.f32 %v6415_v20, %v3264_v46 }
 0x423   : > { %v3301_v33 = vmul.f32 %v3262_v7, %v3093_v45  ;;  %v3302_v43 = vmul.f32 %v3262_v7, %v3094_v13  ;;  %v3469_v53 = vsel %vm3405_vm7, %v3373_v9, %v3437_v30  ;;  %v3470_v5 = vsel %vm3406_vm9, %v3374_v25, %v3438_v17  ;;  %v6186_v17 = vld [vmem:[#allocation14 + $0x78] sm:$0xff] }
 0x424   : > { %v3266_v19 = vmul.f32 0.5, %v3265_v62  ;;  %v3487_v8 = vpack.c.bf16 %v3469_v53, %v3467_v44  ;;  %v3488_v50 = vpack.c.bf16 %v3470_v5, %v3468_v37  ;;  %v6178_v62 = vld [vmem:[#allocation14 + $0x38] sm:$0xff]  ;;  %4669 = vmatpush.bf16.msra.mxu1 %v6186_v17 }
 0x425   : > { %v3338_v52 = vmul.f32 %v9042_v61, %v3301_v33  ;;  %v3339_v31 = vmul.f32 %v9055_v15, %v3302_v43  ;;  %4620 = vmatpush.bf16.msra.mxu0 %v6178_v62 }
 0x426   : > { %v3267_v51 = vsub.f32 1.5, %v3266_v19 }
 0x427   : > { %3694 = vmatmul.bf16.gmra.mxu0 %v3487_v8  ;;  %3792 = vmatmul.bf16.gmra.mxu2 %v3487_v8  ;;  %v3375_v16 = vadd.f32 %v9060_v0, %v3338_v52  ;;  %v3376_v32 = vadd.f32 %v9062_v3, %v3339_v31 }
 0x428   : > { %v3268_v42 = vmul.f32 %v6415_v20, %v3267_v51  ;;  %3743 = vmatmul.bf16.gmra.mxu1 %v3488_v50  ;;  %3841 = vmatmul.bf16.gmra.mxu3 %v3488_v50 }
 0x429   : > { %v3439_v18 = vmul.f32 0.01, %v3375_v16  ;;  %v3440_v56 = vmul.f32 0.01, %v3376_v32  ;;  %vm3407_vm13 = vcmp.ge.f32.partialorder %v3375_v16, 0.0  ;;  %vm3408_vm14 = vcmp.ge.f32.partialorder %v3376_v32, 0.0 }
 0x42a   : > { %v3272_v29 = vsel %vm3271_vm12, %v6415_v20, %v3268_v42 }
 0x42b   : > { %v3303_v57 = vmul.f32 %v3272_v29, %v3095_v28  ;;  %v3304_v27 = vmul.f32 %v3272_v29, %v3096_v58  ;;  %v3471_v39 = vsel %vm3407_vm13, %v3375_v16, %v3439_v18  ;;  %v3472_v4 = vsel %vm3408_vm14, %v3376_v32, %v3440_v56 }
 0x42d   : > { %v3340_v6 = vmul.f32 %v9042_v61, %v3303_v57  ;;  %v3341_v14 = vmul.f32 %v9055_v15, %v3304_v27  ;;  %v2856_v15 = vld [vmem:[#allocation11] sm:$0x3] }
 0x42e   : > { %v9323_v21 = vperm.slane %v2856_v15, 1 }
 0x42f   : > { %v3377_v26 = vadd.f32 %v9060_v0, %v3340_v6  ;;  %v3378_v63 = vadd.f32 %v9062_v3, %v3341_v14  ;;  %v9320_v0 = vperm.slane %v2856_v15, 0  ;;  %v6177_v14 = vld [vmem:[#allocation14 + $0x30] sm:$0xff] }
 0x430   : > { %4621 = vmatpush.bf16.msra.mxu0 %v6177_v14 }
 0x431   : > { %vm3409_vm15 = vcmp.ge.f32.partialorder %v3377_v26, 0.0  ;;  %v3441_v49 = vmul.f32 0.01, %v3377_v26  ;;  %vm3410_vm0 = vcmp.ge.f32.partialorder %v3378_v63, 0.0  ;;  %v3442_v34 = vmul.f32 0.01, %v3378_v63 }
 0x433   : > { %v3473_v59 = vsel %vm3409_vm15, %v3377_v26, %v3441_v49  ;;  %v3474_v38 = vsel %vm3410_vm0, %v3378_v63, %v3442_v34  ;;  %v6185_v26 = vld [vmem:[#allocation14 + $0x70] sm:$0xff] }
 0x434   : > { %v3489_v10 = vpack.c.bf16 %v3473_v59, %v3471_v39  ;;  %v3490_v61 = vpack.c.bf16 %v3474_v38, %v3472_v4  ;;  %4670 = vmatpush.bf16.msra.mxu1 %v6185_v26 }
 0x437   : > { %3699 = vmatmul.bf16.gmra.mxu0 %v3489_v10  ;;  %3797 = vmatmul.bf16.gmra.mxu2 %v3489_v10 }
 0x438   : > { %3748 = vmatmul.bf16.gmra.mxu1 %v3490_v61  ;;  %3846 = vmatmul.bf16.gmra.mxu3 %v3490_v61 }
 0x444   : > { %v3665_v3 = vpop.f32.mrf.mxu0 }
 0x445   : > { %v3714_v1 = vpop.f32.mrf.mxu1  ;;  %v3666_v47 = vadd.f32 %v3665_v3, %v9320_v0 }
 0x447   : > { %v9325_v11 = vadd.f32 %v3714_v1, %v3666_v47 }
 0x449   : > { %v3951_v48 = vmul.f32 %v9325_v11, %v9325_v11 }
 0x44a   : > { %v3763_v36 = vpop.f32.mrf.mxu2 }
 0x44b   : > { %v3764_v41 = vadd.f32 %v3763_v36, %v9323_v21  ;;  %v3812_v2 = vpop.f32.mrf.mxu3 }
 0x44c   : > { %v3667_v60 = vpop.f32.mrf.mxu0 }
 0x44d   : > { %v9328_v22 = vadd.f32 %v3812_v2, %v3764_v41  ;;  %v3716_v55 = vpop.f32.mrf.mxu1  ;;  %v3668_v35 = vadd.f32 %v3667_v60, %v9320_v0 }
 0x44f   : > { %v3887_v54 = vadd.f32 %v9328_v22, %v9325_v11  ;;  %v3952_v24 = vmul.f32 %v9328_v22, %v9328_v22  ;;  %v9337_v25 = vadd.f32 %v3716_v55, %v3668_v35 }
 0x451   : > { %3888 = vadd.xlane.f32.xlu1 %v3887_v54  ;;  %v3983_v23 = vadd.f32 %v3952_v24, %v3951_v48  ;;  %v3953_v13 = vmul.f32 %v9337_v25, %v9337_v25 }
 0x452   : > { %v3765_v9 = vpop.f32.mrf.mxu2 }
 0x453   : > { %v3766_v20 = vadd.f32 %v3765_v9, %v9323_v21  ;;  %v3814_v45 = vpop.f32.mrf.mxu3  ;;  %3984 = vadd.xlane.f32.xlu0 %v3983_v23  ;;  %v6176_v23 = vld [vmem:[#allocation14 + $0x28] sm:$0xff] }
 0x454   : > { %v3670_v7 = vpop.f32.mrf.mxu0  ;;  %v6184_v9 = vld [vmem:[#allocation14 + $0x68] sm:$0xff]  ;;  %4622 = vmatpush.bf16.msra.mxu0 %v6176_v23 }
 0x455   : > { %v9340_v40 = vadd.f32 %v3814_v45, %v3766_v20  ;;  %v3719_v46 = vpop.f32.mrf.mxu1  ;;  %v3671_v33 = vadd.f32 %v3670_v7, %v9320_v0  ;;  %4671 = vmatpush.bf16.msra.mxu1 %v6184_v9 }
 0x457   : > { %v3890_v12 = vadd.f32 %v9340_v40, %v9337_v25  ;;  %v3954_v30 = vmul.f32 %v9340_v40, %v9340_v40  ;;  %v9349_v19 = vadd.f32 %v3719_v46, %v3671_v33 }
 0x459   : > { %3891 = vadd.xlane.f32.xlu2 %v3890_v12  ;;  %v3986_v43 = vadd.f32 %v3954_v30, %v3953_v13  ;;  %v3955_v31 = vmul.f32 %v9349_v19, %v9349_v19 }
 0x45a   : > { %v3768_v44 = vpop.f32.mrf.mxu2 }
 0x45b   : > { %3987 = vadd.xlane.f32.xlu1 %v3986_v43  ;;  %v3817_v53 = vpop.f32.mrf.mxu3  ;;  %v3769_v8 = vadd.f32 %v3768_v44, %v9323_v21 }
 0x45c   : > { %v3672_v37 = vpop.f32.mrf.mxu0 }
 0x45d   : > { %v3721_v5 = vpop.f32.mrf.mxu1  ;;  %v9352_v50 = vadd.f32 %v3817_v53, %v3769_v8  ;;  %v3673_v51 = vadd.f32 %v3672_v37, %v9320_v0 }
 0x45f   : > { %v3893_v52 = vadd.f32 %v9352_v50, %v9349_v19  ;;  %v3956_v42 = vmul.f32 %v9352_v50, %v9352_v50  ;;  %v9361_v57 = vadd.f32 %v3721_v5, %v3673_v51 }
 0x461   : > { %3894 = vadd.xlane.f32.xlu2 %v3893_v52  ;;  %v3989_v28 = vadd.f32 %v3956_v42, %v3955_v31  ;;  %v3957_v56 = vmul.f32 %v9361_v57, %v9361_v57 }
 0x462   : > { %v3770_v58 = vpop.f32.mrf.mxu2 }
 0x463   : > { %v3819_v29 = vpop.f32.mrf.mxu3  ;;  %v3771_v27 = vadd.f32 %v3770_v58, %v9323_v21  ;;  %3990 = vadd.xlane.f32.xlu1 %v3989_v28 }
 0x464   : > { %v3675_v16 = vpop.f32.mrf.mxu0 }
 0x465   : > { %v3724_v32 = vpop.f32.mrf.mxu1  ;;  %v9364_v6 = vadd.f32 %v3819_v29, %v3771_v27  ;;  %v3676_v18 = vadd.f32 %v3675_v16, %v9320_v0  ;;  %v6175_v16 = vld [vmem:[#allocation14 + $0x20] sm:$0xff] }
 0x466   : > { %4623 = vmatpush.bf16.msra.mxu0 %v6175_v16 }
 0x467   : > { %v3896_v63 = vadd.f32 %v9364_v6, %v9361_v57  ;;  %v3958_v49 = vmul.f32 %v9364_v6, %v9364_v6  ;;  %v9373_v4 = vadd.f32 %v3724_v32, %v3676_v18  ;;  %v6183_v32 = vld [vmem:[#allocation14 + $0x60] sm:$0xff] }
 0x468   : > { %4672 = vmatpush.bf16.msra.mxu1 %v6183_v32 }
 0x469   : > { %3897 = vadd.xlane.f32.xlu0 %v3896_v63  ;;  %v3992_v34 = vadd.f32 %v3958_v49, %v3957_v56  ;;  %v3959_v47 = vmul.f32 %v9373_v4, %v9373_v4 }
 0x46a   : > { %v3773_v39 = vpop.f32.mrf.mxu2 }
 0x46b   : > { %v3822_v59 = vpop.f32.mrf.mxu3  ;;  %v3774_v38 = vadd.f32 %v3773_v39, %v9323_v21  ;;  %3993 = vadd.xlane.f32.xlu2 %v3992_v34 }
 0x46c   : > { %v3677_v10 = vpop.f32.mrf.mxu0 }
 0x46d   : > { %v3726_v61 = vpop.f32.mrf.mxu1  ;;  %v9376_v15 = vadd.f32 %v3822_v59, %v3774_v38  ;;  %v3678_v3 = vadd.f32 %v3677_v10, %v9320_v0 }
 0x46f   : > { %v3899_v1 = vadd.f32 %v9376_v15, %v9373_v4  ;;  %v3960_v36 = vmul.f32 %v9376_v15, %v9376_v15  ;;  %v9385_v55 = vadd.f32 %v3726_v61, %v3678_v3 }
 0x471   : > { %3900 = vadd.xlane.f32.xlu0 %v3899_v1  ;;  %v3995_v41 = vadd.f32 %v3960_v36, %v3959_v47  ;;  %v3961_v7 = vmul.f32 %v9385_v55, %v9385_v55 }
 0x472   : > { %v3775_v2 = vpop.f32.mrf.mxu2 }
 0x473   : > { %v3824_v60 = vpop.f32.mrf.mxu3  ;;  %v3776_v35 = vadd.f32 %v3775_v2, %v9323_v21  ;;  %3996 = vadd.xlane.f32.xlu2 %v3995_v41 }
 0x474   : > { %v3680_v54 = vpop.f32.mrf.mxu0 }
 0x475   : > { %v3729_v48 = vpop.f32.mrf.mxu1  ;;  %v9388_v24 = vadd.f32 %v3824_v60, %v3776_v35  ;;  %v3681_v20 = vadd.f32 %v3680_v54, %v9320_v0 }
 0x477   : > { %v3902_v45 = vadd.f32 %v9388_v24, %v9385_v55  ;;  %v3962_v46 = vmul.f32 %v9388_v24, %v9388_v24  ;;  %v9397_v62 = vadd.f32 %v3729_v48, %v3681_v20  ;;  %v6174_v20 = vld [vmem:[#allocation14 + $0x18] sm:$0xff] }
 0x478   : > { %4624 = vmatpush.bf16.msra.mxu0 %v6174_v20 }
 0x479   : > { %3903 = vadd.xlane.f32.xlu1 %v3902_v45  ;;  %v3998_v12 = vadd.f32 %v3962_v46, %v3961_v7  ;;  %v3963_v37 = vmul.f32 %v9397_v62, %v9397_v62  ;;  %v6182_v45 = vld [vmem:[#allocation14 + $0x58] sm:$0xff] }
 0x47a   : > { %v3778_v13 = vpop.f32.mrf.mxu2  ;;  %4673 = vmatpush.bf16.msra.mxu1 %v6182_v45 }
 0x47b   : > { %v3827_v30 = vpop.f32.mrf.mxu3  ;;  %v3779_v17 = vadd.f32 %v3778_v13, %v9323_v21  ;;  %3999 = vadd.xlane.f32.xlu0 %v3998_v12 }
 0x47c   : > { %v3682_v33 = vpop.f32.mrf.mxu0 }
 0x47d   : > { %v3731_v43 = vpop.f32.mrf.mxu1  ;;  %v9400_v44 = vadd.f32 %v3827_v30, %v3779_v17  ;;  %v3683_v53 = vadd.f32 %v3682_v33, %v9320_v0 }
 0x47f   : > { %v3905_v8 = vadd.f32 %v9400_v44, %v9397_v62  ;;  %v3964_v5 = vmul.f32 %v9400_v44, %v9400_v44  ;;  %v9409_v42 = vadd.f32 %v3731_v43, %v3683_v53 }
 0x481   : > { %3906 = vadd.xlane.f32.xlu1 %v3905_v8  ;;  %v4001_v51 = vadd.f32 %v3964_v5, %v3963_v37  ;;  %v3965_v18 = vmul.f32 %v9409_v42, %v9409_v42 }
 0x482   : > { %v3780_v52 = vpop.f32.mrf.mxu2 }
 0x483   : > { %v3829_v31 = vpop.f32.mrf.mxu3  ;;  %v3781_v28 = vadd.f32 %v3780_v52, %v9323_v21  ;;  %4002 = vadd.xlane.f32.xlu0 %v4001_v51 }
 0x484   : > { %v3685_v58 = vpop.f32.mrf.mxu0 }
 0x485   : > { %v3734_v29 = vpop.f32.mrf.mxu1  ;;  %v9412_v27 = vadd.f32 %v3829_v31, %v3781_v28  ;;  %v3686_v14 = vadd.f32 %v3685_v58, %v9320_v0 }
 0x487   : > { %v3908_v26 = vadd.f32 %v9412_v27, %v9409_v42  ;;  %v3966_v63 = vmul.f32 %v9412_v27, %v9412_v27  ;;  %v9421_v39 = vadd.f32 %v3734_v29, %v3686_v14 }
 0x489   : > { %3909 = vadd.xlane.f32.xlu2 %v3908_v26  ;;  %v4004_v56 = vadd.f32 %v3966_v63, %v3965_v18  ;;  %v3967_v47 = vmul.f32 %v9421_v39, %v9421_v39 }
 0x48a   : > { %v3783_v49 = vpop.f32.mrf.mxu2 }
 0x48b   : > { %v3832_v34 = vpop.f32.mrf.mxu3  ;;  %v3784_v59 = vadd.f32 %v3783_v49, %v9323_v21  ;;  %4005 = vadd.xlane.f32.xlu1 %v4004_v56  ;;  %v6173_v56 = vld [vmem:[#allocation14 + $0x10] sm:$0xff] }
 0x48c   : > { %v3687_v38 = vpop.f32.mrf.mxu0  ;;  %v6181_v49 = vld [vmem:[#allocation14 + $0x50] sm:$0xff]  ;;  %4625 = vmatpush.bf16.msra.mxu0 %v6173_v56 }
 0x48d   : > { %v3736_v10 = vpop.f32.mrf.mxu1  ;;  %v9424_v61 = vadd.f32 %v3832_v34, %v3784_v59  ;;  %v3688_v3 = vadd.f32 %v3687_v38, %v9320_v0  ;;  %4674 = vmatpush.bf16.msra.mxu1 %v6181_v49 }
 0x48f   : > { %v3911_v1 = vadd.f32 %v9424_v61, %v9421_v39  ;;  %v3968_v36 = vmul.f32 %v9424_v61, %v9424_v61  ;;  %v9433_v35 = vadd.f32 %v3736_v10, %v3688_v3 }
 0x491   : > { %3912 = vadd.xlane.f32.xlu2 %v3911_v1  ;;  %v4007_v41 = vadd.f32 %v3968_v36, %v3967_v47  ;;  %v3969_v12 = vmul.f32 %v9433_v35, %v9433_v35 }
 0x492   : > { %v3785_v2 = vpop.f32.mrf.mxu2 }
 0x493   : > { %v3834_v60 = vpop.f32.mrf.mxu3  ;;  %v3786_v54 = vadd.f32 %v3785_v2, %v9323_v21  ;;  %4008 = vadd.xlane.f32.xlu1 %v4007_v41 }
 0x494   : > { %v3690_v48 = vpop.f32.mrf.mxu0 }
 0x495   : > { %v3739_v23 = vpop.f32.mrf.mxu1  ;;  %v9436_v9 = vadd.f32 %v3834_v60, %v3786_v54  ;;  %v3691_v7 = vadd.f32 %v3690_v48, %v9320_v0 }
 0x497   : > { %v3914_v46 = vadd.f32 %v9436_v9, %v9433_v35  ;;  %v3970_v13 = vmul.f32 %v9436_v9, %v9436_v9  ;;  %v9445_v43 = vadd.f32 %v3739_v23, %v3691_v7 }
 0x499   : > { %3915 = vadd.xlane.f32.xlu0 %v3914_v46  ;;  %v4010_v30 = vadd.f32 %v3970_v13, %v3969_v12  ;;  %v3971_v31 = vmul.f32 %v9445_v43, %v9445_v43 }
 0x49a   : > { %v3788_v17 = vpop.f32.mrf.mxu2 }
 0x49b   : > { %v3837_v33 = vpop.f32.mrf.mxu3  ;;  %v3789_v53 = vadd.f32 %v3788_v17, %v9323_v21  ;;  %4011 = vadd.xlane.f32.xlu2 %v4010_v30 }
 0x49c   : > { %v3692_v8 = vpop.f32.mrf.mxu0 }
 0x49d   : > { %v3741_v37 = vpop.f32.mrf.mxu1  ;;  %v9448_v5 = vadd.f32 %v3837_v33, %v3789_v53  ;;  %v3693_v51 = vadd.f32 %v3692_v8, %v9320_v0 }
 0x49f   : > { %v3917_v52 = vadd.f32 %v9448_v5, %v9445_v43  ;;  %v3972_v28 = vmul.f32 %v9448_v5, %v9448_v5  ;;  %v9457_v32 = vadd.f32 %v3741_v37, %v3693_v51 }
 0x4a1   : > { %3918 = vadd.xlane.f32.xlu0 %v3917_v52  ;;  %v4013_v58 = vadd.f32 %v3972_v28, %v3971_v31  ;;  %v3973_v38 = vmul.f32 %v9457_v32, %v9457_v32 }
 0x4a2   : > { %v3790_v29 = vpop.f32.mrf.mxu2 }
 0x4a3   : > { %v3839_v16 = vpop.f32.mrf.mxu3  ;;  %v3791_v14 = vadd.f32 %v3790_v29, %v9323_v21  ;;  %4014 = vadd.xlane.f32.xlu2 %v4013_v58 }
 0x4a4   : > { %v3695_v26 = vpop.f32.mrf.mxu0 }
 0x4a5   : > { %v3744_v18 = vpop.f32.mrf.mxu1  ;;  %v9460_v63 = vadd.f32 %v3839_v16, %v3791_v14  ;;  %v3696_v34 = vadd.f32 %v3695_v26, %v9320_v0 }
 0x4a7   : > { %v3920_v59 = vadd.f32 %v9460_v63, %v9457_v32  ;;  %v3974_v10 = vmul.f32 %v9460_v63, %v9460_v63  ;;  %v9469_v36 = vadd.f32 %v3744_v18, %v3696_v34 }
 0x4a9   : > { %3921 = vadd.xlane.f32.xlu1 %v3920_v59  ;;  %v4016_v3 = vadd.f32 %v3974_v10, %v3973_v38  ;;  %v3975_v20 = vmul.f32 %v9469_v36, %v9469_v36 }
 0x4aa   : > { %v3793_v1 = vpop.f32.mrf.mxu2 }
 0x4ab   : > { %v3842_v47 = vpop.f32.mrf.mxu3  ;;  %v3794_v41 = vadd.f32 %v3793_v1, %v9323_v21  ;;  %4017 = vadd.xlane.f32.xlu0 %v4016_v3 }
 0x4ac   : > { %v3697_v2 = vpop.f32.mrf.mxu0 }
 0x4ad   : > { %v9472_v60 = vadd.f32 %v3842_v47, %v3794_v41  ;;  %v3746_v54 = vpop.f32.mrf.mxu1  ;;  %v3698_v48 = vadd.f32 %v3697_v2, %v9320_v0 }
 0x4af   : > { %v3923_v23 = vadd.f32 %v9472_v60, %v9469_v36  ;;  %v3976_v45 = vmul.f32 %v9472_v60, %v9472_v60  ;;  %v9481_v13 = vadd.f32 %v3746_v54, %v3698_v48 }
 0x4b1   : > { %3924 = vadd.xlane.f32.xlu1 %v3923_v23  ;;  %v4019_v7 = vadd.f32 %v3976_v45, %v3975_v20  ;;  %v3977_v37 = vmul.f32 %v9481_v13, %v9481_v13 }
 0x4b2   : > { %v3795_v46 = vpop.f32.mrf.mxu2 }
 0x4b3   : > { %v3844_v12 = vpop.f32.mrf.mxu3  ;;  %v3796_v30 = vadd.f32 %v3795_v46, %v9323_v21  ;;  %4020 = vadd.xlane.f32.xlu0 %v4019_v7 }
 0x4b4   : > { %v3700_v17 = vpop.f32.mrf.mxu0 }
 0x4b5   : > { %v9484_v33 = vadd.f32 %v3844_v12, %v3796_v30  ;;  %v3701_v53 = vadd.f32 %v3700_v17, %v9320_v0  ;;  %v3749_v52 = vpop.f32.mrf.mxu1 }
 0x4b7   : > { %v3926_v8 = vadd.f32 %v9484_v33, %v9481_v13  ;;  %v3978_v51 = vmul.f32 %v9484_v33, %v9484_v33  ;;  %v9493_v29 = vadd.f32 %v3749_v52, %v3701_v53  ;;  %v6172_v53 = vld [vmem:[#allocation14 + $0x8] sm:$0xff] }
 0x4b8   : > { %4626 = vmatpush.bf16.msra.mxu0 %v6172_v53 }
 0x4b9   : > { %3927 = vadd.xlane.f32.xlu2 %v3926_v8  ;;  %v4022_v31 = vadd.f32 %v3978_v51, %v3977_v37  ;;  %v3979_v49 = vmul.f32 %v9493_v29, %v9493_v29  ;;  %v6180_v8 = vld [vmem:[#allocation14 + $0x48] sm:$0xff] }
 0x4ba   : > { %v3798_v28 = vpop.f32.mrf.mxu2  ;;  %4675 = vmatpush.bf16.msra.mxu1 %v6180_v8 }
 0x4bb   : > { %v3847_v58 = vpop.f32.mrf.mxu3  ;;  %v3799_v16 = vadd.f32 %v3798_v28, %v9323_v21  ;;  %4023 = vadd.xlane.f32.xlu1 %v4022_v31 }
 0x4bc   : > { %v3702_v14 = vpop.f32.mrf.mxu0 }
 0x4bd   : > { %v9496_v26 = vadd.f32 %v3847_v58, %v3799_v16  ;;  %v3703_v18 = vadd.f32 %v3702_v14, %v9320_v0  ;;  %v3751_v38 = vpop.f32.mrf.mxu1 }
 0x4bf   : > { %v3929_v56 = vadd.f32 %v9496_v26, %v9493_v29  ;;  %v3980_v34 = vmul.f32 %v9496_v26, %v9496_v26  ;;  %v9505_v3 = vadd.f32 %v3751_v38, %v3703_v18 }
 0x4c1   : > { %3930 = vadd.xlane.f32.xlu2 %v3929_v56  ;;  %v4025_v59 = vadd.f32 %v3980_v34, %v3979_v49  ;;  %v3981_v45 = vmul.f32 %v9505_v3, %v9505_v3 }
 0x4c2   : > { %v3800_v10 = vpop.f32.mrf.mxu2 }
 0x4c3   : > { %v3801_v1 = vadd.f32 %v3800_v10, %v9323_v21  ;;  %4026 = vadd.xlane.f32.xlu1 %v4025_v59  ;;  %v3849_v0 = vpop.f32.mrf.mxu3 }
 0x4c4   : > { %v3889_v47 = vpop.xlane.xlu1 %3888 }
 0x4c5   : > { %v9508_v41 = vmul.f32 0.00390625, %v3889_v47  ;;  %v9510_v54 = vadd.f32 %v3849_v0, %v3801_v1 }
 0x4c6   : > { %v3985_v2 = vpop.xlane.xlu0 %3984 }
 0x4c7   : > { %v4031_v48 = vmul.f32 0.00390625, %v3985_v2  ;;  %v4047_v23 = vmul.f32 %v9508_v41, %v9508_v41  ;;  %v3932_v20 = vadd.f32 %v9510_v54, %v9505_v3  ;;  %v3982_v21 = vmul.f32 %v9510_v54, %v9510_v54 }
 0x4c8   : > { %v4096_v53 = vsub.f32 %v9328_v22, %v9508_v41 }
 0x4c9   : > { %v4063_v7 = vsub.f32 %v4031_v48, %v4047_v23  ;;  %3933 = vadd.xlane.f32.xlu0 %v3932_v20  ;;  %v4028_v46 = vadd.f32 %v3982_v21, %v3981_v45  ;;  %v3852_v48 = vld [vmem:[#allocation13] sm:$0x3]  ;;  %v6171_v21 = vld [vmem:[#allocation14] sm:$0xff] }
 0x4ca   : > { %4627 = vmatpush.bf16.msra.mxu0 %v6171_v21 }
 0x4cb   : > { %v4079_v12 = vmax.f32 %v4063_v7, 0.0  ;;  %4029 = vadd.xlane.f32.xlu2 %v4028_v46  ;;  %v6179_v7 = vld [vmem:[#allocation14 + $0x40] sm:$0xff] }
 0x4cc   : > { %v3892_v30 = vpop.xlane.xlu2 %3891  ;;  %4676 = vmatpush.bf16.msra.mxu1 %v6179_v7 }
 0x4cd   : > { %v9520_v17 = vmul.f32 0.00390625, %v3892_v30  ;;  %v4127_v37 = vadd.f32 1e-05, %v4079_v12  ;;  %v4095_v30 = vsub.f32 %v9325_v11, %v9508_v41  ;;  %v3853_v11 = vld [vmem:[%s10097_s12] sm:$0x3] }
 0x4ce   : > { %v3988_v51 = vpop.xlane.xlu1 %3987 }
 0x4cf   : > { %v4032_v52 = vmul.f32 0.00390625, %v3988_v51  ;;  %v4048_v31 = vmul.f32 %v9520_v17, %v9520_v17  ;;  %6416 = vrsqrt.f32 %v4127_v37  ;;  %vm4149_vm2 = vweird.f32 %v4127_v37 }
 0x4d1   : > { %v4064_v28 = vsub.f32 %v4032_v52, %v4048_v31  ;;  %v9536_v31 = vperm.slane %v3852_v48, 0 }
 0x4d3   : > { %v4080_v58 = vmax.f32 %v4064_v28, 0.0  ;;  %v9538_v28 = vperm.slane %v3852_v48, 1  ;;  %v4097_v48 = vsub.f32 %v9337_v25, %v9520_v17 }
 0x4d4   : > { %v3895_v18 = vpop.xlane.xlu2 %3894 }
 0x4d5   : > { %v4128_v16 = vadd.f32 1e-05, %v4080_v58  ;;  %v6417_v14 = vpop.eup %6416  ;;  %v9524_v49 = vmul.f32 0.00390625, %v3895_v18 }
 0x4d6   : > { %v4144_v56 = vmul.f32 %v6417_v14, %v4127_v37  ;;  %v3991_v34 = vpop.xlane.xlu1 %3990  ;;  %vm4150_vm1 = vweird.f32 %v6417_v14 }
 0x4d7   : > { %6418 = vrsqrt.f32 %v4128_v16  ;;  %v4033_v38 = vmul.f32 0.00390625, %v3991_v34  ;;  %v4049_v10 = vmul.f32 %v9524_v49, %v9524_v49  ;;  %vm4151_vm3 = vmor %vm4149_vm2, %vm4150_vm1  ;;  %vm4159_vm5 = vweird.f32 %v4128_v16 }
 0x4d8   : > { %v4145_v59 = vmul.f32 %v6417_v14, %v4144_v56 }
 0x4d9   : > { %v4065_v47 = vsub.f32 %v4033_v38, %v4049_v10  ;;  %v9548_v38 = vperm.slane %v3853_v11, 1 }
 0x4da   : > { %v4146_v1 = vmul.f32 0.5, %v4145_v59  ;;  %v9546_v59 = vperm.slane %v3853_v11, 0 }
 0x4db   : > { %v4081_v20 = vmax.f32 %v4065_v47, 0.0 }
 0x4dc   : > { %v4147_v2 = vsub.f32 1.5, %v4146_v1  ;;  %v3898_v45 = vpop.xlane.xlu0 %3897 }
 0x4dd   : > { %v6419_v0 = vpop.eup %6418  ;;  %v9528_v12 = vmul.f32 0.00390625, %v3898_v45  ;;  %v9534_v51 = vadd.f32 1e-05, %v4081_v20 }
 0x4de   : > { %v4154_v23 = vmul.f32 %v6419_v0, %v4128_v16  ;;  %v4148_v46 = vmul.f32 %v6417_v14, %v4147_v2  ;;  %v3994_v52 = vpop.xlane.xlu2 %3993  ;;  %vm4160_vm4 = vweird.f32 %v6419_v0 }
 0x4df   : > { %v4034_v58 = vmul.f32 0.00390625, %v3994_v52  ;;  %6420 = vrsqrt.f32 %v9534_v51  ;;  %v4050_v41 = vmul.f32 %v9528_v12, %v9528_v12  ;;  %vm4161_vm6 = vmor %vm4159_vm5, %vm4160_vm4  ;;  %vm4169_vm9 = vweird.f32 %v9534_v51 }
 0x4e0   : > { %v4155_v8 = vmul.f32 %v6419_v0, %v4154_v23  ;;  %v4152_v37 = vsel %vm4151_vm3, %v6417_v14, %v4148_v46  ;;  %v4098_v23 = vsub.f32 %v9340_v40, %v9520_v17 }
 0x4e1   : > { %v4303_v18 = vmul.f32 %v4152_v37, %v4095_v30  ;;  %v4304_v56 = vmul.f32 %v4152_v37, %v4096_v53  ;;  %v4066_v14 = vsub.f32 %v4034_v58, %v4050_v41 }
 0x4e2   : > { %v4156_v22 = vmul.f32 0.5, %v4155_v8 }
 0x4e3   : > { %v4340_v10 = vmul.f32 %v9536_v31, %v4303_v18  ;;  %v4341_v1 = vmul.f32 %v9538_v28, %v4304_v56  ;;  %v4082_v20 = vmax.f32 %v4066_v14, 0.0 }
 0x4e4   : > { %v4157_v34 = vsub.f32 1.5, %v4156_v22  ;;  %v3901_v2 = vpop.xlane.xlu0 %3900 }
 0x4e5   : > { %v9556_v45 = vmul.f32 0.00390625, %v3901_v2  ;;  %v6421_v21 = vpop.eup %6420  ;;  %v4377_v16 = vadd.f32 %v9546_v59, %v4340_v10  ;;  %v4378_v52 = vadd.f32 %v9548_v38, %v4341_v1  ;;  %v9561_v37 = vadd.f32 1e-05, %v4082_v20 }
 0x4e6   : > { %v4158_v47 = vmul.f32 %v6419_v0, %v4157_v34  ;;  %v3997_v46 = vpop.xlane.xlu2 %3996  ;;  %v4164_v8 = vmul.f32 %v6421_v21, %v9534_v51  ;;  %vm4170_vm7 = vweird.f32 %v6421_v21 }
 0x4e7   : > { %v4035_v25 = vmul.f32 0.00390625, %v3997_v46  ;;  %6422 = vrsqrt.f32 %v9561_v37  ;;  %v4441_v34 = vmul.f32 0.01, %v4377_v16  ;;  %v4442_v14 = vmul.f32 0.01, %v4378_v52  ;;  %vm4171_vm13 = vmor %vm4169_vm9, %vm4170_vm7 }
 0x4e8   : > { %v4162_v7 = vsel %vm4161_vm6, %v6419_v0, %v4158_v47  ;;  %v4165_v58 = vmul.f32 %v6421_v21, %v4164_v8  ;;  %v4051_v0 = vmul.f32 %v9556_v45, %v9556_v45  ;;  %vm4409_vm11 = vcmp.ge.f32.partialorder %v4377_v16, 0.0 }
 0x4e9   : > { %v4305_v30 = vmul.f32 %v4162_v7, %v4097_v48  ;;  %v4306_v53 = vmul.f32 %v4162_v7, %v4098_v23  ;;  %vm4410_vm12 = vcmp.ge.f32.partialorder %v4378_v52, 0.0  ;;  %vm4179_vm15 = vweird.f32 %v9561_v37 }
 0x4ea   : > { %v4166_v56 = vmul.f32 0.5, %v4165_v58  ;;  %v4067_v22 = vsub.f32 %v4035_v25, %v4051_v0  ;;  %v4473_v0 = vsel %vm4409_vm11, %v4377_v16, %v4441_v34 }
 0x4eb   : > { %v4342_v40 = vmul.f32 %v9536_v31, %v4305_v30  ;;  %v4343_v17 = vmul.f32 %v9538_v28, %v4306_v53 }
 0x4ec   : > { %v3904_v41 = vpop.xlane.xlu1 %3903  ;;  %v4167_v10 = vsub.f32 1.5, %v4166_v56  ;;  %v4083_v1 = vmax.f32 %v4067_v22, 0.0  ;;  %v4474_v56 = vsel %vm4410_vm12, %v4378_v52, %v4442_v14  ;;  %v4100_v22 = vsub.f32 %v9352_v50, %v9524_v49 }
 0x4ed   : > { %v4379_v11 = vadd.f32 %v9546_v59, %v4342_v40  ;;  %v4380_v18 = vadd.f32 %v9548_v38, %v4343_v17  ;;  %v9570_v47 = vmul.f32 0.00390625, %v3904_v41  ;;  %v6423_v46 = vpop.eup %6422  ;;  %v4099_v17 = vsub.f32 %v9349_v19, %v9524_v49 }
 0x4ee   : > { %v4000_v2 = vpop.xlane.xlu0 %3999  ;;  %v4168_v20 = vmul.f32 %v6421_v21, %v4167_v10  ;;  %v9573_v7 = vadd.f32 1e-05, %v4083_v1  ;;  %v4174_v51 = vmul.f32 %v6423_v46, %v9561_v37  ;;  %vm4180_vm14 = vweird.f32 %v6423_v46 }
 0x4ef   : > { %vm4411_vm8 = vcmp.ge.f32.partialorder %v4379_v11, 0.0  ;;  %v4443_v48 = vmul.f32 0.01, %v4379_v11  ;;  %vm4412_vm10 = vcmp.ge.f32.partialorder %v4380_v18, 0.0  ;;  %v4444_v23 = vmul.f32 0.01, %v4380_v18  ;;  %vm4181_vm0 = vmor %vm4179_vm15, %vm4180_vm14 }
 0x4f0   : > { %v4052_v30 = vmul.f32 %v9570_v47, %v9570_v47  ;;  %v4036_v53 = vmul.f32 0.00390625, %v4000_v2  ;;  %v4172_v40 = vsel %vm4171_vm13, %v6421_v21, %v4168_v20  ;;  %6424 = vrsqrt.f32 %v9573_v7 }
 0x4f1   : > { %v4475_v8 = vsel %vm4411_vm8, %v4379_v11, %v4443_v48  ;;  %v4476_v25 = vsel %vm4412_vm10, %v4380_v18, %v4444_v23  ;;  %v4175_v41 = vmul.f32 %v6423_v46, %v4174_v51  ;;  %v4307_v2 = vmul.f32 %v4172_v40, %v4099_v17 }
 0x4f2   : > { %v4068_v58 = vsub.f32 %v4036_v53, %v4052_v30  ;;  %v4505_v10 = vpack.c.bf16 %v4475_v8, %v4473_v0  ;;  %v4506_v1 = vpack.c.bf16 %v4476_v25, %v4474_v56  ;;  %v4308_v21 = vmul.f32 %v4172_v40, %v4100_v22 }
 0x4f3   : > { %v4176_v48 = vmul.f32 0.5, %v4175_v41  ;;  %v4344_v34 = vmul.f32 %v9536_v31, %v4307_v2  ;;  %v4101_v8 = vsub.f32 %v9361_v57, %v9528_v12  ;;  %v4102_v25 = vsub.f32 %v9364_v6, %v9528_v12 }
 0x4f4   : > { %v4084_v11 = vmax.f32 %v4068_v58, 0.0  ;;  %v3907_v18 = vpop.xlane.xlu1 %3906  ;;  %4628 = vmatmul.bf16.vlgmr.msra.gmra.mxu0 %v4505_v10  ;;  %4677 = vmatmul.bf16.vlgmr.msra.gmra.mxu1 %v4506_v1  ;;  %v4345_v53 = vmul.f32 %v9538_v28, %v4308_v21  ;;  %v4103_v17 = vsub.f32 %v9373_v4, %v9556_v45  ;;  %v4104_v58 = vsub.f32 %v9376_v15, %v9556_v45 }
 0x4f5   : > { %v9584_v23 = vmul.f32 0.00390625, %v3907_v18  ;;  %v4177_v52 = vsub.f32 1.5, %v4176_v48  ;;  %v4381_v10 = vadd.f32 %v9546_v59, %v4344_v34  ;;  %v4105_v57 = vsub.f32 %v9385_v55, %v9570_v47 }
 0x4f6   : > { %v9586_v20 = vadd.f32 1e-05, %v4084_v11  ;;  %v4003_v19 = vpop.xlane.xlu0 %4002  ;;  %v6425_v16 = vpop.eup %6424  ;;  %vm4189_vm2 = vweird.f32 %v9573_v7  ;;  %v4106_v11 = vsub.f32 %v9388_v24, %v9570_v47 }
 0x4f7   : > { %v4053_v50 = vmul.f32 %v9584_v23, %v9584_v23  ;;  %v4184_v49 = vmul.f32 %v6425_v16, %v9573_v7  ;;  %v4178_v14 = vmul.f32 %v6423_v46, %v4177_v52  ;;  %v4037_v30 = vmul.f32 0.00390625, %v4003_v19 }
 0x4f8   : > { %6426 = vrsqrt.f32 %v9586_v20  ;;  %vm4190_vm1 = vweird.f32 %v6425_v16  ;;  %vm4413_vm3 = vcmp.ge.f32.partialorder %v4381_v10, 0.0  ;;  %v4445_v7 = vmul.f32 0.01, %v4381_v10 }
 0x4f9   : > { %v4185_v40 = vmul.f32 %v6425_v16, %v4184_v49  ;;  %v4182_v51 = vsel %vm4181_vm0, %v6423_v46, %v4178_v14  ;;  %v4069_v0 = vsub.f32 %v4037_v30, %v4053_v50  ;;  %v4382_v46 = vadd.f32 %v9548_v38, %v4345_v53  ;;  %vm4191_vm4 = vmor %vm4189_vm2, %vm4190_vm1 }
 0x4fa   : > { %v4309_v37 = vmul.f32 %v4182_v51, %v4101_v8  ;;  %v4310_v56 = vmul.f32 %v4182_v51, %v4102_v25  ;;  %vm4199_vm9 = vweird.f32 %v9586_v20 }
 0x4fb   : > { %v4186_v22 = vmul.f32 0.5, %v4185_v40  ;;  %v4085_v6 = vmax.f32 %v4069_v0, 0.0  ;;  %v4446_v47 = vmul.f32 0.01, %v4382_v46  ;;  %vm4414_vm8 = vcmp.ge.f32.partialorder %v4382_v46, 0.0 }
 0x4fc   : > { %v3910_v41 = vpop.xlane.xlu2 %3909  ;;  %v4346_v15 = vmul.f32 %v9536_v31, %v4309_v37  ;;  %v4347_v45 = vmul.f32 %v9538_v28, %v4310_v56 }
 0x4fd   : > { %v9606_v12 = vmul.f32 0.00390625, %v3910_v41  ;;  %v4187_v4 = vsub.f32 1.5, %v4186_v22  ;;  %v9615_v18 = vadd.f32 1e-05, %v4085_v6 }
 0x4fe   : > { %v6427_v1 = vpop.eup %6426  ;;  %v4006_v2 = vpop.xlane.xlu1 %4005  ;;  %v4383_v50 = vadd.f32 %v9546_v59, %v4346_v15  ;;  %v4384_v24 = vadd.f32 %v9548_v38, %v4347_v45  ;;  %v4478_v45 = vsel %vm4414_vm8, %v4382_v46, %v4446_v47 }
 0x4ff   : > { %v4194_v55 = vmul.f32 %v6427_v1, %v9586_v20  ;;  %v4188_v21 = vmul.f32 %v6425_v16, %v4187_v4  ;;  %v4038_v48 = vmul.f32 0.00390625, %v4006_v2  ;;  %v4054_v19 = vmul.f32 %v9606_v12, %v9606_v12 }
 0x500   : > { %6428 = vrsqrt.f32 %v9615_v18  ;;  %vm4415_vm5 = vcmp.ge.f32.partialorder %v4383_v50, 0.0  ;;  %v4447_v40 = vmul.f32 0.01, %v4383_v50  ;;  %vm4416_vm6 = vcmp.ge.f32.partialorder %v4384_v24, 0.0 }
 0x501   : > { %v4195_v52 = vmul.f32 %v6427_v1, %v4194_v55  ;;  %v4192_v49 = vsel %vm4191_vm4, %v6425_v16, %v4188_v21  ;;  %v4070_v34 = vsub.f32 %v4038_v48, %v4054_v19  ;;  %v4448_v51 = vmul.f32 0.01, %v4384_v24 }
 0x502   : > { %v4311_v14 = vmul.f32 %v4192_v49, %v4103_v17  ;;  %v4312_v30 = vmul.f32 %v4192_v49, %v4104_v58  ;;  %vm4200_vm7 = vweird.f32 %v6427_v1  ;;  %v4477_v16 = vsel %vm4413_vm3, %v4381_v10, %v4445_v7 }
 0x503   : > { %v4196_v53 = vmul.f32 0.5, %v4195_v52  ;;  %v4086_v8 = vmax.f32 %v4070_v34, 0.0  ;;  %v4479_v22 = vsel %vm4415_vm5, %v4383_v50, %v4447_v40  ;;  %v4480_v41 = vsel %vm4416_vm6, %v4384_v24, %v4448_v51  ;;  %vm4201_vm10 = vmor %vm4199_vm9, %vm4200_vm7 }
 0x504   : > { %v3913_v25 = vpop.xlane.xlu2 %3912  ;;  %v4507_v4 = vpack.c.bf16 %v4479_v22, %v4477_v16  ;;  %v4348_v2 = vmul.f32 %v9536_v31, %v4311_v14  ;;  %v4349_v55 = vmul.f32 %v9538_v28, %v4312_v30  ;;  %v4508_v10 = vpack.c.bf16 %v4480_v41, %v4478_v45 }
 0x505   : > { %v4197_v0 = vsub.f32 1.5, %v4196_v53  ;;  %v9622_v37 = vmul.f32 0.00390625, %v3913_v25  ;;  %v9624_v56 = vadd.f32 1e-05, %v4086_v8  ;;  %v4107_v34 = vsub.f32 %v9397_v62, %v9584_v23 }
 0x506   : > { %v4009_v17 = vpop.xlane.xlu1 %4008  ;;  %v6429_v58 = vpop.eup %6428  ;;  %4633 = vmatmul.bf16.gmra.mxu0 %v4507_v4  ;;  %4682 = vmatmul.bf16.gmra.mxu1 %v4508_v10  ;;  %v4385_v49 = vadd.f32 %v9546_v59, %v4348_v2  ;;  %v4386_v47 = vadd.f32 %v9548_v38, %v4349_v55  ;;  %v4108_v14 = vsub.f32 %v9400_v44, %v9584_v23  ;;  %vm4209_vm11 = vweird.f32 %v9615_v18 }
 0x507   : > { %v4198_v6 = vmul.f32 %v6427_v1, %v4197_v0  ;;  %v4204_v15 = vmul.f32 %v6429_v58, %v9615_v18  ;;  %6430 = vrsqrt.f32 %v9624_v56  ;;  %v4039_v48 = vmul.f32 0.00390625, %v4009_v17 }
 0x508   : > { %v4055_v19 = vmul.f32 %v9622_v37, %v9622_v37  ;;  %vm4210_vm12 = vweird.f32 %v6429_v58  ;;  %vm4417_vm13 = vcmp.ge.f32.partialorder %v4385_v49, 0.0  ;;  %v4449_v0 = vmul.f32 0.01, %v4385_v49 }
 0x509   : > { %v4202_v21 = vsel %vm4201_vm10, %v6427_v1, %v4198_v6  ;;  %v4205_v50 = vmul.f32 %v6429_v58, %v4204_v15  ;;  %vm4418_vm14 = vcmp.ge.f32.partialorder %v4386_v47, 0.0  ;;  %vm4211_vm15 = vmor %vm4209_vm11, %vm4210_vm12  ;;  %v4450_v41 = vmul.f32 0.01, %v4386_v47 }
 0x50a   : > { %v4313_v52 = vmul.f32 %v4202_v21, %v4105_v57  ;;  %v4314_v20 = vmul.f32 %v4202_v21, %v4106_v11  ;;  %v4071_v7 = vsub.f32 %v4039_v48, %v4055_v19  ;;  %v4481_v21 = vsel %vm4417_vm13, %v4385_v49, %v4449_v0 }
 0x50b   : > { %v4206_v46 = vmul.f32 0.5, %v4205_v50  ;;  %vm4219_vm3 = vweird.f32 %v9624_v56 }
 0x50c   : > { %v3916_v24 = vpop.xlane.xlu0 %3915  ;;  %v4350_v1 = vmul.f32 %v9536_v31, %v4313_v52  ;;  %v4087_v57 = vmax.f32 %v4071_v7, 0.0  ;;  %v4351_v25 = vmul.f32 %v9538_v28, %v4314_v20 }
 0x50d   : > { %v9642_v11 = vmul.f32 0.00390625, %v3916_v24  ;;  %v6431_v30 = vpop.eup %6430  ;;  %v4207_v53 = vsub.f32 1.5, %v4206_v46 }
 0x50e   : > { %v4012_v8 = vpop.xlane.xlu2 %4011  ;;  %v4387_v62 = vadd.f32 %v9546_v59, %v4350_v1  ;;  %v4214_v40 = vmul.f32 %v6431_v30, %v9624_v56  ;;  %v9647_v51 = vadd.f32 1e-05, %v4087_v57  ;;  %v4388_v2 = vadd.f32 %v9548_v38, %v4351_v25 }
 0x50f   : > { %v4208_v44 = vmul.f32 %v6429_v58, %v4207_v53  ;;  %v4040_v23 = vmul.f32 0.00390625, %v4012_v8  ;;  %v4056_v16 = vmul.f32 %v9642_v11, %v9642_v11  ;;  %vm4220_vm2 = vweird.f32 %v6431_v30 }
 0x510   : > { %v4215_v22 = vmul.f32 %v6431_v30, %v4214_v40  ;;  %6432 = vrsqrt.f32 %v9647_v51  ;;  %vm4419_vm0 = vcmp.ge.f32.partialorder %v4387_v62, 0.0  ;;  %v4451_v4 = vmul.f32 0.01, %v4387_v62  ;;  %vm4221_vm4 = vmor %vm4219_vm3, %vm4220_vm2 }
 0x511   : > { %v4212_v17 = vsel %vm4211_vm15, %v6429_v58, %v4208_v44  ;;  %v4072_v6 = vsub.f32 %v4040_v23, %v4056_v16  ;;  %vm4420_vm1 = vcmp.ge.f32.partialorder %v4388_v2, 0.0  ;;  %v4452_v18 = vmul.f32 0.01, %v4388_v2 }
 0x512   : > { %v4315_v15 = vmul.f32 %v4212_v17, %v4107_v34  ;;  %v4316_v45 = vmul.f32 %v4212_v17, %v4108_v14  ;;  %v4216_v55 = vmul.f32 0.5, %v4215_v22  ;;  %v4483_v48 = vsel %vm4419_vm0, %v4387_v62, %v4451_v4 }
 0x513   : > { %v4088_v10 = vmax.f32 %v4072_v6, 0.0  ;;  %v4509_v20 = vpack.c.bf16 %v4483_v48, %v4481_v21  ;;  %v4109_v58 = vsub.f32 %v9409_v42, %v9606_v12  ;;  %v4482_v34 = vsel %vm4418_vm14, %v4386_v47, %v4450_v41 }
 0x514   : > { %v3919_v19 = vpop.xlane.xlu0 %3918  ;;  %v4217_v52 = vsub.f32 1.5, %v4216_v55  ;;  %v4484_v46 = vsel %vm4420_vm1, %v4388_v2, %v4452_v18  ;;  %v4352_v57 = vmul.f32 %v9536_v31, %v4315_v15  ;;  %v4110_v53 = vsub.f32 %v9412_v27, %v9606_v12 }
 0x515   : > { %v9656_v50 = vmul.f32 0.00390625, %v3919_v19  ;;  %v9660_v7 = vadd.f32 1e-05, %v4088_v10  ;;  %v4510_v14 = vpack.c.bf16 %v4484_v46, %v4482_v34  ;;  %v4353_v42 = vmul.f32 %v9538_v28, %v4316_v45 }
 0x516   : > { %v4015_v24 = vpop.xlane.xlu2 %4014  ;;  %v6433_v49 = vpop.eup %6432  ;;  %v4218_v1 = vmul.f32 %v6431_v30, %v4217_v52  ;;  %4638 = vmatmul.bf16.gmra.mxu0 %v4509_v20  ;;  %v4111_v44 = vsub.f32 %v9421_v39, %v9622_v37  ;;  %v4389_v12 = vadd.f32 %v9546_v59, %v4352_v57  ;;  %v4112_v17 = vsub.f32 %v9424_v61, %v9622_v37 }
 0x517   : > { %v4224_v8 = vmul.f32 %v6433_v49, %v9647_v51  ;;  %6434 = vrsqrt.f32 %v9660_v7  ;;  %v4041_v62 = vmul.f32 0.00390625, %v4015_v24  ;;  %v4057_v25 = vmul.f32 %v9656_v50, %v9656_v50  ;;  %4687 = vmatmul.bf16.gmra.mxu1 %v4510_v14 }
 0x518   : > { %v4222_v47 = vsel %vm4221_vm4, %v6431_v30, %v4218_v1  ;;  %v4390_v41 = vadd.f32 %v9548_v38, %v4353_v42  ;;  %vm4229_vm5 = vweird.f32 %v9647_v51  ;;  %vm4230_vm6 = vweird.f32 %v6433_v49 }
 0x519   : > { %v4317_v56 = vmul.f32 %v4222_v47, %v4109_v58  ;;  %v4318_v40 = vmul.f32 %v4222_v47, %v4110_v53  ;;  %v4225_v0 = vmul.f32 %v6433_v49, %v4224_v8  ;;  %v4073_v27 = vsub.f32 %v4041_v62, %v4057_v25  ;;  %vm4231_vm9 = vmor %vm4229_vm5, %vm4230_vm6 }
 0x51a   : > { %vm4421_vm7 = vcmp.ge.f32.partialorder %v4389_v12, 0.0  ;;  %v4453_v48 = vmul.f32 0.01, %v4389_v12  ;;  %vm4422_vm8 = vcmp.ge.f32.partialorder %v4390_v41, 0.0  ;;  %v4454_v52 = vmul.f32 0.01, %v4390_v41 }
 0x51b   : > { %v4226_v23 = vmul.f32 0.5, %v4225_v0  ;;  %v4354_v22 = vmul.f32 %v9536_v31, %v4317_v56  ;;  %v4355_v30 = vmul.f32 %v9538_v28, %v4318_v40  ;;  %v4089_v6 = vmax.f32 %v4073_v27, 0.0 }
 0x51c   : > { %v3922_v16 = vpop.xlane.xlu1 %3921  ;;  %v4485_v1 = vsel %vm4421_vm7, %v4389_v12, %v4453_v48  ;;  %vm4239_vm13 = vweird.f32 %v9660_v7  ;;  %v4486_v40 = vsel %vm4422_vm8, %v4390_v41, %v4454_v52 }
 0x51d   : > { %v9681_v4 = vmul.f32 0.00390625, %v3922_v16  ;;  %v6435_v39 = vpop.eup %6434  ;;  %v4227_v2 = vsub.f32 1.5, %v4226_v23  ;;  %v4391_v45 = vadd.f32 %v9546_v59, %v4354_v22  ;;  %v4392_v55 = vadd.f32 %v9548_v38, %v4355_v30 }
 0x51e   : > { %v4018_v15 = vpop.xlane.xlu0 %4017  ;;  %v4234_v21 = vmul.f32 %v6435_v39, %v9660_v7  ;;  %v9686_v10 = vadd.f32 1e-05, %v4089_v6  ;;  %vm4240_vm12 = vweird.f32 %v6435_v39  ;;  %v4114_v22 = vsub.f32 %v9436_v9, %v9642_v11 }
 0x51f   : > { %v4228_v61 = vmul.f32 %v6433_v49, %v4227_v2  ;;  %v4058_v37 = vmul.f32 %v9681_v4, %v9681_v4  ;;  %v4042_v18 = vmul.f32 0.00390625, %v4018_v15  ;;  %vm4423_vm10 = vcmp.ge.f32.partialorder %v4391_v45, 0.0  ;;  %vm4241_vm14 = vmor %vm4239_vm13, %vm4240_vm12 }
 0x520   : > { %v4235_v19 = vmul.f32 %v6435_v39, %v4234_v21  ;;  %6436 = vrsqrt.f32 %v9686_v10  ;;  %v4455_v34 = vmul.f32 0.01, %v4391_v45  ;;  %vm4424_vm11 = vcmp.ge.f32.partialorder %v4392_v55, 0.0 }
 0x521   : > { %v4232_v20 = vsel %vm4231_vm9, %v6433_v49, %v4228_v61  ;;  %v4074_v58 = vsub.f32 %v4042_v18, %v4058_v37  ;;  %v4456_v14 = vmul.f32 0.01, %v4392_v55  ;;  %v4113_v49 = vsub.f32 %v9433_v35, %v9642_v11 }
 0x522   : > { %v4319_v46 = vmul.f32 %v4232_v20, %v4111_v44  ;;  %v4236_v24 = vmul.f32 0.5, %v4235_v19  ;;  %v4320_v57 = vmul.f32 %v4232_v20, %v4112_v17  ;;  %v4487_v51 = vsel %vm4423_vm10, %v4391_v45, %v4455_v34 }
 0x523   : > { %v4090_v53 = vmax.f32 %v4074_v58, 0.0  ;;  %v4511_v62 = vpack.c.bf16 %v4487_v51, %v4485_v1  ;;  %v4488_v25 = vsel %vm4424_vm11, %v4392_v55, %v4456_v14  ;;  %v4115_v15 = vsub.f32 %v9445_v43, %v9656_v50 }
 0x524   : > { %v3925_v8 = vpop.xlane.xlu1 %3924  ;;  %v4237_v42 = vsub.f32 1.5, %v4236_v24  ;;  %v4512_v12 = vpack.c.bf16 %v4488_v25, %v4486_v40  ;;  %v4356_v16 = vmul.f32 %v9536_v31, %v4319_v46  ;;  %v4357_v7 = vmul.f32 %v9538_v28, %v4320_v57 }
 0x525   : > { %v9694_v47 = vmul.f32 0.00390625, %v3925_v8  ;;  %v9699_v56 = vadd.f32 1e-05, %v4090_v53  ;;  %v4116_v61 = vsub.f32 %v9448_v5, %v9656_v50  ;;  %vm4249_vm15 = vweird.f32 %v9686_v10 }
 0x526   : > { %v4021_v0 = vpop.xlane.xlu0 %4020  ;;  %v6437_v44 = vpop.eup %6436  ;;  %v4238_v27 = vmul.f32 %v6435_v39, %v4237_v42  ;;  %4643 = vmatmul.bf16.gmra.mxu0 %v4511_v62  ;;  %v4393_v9 = vadd.f32 %v9546_v59, %v4356_v16 }
 0x527   : > { %v4059_v23 = vmul.f32 %v9694_v47, %v9694_v47  ;;  %v4244_v35 = vmul.f32 %v6437_v44, %v9686_v10  ;;  %6438 = vrsqrt.f32 %v9699_v56  ;;  %v4043_v41 = vmul.f32 0.00390625, %v4021_v0  ;;  %4692 = vmatmul.bf16.gmra.mxu1 %v4512_v12 }
 0x528   : > { %v4242_v30 = vsel %vm4241_vm14, %v6435_v39, %v4238_v27  ;;  %v4394_v39 = vadd.f32 %v9548_v38, %v4357_v7  ;;  %vm4250_vm0 = vweird.f32 %v6437_v44  ;;  %vm4425_vm1 = vcmp.ge.f32.partialorder %v4393_v9, 0.0 }
 0x529   : > { %v4321_v17 = vmul.f32 %v4242_v30, %v4113_v49  ;;  %v4322_v6 = vmul.f32 %v4242_v30, %v4114_v22  ;;  %v4245_v2 = vmul.f32 %v6437_v44, %v4244_v35  ;;  %v4075_v45 = vsub.f32 %v4043_v41, %v4059_v23  ;;  %vm4251_vm3 = vmor %vm4249_vm15, %vm4250_vm0 }
 0x52a   : > { %v4457_v24 = vmul.f32 0.01, %v4393_v9  ;;  %vm4426_vm2 = vcmp.ge.f32.partialorder %v4394_v39, 0.0  ;;  %v4458_v57 = vmul.f32 0.01, %v4394_v39  ;;  %vm4259_vm7 = vweird.f32 %v9699_v56 }
 0x52b   : > { %v4246_v11 = vmul.f32 0.5, %v4245_v2  ;;  %v4358_v21 = vmul.f32 %v9536_v31, %v4321_v17  ;;  %v4359_v48 = vmul.f32 %v9538_v28, %v4322_v6  ;;  %v4091_v37 = vmax.f32 %v4075_v45, 0.0 }
 0x52c   : > { %v3928_v55 = vpop.xlane.xlu2 %3927  ;;  %v4489_v25 = vsel %vm4425_vm1, %v4393_v9, %v4457_v24  ;;  %v4490_v35 = vsel %vm4426_vm2, %v4394_v39, %v4458_v57  ;;  %v4118_v45 = vsub.f32 %v9460_v63, %v9681_v4 }
 0x52d   : > { %v9720_v18 = vmul.f32 0.00390625, %v3928_v55  ;;  %v6439_v43 = vpop.eup %6438  ;;  %v4247_v19 = vsub.f32 1.5, %v4246_v11  ;;  %v4395_v20 = vadd.f32 %v9546_v59, %v4358_v21  ;;  %v4396_v58 = vadd.f32 %v9548_v38, %v4359_v48 }
 0x52e   : > { %v4024_v52 = vpop.xlane.xlu1 %4023  ;;  %v4254_v34 = vmul.f32 %v6439_v43, %v9699_v56  ;;  %v9725_v46 = vadd.f32 1e-05, %v4091_v37  ;;  %vm4260_vm6 = vweird.f32 %v6439_v43 }
 0x52f   : > { %v4248_v5 = vmul.f32 %v6437_v44, %v4247_v19  ;;  %v4044_v50 = vmul.f32 0.00390625, %v4024_v52  ;;  %v4060_v1 = vmul.f32 %v9720_v18, %v9720_v18  ;;  %vm4427_vm4 = vcmp.ge.f32.partialorder %v4395_v20, 0.0  ;;  %vm4261_vm8 = vmor %vm4259_vm7, %vm4260_vm6 }
 0x530   : > { %v4255_v14 = vmul.f32 %v6439_v43, %v4254_v34  ;;  %6440 = vrsqrt.f32 %v9725_v46  ;;  %v4459_v51 = vmul.f32 0.01, %v4395_v20  ;;  %vm4428_vm5 = vcmp.ge.f32.partialorder %v4396_v58, 0.0 }
 0x531   : > { %v4252_v53 = vsel %vm4251_vm3, %v6437_v44, %v4248_v5  ;;  %v4076_v8 = vsub.f32 %v4044_v50, %v4060_v1  ;;  %v4460_v49 = vmul.f32 0.01, %v4396_v58  ;;  %vm4269_vm10 = vweird.f32 %v9725_v46 }
 0x532   : > { %v4323_v42 = vmul.f32 %v4252_v53, %v4115_v15  ;;  %v4256_v62 = vmul.f32 0.5, %v4255_v14  ;;  %v4324_v40 = vmul.f32 %v4252_v53, %v4116_v61  ;;  %v4491_v10 = vsel %vm4427_vm4, %v4395_v20, %v4459_v51 }
 0x533   : > { %v4092_v0 = vmax.f32 %v4076_v8, 0.0  ;;  %v4513_v16 = vpack.c.bf16 %v4491_v10, %v4489_v25  ;;  %v4492_v22 = vsel %vm4428_vm5, %v4396_v58, %v4460_v49  ;;  %v4117_v15 = vsub.f32 %v9457_v32, %v9681_v4 }
 0x534   : > { %v3931_v27 = vpop.xlane.xlu2 %3930  ;;  %v4257_v12 = vsub.f32 1.5, %v4256_v62  ;;  %v4514_v17 = vpack.c.bf16 %v4492_v22, %v4490_v35  ;;  %v4360_v2 = vmul.f32 %v9536_v31, %v4323_v42  ;;  %v4361_v55 = vmul.f32 %v9538_v28, %v4324_v40 }
 0x535   : > { %v9733_v23 = vmul.f32 0.00390625, %v3931_v27  ;;  %v9736_v44 = vadd.f32 1e-05, %v4092_v0  ;;  %v4120_v40 = vsub.f32 %v9472_v60, %v9694_v47 }
 0x536   : > { %v4027_v7 = vpop.xlane.xlu1 %4026  ;;  %v6441_v30 = vpop.eup %6440  ;;  %v4258_v41 = vmul.f32 %v6439_v43, %v4257_v12  ;;  %4648 = vmatmul.bf16.gmra.mxu0 %v4513_v16  ;;  %v4397_v63 = vadd.f32 %v9546_v59, %v4360_v2  ;;  %v4398_v58 = vadd.f32 %v9548_v38, %v4361_v55 }
 0x537   : > { %v4045_v6 = vmul.f32 0.00390625, %v4027_v7  ;;  %v4264_v56 = vmul.f32 %v6441_v30, %v9725_v46  ;;  %6442 = vrsqrt.f32 %v9736_v44  ;;  %v4061_v11 = vmul.f32 %v9733_v23, %v9733_v23  ;;  %4697 = vmatmul.bf16.gmra.mxu1 %v4514_v17 }
 0x538   : > { %v4262_v9 = vsel %vm4261_vm8, %v6439_v43, %v4258_v41  ;;  %v4119_v43 = vsub.f32 %v9469_v36, %v9694_v47  ;;  %vm4270_vm9 = vweird.f32 %v6441_v30  ;;  %vm4429_vm11 = vcmp.ge.f32.partialorder %v4397_v63, 0.0 }
 0x539   : > { %v4325_v21 = vmul.f32 %v4262_v9, %v4117_v15  ;;  %v4326_v48 = vmul.f32 %v4262_v9, %v4118_v45  ;;  %v4265_v39 = vmul.f32 %v6441_v30, %v4264_v56  ;;  %v4077_v32 = vsub.f32 %v4045_v6, %v4061_v11  ;;  %vm4271_vm12 = vmor %vm4269_vm10, %vm4270_vm9 }
 0x53a   : > { %v4461_v51 = vmul.f32 0.01, %v4397_v63  ;;  %v4462_v62 = vmul.f32 0.01, %v4398_v58  ;;  %vm4430_vm15 = vcmp.ge.f32.partialorder %v4398_v58, 0.0  ;;  %v4121_v15 = vsub.f32 %v9481_v13, %v9720_v18 }
 0x53b   : > { %v4266_v4 = vmul.f32 0.5, %v4265_v39  ;;  %v4362_v37 = vmul.f32 %v9536_v31, %v4325_v21  ;;  %v4363_v19 = vmul.f32 %v9538_v28, %v4326_v48  ;;  %v4093_v52 = vmax.f32 %v4077_v32, 0.0 }
 0x53c   : > { %v3934_v61 = vpop.xlane.xlu0 %3933  ;;  %v4493_v16 = vsel %vm4429_vm11, %v4397_v63, %v4461_v51  ;;  %v4494_v6 = vsel %vm4430_vm15, %v4398_v58, %v4462_v62  ;;  %vm4279_vm1 = vweird.f32 %v9736_v44  ;;  %v4122_v45 = vsub.f32 %v9484_v33, %v9720_v18 }
 0x53d   : > { %v9755_v20 = vmul.f32 0.00390625, %v3934_v61  ;;  %v6443_v34 = vpop.eup %6442  ;;  %v4267_v24 = vsub.f32 1.5, %v4266_v4  ;;  %v4399_v50 = vadd.f32 %v9546_v59, %v4362_v37  ;;  %v4400_v1 = vadd.f32 %v9548_v38, %v4363_v19 }
 0x53e   : > { %v4030_v5 = vpop.xlane.xlu2 %4029  ;;  %v4274_v14 = vmul.f32 %v6443_v34, %v9736_v44  ;;  %v9762_v57 = vadd.f32 1e-05, %v4093_v52  ;;  %vm4280_vm0 = vweird.f32 %v6443_v34  ;;  %v4123_v19 = vsub.f32 %v9493_v29, %v9733_v23 }
 0x53f   : > { %v4268_v36 = vmul.f32 %v6441_v30, %v4267_v24  ;;  %v4046_v53 = vmul.f32 0.00390625, %v4030_v5  ;;  %v4062_v8 = vmul.f32 %v9755_v20, %v9755_v20  ;;  %vm4431_vm13 = vcmp.ge.f32.partialorder %v4399_v50, 0.0  ;;  %vm4281_vm2 = vmor %vm4279_vm1, %vm4280_vm0 }
 0x540   : > { %v4275_v42 = vmul.f32 %v6443_v34, %v4274_v14  ;;  %6444 = vrsqrt.f32 %v9762_v57  ;;  %v4463_v46 = vmul.f32 0.01, %v4399_v50  ;;  %vm4432_vm14 = vcmp.ge.f32.partialorder %v4400_v1, 0.0 }
 0x541   : > { %v4272_v25 = vsel %vm4271_vm12, %v6441_v30, %v4268_v36  ;;  %v4078_v49 = vsub.f32 %v4046_v53, %v4062_v8  ;;  %v4464_v27 = vmul.f32 0.01, %v4400_v1  ;;  %vm4289_vm4 = vweird.f32 %v9762_v57 }
 0x542   : > { %v4276_v0 = vmul.f32 0.5, %v4275_v42  ;;  %v4327_v10 = vmul.f32 %v4272_v25, %v4119_v43  ;;  %v4495_v22 = vsel %vm4431_vm13, %v4399_v50, %v4463_v46  ;;  %v4328_v17 = vmul.f32 %v4272_v25, %v4120_v40 }
 0x543   : > { %v4094_v12 = vmax.f32 %v4078_v49, 0.0  ;;  %v4515_v7 = vpack.c.bf16 %v4495_v22, %v4493_v16  ;;  %v4496_v41 = vsel %vm4432_vm14, %v4400_v1, %v4464_v27  ;;  %v4124_v29 = vsub.f32 %v9496_v26, %v9733_v23 }
 0x544   : > { %v4277_v35 = vsub.f32 1.5, %v4276_v0  ;;  %v4516_v47 = vpack.c.bf16 %v4496_v41, %v4494_v6  ;;  %v4364_v9 = vmul.f32 %v9536_v31, %v4327_v10  ;;  %v4365_v13 = vmul.f32 %v9538_v28, %v4328_v17 }
 0x545   : > { %v4142_v30 = vadd.f32 1e-05, %v4094_v12  ;;  %v4125_v0 = vsub.f32 %v9505_v3, %v9755_v20  ;;  %v4126_v27 = vsub.f32 %v9510_v54, %v9755_v20 }
 0x546   : > { %v6445_v2 = vpop.eup %6444  ;;  %v4278_v60 = vmul.f32 %v6443_v34, %v4277_v35  ;;  %4653 = vmatmul.bf16.gmra.mxu0 %v4515_v7  ;;  %v4401_v32 = vadd.f32 %v9546_v59, %v4364_v9  ;;  %v4402_v61 = vadd.f32 %v9548_v38, %v4365_v13 }
 0x547   : > { %v4284_v56 = vmul.f32 %v6445_v2, %v9762_v57  ;;  %6446 = vrsqrt.f32 %v4142_v30  ;;  %4702 = vmatmul.bf16.gmra.mxu1 %v4516_v47  ;;  %vm4290_vm3 = vweird.f32 %v6445_v2  ;;  %vm4299_vm11 = vweird.f32 %v4142_v30 }
 0x548   : > { %v4282_v11 = vsel %vm4281_vm2, %v6443_v34, %v4278_v60  ;;  %v4465_v58 = vmul.f32 0.01, %v4401_v32  ;;  %vm4291_vm6 = vmor %vm4289_vm4, %vm4290_vm3  ;;  %vm4433_vm7 = vcmp.ge.f32.partialorder %v4401_v32, 0.0  ;;  %v4466_v14 = vmul.f32 0.01, %v4402_v61 }
 0x549   : > { %v4329_v55 = vmul.f32 %v4282_v11, %v4121_v15  ;;  %v4330_v21 = vmul.f32 %v4282_v11, %v4122_v45  ;;  %v4285_v48 = vmul.f32 %v6445_v2, %v4284_v56  ;;  %vm4434_vm9 = vcmp.ge.f32.partialorder %v4402_v61, 0.0 }
 0x54a   : > { %v4497_v57 = vsel %vm4433_vm7, %v4401_v32, %v4465_v58  ;;  %v4498_v25 = vsel %vm4434_vm9, %v4402_v61, %v4466_v14 }
 0x54b   : > { %v4286_v39 = vmul.f32 0.5, %v4285_v48  ;;  %v4366_v44 = vmul.f32 %v9536_v31, %v4329_v55  ;;  %v4367_v33 = vmul.f32 %v9538_v28, %v4330_v21 }
 0x54d   : > { %v6447_v18 = vpop.eup %6446  ;;  %v4287_v63 = vsub.f32 1.5, %v4286_v39  ;;  %v4403_v4 = vadd.f32 %v9546_v59, %v4366_v44  ;;  %v4404_v37 = vadd.f32 %v9548_v38, %v4367_v33  ;;  %v6194_v39 = vld [vmem:[#allocation17 + $0x38] sm:$0xff] }
 0x54e   : > { %v4294_v43 = vmul.f32 %v6447_v18, %v4142_v30  ;;  %vm4300_vm10 = vweird.f32 %v6447_v18  ;;  %5250 = vmatpush.bf16.msra.mxu2 %v6194_v39 }
 0x54f   : > { %v4288_v52 = vmul.f32 %v6445_v2, %v4287_v63  ;;  %vm4435_vm5 = vcmp.ge.f32.partialorder %v4403_v4, 0.0  ;;  %v4467_v34 = vmul.f32 0.01, %v4403_v4  ;;  %vm4436_vm8 = vcmp.ge.f32.partialorder %v4404_v37, 0.0  ;;  %vm4301_vm12 = vmor %vm4299_vm11, %vm4300_vm10 }
 0x550   : > { %v4295_v24 = vmul.f32 %v6447_v18, %v4294_v43  ;;  %v4468_v5 = vmul.f32 0.01, %v4404_v37  ;;  %v6193_v43 = vld [vmem:[#allocation17 + $0x30] sm:$0xff] }
 0x551   : > { %v4292_v50 = vsel %vm4291_vm6, %v6445_v2, %v4288_v52  ;;  %v4499_v1 = vsel %vm4435_vm5, %v4403_v4, %v4467_v34 }
 0x552   : > { %v4331_v36 = vmul.f32 %v4292_v50, %v4123_v19  ;;  %v4296_v53 = vmul.f32 0.5, %v4295_v24  ;;  %v4500_v8 = vsel %vm4436_vm8, %v4404_v37, %v4468_v5  ;;  %v4517_v42 = vpack.c.bf16 %v4499_v1, %v4497_v57  ;;  %5251 = vmatpush.bf16.msra.mxu2 %v6193_v43 }
 0x553   : > { %v4332_v62 = vmul.f32 %v4292_v50, %v4124_v29  ;;  %v4518_v46 = vpack.c.bf16 %v4500_v8, %v4498_v25  ;;  %v6192_v29 = vld [vmem:[#allocation17 + $0x28] sm:$0xff] }
 0x554   : > { %v4297_v51 = vsub.f32 1.5, %v4296_v53  ;;  %v4368_v40 = vmul.f32 %v9536_v31, %v4331_v36 }
 0x555   : > { %v4369_v12 = vmul.f32 %v9538_v28, %v4332_v62 }
 0x556   : > { %v4298_v49 = vmul.f32 %v6447_v18, %v4297_v51  ;;  %4658 = vmatmul.bf16.gmra.mxu0 %v4517_v42  ;;  %v4405_v16 = vadd.f32 %v9546_v59, %v4368_v40  ;;  %5252 = vmatpush.bf16.msra.mxu2 %v6192_v29 }
 0x557   : > { %4707 = vmatmul.bf16.gmra.mxu1 %v4518_v46  ;;  %v4406_v3 = vadd.f32 %v9548_v38, %v4369_v12 }
 0x558   : > { %v4302_v26 = vsel %vm4301_vm12, %v6447_v18, %v4298_v49  ;;  %v4469_v20 = vmul.f32 0.01, %v4405_v16  ;;  %vm4437_vm14 = vcmp.ge.f32.partialorder %v4405_v16, 0.0 }
 0x559   : > { %v4333_v23 = vmul.f32 %v4302_v26, %v4125_v0  ;;  %v4334_v10 = vmul.f32 %v4302_v26, %v4126_v27  ;;  %v4470_v6 = vmul.f32 0.01, %v4406_v3  ;;  %vm4438_vm0 = vcmp.ge.f32.partialorder %v4406_v3, 0.0  ;;  %v6191_v27 = vld [vmem:[#allocation17 + $0x20] sm:$0xff] }
 0x55a   : > { %v4501_v2 = vsel %vm4437_vm14, %v4405_v16, %v4469_v20  ;;  %5253 = vmatpush.bf16.msra.mxu2 %v6191_v27  ;;  %v6190_v20 = vld [vmem:[#allocation17 + $0x18] sm:$0xff]  ;;  %v6188_v27 = vld [vmem:[#allocation17 + $0x8] sm:$0xff] }
 0x55b   : > { %v4370_v22 = vmul.f32 %v9536_v31, %v4333_v23  ;;  %v4371_v35 = vmul.f32 %v9538_v28, %v4334_v10  ;;  %v4502_v60 = vsel %vm4438_vm0, %v4406_v3, %v4470_v6 }
 0x55d   : > { %v4407_v7 = vadd.f32 %v9546_v59, %v4370_v22  ;;  %v4408_v54 = vadd.f32 %v9548_v38, %v4371_v35  ;;  %v9804_v59 = vld [vmem:[%s10099_s14] ss:$0 sm:$0xff] }
 0x55e   : > { %5254 = vmatpush.bf16.msra.mxu2 %v6190_v20 }
 0x55f   : > { %vm4439_vm13 = vcmp.ge.f32.partialorder %v4407_v7, 0.0  ;;  %v4471_v41 = vmul.f32 0.01, %v4407_v7  ;;  %v4472_v17 = vmul.f32 0.01, %v4408_v54  ;;  %vm4440_vm15 = vcmp.ge.f32.partialorder %v4408_v54, 0.0 }
 0x561   : > { %v4503_v30 = vsel %vm4439_vm13, %v4407_v7, %v4471_v41  ;;  %v4504_v15 = vsel %vm4440_vm15, %v4408_v54, %v4472_v17 }
 0x562   : > { %v4519_v31 = vpack.c.bf16 %v4503_v30, %v4501_v2  ;;  %v4520_v28 = vpack.c.bf16 %v4504_v15, %v4502_v60 }
 0x566   : > { %4663 = vmatmul.bf16.gmra.mxu0 %v4519_v31 }
 0x567   : > { %4712 = vmatmul.bf16.gmra.mxu1 %v4520_v28 }
 0x571   : > { %v4629_v38 = vpop.f32.mrf.mxu0  ;;  %v4678_v47 = vpop.f32.mrf.mxu1 }
 0x572   : > { %v4630_v45 = vadd.f32 %v9804_v59, %v4629_v38 }
 0x574   : > { %v9807_v56 = vadd.f32 %v4678_v47, %v4630_v45  ;;  %v6189_v47 = vld [vmem:[#allocation17 + $0x10] sm:$0xff] }
 0x575   : > { %5255 = vmatpush.bf16.msra.mxu2 %v6189_v47  ;;  %v6187_v47 = vld [vmem:[#allocation17] sm:$0xff] }
 0x576   : > { %4737 = vadd.xlane.f32.xlu0 %v9807_v56  ;;  %v4785_v9 = vmul.f32 %v9807_v56, %v9807_v56 }
 0x578   : > { %4801 = vadd.xlane.f32.xlu2 %v4785_v9 }
 0x579   : > { %v4631_v11 = vpop.f32.mrf.mxu0  ;;  %v4680_v21 = vpop.f32.mrf.mxu1  ;;  %5256 = vmatpush.bf16.msra.mxu2 %v6188_v27 }
 0x57a   : > { %v4632_v55 = vadd.f32 %v9804_v59, %v4631_v11 }
 0x57c   : > { %v9813_v48 = vadd.f32 %v4680_v21, %v4632_v55 }
 0x57d   : > { %5257 = vmatpush.bf16.msra.mxu2 %v6187_v47 }
 0x57e   : > { %4739 = vadd.xlane.f32.xlu1 %v9813_v48  ;;  %v4786_v13 = vmul.f32 %v9813_v48, %v9813_v48 }
 0x580   : > { %4803 = vadd.xlane.f32.xlu0 %v4786_v13 }
 0x583   : > { %v4634_v44 = vpop.f32.mrf.mxu0  ;;  %v4683_v33 = vpop.f32.mrf.mxu1 }
 0x584   : > { %v4635_v32 = vadd.f32 %v9804_v59, %v4634_v44 }
 0x586   : > { %v9819_v18 = vadd.f32 %v4683_v33, %v4635_v32 }
 0x588   : > { %4741 = vadd.xlane.f32.xlu1 %v9819_v18  ;;  %v4787_v63 = vmul.f32 %v9819_v18, %v9819_v18 }
 0x58a   : > { %4805 = vadd.xlane.f32.xlu0 %v4787_v63 }
 0x58b   : > { %v4636_v4 = vpop.f32.mrf.mxu0  ;;  %v4685_v37 = vpop.f32.mrf.mxu1 }
 0x58c   : > { %v4637_v61 = vadd.f32 %v9804_v59, %v4636_v4 }
 0x58e   : > { %v9825_v19 = vadd.f32 %v4685_v37, %v4637_v61 }
 0x590   : > { %4743 = vadd.xlane.f32.xlu2 %v9825_v19  ;;  %v4788_v52 = vmul.f32 %v9825_v19, %v9825_v19 }
 0x592   : > { %4807 = vadd.xlane.f32.xlu1 %v4788_v52 }
 0x593   : > { %v4639_v58 = vpop.f32.mrf.mxu0 }
 0x594   : > { %v4640_v34 = vadd.f32 %v9804_v59, %v4639_v58  ;;  %v4688_v24 = vpop.f32.mrf.mxu1 }
 0x596   : > { %v9831_v5 = vadd.f32 %v4688_v24, %v4640_v34 }
 0x598   : > { %4745 = vadd.xlane.f32.xlu2 %v9831_v5  ;;  %v4789_v50 = vmul.f32 %v9831_v5, %v9831_v5 }
 0x59a   : > { %4809 = vadd.xlane.f32.xlu1 %v4789_v50 }
 0x59b   : > { %v4641_v1 = vpop.f32.mrf.mxu0 }
 0x59c   : > { %v4642_v14 = vadd.f32 %v9804_v59, %v4641_v1  ;;  %v4690_v36 = vpop.f32.mrf.mxu1 }
 0x59e   : > { %v9837_v53 = vadd.f32 %v4690_v36, %v4642_v14 }
 0x5a0   : > { %4747 = vadd.xlane.f32.xlu0 %v9837_v53  ;;  %v4790_v57 = vmul.f32 %v9837_v53, %v9837_v53 }
 0x5a2   : > { %4811 = vadd.xlane.f32.xlu2 %v4790_v57 }
 0x5a3   : > { %v4644_v8 = vpop.f32.mrf.mxu0 }
 0x5a4   : > { %v4645_v51 = vadd.f32 %v9804_v59, %v4644_v8  ;;  %v4693_v42 = vpop.f32.mrf.mxu1 }
 0x5a6   : > { %v9843_v62 = vadd.f32 %v4693_v42, %v4645_v51 }
 0x5a8   : > { %4749 = vadd.xlane.f32.xlu0 %v9843_v62  ;;  %v4791_v25 = vmul.f32 %v9843_v62, %v9843_v62 }
 0x5aa   : > { %4813 = vadd.xlane.f32.xlu2 %v4791_v25 }
 0x5ab   : > { %v4646_v49 = vpop.f32.mrf.mxu0 }
 0x5ac   : > { %v4647_v46 = vadd.f32 %v9804_v59, %v4646_v49  ;;  %v4695_v40 = vpop.f32.mrf.mxu1 }
 0x5ae   : > { %v9849_v0 = vadd.f32 %v4695_v40, %v4647_v46 }
 0x5b0   : > { %4751 = vadd.xlane.f32.xlu1 %v9849_v0  ;;  %v4792_v26 = vmul.f32 %v9849_v0, %v9849_v0 }
 0x5b2   : > { %4815 = vadd.xlane.f32.xlu0 %v4792_v26 }
 0x5b3   : > { %v4649_v23 = vpop.f32.mrf.mxu0 }
 0x5b4   : > { %v4650_v10 = vadd.f32 %v9804_v59, %v4649_v23  ;;  %v4698_v12 = vpop.f32.mrf.mxu1 }
 0x5b6   : > { %v9855_v16 = vadd.f32 %v4698_v12, %v4650_v10 }
 0x5b8   : > { %4753 = vadd.xlane.f32.xlu1 %v9855_v16  ;;  %v4793_v22 = vmul.f32 %v9855_v16, %v9855_v16 }
 0x5ba   : > { %4817 = vadd.xlane.f32.xlu0 %v4793_v22 }
 0x5bb   : > { %v4651_v35 = vpop.f32.mrf.mxu0 }
 0x5bc   : > { %v4652_v7 = vadd.f32 %v9804_v59, %v4651_v35  ;;  %v4700_v3 = vpop.f32.mrf.mxu1 }
 0x5be   : > { %v9861_v54 = vadd.f32 %v4700_v3, %v4652_v7 }
 0x5c0   : > { %4755 = vadd.xlane.f32.xlu2 %v9861_v54  ;;  %v4794_v41 = vmul.f32 %v9861_v54, %v9861_v54 }
 0x5c2   : > { %4819 = vadd.xlane.f32.xlu1 %v4794_v41 }
 0x5c3   : > { %v4654_v17 = vpop.f32.mrf.mxu0 }
 0x5c4   : > { %v4655_v30 = vadd.f32 %v9804_v59, %v4654_v17  ;;  %v4703_v6 = vpop.f32.mrf.mxu1 }
 0x5c6   : > { %v9867_v2 = vadd.f32 %v4703_v6, %v4655_v30 }
 0x5c8   : > { %4757 = vadd.xlane.f32.xlu2 %v9867_v2  ;;  %v4795_v15 = vmul.f32 %v9867_v2, %v9867_v2 }
 0x5ca   : > { %4821 = vadd.xlane.f32.xlu1 %v4795_v15 }
 0x5cb   : > { %v4656_v31 = vpop.f32.mrf.mxu0 }
 0x5cc   : > { %v4657_v60 = vadd.f32 %v9804_v59, %v4656_v31  ;;  %v4705_v28 = vpop.f32.mrf.mxu1 }
 0x5ce   : > { %v9873_v38 = vadd.f32 %v4705_v28, %v4657_v60 }
 0x5d0   : > { %4759 = vadd.xlane.f32.xlu0 %v9873_v38  ;;  %v4796_v45 = vmul.f32 %v9873_v38, %v9873_v38 }
 0x5d2   : > { %4823 = vadd.xlane.f32.xlu2 %v4796_v45 }
 0x5d3   : > { %v4659_v9 = vpop.f32.mrf.mxu0 }
 0x5d4   : > { %v4660_v11 = vadd.f32 %v9804_v59, %v4659_v9  ;;  %v4708_v55 = vpop.f32.mrf.mxu1 }
 0x5d6   : > { %v9879_v21 = vadd.f32 %v4708_v55, %v4660_v11 }
 0x5d8   : > { %4761 = vadd.xlane.f32.xlu0 %v9879_v21  ;;  %v4797_v13 = vmul.f32 %v9879_v21, %v9879_v21 }
 0x5da   : > { %4825 = vadd.xlane.f32.xlu2 %v4797_v13 }
 0x5db   : > { %v4661_v39 = vpop.f32.mrf.mxu0 }
 0x5dc   : > { %v4662_v44 = vadd.f32 %v9804_v59, %v4661_v39  ;;  %v4710_v32 = vpop.f32.mrf.mxu1 }
 0x5de   : > { %v9885_v33 = vadd.f32 %v4710_v32, %v4662_v44 }
 0x5e0   : > { %4763 = vadd.xlane.f32.xlu1 %v9885_v33  ;;  %v4798_v63 = vmul.f32 %v9885_v33, %v9885_v33 }
 0x5e2   : > { %4827 = vadd.xlane.f32.xlu0 %v4798_v63 }
 0x5e3   : > { %v4664_v4 = vpop.f32.mrf.mxu0 }
 0x5e4   : > { %v4665_v61 = vadd.f32 %v9804_v59, %v4664_v4  ;;  %v4713_v37 = vpop.f32.mrf.mxu1  ;;  %v9909_v4 = vld [vmem:[#allocation16] ss:$0 sm:$0xff] }
 0x5e6   : > { %v9891_v43 = vadd.f32 %v4713_v37, %v4665_v61 }
 0x5e8   : > { %4765 = vadd.xlane.f32.xlu1 %v9891_v43  ;;  %v4799_v58 = vmul.f32 %v9891_v43, %v9891_v43 }
 0x5e9   : > { %v4738_v52 = vpop.xlane.xlu0 %4737 }
 0x5ea   : > { %v4769_v34 = vmul.f32 0.0078125, %v4738_v52  ;;  %4829 = vadd.xlane.f32.xlu0 %v4799_v58 }
 0x5eb   : > { %v4802_v24 = vpop.xlane.xlu2 %4801  ;;  %v4666_v14 = vpop.f32.mrf.mxu0 }
 0x5ec   : > { %v4849_v50 = vmul.f32 %v4769_v34, %v4769_v34  ;;  %v4833_v1 = vmul.f32 0.0078125, %v4802_v24  ;;  %v4667_v36 = vadd.f32 %v9804_v59, %v4666_v14  ;;  %v4715_v57 = vpop.f32.mrf.mxu1  ;;  %v4897_v13 = vsub.f32 %v9807_v56, %v4769_v34  ;;  %v9916_v56 = vld [vmem:[%s10101_s16] ss:$0 sm:$0xff] }
 0x5ee   : > { %v4865_v29 = vsub.f32 %v4833_v1, %v4849_v50  ;;  %v9897_v8 = vadd.f32 %v4715_v57, %v4667_v36 }
 0x5f0   : > { %v4881_v51 = vmax.f32 %v4865_v29, 0.0  ;;  %4767 = vadd.xlane.f32.xlu2 %v9897_v8  ;;  %v4800_v49 = vmul.f32 %v9897_v8, %v9897_v8 }
 0x5f1   : > { %v4740_v42 = vpop.xlane.xlu1 %4739 }
 0x5f2   : > { %v4913_v25 = vadd.f32 1e-05, %v4881_v51  ;;  %v4770_v46 = vmul.f32 0.0078125, %v4740_v42  ;;  %4831 = vadd.xlane.f32.xlu1 %v4800_v49 }
 0x5f3   : > { %v4804_v40 = vpop.xlane.xlu0 %4803 }
 0x5f4   : > { %6448 = vrsqrt.f32 %v4913_v25  ;;  %v4850_v26 = vmul.f32 %v4770_v46, %v4770_v46  ;;  %v4834_v23 = vmul.f32 0.0078125, %v4804_v40  ;;  %vm4935_vm2 = vweird.f32 %v4913_v25 }
 0x5f5   : > { %v4898_v14 = vsub.f32 %v9813_v48, %v4770_v46 }
 0x5f6   : > { %v4866_v59 = vsub.f32 %v4834_v23, %v4850_v26 }
 0x5f8   : > { %v4882_v10 = vmax.f32 %v4866_v59, 0.0 }
 0x5fa   : > { %v6449_v12 = vpop.eup %6448  ;;  %v4914_v35 = vadd.f32 1e-05, %v4882_v10 }
 0x5fb   : > { %v4930_v22 = vmul.f32 %v6449_v12, %v4913_v25  ;;  %v4742_v3 = vpop.xlane.xlu1 %4741  ;;  %vm4936_vm1 = vweird.f32 %v6449_v12 }
 0x5fc   : > { %6450 = vrsqrt.f32 %v4914_v35  ;;  %v9902_v20 = vmul.f32 0.0078125, %v4742_v3  ;;  %vm4937_vm3 = vmor %vm4935_vm2, %vm4936_vm1  ;;  %vm4945_vm5 = vweird.f32 %v4914_v35 }
 0x5fd   : > { %v4931_v7 = vmul.f32 %v6449_v12, %v4930_v22  ;;  %v4806_v17 = vpop.xlane.xlu0 %4805 }
 0x5fe   : > { %v4851_v30 = vmul.f32 %v9902_v20, %v9902_v20  ;;  %v4835_v6 = vmul.f32 0.0078125, %v4806_v17 }
 0x5ff   : > { %v4932_v41 = vmul.f32 0.5, %v4931_v7 }
 0x600   : > { %v4867_v31 = vsub.f32 %v4835_v6, %v4851_v30 }
 0x601   : > { %v4933_v15 = vsub.f32 1.5, %v4932_v41 }
 0x602   : > { %v6451_v60 = vpop.eup %6450  ;;  %v4883_v9 = vmax.f32 %v4867_v31, 0.0 }
 0x603   : > { %v4934_v28 = vmul.f32 %v6449_v12, %v4933_v15  ;;  %v4940_v45 = vmul.f32 %v6451_v60, %v4914_v35  ;;  %v4744_v55 = vpop.xlane.xlu2 %4743  ;;  %vm4946_vm4 = vweird.f32 %v6451_v60 }
 0x604   : > { %v4915_v44 = vadd.f32 1e-05, %v4883_v9  ;;  %v9907_v32 = vmul.f32 0.0078125, %v4744_v55  ;;  %vm4947_vm6 = vmor %vm4945_vm5, %vm4946_vm4 }
 0x605   : > { %v4938_v11 = vsel %vm4937_vm3, %v6449_v12, %v4934_v28  ;;  %v4941_v39 = vmul.f32 %v6451_v60, %v4940_v45  ;;  %v4808_v63 = vpop.xlane.xlu1 %4807 }
 0x606   : > { %v5089_v61 = vmul.f32 %v4938_v11, %v4897_v13  ;;  %6452 = vrsqrt.f32 %v4915_v44  ;;  %v4852_v52 = vmul.f32 %v9907_v32, %v9907_v32  ;;  %v4836_v58 = vmul.f32 0.0078125, %v4808_v63 }
 0x607   : > { %v4942_v37 = vmul.f32 0.5, %v4941_v39  ;;  %vm4955_vm10 = vweird.f32 %v4915_v44  ;;  %v4899_v13 = vsub.f32 %v9819_v18, %v9902_v20 }
 0x608   : > { %v4868_v50 = vsub.f32 %v4836_v58, %v4852_v52  ;;  %v5108_v34 = vmul.f32 %v9909_v4, %v5089_v61 }
 0x609   : > { %v4943_v24 = vsub.f32 1.5, %v4942_v37 }
 0x60a   : > { %v4884_v36 = vmax.f32 %v4868_v50, 0.0  ;;  %v5127_v26 = vadd.f32 %v9916_v56, %v5108_v34 }
 0x60b   : > { %v4944_v1 = vmul.f32 %v6451_v60, %v4943_v24  ;;  %v4746_v29 = vpop.xlane.xlu2 %4745 }
 0x60c   : > { %v6453_v57 = vpop.eup %6452  ;;  %v9920_v42 = vmul.f32 0.0078125, %v4746_v29  ;;  %v4916_v40 = vadd.f32 1e-05, %v4884_v36  ;;  %v5159_v7 = vmul.f32 0.01, %v5127_v26  ;;  %vm5143_vm9 = vcmp.ge.f32.partialorder %v5127_v26, 0.0 }
 0x60d   : > { %v4948_v51 = vsel %vm4947_vm6, %v6451_v60, %v4944_v1  ;;  %v4950_v49 = vmul.f32 %v6453_v57, %v4915_v44  ;;  %v4810_v27 = vpop.xlane.xlu1 %4809  ;;  %vm4956_vm7 = vweird.f32 %v6453_v57 }
 0x60e   : > { %v5090_v25 = vmul.f32 %v4948_v51, %v4898_v14  ;;  %v4853_v23 = vmul.f32 %v9920_v42, %v9920_v42  ;;  %v4837_v59 = vmul.f32 0.0078125, %v4810_v27  ;;  %6454 = vrsqrt.f32 %v4916_v40  ;;  %vm4957_vm11 = vmor %vm4955_vm10, %vm4956_vm7 }
 0x60f   : > { %v4951_v48 = vmul.f32 %v6453_v57, %v4950_v49  ;;  %v5175_v55 = vsel %vm5143_vm9, %v5127_v26, %v5159_v7  ;;  %vm4965_vm13 = vweird.f32 %v4916_v40  ;;  %v4900_v51 = vsub.f32 %v9825_v19, %v9907_v32 }
 0x610   : > { %v5109_v10 = vmul.f32 %v9909_v4, %v5090_v25  ;;  %v4869_v46 = vsub.f32 %v4837_v59, %v4853_v23 }
 0x611   : > { %v4952_v22 = vmul.f32 0.5, %v4951_v48 }
 0x612   : > { %v5128_v12 = vadd.f32 %v9916_v56, %v5109_v10  ;;  %v4885_v35 = vmax.f32 %v4869_v46, 0.0 }
 0x613   : > { %v4953_v3 = vsub.f32 1.5, %v4952_v22  ;;  %v4748_v41 = vpop.xlane.xlu0 %4747 }
 0x614   : > { %vm5144_vm8 = vcmp.ge.f32.partialorder %v5128_v12, 0.0  ;;  %v5160_v17 = vmul.f32 0.01, %v5128_v12  ;;  %v4917_v30 = vadd.f32 1e-05, %v4885_v35  ;;  %v9927_v6 = vmul.f32 0.0078125, %v4748_v41  ;;  %v6455_v15 = vpop.eup %6454 }
 0x615   : > { %v4954_v31 = vmul.f32 %v6453_v57, %v4953_v3  ;;  %v4812_v60 = vpop.xlane.xlu2 %4811  ;;  %v4960_v47 = vmul.f32 %v6455_v15, %v4916_v40  ;;  %vm4966_vm12 = vweird.f32 %v6455_v15 }
 0x616   : > { %v5176_v28 = vsel %vm5144_vm8, %v5128_v12, %v5160_v17  ;;  %6456 = vrsqrt.f32 %v4917_v30  ;;  %v4854_v9 = vmul.f32 %v9927_v6, %v9927_v6  ;;  %v4838_v11 = vmul.f32 0.0078125, %v4812_v60  ;;  %vm4967_vm14 = vmor %vm4965_vm13, %vm4966_vm12 }
 0x617   : > { %v4958_v45 = vsel %vm4957_vm11, %v6453_v57, %v4954_v31  ;;  %v4961_v39 = vmul.f32 %v6455_v15, %v4960_v47  ;;  %v5191_v63 = vpack.c.bf16 %v5176_v28, %v5175_v55  ;;  %vm4975_vm0 = vweird.f32 %v4917_v30 }
 0x618   : > { %v4870_v61 = vsub.f32 %v4838_v11, %v4854_v9  ;;  %v5091_v37 = vmul.f32 %v4958_v45, %v4899_v13  ;;  %v4901_v60 = vsub.f32 %v9831_v5, %v9920_v42 }
 0x619   : > { %v4962_v52 = vmul.f32 0.5, %v4961_v39  ;;  %5258 = vmatmul.bf16.vlgmr.msra.gmra.mxu2 %v5191_v63 }
 0x61a   : > { %v4886_v44 = vmax.f32 %v4870_v61, 0.0  ;;  %v5110_v57 = vmul.f32 %v9909_v4, %v5091_v37 }
 0x61b   : > { %v4750_v58 = vpop.xlane.xlu0 %4749  ;;  %v4963_v50 = vsub.f32 1.5, %v4962_v52 }
 0x61c   : > { %v6457_v24 = vpop.eup %6456  ;;  %v9933_v34 = vmul.f32 0.0078125, %v4750_v58  ;;  %v4918_v14 = vadd.f32 1e-05, %v4886_v44  ;;  %v5129_v59 = vadd.f32 %v9916_v56, %v5110_v57 }
 0x61d   : > { %v4970_v1 = vmul.f32 %v6457_v24, %v4917_v30  ;;  %v4814_v36 = vpop.xlane.xlu2 %4813  ;;  %v4964_v29 = vmul.f32 %v6455_v15, %v4963_v50  ;;  %vm4976_vm15 = vweird.f32 %v6457_v24 }
 0x61e   : > { %v4855_v18 = vmul.f32 %v9933_v34, %v9933_v34  ;;  %v4839_v20 = vmul.f32 0.0078125, %v4814_v36  ;;  %6458 = vrsqrt.f32 %v4918_v14  ;;  %vm4977_vm1 = vmor %vm4975_vm0, %vm4976_vm15  ;;  %v5161_v41 = vmul.f32 0.01, %v5129_v59 }
 0x61f   : > { %v4971_v25 = vmul.f32 %v6457_v24, %v4970_v1  ;;  %v4968_v49 = vsel %vm4967_vm14, %v6455_v15, %v4964_v29  ;;  %vm5145_vm2 = vcmp.ge.f32.partialorder %v5129_v59, 0.0  ;;  %vm4985_vm5 = vweird.f32 %v4918_v14 }
 0x620   : > { %v4871_v27 = vsub.f32 %v4839_v20, %v4855_v18  ;;  %v5092_v26 = vmul.f32 %v4968_v49, %v4900_v51  ;;  %v5177_v11 = vsel %vm5145_vm2, %v5129_v59, %v5161_v41  ;;  %v4902_v36 = vsub.f32 %v9837_v53, %v9927_v6 }
 0x621   : > { %v4972_v40 = vmul.f32 0.5, %v4971_v25 }
 0x622   : > { %v4887_v23 = vmax.f32 %v4871_v27, 0.0  ;;  %v5111_v46 = vmul.f32 %v9909_v4, %v5092_v26 }
 0x623   : > { %v4973_v10 = vsub.f32 1.5, %v4972_v40  ;;  %v4752_v48 = vpop.xlane.xlu1 %4751 }
 0x624   : > { %v4919_v12 = vadd.f32 1e-05, %v4887_v23  ;;  %v9942_v22 = vmul.f32 0.0078125, %v4752_v48  ;;  %v6459_v35 = vpop.eup %6458  ;;  %v5130_v7 = vadd.f32 %v9916_v56, %v5111_v46 }
 0x625   : > { %v4974_v19 = vmul.f32 %v6457_v24, %v4973_v10  ;;  %v4816_v32 = vpop.xlane.xlu0 %4815  ;;  %v4980_v3 = vmul.f32 %v6459_v35, %v4918_v14  ;;  %vm4986_vm4 = vweird.f32 %v6459_v35 }
 0x626   : > { %6460 = vrsqrt.f32 %v4919_v12  ;;  %v4856_v15 = vmul.f32 %v9942_v22, %v9942_v22  ;;  %v4840_v31 = vmul.f32 0.0078125, %v4816_v32  ;;  %vm5146_vm3 = vcmp.ge.f32.partialorder %v5130_v7, 0.0  ;;  %vm4987_vm6 = vmor %vm4985_vm5, %vm4986_vm4 }
 0x627   : > { %v4978_v17 = vsel %vm4977_vm1, %v6457_v24, %v4974_v19  ;;  %v4981_v28 = vmul.f32 %v6459_v35, %v4980_v3  ;;  %v5162_v47 = vmul.f32 0.01, %v5130_v7  ;;  %vm4995_vm8 = vweird.f32 %v4919_v12 }
 0x628   : > { %v4872_v30 = vsub.f32 %v4840_v31, %v4856_v15  ;;  %v5093_v45 = vmul.f32 %v4978_v17, %v4901_v60 }
 0x629   : > { %v4982_v9 = vmul.f32 0.5, %v4981_v28  ;;  %v5178_v55 = vsel %vm5146_vm3, %v5130_v7, %v5162_v47  ;;  %v4903_v7 = vsub.f32 %v9843_v62, %v9933_v34 }
 0x62a   : > { %v4888_v13 = vmax.f32 %v4872_v30, 0.0  ;;  %v5192_v63 = vpack.c.bf16 %v5178_v55, %v5177_v11  ;;  %v5112_v1 = vmul.f32 %v9909_v4, %v5093_v45 }
 0x62b   : > { %v4754_v39 = vpop.xlane.xlu1 %4753  ;;  %v4983_v37 = vsub.f32 1.5, %v4982_v9 }
 0x62c   : > { %v6461_v61 = vpop.eup %6460  ;;  %v9949_v52 = vmul.f32 0.0078125, %v4754_v39  ;;  %v4920_v58 = vadd.f32 1e-05, %v4888_v13  ;;  %5263 = vmatmul.bf16.gmra.mxu2 %v5192_v63  ;;  %v5131_v25 = vadd.f32 %v9916_v56, %v5112_v1 }
 0x62d   : > { %v4990_v44 = vmul.f32 %v6461_v61, %v4919_v12  ;;  %v4818_v5 = vpop.xlane.xlu0 %4817  ;;  %v4984_v42 = vmul.f32 %v6459_v35, %v4983_v37  ;;  %vm4996_vm7 = vweird.f32 %v6461_v61  ;;  %v4904_v37 = vsub.f32 %v9849_v0, %v9942_v22 }
 0x62e   : > { %v4857_v24 = vmul.f32 %v9949_v52, %v9949_v52  ;;  %v4841_v50 = vmul.f32 0.0078125, %v4818_v5  ;;  %6462 = vrsqrt.f32 %v4920_v58  ;;  %vm4997_vm9 = vmor %vm4995_vm8, %vm4996_vm7  ;;  %v5163_v46 = vmul.f32 0.01, %v5131_v25 }
 0x62f   : > { %v4991_v29 = vmul.f32 %v6461_v61, %v4990_v44  ;;  %v4988_v18 = vsel %vm4987_vm6, %v6459_v35, %v4984_v42  ;;  %vm5147_vm10 = vcmp.ge.f32.partialorder %v5131_v25, 0.0  ;;  %vm5005_vm13 = vweird.f32 %v4920_v58 }
 0x630   : > { %v4873_v20 = vsub.f32 %v4841_v50, %v4857_v24  ;;  %v5094_v14 = vmul.f32 %v4988_v18, %v4902_v36  ;;  %v5179_v31 = vsel %vm5147_vm10, %v5131_v25, %v5163_v46 }
 0x631   : > { %v4992_v57 = vmul.f32 0.5, %v4991_v29 }
 0x632   : > { %v4889_v51 = vmax.f32 %v4873_v20, 0.0  ;;  %v5113_v26 = vmul.f32 %v9909_v4, %v5094_v14 }
 0x633   : > { %v4993_v49 = vsub.f32 1.5, %v4992_v57  ;;  %v4756_v27 = vpop.xlane.xlu2 %4755 }
 0x634   : > { %v4921_v40 = vadd.f32 1e-05, %v4889_v51  ;;  %v9958_v23 = vmul.f32 0.0078125, %v4756_v27  ;;  %v6463_v59 = vpop.eup %6462  ;;  %v5132_v10 = vadd.f32 %v9916_v56, %v5113_v26 }
 0x635   : > { %v4994_v53 = vmul.f32 %v6461_v61, %v4993_v49  ;;  %v4820_v6 = vpop.xlane.xlu1 %4819  ;;  %v5000_v48 = vmul.f32 %v6463_v59, %v4920_v58  ;;  %vm5006_vm12 = vweird.f32 %v6463_v59 }
 0x636   : > { %6464 = vrsqrt.f32 %v4921_v40  ;;  %v4858_v19 = vmul.f32 %v9958_v23, %v9958_v23  ;;  %v4842_v32 = vmul.f32 0.0078125, %v4820_v6  ;;  %vm5148_vm11 = vcmp.ge.f32.partialorder %v5132_v10, 0.0  ;;  %vm5007_vm14 = vmor %vm5005_vm13, %vm5006_vm12 }
 0x637   : > { %v4998_v35 = vsel %vm4997_vm9, %v6461_v61, %v4994_v53  ;;  %v5001_v3 = vmul.f32 %v6463_v59, %v5000_v48  ;;  %v5164_v41 = vmul.f32 0.01, %v5132_v10  ;;  %vm5015_vm0 = vweird.f32 %v4921_v40 }
 0x638   : > { %v4874_v12 = vsub.f32 %v4842_v32, %v4858_v19  ;;  %v5095_v17 = vmul.f32 %v4998_v35, %v4903_v7  ;;  %v4905_v53 = vsub.f32 %v9855_v16, %v9949_v52 }
 0x639   : > { %v5002_v15 = vmul.f32 0.5, %v5001_v3  ;;  %v5180_v60 = vsel %vm5148_vm11, %v5132_v10, %v5164_v41 }
 0x63a   : > { %v4890_v28 = vmax.f32 %v4874_v12, 0.0  ;;  %v5193_v30 = vpack.c.bf16 %v5180_v60, %v5179_v31  ;;  %v5114_v61 = vmul.f32 %v9909_v4, %v5095_v17 }
 0x63b   : > { %v4758_v47 = vpop.xlane.xlu2 %4757  ;;  %v5003_v9 = vsub.f32 1.5, %v5002_v15 }
 0x63c   : > { %v6465_v45 = vpop.eup %6464  ;;  %v9965_v11 = vmul.f32 0.0078125, %v4758_v47  ;;  %v4922_v13 = vadd.f32 1e-05, %v4890_v28  ;;  %5268 = vmatmul.bf16.gmra.mxu2 %v5193_v30  ;;  %v5133_v1 = vadd.f32 %v9916_v56, %v5114_v61  ;;  %v4906_v30 = vsub.f32 %v9861_v54, %v9958_v23 }
 0x63d   : > { %v5010_v55 = vmul.f32 %v6465_v45, %v4921_v40  ;;  %v4822_v62 = vpop.xlane.xlu1 %4821  ;;  %v5004_v34 = vmul.f32 %v6463_v59, %v5003_v9  ;;  %vm5016_vm15 = vweird.f32 %v6465_v45 }
 0x63e   : > { %v4859_v39 = vmul.f32 %v9965_v11, %v9965_v11  ;;  %v4843_v63 = vmul.f32 0.0078125, %v4822_v62  ;;  %6466 = vrsqrt.f32 %v4922_v13  ;;  %vm5017_vm1 = vmor %vm5015_vm0, %vm5016_vm15  ;;  %v5165_v49 = vmul.f32 0.01, %v5133_v1 }
 0x63f   : > { %v5011_v44 = vmul.f32 %v6465_v45, %v5010_v55  ;;  %v5008_v5 = vsel %vm5007_vm14, %v6463_v59, %v5004_v34  ;;  %vm5149_vm2 = vcmp.ge.f32.partialorder %v5133_v1, 0.0  ;;  %vm5025_vm5 = vweird.f32 %v4922_v13 }
 0x640   : > { %v4875_v42 = vsub.f32 %v4843_v63, %v4859_v39  ;;  %v5096_v58 = vmul.f32 %v5008_v5, %v4904_v37  ;;  %v5181_v35 = vsel %vm5149_vm2, %v5133_v1, %v5165_v49 }
 0x641   : > { %v5012_v24 = vmul.f32 0.5, %v5011_v44 }
 0x642   : > { %v4891_v50 = vmax.f32 %v4875_v42, 0.0  ;;  %v5115_v18 = vmul.f32 %v9909_v4, %v5096_v58 }
 0x643   : > { %v5013_v36 = vsub.f32 1.5, %v5012_v24  ;;  %v4760_v29 = vpop.xlane.xlu0 %4759 }
 0x644   : > { %v4923_v20 = vadd.f32 1e-05, %v4891_v50  ;;  %v9974_v14 = vmul.f32 0.0078125, %v4760_v29  ;;  %v6467_v57 = vpop.eup %6466  ;;  %v5134_v51 = vadd.f32 %v9916_v56, %v5115_v18  ;;  %v4907_v18 = vsub.f32 %v9867_v2, %v9965_v11 }
 0x645   : > { %v5014_v0 = vmul.f32 %v6465_v45, %v5013_v36  ;;  %v4824_v22 = vpop.xlane.xlu2 %4823  ;;  %v5020_v25 = vmul.f32 %v6467_v57, %v4922_v13  ;;  %vm5026_vm4 = vweird.f32 %v6467_v57 }
 0x646   : > { %6468 = vrsqrt.f32 %v4923_v20  ;;  %v4860_v26 = vmul.f32 %v9974_v14, %v9974_v14  ;;  %v4844_v59 = vmul.f32 0.0078125, %v4824_v22  ;;  %vm5150_vm3 = vcmp.ge.f32.partialorder %v5134_v51, 0.0  ;;  %vm5027_vm6 = vmor %vm5025_vm5, %vm5026_vm4 }
 0x647   : > { %v5018_v27 = vsel %vm5017_vm1, %v6465_v45, %v5014_v0  ;;  %v5021_v6 = vmul.f32 %v6467_v57, %v5020_v25  ;;  %v5166_v10 = vmul.f32 0.01, %v5134_v51  ;;  %vm5035_vm8 = vweird.f32 %v4923_v20 }
 0x648   : > { %v4876_v40 = vsub.f32 %v4844_v59, %v4860_v26  ;;  %v5097_v48 = vmul.f32 %v5018_v27, %v4905_v53 }
 0x649   : > { %v5022_v46 = vmul.f32 0.5, %v5021_v6  ;;  %v5182_v19 = vsel %vm5150_vm3, %v5134_v51, %v5166_v10 }
 0x64a   : > { %v4892_v32 = vmax.f32 %v4876_v40, 0.0  ;;  %v5194_v7 = vpack.c.bf16 %v5182_v19, %v5181_v35  ;;  %v5116_v47 = vmul.f32 %v9909_v4, %v5097_v48 }
 0x64b   : > { %v4762_v3 = vpop.xlane.xlu0 %4761  ;;  %v5023_v12 = vsub.f32 1.5, %v5022_v46 }
 0x64c   : > { %v6469_v41 = vpop.eup %6468  ;;  %v9981_v17 = vmul.f32 0.0078125, %v4762_v3  ;;  %v4924_v31 = vadd.f32 1e-05, %v4892_v32  ;;  %5273 = vmatmul.bf16.gmra.mxu2 %v5194_v7  ;;  %v5135_v39 = vadd.f32 %v9916_v56, %v5116_v47  ;;  %v4908_v32 = vsub.f32 %v9873_v38, %v9974_v14 }
 0x64d   : > { %v5030_v15 = vmul.f32 %v6469_v41, %v4923_v20  ;;  %v4826_v16 = vpop.xlane.xlu2 %4825  ;;  %v5024_v52 = vmul.f32 %v6467_v57, %v5023_v12  ;;  %vm5036_vm7 = vweird.f32 %v6469_v41 }
 0x64e   : > { %v4861_v60 = vmul.f32 %v9981_v17, %v9981_v17  ;;  %v4845_v28 = vmul.f32 0.0078125, %v4826_v16  ;;  %6470 = vrsqrt.f32 %v4924_v31  ;;  %vm5037_vm9 = vmor %vm5035_vm8, %vm5036_vm7  ;;  %v5167_v50 = vmul.f32 0.01, %v5135_v39 }
 0x64f   : > { %v5031_v45 = vmul.f32 %v6469_v41, %v5030_v15  ;;  %v5028_v9 = vsel %vm5027_vm6, %v6467_v57, %v5024_v52  ;;  %vm5151_vm10 = vcmp.ge.f32.partialorder %v5135_v39, 0.0  ;;  %vm5045_vm13 = vweird.f32 %v4924_v31 }
 0x650   : > { %v4877_v55 = vsub.f32 %v4845_v28, %v4861_v60  ;;  %v5098_v13 = vmul.f32 %v5028_v9, %v4906_v30  ;;  %v5183_v25 = vsel %vm5151_vm10, %v5135_v39, %v5167_v50 }
 0x651   : > { %v5032_v62 = vmul.f32 0.5, %v5031_v45 }
 0x652   : > { %v4893_v34 = vmax.f32 %v4877_v55, 0.0  ;;  %v5117_v37 = vmul.f32 %v9909_v4, %v5098_v13  ;;  %v4909_v55 = vsub.f32 %v9879_v21, %v9981_v17 }
 0x653   : > { %v5033_v63 = vsub.f32 1.5, %v5032_v62  ;;  %v4764_v61 = vpop.xlane.xlu1 %4763 }
 0x654   : > { %v4925_v44 = vadd.f32 1e-05, %v4893_v34  ;;  %v9990_v5 = vmul.f32 0.0078125, %v4764_v61  ;;  %v6471_v42 = vpop.eup %6470  ;;  %v5136_v58 = vadd.f32 %v9916_v56, %v5117_v37 }
 0x655   : > { %v5034_v54 = vmul.f32 %v6469_v41, %v5033_v63  ;;  %v4828_v23 = vpop.xlane.xlu0 %4827  ;;  %v5040_v24 = vmul.f32 %v6471_v42, %v4924_v31  ;;  %vm5046_vm12 = vweird.f32 %v6471_v42 }
 0x656   : > { %6472 = vrsqrt.f32 %v4925_v44  ;;  %v4862_v36 = vmul.f32 %v9990_v5, %v9990_v5  ;;  %v4846_v29 = vmul.f32 0.0078125, %v4828_v23  ;;  %vm5152_vm11 = vcmp.ge.f32.partialorder %v5136_v58, 0.0  ;;  %vm5047_vm14 = vmor %vm5045_vm13, %vm5046_vm12 }
 0x657   : > { %v5038_v1 = vsel %vm5037_vm9, %v6469_v41, %v5034_v54  ;;  %v5041_v57 = vmul.f32 %v6471_v42, %v5040_v24  ;;  %v5168_v0 = vmul.f32 0.01, %v5136_v58  ;;  %vm5055_vm0 = vweird.f32 %v4925_v44 }
 0x658   : > { %v4878_v20 = vsub.f32 %v4846_v29, %v4862_v36  ;;  %v5099_v22 = vmul.f32 %v5038_v1, %v4907_v18 }
 0x659   : > { %v5042_v51 = vmul.f32 0.5, %v5041_v57  ;;  %v5184_v49 = vsel %vm5152_vm11, %v5136_v58, %v5168_v0  ;;  %v4910_v57 = vsub.f32 %v9885_v33, %v9990_v5 }
 0x65a   : > { %v4894_v27 = vmax.f32 %v4878_v20, 0.0  ;;  %v5195_v59 = vpack.c.bf16 %v5184_v49, %v5183_v25  ;;  %v5118_v19 = vmul.f32 %v9909_v4, %v5099_v22 }
 0x65b   : > { %v4766_v26 = vpop.xlane.xlu1 %4765  ;;  %v5043_v6 = vsub.f32 1.5, %v5042_v51 }
 0x65c   : > { %v6473_v53 = vpop.eup %6472  ;;  %v9997_v10 = vmul.f32 0.0078125, %v4766_v26  ;;  %v4926_v48 = vadd.f32 1e-05, %v4894_v27  ;;  %5278 = vmatmul.bf16.gmra.mxu2 %v5195_v59  ;;  %v5137_v16 = vadd.f32 %v9916_v56, %v5118_v19 }
 0x65d   : > { %v5050_v40 = vmul.f32 %v6473_v53, %v4925_v44  ;;  %v4830_v2 = vpop.xlane.xlu0 %4829  ;;  %v5044_v11 = vmul.f32 %v6471_v42, %v5043_v6  ;;  %vm5056_vm15 = vweird.f32 %v6473_v53 }
 0x65e   : > { %v4863_v46 = vmul.f32 %v9997_v10, %v9997_v10  ;;  %v4847_v35 = vmul.f32 0.0078125, %v4830_v2  ;;  %6474 = vrsqrt.f32 %v4926_v48  ;;  %vm5057_vm1 = vmor %vm5055_vm0, %vm5056_vm15  ;;  %v5169_v62 = vmul.f32 0.01, %v5137_v16 }
 0x65f   : > { %v5051_v7 = vmul.f32 %v6473_v53, %v5050_v40  ;;  %v5048_v3 = vsel %vm5047_vm14, %v6471_v42, %v5044_v11  ;;  %vm5153_vm2 = vcmp.ge.f32.partialorder %v5137_v16, 0.0  ;;  %vm5065_vm5 = vweird.f32 %v4926_v48 }
 0x660   : > { %v4879_v41 = vsub.f32 %v4847_v35, %v4863_v46  ;;  %v5100_v12 = vmul.f32 %v5048_v3, %v4908_v32  ;;  %v5185_v23 = vsel %vm5153_vm2, %v5137_v16, %v5169_v62  ;;  %v4911_v5 = vsub.f32 %v9891_v43, %v9997_v10 }
 0x661   : > { %v5052_v15 = vmul.f32 0.5, %v5051_v7 }
 0x662   : > { %v4895_v31 = vmax.f32 %v4879_v41, 0.0  ;;  %v5119_v28 = vmul.f32 %v9909_v4, %v5100_v12 }
 0x663   : > { %v5053_v52 = vsub.f32 1.5, %v5052_v15  ;;  %v4768_v60 = vpop.xlane.xlu2 %4767 }
 0x664   : > { %v4927_v47 = vadd.f32 1e-05, %v4895_v31  ;;  %v10006_v30 = vmul.f32 0.0078125, %v4768_v60  ;;  %v6475_v45 = vpop.eup %6474  ;;  %v5138_v9 = vadd.f32 %v9916_v56, %v5119_v28 }
 0x665   : > { %v5054_v38 = vmul.f32 %v6473_v53, %v5053_v52  ;;  %v4832_v14 = vpop.xlane.xlu1 %4831  ;;  %v5060_v13 = vmul.f32 %v6475_v45, %v4926_v48  ;;  %vm5066_vm4 = vweird.f32 %v6475_v45 }
 0x666   : > { %6476 = vrsqrt.f32 %v4927_v47  ;;  %v4864_v39 = vmul.f32 %v10006_v30, %v10006_v30  ;;  %v4848_v63 = vmul.f32 0.0078125, %v4832_v14  ;;  %vm5154_vm3 = vcmp.ge.f32.partialorder %v5138_v9, 0.0  ;;  %vm5067_vm6 = vmor %vm5065_vm5, %vm5066_vm4 }
 0x667   : > { %v5058_v34 = vsel %vm5057_vm1, %v6473_v53, %v5054_v38  ;;  %v5061_v61 = vmul.f32 %v6475_v45, %v5060_v13  ;;  %v5170_v37 = vmul.f32 0.01, %v5138_v9  ;;  %vm5075_vm8 = vweird.f32 %v4927_v47 }
 0x668   : > { %v5101_v44 = vmul.f32 %v5058_v34, %v4909_v55  ;;  %v4880_v42 = vsub.f32 %v4848_v63, %v4864_v39  ;;  %v4912_v43 = vsub.f32 %v9897_v8, %v10006_v30  ;;  %v6351_v8 = vld [vmem:[%s10351_s26] ss:$0 sm:$0xff] }
 0x669   : > { %v5062_v54 = vmul.f32 0.5, %v5061_v61  ;;  %v5186_v58 = vsel %vm5154_vm3, %v5138_v9, %v5170_v37 }
 0x66a   : > { %v4896_v24 = vmax.f32 %v4880_v42, 0.0  ;;  %v5196_v21 = vpack.c.bf16 %v5186_v58, %v5185_v23  ;;  %v5120_v29 = vmul.f32 %v9909_v4, %v5101_v44 }
 0x66b   : > { %v5063_v50 = vsub.f32 1.5, %v5062_v54 }
 0x66c   : > { %v6477_v17 = vpop.eup %6476  ;;  %v4928_v36 = vadd.f32 1e-05, %v4896_v24  ;;  %5283 = vmatmul.bf16.gmra.mxu2 %v5196_v21  ;;  %v5139_v25 = vadd.f32 %v9916_v56, %v5120_v29 }
 0x66d   : > { %v5070_v1 = vmul.f32 %v6477_v17, %v4927_v47  ;;  %v5064_v18 = vmul.f32 %v6475_v45, %v5063_v50  ;;  %vm5076_vm7 = vweird.f32 %v6477_v17 }
 0x66e   : > { %6478 = vrsqrt.f32 %v4928_v36  ;;  %v5171_v6 = vmul.f32 0.01, %v5139_v25  ;;  %vm5077_vm9 = vmor %vm5075_vm8, %vm5076_vm7  ;;  %vm5155_vm10 = vcmp.ge.f32.partialorder %v5139_v25, 0.0  ;;  %vm5085_vm13 = vweird.f32 %v4928_v36 }
 0x66f   : > { %v5071_v0 = vmul.f32 %v6477_v17, %v5070_v1  ;;  %v5068_v20 = vsel %vm5067_vm6, %v6475_v45, %v5064_v18 }
 0x670   : > { %v5102_v22 = vmul.f32 %v5068_v20, %v4910_v57  ;;  %v5187_v46 = vsel %vm5155_vm10, %v5139_v25, %v5171_v6 }
 0x671   : > { %v5072_v51 = vmul.f32 0.5, %v5071_v0 }
 0x672   : > { %v5121_v27 = vmul.f32 %v9909_v4, %v5102_v22 }
 0x673   : > { %v5073_v49 = vsub.f32 1.5, %v5072_v51 }
 0x674   : > { %v6479_v26 = vpop.eup %6478  ;;  %v5140_v53 = vadd.f32 %v9916_v56, %v5121_v27 }
 0x675   : > { %v5074_v59 = vmul.f32 %v6477_v17, %v5073_v49  ;;  %v5080_v33 = vmul.f32 %v6479_v26, %v4928_v36  ;;  %vm5086_vm12 = vweird.f32 %v6479_v26 }
 0x676   : > { %vm5156_vm11 = vcmp.ge.f32.partialorder %v5140_v53, 0.0  ;;  %v5172_v48 = vmul.f32 0.01, %v5140_v53  ;;  %vm5087_vm14 = vmor %vm5085_vm13, %vm5086_vm12 }
 0x677   : > { %v5078_v40 = vsel %vm5077_vm9, %v6477_v17, %v5074_v59  ;;  %v5081_v2 = vmul.f32 %v6479_v26, %v5080_v33 }
 0x678   : > { %v5103_v11 = vmul.f32 %v5078_v40, %v4911_v5  ;;  %v5188_v35 = vsel %vm5156_vm11, %v5140_v53, %v5172_v48 }
 0x679   : > { %v5082_v19 = vmul.f32 0.5, %v5081_v2  ;;  %v5197_v32 = vpack.c.bf16 %v5188_v35, %v5187_v46 }
 0x67a   : > { %v5122_v3 = vmul.f32 %v9909_v4, %v5103_v11 }
 0x67b   : > { %v5083_v7 = vsub.f32 1.5, %v5082_v19 }
 0x67c   : > { %5288 = vmatmul.bf16.gmra.mxu2 %v5197_v32  ;;  %v5141_v15 = vadd.f32 %v9916_v56, %v5122_v3 }
 0x67d   : > { %v5084_v41 = vmul.f32 %v6479_v26, %v5083_v7 }
 0x67e   : > { %v5173_v52 = vmul.f32 0.01, %v5141_v15  ;;  %vm5157_vm15 = vcmp.ge.f32.partialorder %v5141_v15, 0.0 }
 0x67f   : > { %v5088_v10 = vsel %vm5087_vm14, %v6479_v26, %v5084_v41 }
 0x680   : > { %v5104_v12 = vmul.f32 %v5088_v10, %v4912_v43  ;;  %v5189_v28 = vsel %vm5157_vm15, %v5141_v15, %v5173_v52 }
 0x682   : > { %v5123_v31 = vmul.f32 %v9909_v4, %v5104_v12 }
 0x684   : > { %v5142_v16 = vadd.f32 %v9916_v56, %v5123_v31 }
 0x686   : > { %vm5158_vm0 = vcmp.ge.f32.partialorder %v5142_v16, 0.0  ;;  %v5174_v60 = vmul.f32 0.01, %v5142_v16 }
 0x688   : > { %v5190_v47 = vsel %vm5158_vm0, %v5142_v16, %v5174_v60 }
 0x689   : > { %v5198_v45 = vpack.c.bf16 %v5190_v47, %v5189_v28 }
 0x68c   : > { %5293 = vmatmul.bf16.gmra.mxu2 %v5198_v45 }
 0x69c   : > { %v5259_v30 = vpop.f32.mrf.mxu2 }
 0x69d   : > { %v5260_v38 = vadd.f32 %v6351_v8, %v5259_v30 }
 0x69f   : > { %5299 = vst [vmem:[%s10033_s5] sm:$0xff] %v5260_v38 }
 0x6a4   : > { %v5261_v4 = vpop.f32.mrf.mxu2 }
 0x6a5   : > { %v5262_v56 = vadd.f32 %v6351_v8, %v5261_v4 }
 0x6a7   : > { %5300 = vst [vmem:[%s10033_s5 + $0x8] sm:$0xff] %v5262_v56 }
 0x6af   : > { %v5264_v14 = vpop.f32.mrf.mxu2 }
 0x6b0   : > { %v5265_v9 = vadd.f32 %v6351_v8, %v5264_v14 }
 0x6b2   : > { %5301 = vst [vmem:[%s10033_s5 + $0x10] sm:$0xff] %v5265_v9 }
 0x6b7   : > { %v5266_v55 = vpop.f32.mrf.mxu2 }
 0x6b8   : > { %v5267_v13 = vadd.f32 %v6351_v8, %v5266_v55 }
 0x6ba   : > { %5302 = vst [vmem:[%s10033_s5 + $0x18] sm:$0xff] %v5267_v13 }
 0x6bf   : > { %v5269_v62 = vpop.f32.mrf.mxu2 }
 0x6c0   : > { %v5270_v34 = vadd.f32 %v6351_v8, %v5269_v62 }
 0x6c2   : > { %5303 = vst [vmem:[%s10033_s5 + $0x20] sm:$0xff] %v5270_v34 }
 0x6c7   : > { %v5271_v39 = vpop.f32.mrf.mxu2 }
 0x6c8   : > { %v5272_v63 = vadd.f32 %v6351_v8, %v5271_v39 }
 0x6ca   : > { %5304 = vst [vmem:[%s10033_s5 + $0x28] sm:$0xff] %v5272_v63 }
 0x6cf   : > { %v5274_v61 = vpop.f32.mrf.mxu2 }
 0x6d0   : > { %v5275_v37 = vadd.f32 %v6351_v8, %v5274_v61 }
 0x6d2   : > { %5305 = vst [vmem:[%s10033_s5 + $0x30] sm:$0xff] %v5275_v37 }
 0x6d7   : > { %v5276_v44 = vpop.f32.mrf.mxu2 }
 0x6d8   : > { %v5277_v42 = vadd.f32 %v6351_v8, %v5276_v44 }
 0x6da   : > { %5306 = vst [vmem:[%s10033_s5 + $0x38] sm:$0xff] %v5277_v42 }
 0x6df   : > { %v5279_v54 = vpop.f32.mrf.mxu2 }
 0x6e0   : > { %v5280_v23 = vadd.f32 %v6351_v8, %v5279_v54 }
 0x6e2   : > { %5307 = vst [vmem:[%s10033_s5 + $0x40] sm:$0xff] %v5280_v23 }
 0x6e7   : > { %v5281_v58 = vpop.f32.mrf.mxu2 }
 0x6e8   : > { %v5282_v24 = vadd.f32 %v6351_v8, %v5281_v58 }
 0x6ea   : > { %5308 = vst [vmem:[%s10033_s5 + $0x48] sm:$0xff] %v5282_v24 }
 0x6ef   : > { %v5284_v21 = vpop.f32.mrf.mxu2 }
 0x6f0   : > { %v5285_v17 = vadd.f32 %v6351_v8, %v5284_v21 }
 0x6f2   : > { %5309 = vst [vmem:[%s10033_s5 + $0x50] sm:$0xff] %v5285_v17 }
 0x6f7   : > { %v5286_v50 = vpop.f32.mrf.mxu2 }
 0x6f8   : > { %v5287_v1 = vadd.f32 %v6351_v8, %v5286_v50 }
 0x6fa   : > { %5310 = vst [vmem:[%s10033_s5 + $0x58] sm:$0xff] %v5287_v1 }
 0x6ff   : > { %v5289_v36 = vpop.f32.mrf.mxu2 }
 0x700   : > { %v5290_v29 = vadd.f32 %v6351_v8, %v5289_v36 }
 0x702   : > { %5311 = vst [vmem:[%s10033_s5 + $0x60] sm:$0xff] %v5290_v29 }
 0x707   : > { %v5291_v18 = vpop.f32.mrf.mxu2 }
 0x708   : > { %v5292_v57 = vadd.f32 %v6351_v8, %v5291_v18 }
 0x70a   : > { %5312 = vst [vmem:[%s10033_s5 + $0x68] sm:$0xff] %v5292_v57 }
 0x70f   : > { %v5294_v0 = vpop.f32.mrf.mxu2 }
 0x710   : > { %v5295_v20 = vadd.f32 %v6351_v8, %v5294_v0 }
 0x712   : > { %5313 = vst [vmem:[%s10033_s5 + $0x70] sm:$0xff] %v5295_v20 }
 0x717   : > { %v5296_v22 = vpop.f32.mrf.mxu2 }
 0x718   : > { %v5297_v51 = vadd.f32 %v6351_v8, %v5296_v22 }
 0x71a   : > { %5314 = vst [vmem:[%s10033_s5 + $0x78] sm:$0xff] %v5297_v51 }
 0x71b   : > { %6807 = shalt.err (!%p6804_p8)
}
 0x71c   : > { %s6882_s21 = smov 128   ;;  %s6883_s5 = smov 8  }
 0x71d   : > { %6242 = dma.vmem_to_hbm [thread:$0]  (%p7022_p5), %s5329_s19, 2048, %s5331_s25, %s5316_s0, %s6882_s21, %s6882_s21, %s6883_s5  }
 0x71e PF: > { %s10354_s2 = sld [smem:[#allocation29_spill]] }
 0x71f   : > { %s10355_s24 = sld [smem:[#allocation27_spill]] }
 0x724   : > { %p6299_p9 = scmp.ge.s32.totalorder %s10354_s2, 2 }
 0x725   : > { %s5345_s1 = sand.u32 1, %s10355_s24  }
 0x726   : > { %p6276_p10 = pnand %p6299_p9, %p7026_p6  ;;  %s5346_s29 = scalar_lea.sflag [#allocation4], %s5345_s1 }
 0x728   : > { %p6277_p11 = pneg %p6276_p10 }
 0x72a   : > { %6849 = dma.done.wait (%p6277_p11), %s5346_s29, 2048  }
 0x72b   : > { %6851 = vsyncadd (%p6277_p11), %s5346_s29, 4294965248  ;;  %s10357_s21 = sld [smem:[#allocation30_spill]]  ;;  %s10360_s0 = smov %s6858_s30 }
 0x72c   : > { %s10358_s27 = sld [smem:[#allocation28_spill]] }
 0x72d   : > { %s10359_s20 = sld [smem:[#allocation31_spill]] }
 0x731   : > { %p35_p12 = scmp.ge.s32.totalorder %s10357_s21, 4  }
 0x732   : > { %s10361_s30 = smov %s10358_s27 }
 0x733   :  { %37 = sbr.rel (!%p35_p12) target bundleno = 18 (0x12), region = 172 }
 0x738   :  { %5352 = vsyncpa [#allocation3], 1 }
 0x739   :  { %5354 = vsyncpa [#allocation3 + $0x1], 1 }
 0x73a   :  { %5355 = vsyncpa [#allocation6], 1 }
 0x73b   :  { %5356 = vsyncpa [#allocation9], 1 }
 0x73c   :  { %5357 = vsyncpa [#allocation12], 1 }
 0x73d   :  { %5358 = vsyncpa [#allocation15], 1 }
 0x73e   :  { %5359 = vsyncpa [#allocation18], 1 }
 0x73f   :  { %5360 = vsyncpa [#allocation4], 1 }
 0x740   :  { %5362 = vsyncpa [#allocation4 + $0x1], 1 }

</bundles_post_ra>
